<compile_context>
chip_gen: v7x
topology: tpu7x:2x2x1
jax: 0.10.0
libtpu: 0.0.40
codegen_flags: <defaults>
</compile_context>

<pallas_src>
import functools

import jax
import jax.numpy as jnp
from jax.experimental import pallas as pl
from jax.experimental.pallas import tpu as pltpu


# ---------------------------------------------------------------------------
# Kernel 1: fused trunk
#   Conv2dInit(3x3, pad 1, +bias) -> residual stack -> ReLU
#   -> ConvTranspose2d(nh -> nh//2, 4, 2, 1) in sub-pixel form (+bias, +ReLU)
# Activations never leave VMEM; convs are tap loops over a padded scratch.
# ---------------------------------------------------------------------------
def _trunk_kernel(xp_ref, win_ref, bin_ref, w1_ref, w2_ref, wd1_ref, bd1_ref,
                  out_ref, pad_ref, *, H, W, nres):
    NB = xp_ref.shape[0]            # batch rows handled by this grid step (=1)
    cin = xp_ref.shape[3]
    nh = pad_ref.shape[3]
    rh = w1_ref.shape[3]
    c2 = wd1_ref.shape[3]
    M = NB * H * W
    f32 = jnp.float32

    # ---- Conv2dInit: 3x3, pad 1 (input arrives pre-padded by 1) ----
    x = jnp.zeros((M, nh), f32)
    for t in range(9):
        dy, dx = t // 3, t % 3
        a = xp_ref[:, dy:dy + H, dx:dx + W, :].reshape(M, cin)
        x = x + jnp.dot(a, win_ref[t], preferred_element_type=f32)
    x = x + bin_ref[...]

    # Zero the padded scratch once; its border stays zero for every later conv.
    pad_ref[...] = jnp.zeros(pad_ref.shape, f32)

    # ---- residual stack: x += Conv1x1(ReLU(Conv3x3(ReLU(x))))  (no biases) ----
    for l in range(nres):
        r = jnp.maximum(x, 0.0)
        pad_ref[:, 1:H + 1, 1:W + 1, :] = r.reshape(NB, H, W, nh)
        h = jnp.zeros((M, rh), f32)
        for t in range(9):
            dy, dx = t // 3, t % 3
            a = pad_ref[:, dy:dy + H, dx:dx + W, :].reshape(M, nh)
            h = h + jnp.dot(a, w1_ref[l, t], preferred_element_type=f32)
        h = jnp.maximum(h, 0.0)
        x = x + jnp.dot(h, w2_ref[l], preferred_element_type=f32)
    x = jnp.maximum(x, 0.0)          # final ReLU of ResidualBlocks

    # ---- ConvTranspose2d(nh -> c2, 4, 2, 1) + ReLU, sub-pixel (phase) form ----
    pad_ref[:, 1:H + 1, 1:W + 1, :] = x.reshape(NB, H, W, nh)
    for py in range(2):
        for px in range(2):
            p = py * 2 + px
            acc = jnp.zeros((M, c2), f32)
            for ry in range(2):
                for rx in range(2):
                    t = ry * 2 + rx
                    a = pad_ref[:, py + ry:py + ry + H,
                                px + rx:px + rx + W, :].reshape(M, nh)
                    acc = acc + jnp.dot(a, wd1_ref[p, t],
                                        preferred_element_type=f32)
            out_ref[p] = jnp.maximum(acc + bd1_ref[...], 0.0)


# ---------------------------------------------------------------------------
# Kernel 2: sub-pixel ConvTranspose2d(c2 -> out_channels, 4, 2, 1)  (no ReLU)
# Input arrives zero-padded by 1 on each spatial side.
# ---------------------------------------------------------------------------
def _subpixel_deconv_kernel(up_ref, wd_ref, b_ref, out_ref, *, H, W, relu):
    NB = up_ref.shape[0]
    cin = up_ref.shape[3]
    cout = wd_ref.shape[3]
    M = NB * H * W
    f32 = jnp.float32
    for py in range(2):
        for px in range(2):
            p = py * 2 + px
            acc = jnp.zeros((M, cout), f32)
            for ry in range(2):
                for rx in range(2):
                    t = ry * 2 + rx
                    a = up_ref[:, py + ry:py + ry + H,
                               px + rx:px + rx + W, :].reshape(M, cin)
                    acc = acc + jnp.dot(a, wd_ref[p, t],
                                        preferred_element_type=f32)
            acc = acc + b_ref[...]
            if relu:
                acc = jnp.maximum(acc, 0.0)
            out_ref[p] = acc


# ---------------------------------------------------------------------------
# Wrappers (weight prep / pixel shuffle are tiny XLA glue)
# ---------------------------------------------------------------------------
def _conv3x3_taps(w_oihw):
    """PyTorch conv weight (Cout, Cin, 3, 3) -> (9, Cin, Cout) tap matrices."""
    cout, cin = w_oihw.shape[0], w_oihw.shape[1]
    return jnp.transpose(w_oihw, (2, 3, 1, 0)).reshape(9, cin, cout)


def _phase_weights(wt):
    """ConvTranspose2d weight (Cin, Cout, 4, 4) -> sub-pixel weights (4, 4, Cin, Cout).

    With the low-res input zero-padded by 1 (xpad), output phase p = py*2+px at
    low-res pixel (i, j) is sum_{ry,rx} xpad[i+py+ry, j+px+rx] @ out[p, ry*2+rx].
    """
    taps = []
    for py in range(2):
        for px in range(2):
            for ry in range(2):
                for rx in range(2):
                    taps.append(wt[:, :, 3 - 2 * ry - py, 3 - 2 * rx - px])
    cin, cout = wt.shape[0], wt.shape[1]
    return jnp.stack(taps, axis=0).reshape(4, 4, cin, cout)


def _pixel_shuffle(phases, N, H, W, C):
    """phases: (4, N*H*W, C), phase p = py*2+px  ->  (N, 2H, 2W, C)."""
    t = phases.reshape(2, 2, N, H, W, C)
    t = jnp.transpose(t, (2, 3, 0, 4, 1, 5))     # n, i, py, j, px, c
    return t.reshape(N, 2 * H, 2 * W, C)


def _trunk_call(xp, win, b_in, w1s, w2s, wd1, bd1, *, H, W, nres):
    N, _, _, cin = xp.shape
    nh = win.shape[2]
    rh = w1s.shape[3]
    c2 = wd1.shape[3]
    L = w1s.shape[0]
    kernel = functools.partial(_trunk_kernel, H=H, W=W, nres=nres)
    return pl.pallas_call(
        kernel,
        out_shape=jax.ShapeDtypeStruct((4, N * H * W, c2), jnp.float32),
        grid=(N,),
        in_specs=[
            pl.BlockSpec((1, H + 2, W + 2, cin), lambda n: (n, 0, 0, 0)),
            pl.BlockSpec((9, cin, nh), lambda n: (0, 0, 0)),
            pl.BlockSpec((1, nh), lambda n: (0, 0)),
            pl.BlockSpec((L, 9, nh, rh), lambda n: (0, 0, 0, 0)),
            pl.BlockSpec((L, rh, nh), lambda n: (0, 0, 0)),
            pl.BlockSpec((4, 4, nh, c2), lambda n: (0, 0, 0, 0)),
            pl.BlockSpec((1, c2), lambda n: (0, 0)),
        ],
        out_specs=pl.BlockSpec((4, H * W, c2), lambda n: (0, n, 0)),
        scratch_shapes=[pltpu.VMEM((1, H + 2, W + 2, nh), jnp.float32)],
        compiler_params=pltpu.CompilerParams(
            dimension_semantics=("parallel",)),
    )(xp, win, b_in, w1s, w2s, wd1, bd1)


def _deconv_call(up, wd, b, *, H, W, relu):
    N, _, _, cin = up.shape
    cout = wd.shape[3]
    kernel = functools.partial(_subpixel_deconv_kernel, H=H, W=W, relu=relu)
    return pl.pallas_call(
        kernel,
        out_shape=jax.ShapeDtypeStruct((4, N * H * W, cout), jnp.float32),
        grid=(N,),
        in_specs=[
            pl.BlockSpec((1, H + 2, W + 2, cin), lambda n: (n, 0, 0, 0)),
            pl.BlockSpec((4, 4, cin, cout), lambda n: (0, 0, 0, 0)),
            pl.BlockSpec((1, cout), lambda n: (0, 0)),
        ],
        out_specs=pl.BlockSpec((4, H * W, cout), lambda n: (0, n, 0)),
        compiler_params=pltpu.CompilerParams(
            dimension_semantics=("parallel",)),
    )(up, wd, b)


# ---------------------------------------------------------------------------
# Decoder forward
# ---------------------------------------------------------------------------
def decoder_forward(x_nchw, params):
    N, _, H, W = x_nchw.shape
    nh = params["conv_in_w"].shape[0]
    c2 = params["deconv1_w"].shape[1]
    cout = params["deconv2_w"].shape[1]
    nres = len(params["res"])
    assert nres >= 1

    # weight preprocessing (tiny)
    win = _conv3x3_taps(params["conv_in_w"])                              # (9, cin, nh)
    b_in = params["conv_in_b"].reshape(1, nh).astype(jnp.float32)
    w1s = jnp.stack([_conv3x3_taps(w1) for (w1, _) in params["res"]], 0)  # (L, 9, nh, rh)
    w2s = jnp.stack([jnp.transpose(w2[:, :, 0, 0])
                     for (_, w2) in params["res"]], 0)                    # (L, rh, nh)
    wd1 = _phase_weights(params["deconv1_w"])                             # (4, 4, nh, c2)
    bd1 = params["deconv1_b"].reshape(1, c2).astype(jnp.float32)
    wd2 = _phase_weights(params["deconv2_w"])                             # (4, 4, c2, cout)
    bd2 = params["deconv2_b"].reshape(1, cout).astype(jnp.float32)

    x = jnp.transpose(x_nchw, (0, 2, 3, 1))                               # NCHW -> NHWC
    xp = jnp.pad(x, ((0, 0), (1, 1), (1, 1), (0, 0)))                     # pad for 3x3 conv

    # fused trunk: conv_in + residual stack + ReLU + deconv1 (sub-pixel) + ReLU
    ph1 = _trunk_call(xp, win, b_in, w1s, w2s, wd1, bd1, H=H, W=W, nres=nres)
    u = _pixel_shuffle(ph1, N, H, W, c2)                                  # (N, 2H, 2W, c2)

    # final deconv (sub-pixel), no activation
    up = jnp.pad(u, ((0, 0), (1, 1), (1, 1), (0, 0)))
    ph2 = _deconv_call(up, wd2, bd2, H=2 * H, W=2 * W, relu=False)
    y = _pixel_shuffle(ph2, N, 2 * H, 2 * W, cout)                        # (N, 4H, 4W, cout)

    return jnp.transpose(y, (0, 3, 1, 2))                                 # NHWC -> NCHW


def init_params(key, in_channels, num_hiddens, out_channels,
                num_residual_layers, num_residual_hiddens):
    keys = jax.random.split(key, 6 + 2 * num_residual_layers)
    scale = 0.05
    params = {
        "conv_in_w": scale * jax.random.normal(
            keys[0], (num_hiddens, in_channels, 3, 3), jnp.float32),
        "conv_in_b": scale * jax.random.normal(keys[1], (num_hiddens,), jnp.float32),
        "res": [],
        "deconv1_w": scale * jax.random.normal(
            keys[2], (num_hiddens, num_hiddens // 2, 4, 4), jnp.float32),
        "deconv1_b": scale * jax.random.normal(
            keys[3], (num_hiddens // 2,), jnp.float32),
        "deconv2_w": scale * jax.random.normal(
            keys[4], (num_hiddens // 2, out_channels, 4, 4), jnp.float32),
        "deconv2_b": scale * jax.random.normal(
            keys[5], (out_channels,), jnp.float32),
    }
    for i in range(num_residual_layers):
        k1, k2 = keys[6 + 2 * i], keys[7 + 2 * i]
        w1 = scale * jax.random.normal(
            k1, (num_residual_hiddens, num_hiddens, 3, 3), jnp.float32)
        w2 = scale * jax.random.normal(
            k2, (num_hiddens, num_residual_hiddens, 1, 1), jnp.float32)
        params["res"].append((w1, w2))
    return params


if __name__ == "__main__":
    config = dict(in_channels=4, num_hiddens=32, out_channels=3,
                  num_residual_layers=2, num_residual_hiddens=8)
    key = jax.random.PRNGKey(0)
    pkey, xkey = jax.random.split(key)
    params = init_params(pkey, **config)

    # latent input: (N=2, C=4, H=8, W=8)  -> decoder output (2, 3, 32, 32)
    x = jax.random.normal(xkey, (2, 4, 8, 8), jnp.float32)

    fwd = jax.jit(lambda inp: decoder_forward(inp, params))
    out = fwd(x)
    jax.block_until_ready(out)

    assert out.shape == (2, 3, 32, 32), out.shape
    assert out.dtype == jnp.float32
    print("KERNEL_OK")
</pallas_src>

<mosaic_0001>
module attributes {stable_mosaic.version = 11 : i64} {
  func.func @_trunk_kernel(%arg0: i32, %arg1: memref<1x10x10x4xf32, #tpu.memory_space<vmem>>, %arg2: memref<9x4x32xf32, #tpu.memory_space<vmem>>, %arg3: memref<1x32xf32, #tpu.memory_space<vmem>>, %arg4: memref<2x9x32x8xf32, #tpu.memory_space<vmem>>, %arg5: memref<2x8x32xf32, #tpu.memory_space<vmem>>, %arg6: memref<4x4x32x16xf32, #tpu.memory_space<vmem>>, %arg7: memref<1x16xf32, #tpu.memory_space<vmem>>, %arg8: memref<4x64x16xf32, #tpu.memory_space<vmem>>, %arg9: memref<1x10x10x32xf32, #tpu.memory_space<vmem>>) attributes {dimension_semantics = [#tpu.dimension_semantics<parallel>], iteration_bounds = array<i64: 2>, scalar_prefetch = 0 : i64, scratch_operands = 1 : i64, tpu.core_type = #tpu.core_type<tc>, window_params = [{transform_indices = @transform_0, window_bounds = array<i64: 1, 10, 10, 4>}, {pipeline_mode = #tpu.pipeline_mode<synchronous>, transform_indices = @transform_1, window_bounds = array<i64: 9, 4, 32>}, {pipeline_mode = #tpu.pipeline_mode<synchronous>, transform_indices = @transform_2, window_bounds = array<i64: 1, 32>}, {pipeline_mode = #tpu.pipeline_mode<synchronous>, transform_indices = @transform_3, window_bounds = array<i64: 2, 9, 32, 8>}, {pipeline_mode = #tpu.pipeline_mode<synchronous>, transform_indices = @transform_4, window_bounds = array<i64: 2, 8, 32>}, {pipeline_mode = #tpu.pipeline_mode<synchronous>, transform_indices = @transform_5, window_bounds = array<i64: 4, 4, 32, 16>}, {pipeline_mode = #tpu.pipeline_mode<synchronous>, transform_indices = @transform_6, window_bounds = array<i64: 1, 16>}, {transform_indices = @transform_7, window_bounds = array<i64: 4, 64, 16>}]} {
    %cst = arith.constant 0.000000e+00 : f32
    %0 = vector.broadcast %cst : f32 to vector<64x32xf32>
    %c0 = arith.constant 0 : index
    %c0_0 = arith.constant 0 : index
    %c0_1 = arith.constant 0 : index
    %c0_2 = arith.constant 0 : index
    %1 = vector.load %arg1[%c0, %c0_0, %c0_1, %c0_2] : memref<1x10x10x4xf32, #tpu.memory_space<vmem>>, vector<1x8x8x4xf32>
    %2 = vector.shape_cast %1 : vector<1x8x8x4xf32> to vector<64x4xf32>
    %c0_3 = arith.constant 0 : index
    %c0_4 = arith.constant 0 : index
    %c0_5 = arith.constant 0 : index
    %3 = vector.load %arg2[%c0_3, %c0_4, %c0_5] : memref<9x4x32xf32, #tpu.memory_space<vmem>>, vector<1x4x32xf32>
    %4 = vector.shape_cast %3 : vector<1x4x32xf32> to vector<4x32xf32>
    %cst_6 = arith.constant dense<0.000000e+00> : vector<64x32xf32>
    %5 = tpu.matmul %2, %4, %cst_6 {dimension_numbers = #tpu.dot_dimension_numbers<[1], [0], [0], [1], [0, 0, 1, 1], [], []>} : vector<64x4xf32>, vector<4x32xf32>, vector<64x32xf32> -> vector<64x32xf32>
    %6 = arith.addf %0, %5 : vector<64x32xf32>
    %c0_7 = arith.constant 0 : index
    %c0_8 = arith.constant 0 : index
    %c1 = arith.constant 1 : index
    %c0_9 = arith.constant 0 : index
    %7 = vector.load %arg1[%c0_7, %c0_8, %c1, %c0_9] : memref<1x10x10x4xf32, #tpu.memory_space<vmem>>, vector<1x8x8x4xf32>
    %8 = vector.shape_cast %7 : vector<1x8x8x4xf32> to vector<64x4xf32>
    %c1_10 = arith.constant 1 : index
    %c0_11 = arith.constant 0 : index
    %c0_12 = arith.constant 0 : index
    %9 = vector.load %arg2[%c1_10, %c0_11, %c0_12] : memref<9x4x32xf32, #tpu.memory_space<vmem>>, vector<1x4x32xf32>
    %10 = vector.shape_cast %9 : vector<1x4x32xf32> to vector<4x32xf32>
    %cst_13 = arith.constant dense<0.000000e+00> : vector<64x32xf32>
    %11 = tpu.matmul %8, %10, %cst_13 {dimension_numbers = #tpu.dot_dimension_numbers<[1], [0], [0], [1], [0, 0, 1, 1], [], []>} : vector<64x4xf32>, vector<4x32xf32>, vector<64x32xf32> -> vector<64x32xf32>
    %12 = arith.addf %6, %11 : vector<64x32xf32>
    %c0_14 = arith.constant 0 : index
    %c0_15 = arith.constant 0 : index
    %c2 = arith.constant 2 : index
    %c0_16 = arith.constant 0 : index
    %13 = vector.load %arg1[%c0_14, %c0_15, %c2, %c0_16] : memref<1x10x10x4xf32, #tpu.memory_space<vmem>>, vector<1x8x8x4xf32>
    %14 = vector.shape_cast %13 : vector<1x8x8x4xf32> to vector<64x4xf32>
    %c2_17 = arith.constant 2 : index
    %c0_18 = arith.constant 0 : index
    %c0_19 = arith.constant 0 : index
    %15 = vector.load %arg2[%c2_17, %c0_18, %c0_19] : memref<9x4x32xf32, #tpu.memory_space<vmem>>, vector<1x4x32xf32>
    %16 = vector.shape_cast %15 : vector<1x4x32xf32> to vector<4x32xf32>
    %cst_20 = arith.constant dense<0.000000e+00> : vector<64x32xf32>
    %17 = tpu.matmul %14, %16, %cst_20 {dimension_numbers = #tpu.dot_dimension_numbers<[1], [0], [0], [1], [0, 0, 1, 1], [], []>} : vector<64x4xf32>, vector<4x32xf32>, vector<64x32xf32> -> vector<64x32xf32>
    %18 = arith.addf %12, %17 : vector<64x32xf32>
    %c0_21 = arith.constant 0 : index
    %c1_22 = arith.constant 1 : index
    %c0_23 = arith.constant 0 : index
    %c0_24 = arith.constant 0 : index
    %19 = vector.load %arg1[%c0_21, %c1_22, %c0_23, %c0_24] : memref<1x10x10x4xf32, #tpu.memory_space<vmem>>, vector<1x8x8x4xf32>
    %20 = vector.shape_cast %19 : vector<1x8x8x4xf32> to vector<64x4xf32>
    %c3 = arith.constant 3 : index
    %c0_25 = arith.constant 0 : index
    %c0_26 = arith.constant 0 : index
    %21 = vector.load %arg2[%c3, %c0_25, %c0_26] : memref<9x4x32xf32, #tpu.memory_space<vmem>>, vector<1x4x32xf32>
    %22 = vector.shape_cast %21 : vector<1x4x32xf32> to vector<4x32xf32>
    %cst_27 = arith.constant dense<0.000000e+00> : vector<64x32xf32>
    %23 = tpu.matmul %20, %22, %cst_27 {dimension_numbers = #tpu.dot_dimension_numbers<[1], [0], [0], [1], [0, 0, 1, 1], [], []>} : vector<64x4xf32>, vector<4x32xf32>, vector<64x32xf32> -> vector<64x32xf32>
    %24 = arith.addf %18, %23 : vector<64x32xf32>
    %c0_28 = arith.constant 0 : index
    %c1_29 = arith.constant 1 : index
    %c1_30 = arith.constant 1 : index
    %c0_31 = arith.constant 0 : index
    %25 = vector.load %arg1[%c0_28, %c1_29, %c1_30, %c0_31] : memref<1x10x10x4xf32, #tpu.memory_space<vmem>>, vector<1x8x8x4xf32>
    %26 = vector.shape_cast %25 : vector<1x8x8x4xf32> to vector<64x4xf32>
    %c4 = arith.constant 4 : index
    %c0_32 = arith.constant 0 : index
    %c0_33 = arith.constant 0 : index
    %27 = vector.load %arg2[%c4, %c0_32, %c0_33] : memref<9x4x32xf32, #tpu.memory_space<vmem>>, vector<1x4x32xf32>
    %28 = vector.shape_cast %27 : vector<1x4x32xf32> to vector<4x32xf32>
    %cst_34 = arith.constant dense<0.000000e+00> : vector<64x32xf32>
    %29 = tpu.matmul %26, %28, %cst_34 {dimension_numbers = #tpu.dot_dimension_numbers<[1], [0], [0], [1], [0, 0, 1, 1], [], []>} : vector<64x4xf32>, vector<4x32xf32>, vector<64x32xf32> -> vector<64x32xf32>
    %30 = arith.addf %24, %29 : vector<64x32xf32>
    %c0_35 = arith.constant 0 : index
    %c1_36 = arith.constant 1 : index
    %c2_37 = arith.constant 2 : index
    %c0_38 = arith.constant 0 : index
    %31 = vector.load %arg1[%c0_35, %c1_36, %c2_37, %c0_38] : memref<1x10x10x4xf32, #tpu.memory_space<vmem>>, vector<1x8x8x4xf32>
    %32 = vector.shape_cast %31 : vector<1x8x8x4xf32> to vector<64x4xf32>
    %c5 = arith.constant 5 : index
    %c0_39 = arith.constant 0 : index
    %c0_40 = arith.constant 0 : index
    %33 = vector.load %arg2[%c5, %c0_39, %c0_40] : memref<9x4x32xf32, #tpu.memory_space<vmem>>, vector<1x4x32xf32>
    %34 = vector.shape_cast %33 : vector<1x4x32xf32> to vector<4x32xf32>
    %cst_41 = arith.constant dense<0.000000e+00> : vector<64x32xf32>
    %35 = tpu.matmul %32, %34, %cst_41 {dimension_numbers = #tpu.dot_dimension_numbers<[1], [0], [0], [1], [0, 0, 1, 1], [], []>} : vector<64x4xf32>, vector<4x32xf32>, vector<64x32xf32> -> vector<64x32xf32>
    %36 = arith.addf %30, %35 : vector<64x32xf32>
    %c0_42 = arith.constant 0 : index
    %c2_43 = arith.constant 2 : index
    %c0_44 = arith.constant 0 : index
    %c0_45 = arith.constant 0 : index
    %37 = vector.load %arg1[%c0_42, %c2_43, %c0_44, %c0_45] : memref<1x10x10x4xf32, #tpu.memory_space<vmem>>, vector<1x8x8x4xf32>
    %38 = vector.shape_cast %37 : vector<1x8x8x4xf32> to vector<64x4xf32>
    %c6 = arith.constant 6 : index
    %c0_46 = arith.constant 0 : index
    %c0_47 = arith.constant 0 : index
    %39 = vector.load %arg2[%c6, %c0_46, %c0_47] : memref<9x4x32xf32, #tpu.memory_space<vmem>>, vector<1x4x32xf32>
    %40 = vector.shape_cast %39 : vector<1x4x32xf32> to vector<4x32xf32>
    %cst_48 = arith.constant dense<0.000000e+00> : vector<64x32xf32>
    %41 = tpu.matmul %38, %40, %cst_48 {dimension_numbers = #tpu.dot_dimension_numbers<[1], [0], [0], [1], [0, 0, 1, 1], [], []>} : vector<64x4xf32>, vector<4x32xf32>, vector<64x32xf32> -> vector<64x32xf32>
    %42 = arith.addf %36, %41 : vector<64x32xf32>
    %c0_49 = arith.constant 0 : index
    %c2_50 = arith.constant 2 : index
    %c1_51 = arith.constant 1 : index
    %c0_52 = arith.constant 0 : index
    %43 = vector.load %arg1[%c0_49, %c2_50, %c1_51, %c0_52] : memref<1x10x10x4xf32, #tpu.memory_space<vmem>>, vector<1x8x8x4xf32>
    %44 = vector.shape_cast %43 : vector<1x8x8x4xf32> to vector<64x4xf32>
    %c7 = arith.constant 7 : index
    %c0_53 = arith.constant 0 : index
    %c0_54 = arith.constant 0 : index
    %45 = vector.load %arg2[%c7, %c0_53, %c0_54] : memref<9x4x32xf32, #tpu.memory_space<vmem>>, vector<1x4x32xf32>
    %46 = vector.shape_cast %45 : vector<1x4x32xf32> to vector<4x32xf32>
    %cst_55 = arith.constant dense<0.000000e+00> : vector<64x32xf32>
    %47 = tpu.matmul %44, %46, %cst_55 {dimension_numbers = #tpu.dot_dimension_numbers<[1], [0], [0], [1], [0, 0, 1, 1], [], []>} : vector<64x4xf32>, vector<4x32xf32>, vector<64x32xf32> -> vector<64x32xf32>
    %48 = arith.addf %42, %47 : vector<64x32xf32>
    %c0_56 = arith.constant 0 : index
    %c2_57 = arith.constant 2 : index
    %c2_58 = arith.constant 2 : index
    %c0_59 = arith.constant 0 : index
    %49 = vector.load %arg1[%c0_56, %c2_57, %c2_58, %c0_59] : memref<1x10x10x4xf32, #tpu.memory_space<vmem>>, vector<1x8x8x4xf32>
    %50 = vector.shape_cast %49 : vector<1x8x8x4xf32> to vector<64x4xf32>
    %c8 = arith.constant 8 : index
    %c0_60 = arith.constant 0 : index
    %c0_61 = arith.constant 0 : index
    %51 = vector.load %arg2[%c8, %c0_60, %c0_61] : memref<9x4x32xf32, #tpu.memory_space<vmem>>, vector<1x4x32xf32>
    %52 = vector.shape_cast %51 : vector<1x4x32xf32> to vector<4x32xf32>
    %cst_62 = arith.constant dense<0.000000e+00> : vector<64x32xf32>
    %53 = tpu.matmul %50, %52, %cst_62 {dimension_numbers = #tpu.dot_dimension_numbers<[1], [0], [0], [1], [0, 0, 1, 1], [], []>} : vector<64x4xf32>, vector<4x32xf32>, vector<64x32xf32> -> vector<64x32xf32>
    %54 = arith.addf %48, %53 : vector<64x32xf32>
    %c0_63 = arith.constant 0 : index
    %c0_64 = arith.constant 0 : index
    %55 = vector.load %arg3[%c0_63, %c0_64] : memref<1x32xf32, #tpu.memory_space<vmem>>, vector<1x32xf32>
    %56 = vector.broadcast %55 : vector<1x32xf32> to vector<64x32xf32>
    %57 = arith.addf %54, %56 : vector<64x32xf32>
    %cst_65 = arith.constant 0.000000e+00 : f32
    %58 = vector.broadcast %cst_65 : f32 to vector<1x10x10x32xf32>
    %c0_66 = arith.constant 0 : index
    %c0_67 = arith.constant 0 : index
    %c0_68 = arith.constant 0 : index
    %c0_69 = arith.constant 0 : index
    %59 = vector.load %arg9[%c0_66, %c0_67, %c0_68, %c0_69] : memref<1x10x10x32xf32, #tpu.memory_space<vmem>>, vector<1x10x10x32xf32>
    tpu.vector_store %arg9[%c0_66, %c0_67, %c0_68, %c0_69], %58 {strides = array<i32>} : memref<1x10x10x32xf32, #tpu.memory_space<vmem>>, vector<1x10x10x32xf32>,
    %cst_70 = arith.constant 0.000000e+00 : f32
    %60 = vector.broadcast %cst_70 : f32 to vector<64x32xf32>
    %61 = arith.maximumf %57, %60 : vector<64x32xf32>
    %62 = vector.shape_cast %61 : vector<64x32xf32> to vector<1x8x8x32xf32>
    %c0_71 = arith.constant 0 : index
    %c1_72 = arith.constant 1 : index
    %c1_73 = arith.constant 1 : index
    %c0_74 = arith.constant 0 : index
    %63 = vector.load %arg9[%c0_71, %c1_72, %c1_73, %c0_74] : memref<1x10x10x32xf32, #tpu.memory_space<vmem>>, vector<1x8x8x32xf32>
    tpu.vector_store %arg9[%c0_71, %c1_72, %c1_73, %c0_74], %62 {strides = array<i32>} : memref<1x10x10x32xf32, #tpu.memory_space<vmem>>, vector<1x8x8x32xf32>,
    %cst_75 = arith.constant 0.000000e+00 : f32
    %64 = vector.broadcast %cst_75 : f32 to vector<64x8xf32>
    %c0_76 = arith.constant 0 : index
    %c0_77 = arith.constant 0 : index
    %c0_78 = arith.constant 0 : index
    %c0_79 = arith.constant 0 : index
    %65 = vector.load %arg9[%c0_76, %c0_77, %c0_78, %c0_79] : memref<1x10x10x32xf32, #tpu.memory_space<vmem>>, vector<1x8x8x32xf32>
    %66 = vector.shape_cast %65 : vector<1x8x8x32xf32> to vector<64x32xf32>
    %c0_80 = arith.constant 0 : index
    %c0_81 = arith.constant 0 : index
    %c0_82 = arith.constant 0 : index
    %c0_83 = arith.constant 0 : index
    %67 = vector.load %arg4[%c0_80, %c0_81, %c0_82, %c0_83] : memref<2x9x32x8xf32, #tpu.memory_space<vmem>>, vector<1x1x32x8xf32>
    %68 = vector.shape_cast %67 : vector<1x1x32x8xf32> to vector<32x8xf32>
    %cst_84 = arith.constant dense<0.000000e+00> : vector<64x8xf32>
    %69 = tpu.matmul %66, %68, %cst_84 {dimension_numbers = #tpu.dot_dimension_numbers<[1], [0], [0], [1], [0, 0, 1, 1], [], []>} : vector<64x32xf32>, vector<32x8xf32>, vector<64x8xf32> -> vector<64x8xf32>
    %70 = arith.addf %64, %69 : vector<64x8xf32>
    %c0_85 = arith.constant 0 : index
    %c0_86 = arith.constant 0 : index
    %c1_87 = arith.constant 1 : index
    %c0_88 = arith.constant 0 : index
    %71 = vector.load %arg9[%c0_85, %c0_86, %c1_87, %c0_88] : memref<1x10x10x32xf32, #tpu.memory_space<vmem>>, vector<1x8x8x32xf32>
    %72 = vector.shape_cast %71 : vector<1x8x8x32xf32> to vector<64x32xf32>
    %c0_89 = arith.constant 0 : index
    %c1_90 = arith.constant 1 : index
    %c0_91 = arith.constant 0 : index
    %c0_92 = arith.constant 0 : index
    %73 = vector.load %arg4[%c0_89, %c1_90, %c0_91, %c0_92] : memref<2x9x32x8xf32, #tpu.memory_space<vmem>>, vector<1x1x32x8xf32>
    %74 = vector.shape_cast %73 : vector<1x1x32x8xf32> to vector<32x8xf32>
    %cst_93 = arith.constant dense<0.000000e+00> : vector<64x8xf32>
    %75 = tpu.matmul %72, %74, %cst_93 {dimension_numbers = #tpu.dot_dimension_numbers<[1], [0], [0], [1], [0, 0, 1, 1], [], []>} : vector<64x32xf32>, vector<32x8xf32>, vector<64x8xf32> -> vector<64x8xf32>
    %76 = arith.addf %70, %75 : vector<64x8xf32>
    %c0_94 = arith.constant 0 : index
    %c0_95 = arith.constant 0 : index
    %c2_96 = arith.constant 2 : index
    %c0_97 = arith.constant 0 : index
    %77 = vector.load %arg9[%c0_94, %c0_95, %c2_96, %c0_97] : memref<1x10x10x32xf32, #tpu.memory_space<vmem>>, vector<1x8x8x32xf32>
    %78 = vector.shape_cast %77 : vector<1x8x8x32xf32> to vector<64x32xf32>
    %c0_98 = arith.constant 0 : index
    %c2_99 = arith.constant 2 : index
    %c0_100 = arith.constant 0 : index
    %c0_101 = arith.constant 0 : index
    %79 = vector.load %arg4[%c0_98, %c2_99, %c0_100, %c0_101] : memref<2x9x32x8xf32, #tpu.memory_space<vmem>>, vector<1x1x32x8xf32>
    %80 = vector.shape_cast %79 : vector<1x1x32x8xf32> to vector<32x8xf32>
    %cst_102 = arith.constant dense<0.000000e+00> : vector<64x8xf32>
    %81 = tpu.matmul %78, %80, %cst_102 {dimension_numbers = #tpu.dot_dimension_numbers<[1], [0], [0], [1], [0, 0, 1, 1], [], []>} : vector<64x32xf32>, vector<32x8xf32>, vector<64x8xf32> -> vector<64x8xf32>
    %82 = arith.addf %76, %81 : vector<64x8xf32>
    %c0_103 = arith.constant 0 : index
    %c1_104 = arith.constant 1 : index
    %c0_105 = arith.constant 0 : index
    %c0_106 = arith.constant 0 : index
    %83 = vector.load %arg9[%c0_103, %c1_104, %c0_105, %c0_106] : memref<1x10x10x32xf32, #tpu.memory_space<vmem>>, vector<1x8x8x32xf32>
    %84 = vector.shape_cast %83 : vector<1x8x8x32xf32> to vector<64x32xf32>
    %c0_107 = arith.constant 0 : index
    %c3_108 = arith.constant 3 : index
    %c0_109 = arith.constant 0 : index
    %c0_110 = arith.constant 0 : index
    %85 = vector.load %arg4[%c0_107, %c3_108, %c0_109, %c0_110] : memref<2x9x32x8xf32, #tpu.memory_space<vmem>>, vector<1x1x32x8xf32>
    %86 = vector.shape_cast %85 : vector<1x1x32x8xf32> to vector<32x8xf32>
    %cst_111 = arith.constant dense<0.000000e+00> : vector<64x8xf32>
    %87 = tpu.matmul %84, %86, %cst_111 {dimension_numbers = #tpu.dot_dimension_numbers<[1], [0], [0], [1], [0, 0, 1, 1], [], []>} : vector<64x32xf32>, vector<32x8xf32>, vector<64x8xf32> -> vector<64x8xf32>
    %88 = arith.addf %82, %87 : vector<64x8xf32>
    %c0_112 = arith.constant 0 : index
    %c1_113 = arith.constant 1 : index
    %c1_114 = arith.constant 1 : index
    %c0_115 = arith.constant 0 : index
    %89 = vector.load %arg9[%c0_112, %c1_113, %c1_114, %c0_115] : memref<1x10x10x32xf32, #tpu.memory_space<vmem>>, vector<1x8x8x32xf32>
    %90 = vector.shape_cast %89 : vector<1x8x8x32xf32> to vector<64x32xf32>
    %c0_116 = arith.constant 0 : index
    %c4_117 = arith.constant 4 : index
    %c0_118 = arith.constant 0 : index
    %c0_119 = arith.constant 0 : index
    %91 = vector.load %arg4[%c0_116, %c4_117, %c0_118, %c0_119] : memref<2x9x32x8xf32, #tpu.memory_space<vmem>>, vector<1x1x32x8xf32>
    %92 = vector.shape_cast %91 : vector<1x1x32x8xf32> to vector<32x8xf32>
    %cst_120 = arith.constant dense<0.000000e+00> : vector<64x8xf32>
    %93 = tpu.matmul %90, %92, %cst_120 {dimension_numbers = #tpu.dot_dimension_numbers<[1], [0], [0], [1], [0, 0, 1, 1], [], []>} : vector<64x32xf32>, vector<32x8xf32>, vector<64x8xf32> -> vector<64x8xf32>
    %94 = arith.addf %88, %93 : vector<64x8xf32>
    %c0_121 = arith.constant 0 : index
    %c1_122 = arith.constant 1 : index
    %c2_123 = arith.constant 2 : index
    %c0_124 = arith.constant 0 : index
    %95 = vector.load %arg9[%c0_121, %c1_122, %c2_123, %c0_124] : memref<1x10x10x32xf32, #tpu.memory_space<vmem>>, vector<1x8x8x32xf32>
    %96 = vector.shape_cast %95 : vector<1x8x8x32xf32> to vector<64x32xf32>
    %c0_125 = arith.constant 0 : index
    %c5_126 = arith.constant 5 : index
    %c0_127 = arith.constant 0 : index
    %c0_128 = arith.constant 0 : index
    %97 = vector.load %arg4[%c0_125, %c5_126, %c0_127, %c0_128] : memref<2x9x32x8xf32, #tpu.memory_space<vmem>>, vector<1x1x32x8xf32>
    %98 = vector.shape_cast %97 : vector<1x1x32x8xf32> to vector<32x8xf32>
    %cst_129 = arith.constant dense<0.000000e+00> : vector<64x8xf32>
    %99 = tpu.matmul %96, %98, %cst_129 {dimension_numbers = #tpu.dot_dimension_numbers<[1], [0], [0], [1], [0, 0, 1, 1], [], []>} : vector<64x32xf32>, vector<32x8xf32>, vector<64x8xf32> -> vector<64x8xf32>
    %100 = arith.addf %94, %99 : vector<64x8xf32>
    %c0_130 = arith.constant 0 : index
    %c2_131 = arith.constant 2 : index
    %c0_132 = arith.constant 0 : index
    %c0_133 = arith.constant 0 : index
    %101 = vector.load %arg9[%c0_130, %c2_131, %c0_132, %c0_133] : memref<1x10x10x32xf32, #tpu.memory_space<vmem>>, vector<1x8x8x32xf32>
    %102 = vector.shape_cast %101 : vector<1x8x8x32xf32> to vector<64x32xf32>
    %c0_134 = arith.constant 0 : index
    %c6_135 = arith.constant 6 : index
    %c0_136 = arith.constant 0 : index
    %c0_137 = arith.constant 0 : index
    %103 = vector.load %arg4[%c0_134, %c6_135, %c0_136, %c0_137] : memref<2x9x32x8xf32, #tpu.memory_space<vmem>>, vector<1x1x32x8xf32>
    %104 = vector.shape_cast %103 : vector<1x1x32x8xf32> to vector<32x8xf32>
    %cst_138 = arith.constant dense<0.000000e+00> : vector<64x8xf32>
    %105 = tpu.matmul %102, %104, %cst_138 {dimension_numbers = #tpu.dot_dimension_numbers<[1], [0], [0], [1], [0, 0, 1, 1], [], []>} : vector<64x32xf32>, vector<32x8xf32>, vector<64x8xf32> -> vector<64x8xf32>
    %106 = arith.addf %100, %105 : vector<64x8xf32>
    %c0_139 = arith.constant 0 : index
    %c2_140 = arith.constant 2 : index
    %c1_141 = arith.constant 1 : index
    %c0_142 = arith.constant 0 : index
    %107 = vector.load %arg9[%c0_139, %c2_140, %c1_141, %c0_142] : memref<1x10x10x32xf32, #tpu.memory_space<vmem>>, vector<1x8x8x32xf32>
    %108 = vector.shape_cast %107 : vector<1x8x8x32xf32> to vector<64x32xf32>
    %c0_143 = arith.constant 0 : index
    %c7_144 = arith.constant 7 : index
    %c0_145 = arith.constant 0 : index
    %c0_146 = arith.constant 0 : index
    %109 = vector.load %arg4[%c0_143, %c7_144, %c0_145, %c0_146] : memref<2x9x32x8xf32, #tpu.memory_space<vmem>>, vector<1x1x32x8xf32>
    %110 = vector.shape_cast %109 : vector<1x1x32x8xf32> to vector<32x8xf32>
    %cst_147 = arith.constant dense<0.000000e+00> : vector<64x8xf32>
    %111 = tpu.matmul %108, %110, %cst_147 {dimension_numbers = #tpu.dot_dimension_numbers<[1], [0], [0], [1], [0, 0, 1, 1], [], []>} : vector<64x32xf32>, vector<32x8xf32>, vector<64x8xf32> -> vector<64x8xf32>
    %112 = arith.addf %106, %111 : vector<64x8xf32>
    %c0_148 = arith.constant 0 : index
    %c2_149 = arith.constant 2 : index
    %c2_150 = arith.constant 2 : index
    %c0_151 = arith.constant 0 : index
    %113 = vector.load %arg9[%c0_148, %c2_149, %c2_150, %c0_151] : memref<1x10x10x32xf32, #tpu.memory_space<vmem>>, vector<1x8x8x32xf32>
    %114 = vector.shape_cast %113 : vector<1x8x8x32xf32> to vector<64x32xf32>
    %c0_152 = arith.constant 0 : index
    %c8_153 = arith.constant 8 : index
    %c0_154 = arith.constant 0 : index
    %c0_155 = arith.constant 0 : index
    %115 = vector.load %arg4[%c0_152, %c8_153, %c0_154, %c0_155] : memref<2x9x32x8xf32, #tpu.memory_space<vmem>>, vector<1x1x32x8xf32>
    %116 = vector.shape_cast %115 : vector<1x1x32x8xf32> to vector<32x8xf32>
    %cst_156 = arith.constant dense<0.000000e+00> : vector<64x8xf32>
    %117 = tpu.matmul %114, %116, %cst_156 {dimension_numbers = #tpu.dot_dimension_numbers<[1], [0], [0], [1], [0, 0, 1, 1], [], []>} : vector<64x32xf32>, vector<32x8xf32>, vector<64x8xf32> -> vector<64x8xf32>
    %118 = arith.addf %112, %117 : vector<64x8xf32>
    %cst_157 = arith.constant 0.000000e+00 : f32
    %119 = vector.broadcast %cst_157 : f32 to vector<64x8xf32>
    %120 = arith.maximumf %118, %119 : vector<64x8xf32>
    %c0_158 = arith.constant 0 : index
    %c0_159 = arith.constant 0 : index
    %c0_160 = arith.constant 0 : index
    %121 = vector.load %arg5[%c0_158, %c0_159, %c0_160] : memref<2x8x32xf32, #tpu.memory_space<vmem>>, vector<1x8x32xf32>
    %122 = vector.shape_cast %121 : vector<1x8x32xf32> to vector<8x32xf32>
    %cst_161 = arith.constant dense<0.000000e+00> : vector<64x32xf32>
    %123 = tpu.matmul %120, %122, %cst_161 {dimension_numbers = #tpu.dot_dimension_numbers<[1], [0], [0], [1], [0, 0, 1, 1], [], []>} : vector<64x8xf32>, vector<8x32xf32>, vector<64x32xf32> -> vector<64x32xf32>
    %124 = arith.addf %57, %123 : vector<64x32xf32>
    %cst_162 = arith.constant 0.000000e+00 : f32
    %125 = vector.broadcast %cst_162 : f32 to vector<64x32xf32>
    %126 = arith.maximumf %124, %125 : vector<64x32xf32>
    %127 = vector.shape_cast %126 : vector<64x32xf32> to vector<1x8x8x32xf32>
    %c0_163 = arith.constant 0 : index
    %c1_164 = arith.constant 1 : index
    %c1_165 = arith.constant 1 : index
    %c0_166 = arith.constant 0 : index
    %128 = vector.load %arg9[%c0_163, %c1_164, %c1_165, %c0_166] : memref<1x10x10x32xf32, #tpu.memory_space<vmem>>, vector<1x8x8x32xf32>
    tpu.vector_store %arg9[%c0_163, %c1_164, %c1_165, %c0_166], %127 {strides = array<i32>} : memref<1x10x10x32xf32, #tpu.memory_space<vmem>>, vector<1x8x8x32xf32>,
    %cst_167 = arith.constant 0.000000e+00 : f32
    %129 = vector.broadcast %cst_167 : f32 to vector<64x8xf32>
    %c0_168 = arith.constant 0 : index
    %c0_169 = arith.constant 0 : index
    %c0_170 = arith.constant 0 : index
    %c0_171 = arith.constant 0 : index
    %130 = vector.load %arg9[%c0_168, %c0_169, %c0_170, %c0_171] : memref<1x10x10x32xf32, #tpu.memory_space<vmem>>, vector<1x8x8x32xf32>
    %131 = vector.shape_cast %130 : vector<1x8x8x32xf32> to vector<64x32xf32>
    %c1_172 = arith.constant 1 : index
    %c0_173 = arith.constant 0 : index
    %c0_174 = arith.constant 0 : index
    %c0_175 = arith.constant 0 : index
    %132 = vector.load %arg4[%c1_172, %c0_173, %c0_174, %c0_175] : memref<2x9x32x8xf32, #tpu.memory_space<vmem>>, vector<1x1x32x8xf32>
    %133 = vector.shape_cast %132 : vector<1x1x32x8xf32> to vector<32x8xf32>
    %cst_176 = arith.constant dense<0.000000e+00> : vector<64x8xf32>
    %134 = tpu.matmul %131, %133, %cst_176 {dimension_numbers = #tpu.dot_dimension_numbers<[1], [0], [0], [1], [0, 0, 1, 1], [], []>} : vector<64x32xf32>, vector<32x8xf32>, vector<64x8xf32> -> vector<64x8xf32>
    %135 = arith.addf %129, %134 : vector<64x8xf32>
    %c0_177 = arith.constant 0 : index
    %c0_178 = arith.constant 0 : index
    %c1_179 = arith.constant 1 : index
    %c0_180 = arith.constant 0 : index
    %136 = vector.load %arg9[%c0_177, %c0_178, %c1_179, %c0_180] : memref<1x10x10x32xf32, #tpu.memory_space<vmem>>, vector<1x8x8x32xf32>
    %137 = vector.shape_cast %136 : vector<1x8x8x32xf32> to vector<64x32xf32>
    %c1_181 = arith.constant 1 : index
    %c1_182 = arith.constant 1 : index
    %c0_183 = arith.constant 0 : index
    %c0_184 = arith.constant 0 : index
    %138 = vector.load %arg4[%c1_181, %c1_182, %c0_183, %c0_184] : memref<2x9x32x8xf32, #tpu.memory_space<vmem>>, vector<1x1x32x8xf32>
    %139 = vector.shape_cast %138 : vector<1x1x32x8xf32> to vector<32x8xf32>
    %cst_185 = arith.constant dense<0.000000e+00> : vector<64x8xf32>
    %140 = tpu.matmul %137, %139, %cst_185 {dimension_numbers = #tpu.dot_dimension_numbers<[1], [0], [0], [1], [0, 0, 1, 1], [], []>} : vector<64x32xf32>, vector<32x8xf32>, vector<64x8xf32> -> vector<64x8xf32>
    %141 = arith.addf %135, %140 : vector<64x8xf32>
    %c0_186 = arith.constant 0 : index
    %c0_187 = arith.constant 0 : index
    %c2_188 = arith.constant 2 : index
    %c0_189 = arith.constant 0 : index
    %142 = vector.load %arg9[%c0_186, %c0_187, %c2_188, %c0_189] : memref<1x10x10x32xf32, #tpu.memory_space<vmem>>, vector<1x8x8x32xf32>
    %143 = vector.shape_cast %142 : vector<1x8x8x32xf32> to vector<64x32xf32>
    %c1_190 = arith.constant 1 : index
    %c2_191 = arith.constant 2 : index
    %c0_192 = arith.constant 0 : index
    %c0_193 = arith.constant 0 : index
    %144 = vector.load %arg4[%c1_190, %c2_191, %c0_192, %c0_193] : memref<2x9x32x8xf32, #tpu.memory_space<vmem>>, vector<1x1x32x8xf32>
    %145 = vector.shape_cast %144 : vector<1x1x32x8xf32> to vector<32x8xf32>
    %cst_194 = arith.constant dense<0.000000e+00> : vector<64x8xf32>
    %146 = tpu.matmul %143, %145, %cst_194 {dimension_numbers = #tpu.dot_dimension_numbers<[1], [0], [0], [1], [0, 0, 1, 1], [], []>} : vector<64x32xf32>, vector<32x8xf32>, vector<64x8xf32> -> vector<64x8xf32>
    %147 = arith.addf %141, %146 : vector<64x8xf32>
    %c0_195 = arith.constant 0 : index
    %c1_196 = arith.constant 1 : index
    %c0_197 = arith.constant 0 : index
    %c0_198 = arith.constant 0 : index
    %148 = vector.load %arg9[%c0_195, %c1_196, %c0_197, %c0_198] : memref<1x10x10x32xf32, #tpu.memory_space<vmem>>, vector<1x8x8x32xf32>
    %149 = vector.shape_cast %148 : vector<1x8x8x32xf32> to vector<64x32xf32>
    %c1_199 = arith.constant 1 : index
    %c3_200 = arith.constant 3 : index
    %c0_201 = arith.constant 0 : index
    %c0_202 = arith.constant 0 : index
    %150 = vector.load %arg4[%c1_199, %c3_200, %c0_201, %c0_202] : memref<2x9x32x8xf32, #tpu.memory_space<vmem>>, vector<1x1x32x8xf32>
    %151 = vector.shape_cast %150 : vector<1x1x32x8xf32> to vector<32x8xf32>
    %cst_203 = arith.constant dense<0.000000e+00> : vector<64x8xf32>
    %152 = tpu.matmul %149, %151, %cst_203 {dimension_numbers = #tpu.dot_dimension_numbers<[1], [0], [0], [1], [0, 0, 1, 1], [], []>} : vector<64x32xf32>, vector<32x8xf32>, vector<64x8xf32> -> vector<64x8xf32>
    %153 = arith.addf %147, %152 : vector<64x8xf32>
    %c0_204 = arith.constant 0 : index
    %c1_205 = arith.constant 1 : index
    %c1_206 = arith.constant 1 : index
    %c0_207 = arith.constant 0 : index
    %154 = vector.load %arg9[%c0_204, %c1_205, %c1_206, %c0_207] : memref<1x10x10x32xf32, #tpu.memory_space<vmem>>, vector<1x8x8x32xf32>
    %155 = vector.shape_cast %154 : vector<1x8x8x32xf32> to vector<64x32xf32>
    %c1_208 = arith.constant 1 : index
    %c4_209 = arith.constant 4 : index
    %c0_210 = arith.constant 0 : index
    %c0_211 = arith.constant 0 : index
    %156 = vector.load %arg4[%c1_208, %c4_209, %c0_210, %c0_211] : memref<2x9x32x8xf32, #tpu.memory_space<vmem>>, vector<1x1x32x8xf32>
    %157 = vector.shape_cast %156 : vector<1x1x32x8xf32> to vector<32x8xf32>
    %cst_212 = arith.constant dense<0.000000e+00> : vector<64x8xf32>
    %158 = tpu.matmul %155, %157, %cst_212 {dimension_numbers = #tpu.dot_dimension_numbers<[1], [0], [0], [1], [0, 0, 1, 1], [], []>} : vector<64x32xf32>, vector<32x8xf32>, vector<64x8xf32> -> vector<64x8xf32>
    %159 = arith.addf %153, %158 : vector<64x8xf32>
    %c0_213 = arith.constant 0 : index
    %c1_214 = arith.constant 1 : index
    %c2_215 = arith.constant 2 : index
    %c0_216 = arith.constant 0 : index
    %160 = vector.load %arg9[%c0_213, %c1_214, %c2_215, %c0_216] : memref<1x10x10x32xf32, #tpu.memory_space<vmem>>, vector<1x8x8x32xf32>
    %161 = vector.shape_cast %160 : vector<1x8x8x32xf32> to vector<64x32xf32>
    %c1_217 = arith.constant 1 : index
    %c5_218 = arith.constant 5 : index
    %c0_219 = arith.constant 0 : index
    %c0_220 = arith.constant 0 : index
    %162 = vector.load %arg4[%c1_217, %c5_218, %c0_219, %c0_220] : memref<2x9x32x8xf32, #tpu.memory_space<vmem>>, vector<1x1x32x8xf32>
    %163 = vector.shape_cast %162 : vector<1x1x32x8xf32> to vector<32x8xf32>
    %cst_221 = arith.constant dense<0.000000e+00> : vector<64x8xf32>
    %164 = tpu.matmul %161, %163, %cst_221 {dimension_numbers = #tpu.dot_dimension_numbers<[1], [0], [0], [1], [0, 0, 1, 1], [], []>} : vector<64x32xf32>, vector<32x8xf32>, vector<64x8xf32> -> vector<64x8xf32>
    %165 = arith.addf %159, %164 : vector<64x8xf32>
    %c0_222 = arith.constant 0 : index
    %c2_223 = arith.constant 2 : index
    %c0_224 = arith.constant 0 : index
    %c0_225 = arith.constant 0 : index
    %166 = vector.load %arg9[%c0_222, %c2_223, %c0_224, %c0_225] : memref<1x10x10x32xf32, #tpu.memory_space<vmem>>, vector<1x8x8x32xf32>
    %167 = vector.shape_cast %166 : vector<1x8x8x32xf32> to vector<64x32xf32>
    %c1_226 = arith.constant 1 : index
    %c6_227 = arith.constant 6 : index
    %c0_228 = arith.constant 0 : index
    %c0_229 = arith.constant 0 : index
    %168 = vector.load %arg4[%c1_226, %c6_227, %c0_228, %c0_229] : memref<2x9x32x8xf32, #tpu.memory_space<vmem>>, vector<1x1x32x8xf32>
    %169 = vector.shape_cast %168 : vector<1x1x32x8xf32> to vector<32x8xf32>
    %cst_230 = arith.constant dense<0.000000e+00> : vector<64x8xf32>
    %170 = tpu.matmul %167, %169, %cst_230 {dimension_numbers = #tpu.dot_dimension_numbers<[1], [0], [0], [1], [0, 0, 1, 1], [], []>} : vector<64x32xf32>, vector<32x8xf32>, vector<64x8xf32> -> vector<64x8xf32>
    %171 = arith.addf %165, %170 : vector<64x8xf32>
    %c0_231 = arith.constant 0 : index
    %c2_232 = arith.constant 2 : index
    %c1_233 = arith.constant 1 : index
    %c0_234 = arith.constant 0 : index
    %172 = vector.load %arg9[%c0_231, %c2_232, %c1_233, %c0_234] : memref<1x10x10x32xf32, #tpu.memory_space<vmem>>, vector<1x8x8x32xf32>
    %173 = vector.shape_cast %172 : vector<1x8x8x32xf32> to vector<64x32xf32>
    %c1_235 = arith.constant 1 : index
    %c7_236 = arith.constant 7 : index
    %c0_237 = arith.constant 0 : index
    %c0_238 = arith.constant 0 : index
    %174 = vector.load %arg4[%c1_235, %c7_236, %c0_237, %c0_238] : memref<2x9x32x8xf32, #tpu.memory_space<vmem>>, vector<1x1x32x8xf32>
    %175 = vector.shape_cast %174 : vector<1x1x32x8xf32> to vector<32x8xf32>
    %cst_239 = arith.constant dense<0.000000e+00> : vector<64x8xf32>
    %176 = tpu.matmul %173, %175, %cst_239 {dimension_numbers = #tpu.dot_dimension_numbers<[1], [0], [0], [1], [0, 0, 1, 1], [], []>} : vector<64x32xf32>, vector<32x8xf32>, vector<64x8xf32> -> vector<64x8xf32>
    %177 = arith.addf %171, %176 : vector<64x8xf32>
    %c0_240 = arith.constant 0 : index
    %c2_241 = arith.constant 2 : index
    %c2_242 = arith.constant 2 : index
    %c0_243 = arith.constant 0 : index
    %178 = vector.load %arg9[%c0_240, %c2_241, %c2_242, %c0_243] : memref<1x10x10x32xf32, #tpu.memory_space<vmem>>, vector<1x8x8x32xf32>
    %179 = vector.shape_cast %178 : vector<1x8x8x32xf32> to vector<64x32xf32>
    %c1_244 = arith.constant 1 : index
    %c8_245 = arith.constant 8 : index
    %c0_246 = arith.constant 0 : index
    %c0_247 = arith.constant 0 : index
    %180 = vector.load %arg4[%c1_244, %c8_245, %c0_246, %c0_247] : memref<2x9x32x8xf32, #tpu.memory_space<vmem>>, vector<1x1x32x8xf32>
    %181 = vector.shape_cast %180 : vector<1x1x32x8xf32> to vector<32x8xf32>
    %cst_248 = arith.constant dense<0.000000e+00> : vector<64x8xf32>
    %182 = tpu.matmul %179, %181, %cst_248 {dimension_numbers = #tpu.dot_dimension_numbers<[1], [0], [0], [1], [0, 0, 1, 1], [], []>} : vector<64x32xf32>, vector<32x8xf32>, vector<64x8xf32> -> vector<64x8xf32>
    %183 = arith.addf %177, %182 : vector<64x8xf32>
    %cst_249 = arith.constant 0.000000e+00 : f32
    %184 = vector.broadcast %cst_249 : f32 to vector<64x8xf32>
    %185 = arith.maximumf %183, %184 : vector<64x8xf32>
    %c1_250 = arith.constant 1 : index
    %c0_251 = arith.constant 0 : index
    %c0_252 = arith.constant 0 : index
    %186 = vector.load %arg5[%c1_250, %c0_251, %c0_252] : memref<2x8x32xf32, #tpu.memory_space<vmem>>, vector<1x8x32xf32>
    %187 = vector.shape_cast %186 : vector<1x8x32xf32> to vector<8x32xf32>
    %cst_253 = arith.constant dense<0.000000e+00> : vector<64x32xf32>
    %188 = tpu.matmul %185, %187, %cst_253 {dimension_numbers = #tpu.dot_dimension_numbers<[1], [0], [0], [1], [0, 0, 1, 1], [], []>} : vector<64x8xf32>, vector<8x32xf32>, vector<64x32xf32> -> vector<64x32xf32>
    %189 = arith.addf %124, %188 : vector<64x32xf32>
    %cst_254 = arith.constant 0.000000e+00 : f32
    %190 = vector.broadcast %cst_254 : f32 to vector<64x32xf32>
    %191 = arith.maximumf %189, %190 : vector<64x32xf32>
    %192 = vector.shape_cast %191 : vector<64x32xf32> to vector<1x8x8x32xf32>
    %c0_255 = arith.constant 0 : index
    %c1_256 = arith.constant 1 : index
    %c1_257 = arith.constant 1 : index
    %c0_258 = arith.constant 0 : index
    %193 = vector.load %arg9[%c0_255, %c1_256, %c1_257, %c0_258] : memref<1x10x10x32xf32, #tpu.memory_space<vmem>>, vector<1x8x8x32xf32>
    tpu.vector_store %arg9[%c0_255, %c1_256, %c1_257, %c0_258], %192 {strides = array<i32>} : memref<1x10x10x32xf32, #tpu.memory_space<vmem>>, vector<1x8x8x32xf32>,
    %cst_259 = arith.constant 0.000000e+00 : f32
    %194 = vector.broadcast %cst_259 : f32 to vector<64x16xf32>
    %c0_260 = arith.constant 0 : index
    %c0_261 = arith.constant 0 : index
    %c0_262 = arith.constant 0 : index
    %c0_263 = arith.constant 0 : index
    %195 = vector.load %arg9[%c0_260, %c0_261, %c0_262, %c0_263] : memref<1x10x10x32xf32, #tpu.memory_space<vmem>>, vector<1x8x8x32xf32>
    %196 = vector.shape_cast %195 : vector<1x8x8x32xf32> to vector<64x32xf32>
    %c0_264 = arith.constant 0 : index
    %c0_265 = arith.constant 0 : index
    %c0_266 = arith.constant 0 : index
    %c0_267 = arith.constant 0 : index
    %197 = vector.load %arg6[%c0_264, %c0_265, %c0_266, %c0_267] : memref<4x4x32x16xf32, #tpu.memory_space<vmem>>, vector<1x1x32x16xf32>
    %198 = vector.shape_cast %197 : vector<1x1x32x16xf32> to vector<32x16xf32>
    %cst_268 = arith.constant dense<0.000000e+00> : vector<64x16xf32>
    %199 = tpu.matmul %196, %198, %cst_268 {dimension_numbers = #tpu.dot_dimension_numbers<[1], [0], [0], [1], [0, 0, 1, 1], [], []>} : vector<64x32xf32>, vector<32x16xf32>, vector<64x16xf32> -> vector<64x16xf32>
    %200 = arith.addf %194, %199 : vector<64x16xf32>
    %c0_269 = arith.constant 0 : index
    %c0_270 = arith.constant 0 : index
    %c1_271 = arith.constant 1 : index
    %c0_272 = arith.constant 0 : index
    %201 = vector.load %arg9[%c0_269, %c0_270, %c1_271, %c0_272] : memref<1x10x10x32xf32, #tpu.memory_space<vmem>>, vector<1x8x8x32xf32>
    %202 = vector.shape_cast %201 : vector<1x8x8x32xf32> to vector<64x32xf32>
    %c0_273 = arith.constant 0 : index
    %c1_274 = arith.constant 1 : index
    %c0_275 = arith.constant 0 : index
    %c0_276 = arith.constant 0 : index
    %203 = vector.load %arg6[%c0_273, %c1_274, %c0_275, %c0_276] : memref<4x4x32x16xf32, #tpu.memory_space<vmem>>, vector<1x1x32x16xf32>
    %204 = vector.shape_cast %203 : vector<1x1x32x16xf32> to vector<32x16xf32>
    %cst_277 = arith.constant dense<0.000000e+00> : vector<64x16xf32>
    %205 = tpu.matmul %202, %204, %cst_277 {dimension_numbers = #tpu.dot_dimension_numbers<[1], [0], [0], [1], [0, 0, 1, 1], [], []>} : vector<64x32xf32>, vector<32x16xf32>, vector<64x16xf32> -> vector<64x16xf32>
    %206 = arith.addf %200, %205 : vector<64x16xf32>
    %c0_278 = arith.constant 0 : index
    %c1_279 = arith.constant 1 : index
    %c0_280 = arith.constant 0 : index
    %c0_281 = arith.constant 0 : index
    %207 = vector.load %arg9[%c0_278, %c1_279, %c0_280, %c0_281] : memref<1x10x10x32xf32, #tpu.memory_space<vmem>>, vector<1x8x8x32xf32>
    %208 = vector.shape_cast %207 : vector<1x8x8x32xf32> to vector<64x32xf32>
    %c0_282 = arith.constant 0 : index
    %c2_283 = arith.constant 2 : index
    %c0_284 = arith.constant 0 : index
    %c0_285 = arith.constant 0 : index
    %209 = vector.load %arg6[%c0_282, %c2_283, %c0_284, %c0_285] : memref<4x4x32x16xf32, #tpu.memory_space<vmem>>, vector<1x1x32x16xf32>
    %210 = vector.shape_cast %209 : vector<1x1x32x16xf32> to vector<32x16xf32>
    %cst_286 = arith.constant dense<0.000000e+00> : vector<64x16xf32>
    %211 = tpu.matmul %208, %210, %cst_286 {dimension_numbers = #tpu.dot_dimension_numbers<[1], [0], [0], [1], [0, 0, 1, 1], [], []>} : vector<64x32xf32>, vector<32x16xf32>, vector<64x16xf32> -> vector<64x16xf32>
    %212 = arith.addf %206, %211 : vector<64x16xf32>
    %c0_287 = arith.constant 0 : index
    %c1_288 = arith.constant 1 : index
    %c1_289 = arith.constant 1 : index
    %c0_290 = arith.constant 0 : index
    %213 = vector.load %arg9[%c0_287, %c1_288, %c1_289, %c0_290] : memref<1x10x10x32xf32, #tpu.memory_space<vmem>>, vector<1x8x8x32xf32>
    %214 = vector.shape_cast %213 : vector<1x8x8x32xf32> to vector<64x32xf32>
    %c0_291 = arith.constant 0 : index
    %c3_292 = arith.constant 3 : index
    %c0_293 = arith.constant 0 : index
    %c0_294 = arith.constant 0 : index
    %215 = vector.load %arg6[%c0_291, %c3_292, %c0_293, %c0_294] : memref<4x4x32x16xf32, #tpu.memory_space<vmem>>, vector<1x1x32x16xf32>
    %216 = vector.shape_cast %215 : vector<1x1x32x16xf32> to vector<32x16xf32>
    %cst_295 = arith.constant dense<0.000000e+00> : vector<64x16xf32>
    %217 = tpu.matmul %214, %216, %cst_295 {dimension_numbers = #tpu.dot_dimension_numbers<[1], [0], [0], [1], [0, 0, 1, 1], [], []>} : vector<64x32xf32>, vector<32x16xf32>, vector<64x16xf32> -> vector<64x16xf32>
    %218 = arith.addf %212, %217 : vector<64x16xf32>
    %c0_296 = arith.constant 0 : index
    %c0_297 = arith.constant 0 : index
    %219 = vector.load %arg7[%c0_296, %c0_297] : memref<1x16xf32, #tpu.memory_space<vmem>>, vector<1x16xf32>
    %220 = vector.broadcast %219 : vector<1x16xf32> to vector<64x16xf32>
    %221 = arith.addf %218, %220 : vector<64x16xf32>
    %cst_298 = arith.constant 0.000000e+00 : f32
    %222 = vector.broadcast %cst_298 : f32 to vector<64x16xf32>
    %223 = arith.maximumf %221, %222 : vector<64x16xf32>
    %c0_299 = arith.constant 0 : index
    %c0_300 = arith.constant 0 : index
    %c0_301 = arith.constant 0 : index
    %224 = vector.load %arg8[%c0_299, %c0_300, %c0_301] : memref<4x64x16xf32, #tpu.memory_space<vmem>>, vector<1x64x16xf32>
    %225 = vector.shape_cast %224 : vector<1x64x16xf32> to vector<64x16xf32>
    %226 = vector.shape_cast %223 : vector<64x16xf32> to vector<1x64x16xf32>
    tpu.vector_store %arg8[%c0_299, %c0_300, %c0_301], %226 {strides = array<i32>} : memref<4x64x16xf32, #tpu.memory_space<vmem>>, vector<1x64x16xf32>,
    %cst_302 = arith.constant 0.000000e+00 : f32
    %227 = vector.broadcast %cst_302 : f32 to vector<64x16xf32>
    %c0_303 = arith.constant 0 : index
    %c0_304 = arith.constant 0 : index
    %c1_305 = arith.constant 1 : index
    %c0_306 = arith.constant 0 : index
    %228 = vector.load %arg9[%c0_303, %c0_304, %c1_305, %c0_306] : memref<1x10x10x32xf32, #tpu.memory_space<vmem>>, vector<1x8x8x32xf32>
    %229 = vector.shape_cast %228 : vector<1x8x8x32xf32> to vector<64x32xf32>
    %c1_307 = arith.constant 1 : index
    %c0_308 = arith.constant 0 : index
    %c0_309 = arith.constant 0 : index
    %c0_310 = arith.constant 0 : index
    %230 = vector.load %arg6[%c1_307, %c0_308, %c0_309, %c0_310] : memref<4x4x32x16xf32, #tpu.memory_space<vmem>>, vector<1x1x32x16xf32>
    %231 = vector.shape_cast %230 : vector<1x1x32x16xf32> to vector<32x16xf32>
    %cst_311 = arith.constant dense<0.000000e+00> : vector<64x16xf32>
    %232 = tpu.matmul %229, %231, %cst_311 {dimension_numbers = #tpu.dot_dimension_numbers<[1], [0], [0], [1], [0, 0, 1, 1], [], []>} : vector<64x32xf32>, vector<32x16xf32>, vector<64x16xf32> -> vector<64x16xf32>
    %233 = arith.addf %227, %232 : vector<64x16xf32>
    %c0_312 = arith.constant 0 : index
    %c0_313 = arith.constant 0 : index
    %c2_314 = arith.constant 2 : index
    %c0_315 = arith.constant 0 : index
    %234 = vector.load %arg9[%c0_312, %c0_313, %c2_314, %c0_315] : memref<1x10x10x32xf32, #tpu.memory_space<vmem>>, vector<1x8x8x32xf32>
    %235 = vector.shape_cast %234 : vector<1x8x8x32xf32> to vector<64x32xf32>
    %c1_316 = arith.constant 1 : index
    %c1_317 = arith.constant 1 : index
    %c0_318 = arith.constant 0 : index
    %c0_319 = arith.constant 0 : index
    %236 = vector.load %arg6[%c1_316, %c1_317, %c0_318, %c0_319] : memref<4x4x32x16xf32, #tpu.memory_space<vmem>>, vector<1x1x32x16xf32>
    %237 = vector.shape_cast %236 : vector<1x1x32x16xf32> to vector<32x16xf32>
    %cst_320 = arith.constant dense<0.000000e+00> : vector<64x16xf32>
    %238 = tpu.matmul %235, %237, %cst_320 {dimension_numbers = #tpu.dot_dimension_numbers<[1], [0], [0], [1], [0, 0, 1, 1], [], []>} : vector<64x32xf32>, vector<32x16xf32>, vector<64x16xf32> -> vector<64x16xf32>
    %239 = arith.addf %233, %238 : vector<64x16xf32>
    %c0_321 = arith.constant 0 : index
    %c1_322 = arith.constant 1 : index
    %c1_323 = arith.constant 1 : index
    %c0_324 = arith.constant 0 : index
    %240 = vector.load %arg9[%c0_321, %c1_322, %c1_323, %c0_324] : memref<1x10x10x32xf32, #tpu.memory_space<vmem>>, vector<1x8x8x32xf32>
    %241 = vector.shape_cast %240 : vector<1x8x8x32xf32> to vector<64x32xf32>
    %c1_325 = arith.constant 1 : index
    %c2_326 = arith.constant 2 : index
    %c0_327 = arith.constant 0 : index
    %c0_328 = arith.constant 0 : index
    %242 = vector.load %arg6[%c1_325, %c2_326, %c0_327, %c0_328] : memref<4x4x32x16xf32, #tpu.memory_space<vmem>>, vector<1x1x32x16xf32>
    %243 = vector.shape_cast %242 : vector<1x1x32x16xf32> to vector<32x16xf32>
    %cst_329 = arith.constant dense<0.000000e+00> : vector<64x16xf32>
    %244 = tpu.matmul %241, %243, %cst_329 {dimension_numbers = #tpu.dot_dimension_numbers<[1], [0], [0], [1], [0, 0, 1, 1], [], []>} : vector<64x32xf32>, vector<32x16xf32>, vector<64x16xf32> -> vector<64x16xf32>
    %245 = arith.addf %239, %244 : vector<64x16xf32>
    %c0_330 = arith.constant 0 : index
    %c1_331 = arith.constant 1 : index
    %c2_332 = arith.constant 2 : index
    %c0_333 = arith.constant 0 : index
    %246 = vector.load %arg9[%c0_330, %c1_331, %c2_332, %c0_333] : memref<1x10x10x32xf32, #tpu.memory_space<vmem>>, vector<1x8x8x32xf32>
    %247 = vector.shape_cast %246 : vector<1x8x8x32xf32> to vector<64x32xf32>
    %c1_334 = arith.constant 1 : index
    %c3_335 = arith.constant 3 : index
    %c0_336 = arith.constant 0 : index
    %c0_337 = arith.constant 0 : index
    %248 = vector.load %arg6[%c1_334, %c3_335, %c0_336, %c0_337] : memref<4x4x32x16xf32, #tpu.memory_space<vmem>>, vector<1x1x32x16xf32>
    %249 = vector.shape_cast %248 : vector<1x1x32x16xf32> to vector<32x16xf32>
    %cst_338 = arith.constant dense<0.000000e+00> : vector<64x16xf32>
    %250 = tpu.matmul %247, %249, %cst_338 {dimension_numbers = #tpu.dot_dimension_numbers<[1], [0], [0], [1], [0, 0, 1, 1], [], []>} : vector<64x32xf32>, vector<32x16xf32>, vector<64x16xf32> -> vector<64x16xf32>
    %251 = arith.addf %245, %250 : vector<64x16xf32>
    %c0_339 = arith.constant 0 : index
    %c0_340 = arith.constant 0 : index
    %252 = vector.load %arg7[%c0_339, %c0_340] : memref<1x16xf32, #tpu.memory_space<vmem>>, vector<1x16xf32>
    %253 = vector.broadcast %252 : vector<1x16xf32> to vector<64x16xf32>
    %254 = arith.addf %251, %253 : vector<64x16xf32>
    %cst_341 = arith.constant 0.000000e+00 : f32
    %255 = vector.broadcast %cst_341 : f32 to vector<64x16xf32>
    %256 = arith.maximumf %254, %255 : vector<64x16xf32>
    %c1_342 = arith.constant 1 : index
    %c0_343 = arith.constant 0 : index
    %c0_344 = arith.constant 0 : index
    %257 = vector.load %arg8[%c1_342, %c0_343, %c0_344] : memref<4x64x16xf32, #tpu.memory_space<vmem>>, vector<1x64x16xf32>
    %258 = vector.shape_cast %257 : vector<1x64x16xf32> to vector<64x16xf32>
    %259 = vector.shape_cast %256 : vector<64x16xf32> to vector<1x64x16xf32>
    tpu.vector_store %arg8[%c1_342, %c0_343, %c0_344], %259 {strides = array<i32>} : memref<4x64x16xf32, #tpu.memory_space<vmem>>, vector<1x64x16xf32>,
    %cst_345 = arith.constant 0.000000e+00 : f32
    %260 = vector.broadcast %cst_345 : f32 to vector<64x16xf32>
    %c0_346 = arith.constant 0 : index
    %c1_347 = arith.constant 1 : index
    %c0_348 = arith.constant 0 : index
    %c0_349 = arith.constant 0 : index
    %261 = vector.load %arg9[%c0_346, %c1_347, %c0_348, %c0_349] : memref<1x10x10x32xf32, #tpu.memory_space<vmem>>, vector<1x8x8x32xf32>
    %262 = vector.shape_cast %261 : vector<1x8x8x32xf32> to vector<64x32xf32>
    %c2_350 = arith.constant 2 : index
    %c0_351 = arith.constant 0 : index
    %c0_352 = arith.constant 0 : index
    %c0_353 = arith.constant 0 : index
    %263 = vector.load %arg6[%c2_350, %c0_351, %c0_352, %c0_353] : memref<4x4x32x16xf32, #tpu.memory_space<vmem>>, vector<1x1x32x16xf32>
    %264 = vector.shape_cast %263 : vector<1x1x32x16xf32> to vector<32x16xf32>
    %cst_354 = arith.constant dense<0.000000e+00> : vector<64x16xf32>
    %265 = tpu.matmul %262, %264, %cst_354 {dimension_numbers = #tpu.dot_dimension_numbers<[1], [0], [0], [1], [0, 0, 1, 1], [], []>} : vector<64x32xf32>, vector<32x16xf32>, vector<64x16xf32> -> vector<64x16xf32>
    %266 = arith.addf %260, %265 : vector<64x16xf32>
    %c0_355 = arith.constant 0 : index
    %c1_356 = arith.constant 1 : index
    %c1_357 = arith.constant 1 : index
    %c0_358 = arith.constant 0 : index
    %267 = vector.load %arg9[%c0_355, %c1_356, %c1_357, %c0_358] : memref<1x10x10x32xf32, #tpu.memory_space<vmem>>, vector<1x8x8x32xf32>
    %268 = vector.shape_cast %267 : vector<1x8x8x32xf32> to vector<64x32xf32>
    %c2_359 = arith.constant 2 : index
    %c1_360 = arith.constant 1 : index
    %c0_361 = arith.constant 0 : index
    %c0_362 = arith.constant 0 : index
    %269 = vector.load %arg6[%c2_359, %c1_360, %c0_361, %c0_362] : memref<4x4x32x16xf32, #tpu.memory_space<vmem>>, vector<1x1x32x16xf32>
    %270 = vector.shape_cast %269 : vector<1x1x32x16xf32> to vector<32x16xf32>
    %cst_363 = arith.constant dense<0.000000e+00> : vector<64x16xf32>
    %271 = tpu.matmul %268, %270, %cst_363 {dimension_numbers = #tpu.dot_dimension_numbers<[1], [0], [0], [1], [0, 0, 1, 1], [], []>} : vector<64x32xf32>, vector<32x16xf32>, vector<64x16xf32> -> vector<64x16xf32>
    %272 = arith.addf %266, %271 : vector<64x16xf32>
    %c0_364 = arith.constant 0 : index
    %c2_365 = arith.constant 2 : index
    %c0_366 = arith.constant 0 : index
    %c0_367 = arith.constant 0 : index
    %273 = vector.load %arg9[%c0_364, %c2_365, %c0_366, %c0_367] : memref<1x10x10x32xf32, #tpu.memory_space<vmem>>, vector<1x8x8x32xf32>
    %274 = vector.shape_cast %273 : vector<1x8x8x32xf32> to vector<64x32xf32>
    %c2_368 = arith.constant 2 : index
    %c2_369 = arith.constant 2 : index
    %c0_370 = arith.constant 0 : index
    %c0_371 = arith.constant 0 : index
    %275 = vector.load %arg6[%c2_368, %c2_369, %c0_370, %c0_371] : memref<4x4x32x16xf32, #tpu.memory_space<vmem>>, vector<1x1x32x16xf32>
    %276 = vector.shape_cast %275 : vector<1x1x32x16xf32> to vector<32x16xf32>
    %cst_372 = arith.constant dense<0.000000e+00> : vector<64x16xf32>
    %277 = tpu.matmul %274, %276, %cst_372 {dimension_numbers = #tpu.dot_dimension_numbers<[1], [0], [0], [1], [0, 0, 1, 1], [], []>} : vector<64x32xf32>, vector<32x16xf32>, vector<64x16xf32> -> vector<64x16xf32>
    %278 = arith.addf %272, %277 : vector<64x16xf32>
    %c0_373 = arith.constant 0 : index
    %c2_374 = arith.constant 2 : index
    %c1_375 = arith.constant 1 : index
    %c0_376 = arith.constant 0 : index
    %279 = vector.load %arg9[%c0_373, %c2_374, %c1_375, %c0_376] : memref<1x10x10x32xf32, #tpu.memory_space<vmem>>, vector<1x8x8x32xf32>
    %280 = vector.shape_cast %279 : vector<1x8x8x32xf32> to vector<64x32xf32>
    %c2_377 = arith.constant 2 : index
    %c3_378 = arith.constant 3 : index
    %c0_379 = arith.constant 0 : index
    %c0_380 = arith.constant 0 : index
    %281 = vector.load %arg6[%c2_377, %c3_378, %c0_379, %c0_380] : memref<4x4x32x16xf32, #tpu.memory_space<vmem>>, vector<1x1x32x16xf32>
    %282 = vector.shape_cast %281 : vector<1x1x32x16xf32> to vector<32x16xf32>
    %cst_381 = arith.constant dense<0.000000e+00> : vector<64x16xf32>
    %283 = tpu.matmul %280, %282, %cst_381 {dimension_numbers = #tpu.dot_dimension_numbers<[1], [0], [0], [1], [0, 0, 1, 1], [], []>} : vector<64x32xf32>, vector<32x16xf32>, vector<64x16xf32> -> vector<64x16xf32>
    %284 = arith.addf %278, %283 : vector<64x16xf32>
    %c0_382 = arith.constant 0 : index
    %c0_383 = arith.constant 0 : index
    %285 = vector.load %arg7[%c0_382, %c0_383] : memref<1x16xf32, #tpu.memory_space<vmem>>, vector<1x16xf32>
    %286 = vector.broadcast %285 : vector<1x16xf32> to vector<64x16xf32>
    %287 = arith.addf %284, %286 : vector<64x16xf32>
    %cst_384 = arith.constant 0.000000e+00 : f32
    %288 = vector.broadcast %cst_384 : f32 to vector<64x16xf32>
    %289 = arith.maximumf %287, %288 : vector<64x16xf32>
    %c2_385 = arith.constant 2 : index
    %c0_386 = arith.constant 0 : index
    %c0_387 = arith.constant 0 : index
    %290 = vector.load %arg8[%c2_385, %c0_386, %c0_387] : memref<4x64x16xf32, #tpu.memory_space<vmem>>, vector<1x64x16xf32>
    %291 = vector.shape_cast %290 : vector<1x64x16xf32> to vector<64x16xf32>
    %292 = vector.shape_cast %289 : vector<64x16xf32> to vector<1x64x16xf32>
    tpu.vector_store %arg8[%c2_385, %c0_386, %c0_387], %292 {strides = array<i32>} : memref<4x64x16xf32, #tpu.memory_space<vmem>>, vector<1x64x16xf32>,
    %cst_388 = arith.constant 0.000000e+00 : f32
    %293 = vector.broadcast %cst_388 : f32 to vector<64x16xf32>
    %c0_389 = arith.constant 0 : index
    %c1_390 = arith.constant 1 : index
    %c1_391 = arith.constant 1 : index
    %c0_392 = arith.constant 0 : index
    %294 = vector.load %arg9[%c0_389, %c1_390, %c1_391, %c0_392] : memref<1x10x10x32xf32, #tpu.memory_space<vmem>>, vector<1x8x8x32xf32>
    %295 = vector.shape_cast %294 : vector<1x8x8x32xf32> to vector<64x32xf32>
    %c3_393 = arith.constant 3 : index
    %c0_394 = arith.constant 0 : index
    %c0_395 = arith.constant 0 : index
    %c0_396 = arith.constant 0 : index
    %296 = vector.load %arg6[%c3_393, %c0_394, %c0_395, %c0_396] : memref<4x4x32x16xf32, #tpu.memory_space<vmem>>, vector<1x1x32x16xf32>
    %297 = vector.shape_cast %296 : vector<1x1x32x16xf32> to vector<32x16xf32>
    %cst_397 = arith.constant dense<0.000000e+00> : vector<64x16xf32>
    %298 = tpu.matmul %295, %297, %cst_397 {dimension_numbers = #tpu.dot_dimension_numbers<[1], [0], [0], [1], [0, 0, 1, 1], [], []>} : vector<64x32xf32>, vector<32x16xf32>, vector<64x16xf32> -> vector<64x16xf32>
    %299 = arith.addf %293, %298 : vector<64x16xf32>
    %c0_398 = arith.constant 0 : index
    %c1_399 = arith.constant 1 : index
    %c2_400 = arith.constant 2 : index
    %c0_401 = arith.constant 0 : index
    %300 = vector.load %arg9[%c0_398, %c1_399, %c2_400, %c0_401] : memref<1x10x10x32xf32, #tpu.memory_space<vmem>>, vector<1x8x8x32xf32>
    %301 = vector.shape_cast %300 : vector<1x8x8x32xf32> to vector<64x32xf32>
    %c3_402 = arith.constant 3 : index
    %c1_403 = arith.constant 1 : index
    %c0_404 = arith.constant 0 : index
    %c0_405 = arith.constant 0 : index
    %302 = vector.load %arg6[%c3_402, %c1_403, %c0_404, %c0_405] : memref<4x4x32x16xf32, #tpu.memory_space<vmem>>, vector<1x1x32x16xf32>
    %303 = vector.shape_cast %302 : vector<1x1x32x16xf32> to vector<32x16xf32>
    %cst_406 = arith.constant dense<0.000000e+00> : vector<64x16xf32>
    %304 = tpu.matmul %301, %303, %cst_406 {dimension_numbers = #tpu.dot_dimension_numbers<[1], [0], [0], [1], [0, 0, 1, 1], [], []>} : vector<64x32xf32>, vector<32x16xf32>, vector<64x16xf32> -> vector<64x16xf32>
    %305 = arith.addf %299, %304 : vector<64x16xf32>
    %c0_407 = arith.constant 0 : index
    %c2_408 = arith.constant 2 : index
    %c1_409 = arith.constant 1 : index
    %c0_410 = arith.constant 0 : index
    %306 = vector.load %arg9[%c0_407, %c2_408, %c1_409, %c0_410] : memref<1x10x10x32xf32, #tpu.memory_space<vmem>>, vector<1x8x8x32xf32>
    %307 = vector.shape_cast %306 : vector<1x8x8x32xf32> to vector<64x32xf32>
    %c3_411 = arith.constant 3 : index
    %c2_412 = arith.constant 2 : index
    %c0_413 = arith.constant 0 : index
    %c0_414 = arith.constant 0 : index
    %308 = vector.load %arg6[%c3_411, %c2_412, %c0_413, %c0_414] : memref<4x4x32x16xf32, #tpu.memory_space<vmem>>, vector<1x1x32x16xf32>
    %309 = vector.shape_cast %308 : vector<1x1x32x16xf32> to vector<32x16xf32>
    %cst_415 = arith.constant dense<0.000000e+00> : vector<64x16xf32>
    %310 = tpu.matmul %307, %309, %cst_415 {dimension_numbers = #tpu.dot_dimension_numbers<[1], [0], [0], [1], [0, 0, 1, 1], [], []>} : vector<64x32xf32>, vector<32x16xf32>, vector<64x16xf32> -> vector<64x16xf32>
    %311 = arith.addf %305, %310 : vector<64x16xf32>
    %c0_416 = arith.constant 0 : index
    %c2_417 = arith.constant 2 : index
    %c2_418 = arith.constant 2 : index
    %c0_419 = arith.constant 0 : index
    %312 = vector.load %arg9[%c0_416, %c2_417, %c2_418, %c0_419] : memref<1x10x10x32xf32, #tpu.memory_space<vmem>>, vector<1x8x8x32xf32>
    %313 = vector.shape_cast %312 : vector<1x8x8x32xf32> to vector<64x32xf32>
    %c3_420 = arith.constant 3 : index
    %c3_421 = arith.constant 3 : index
    %c0_422 = arith.constant 0 : index
    %c0_423 = arith.constant 0 : index
    %314 = vector.load %arg6[%c3_420, %c3_421, %c0_422, %c0_423] : memref<4x4x32x16xf32, #tpu.memory_space<vmem>>, vector<1x1x32x16xf32>
    %315 = vector.shape_cast %314 : vector<1x1x32x16xf32> to vector<32x16xf32>
    %cst_424 = arith.constant dense<0.000000e+00> : vector<64x16xf32>
    %316 = tpu.matmul %313, %315, %cst_424 {dimension_numbers = #tpu.dot_dimension_numbers<[1], [0], [0], [1], [0, 0, 1, 1], [], []>} : vector<64x32xf32>, vector<32x16xf32>, vector<64x16xf32> -> vector<64x16xf32>
    %317 = arith.addf %311, %316 : vector<64x16xf32>
    %c0_425 = arith.constant 0 : index
    %c0_426 = arith.constant 0 : index
    %318 = vector.load %arg7[%c0_425, %c0_426] : memref<1x16xf32, #tpu.memory_space<vmem>>, vector<1x16xf32>
    %319 = vector.broadcast %318 : vector<1x16xf32> to vector<64x16xf32>
    %320 = arith.addf %317, %319 : vector<64x16xf32>
    %cst_427 = arith.constant 0.000000e+00 : f32
    %321 = vector.broadcast %cst_427 : f32 to vector<64x16xf32>
    %322 = arith.maximumf %320, %321 : vector<64x16xf32>
    %c3_428 = arith.constant 3 : index
    %c0_429 = arith.constant 0 : index
    %c0_430 = arith.constant 0 : index
    %323 = vector.load %arg8[%c3_428, %c0_429, %c0_430] : memref<4x64x16xf32, #tpu.memory_space<vmem>>, vector<1x64x16xf32>
    %324 = vector.shape_cast %323 : vector<1x64x16xf32> to vector<64x16xf32>
    %325 = vector.shape_cast %322 : vector<64x16xf32> to vector<1x64x16xf32>
    tpu.vector_store %arg8[%c3_428, %c0_429, %c0_430], %325 {strides = array<i32>} : memref<4x64x16xf32, #tpu.memory_space<vmem>>, vector<1x64x16xf32>,
    return
  }
  func.func @transform_0(%arg0: i32) -> (i32, i32, i32, i32) {
    %c0_i32 = arith.constant 0 : i32
    %c0_i32_0 = arith.constant 0 : i32
    %c0_i32_1 = arith.constant 0 : i32
    %c0_i32_2 = arith.constant 0 : i32
    return %arg0, %c0_i32, %c0_i32_0, %c0_i32_1 : i32, i32, i32, i32
  }
  func.func @transform_1(%arg0: i32) -> (i32, i32, i32) {
    %c0_i32 = arith.constant 0 : i32
    %c0_i32_0 = arith.constant 0 : i32
    %c0_i32_1 = arith.constant 0 : i32
    %c0_i32_2 = arith.constant 0 : i32
    return %c0_i32, %c0_i32_0, %c0_i32_1 : i32, i32, i32
  }
  func.func @transform_2(%arg0: i32) -> (i32, i32) {
    %c0_i32 = arith.constant 0 : i32
    %c0_i32_0 = arith.constant 0 : i32
    %c0_i32_1 = arith.constant 0 : i32
    return %c0_i32, %c0_i32_0 : i32, i32
  }
  func.func @transform_3(%arg0: i32) -> (i32, i32, i32, i32) {
    %c0_i32 = arith.constant 0 : i32
    %c0_i32_0 = arith.constant 0 : i32
    %c0_i32_1 = arith.constant 0 : i32
    %c0_i32_2 = arith.constant 0 : i32
    %c0_i32_3 = arith.constant 0 : i32
    return %c0_i32, %c0_i32_0, %c0_i32_1, %c0_i32_2 : i32, i32, i32, i32
  }
  func.func @transform_4(%arg0: i32) -> (i32, i32, i32) {
    %c0_i32 = arith.constant 0 : i32
    %c0_i32_0 = arith.constant 0 : i32
    %c0_i32_1 = arith.constant 0 : i32
    %c0_i32_2 = arith.constant 0 : i32
    return %c0_i32, %c0_i32_0, %c0_i32_1 : i32, i32, i32
  }
  func.func @transform_5(%arg0: i32) -> (i32, i32, i32, i32) {
    %c0_i32 = arith.constant 0 : i32
    %c0_i32_0 = arith.constant 0 : i32
    %c0_i32_1 = arith.constant 0 : i32
    %c0_i32_2 = arith.constant 0 : i32
    %c0_i32_3 = arith.constant 0 : i32
    return %c0_i32, %c0_i32_0, %c0_i32_1, %c0_i32_2 : i32, i32, i32, i32
  }
  func.func @transform_6(%arg0: i32) -> (i32, i32) {
    %c0_i32 = arith.constant 0 : i32
    %c0_i32_0 = arith.constant 0 : i32
    %c0_i32_1 = arith.constant 0 : i32
    return %c0_i32, %c0_i32_0 : i32, i32
  }
  func.func @transform_7(%arg0: i32) -> (i32, i32, i32) {
    %c0_i32 = arith.constant 0 : i32
    %c0_i32_0 = arith.constant 0 : i32
    %c0_i32_1 = arith.constant 0 : i32
    return %c0_i32, %arg0, %c0_i32_0 : i32, i32, i32
  }
}

module attributes {stable_mosaic.version = 11 : i64} {
  func.func @_subpixel_deconv_kernel(%arg0: i32, %arg1: memref<1x18x18x16xf32, #tpu.memory_space<vmem>>, %arg2: memref<4x4x16x3xf32, #tpu.memory_space<vmem>>, %arg3: memref<1x3xf32, #tpu.memory_space<vmem>>, %arg4: memref<4x256x3xf32, #tpu.memory_space<vmem>>) attributes {dimension_semantics = [#tpu.dimension_semantics<parallel>], iteration_bounds = array<i64: 2>, scalar_prefetch = 0 : i64, scratch_operands = 0 : i64, tpu.core_type = #tpu.core_type<tc>, window_params = [{transform_indices = @transform_0, window_bounds = array<i64: 1, 18, 18, 16>}, {pipeline_mode = #tpu.pipeline_mode<synchronous>, transform_indices = @transform_1, window_bounds = array<i64: 4, 4, 16, 3>}, {pipeline_mode = #tpu.pipeline_mode<synchronous>, transform_indices = @transform_2, window_bounds = array<i64: 1, 3>}, {transform_indices = @transform_3, window_bounds = array<i64: 4, 256, 3>}]} {
    %cst = arith.constant 0.000000e+00 : f32
    %0 = vector.broadcast %cst : f32 to vector<256x3xf32>
    %c0 = arith.constant 0 : index
    %c0_0 = arith.constant 0 : index
    %c0_1 = arith.constant 0 : index
    %c0_2 = arith.constant 0 : index
    %1 = vector.load %arg1[%c0, %c0_0, %c0_1, %c0_2] : memref<1x18x18x16xf32, #tpu.memory_space<vmem>>, vector<1x16x16x16xf32>
    %2 = vector.shape_cast %1 : vector<1x16x16x16xf32> to vector<256x16xf32>
    %c0_3 = arith.constant 0 : index
    %c0_4 = arith.constant 0 : index
    %c0_5 = arith.constant 0 : index
    %c0_6 = arith.constant 0 : index
    %3 = vector.load %arg2[%c0_3, %c0_4, %c0_5, %c0_6] : memref<4x4x16x3xf32, #tpu.memory_space<vmem>>, vector<1x1x16x3xf32>
    %4 = vector.shape_cast %3 : vector<1x1x16x3xf32> to vector<16x3xf32>
    %cst_7 = arith.constant dense<0.000000e+00> : vector<256x3xf32>
    %5 = tpu.matmul %2, %4, %cst_7 {dimension_numbers = #tpu.dot_dimension_numbers<[1], [0], [0], [1], [0, 0, 1, 1], [], []>} : vector<256x16xf32>, vector<16x3xf32>, vector<256x3xf32> -> vector<256x3xf32>
    %6 = arith.addf %0, %5 : vector<256x3xf32>
    %c0_8 = arith.constant 0 : index
    %c0_9 = arith.constant 0 : index
    %c1 = arith.constant 1 : index
    %c0_10 = arith.constant 0 : index
    %7 = vector.load %arg1[%c0_8, %c0_9, %c1, %c0_10] : memref<1x18x18x16xf32, #tpu.memory_space<vmem>>, vector<1x16x16x16xf32>
    %8 = vector.shape_cast %7 : vector<1x16x16x16xf32> to vector<256x16xf32>
    %c0_11 = arith.constant 0 : index
    %c1_12 = arith.constant 1 : index
    %c0_13 = arith.constant 0 : index
    %c0_14 = arith.constant 0 : index
    %9 = vector.load %arg2[%c0_11, %c1_12, %c0_13, %c0_14] : memref<4x4x16x3xf32, #tpu.memory_space<vmem>>, vector<1x1x16x3xf32>
    %10 = vector.shape_cast %9 : vector<1x1x16x3xf32> to vector<16x3xf32>
    %cst_15 = arith.constant dense<0.000000e+00> : vector<256x3xf32>
    %11 = tpu.matmul %8, %10, %cst_15 {dimension_numbers = #tpu.dot_dimension_numbers<[1], [0], [0], [1], [0, 0, 1, 1], [], []>} : vector<256x16xf32>, vector<16x3xf32>, vector<256x3xf32> -> vector<256x3xf32>
    %12 = arith.addf %6, %11 : vector<256x3xf32>
    %c0_16 = arith.constant 0 : index
    %c1_17 = arith.constant 1 : index
    %c0_18 = arith.constant 0 : index
    %c0_19 = arith.constant 0 : index
    %13 = vector.load %arg1[%c0_16, %c1_17, %c0_18, %c0_19] : memref<1x18x18x16xf32, #tpu.memory_space<vmem>>, vector<1x16x16x16xf32>
    %14 = vector.shape_cast %13 : vector<1x16x16x16xf32> to vector<256x16xf32>
    %c0_20 = arith.constant 0 : index
    %c2 = arith.constant 2 : index
    %c0_21 = arith.constant 0 : index
    %c0_22 = arith.constant 0 : index
    %15 = vector.load %arg2[%c0_20, %c2, %c0_21, %c0_22] : memref<4x4x16x3xf32, #tpu.memory_space<vmem>>, vector<1x1x16x3xf32>
    %16 = vector.shape_cast %15 : vector<1x1x16x3xf32> to vector<16x3xf32>
    %cst_23 = arith.constant dense<0.000000e+00> : vector<256x3xf32>
    %17 = tpu.matmul %14, %16, %cst_23 {dimension_numbers = #tpu.dot_dimension_numbers<[1], [0], [0], [1], [0, 0, 1, 1], [], []>} : vector<256x16xf32>, vector<16x3xf32>, vector<256x3xf32> -> vector<256x3xf32>
    %18 = arith.addf %12, %17 : vector<256x3xf32>
    %c0_24 = arith.constant 0 : index
    %c1_25 = arith.constant 1 : index
    %c1_26 = arith.constant 1 : index
    %c0_27 = arith.constant 0 : index
    %19 = vector.load %arg1[%c0_24, %c1_25, %c1_26, %c0_27] : memref<1x18x18x16xf32, #tpu.memory_space<vmem>>, vector<1x16x16x16xf32>
    %20 = vector.shape_cast %19 : vector<1x16x16x16xf32> to vector<256x16xf32>
    %c0_28 = arith.constant 0 : index
    %c3 = arith.constant 3 : index
    %c0_29 = arith.constant 0 : index
    %c0_30 = arith.constant 0 : index
    %21 = vector.load %arg2[%c0_28, %c3, %c0_29, %c0_30] : memref<4x4x16x3xf32, #tpu.memory_space<vmem>>, vector<1x1x16x3xf32>
    %22 = vector.shape_cast %21 : vector<1x1x16x3xf32> to vector<16x3xf32>
    %cst_31 = arith.constant dense<0.000000e+00> : vector<256x3xf32>
    %23 = tpu.matmul %20, %22, %cst_31 {dimension_numbers = #tpu.dot_dimension_numbers<[1], [0], [0], [1], [0, 0, 1, 1], [], []>} : vector<256x16xf32>, vector<16x3xf32>, vector<256x3xf32> -> vector<256x3xf32>
    %24 = arith.addf %18, %23 : vector<256x3xf32>
    %c0_32 = arith.constant 0 : index
    %c0_33 = arith.constant 0 : index
    %25 = vector.load %arg3[%c0_32, %c0_33] : memref<1x3xf32, #tpu.memory_space<vmem>>, vector<1x3xf32>
    %26 = vector.broadcast %25 : vector<1x3xf32> to vector<256x3xf32>
    %27 = arith.addf %24, %26 : vector<256x3xf32>
    %c0_34 = arith.constant 0 : index
    %c0_35 = arith.constant 0 : index
    %c0_36 = arith.constant 0 : index
    %28 = vector.load %arg4[%c0_34, %c0_35, %c0_36] : memref<4x256x3xf32, #tpu.memory_space<vmem>>, vector<1x256x3xf32>
    %29 = vector.shape_cast %28 : vector<1x256x3xf32> to vector<256x3xf32>
    %30 = vector.shape_cast %27 : vector<256x3xf32> to vector<1x256x3xf32>
    tpu.vector_store %arg4[%c0_34, %c0_35, %c0_36], %30 {strides = array<i32>} : memref<4x256x3xf32, #tpu.memory_space<vmem>>, vector<1x256x3xf32>,
    %cst_37 = arith.constant 0.000000e+00 : f32
    %31 = vector.broadcast %cst_37 : f32 to vector<256x3xf32>
    %c0_38 = arith.constant 0 : index
    %c0_39 = arith.constant 0 : index
    %c1_40 = arith.constant 1 : index
    %c0_41 = arith.constant 0 : index
    %32 = vector.load %arg1[%c0_38, %c0_39, %c1_40, %c0_41] : memref<1x18x18x16xf32, #tpu.memory_space<vmem>>, vector<1x16x16x16xf32>
    %33 = vector.shape_cast %32 : vector<1x16x16x16xf32> to vector<256x16xf32>
    %c1_42 = arith.constant 1 : index
    %c0_43 = arith.constant 0 : index
    %c0_44 = arith.constant 0 : index
    %c0_45 = arith.constant 0 : index
    %34 = vector.load %arg2[%c1_42, %c0_43, %c0_44, %c0_45] : memref<4x4x16x3xf32, #tpu.memory_space<vmem>>, vector<1x1x16x3xf32>
    %35 = vector.shape_cast %34 : vector<1x1x16x3xf32> to vector<16x3xf32>
    %cst_46 = arith.constant dense<0.000000e+00> : vector<256x3xf32>
    %36 = tpu.matmul %33, %35, %cst_46 {dimension_numbers = #tpu.dot_dimension_numbers<[1], [0], [0], [1], [0, 0, 1, 1], [], []>} : vector<256x16xf32>, vector<16x3xf32>, vector<256x3xf32> -> vector<256x3xf32>
    %37 = arith.addf %31, %36 : vector<256x3xf32>
    %c0_47 = arith.constant 0 : index
    %c0_48 = arith.constant 0 : index
    %c2_49 = arith.constant 2 : index
    %c0_50 = arith.constant 0 : index
    %38 = vector.load %arg1[%c0_47, %c0_48, %c2_49, %c0_50] : memref<1x18x18x16xf32, #tpu.memory_space<vmem>>, vector<1x16x16x16xf32>
    %39 = vector.shape_cast %38 : vector<1x16x16x16xf32> to vector<256x16xf32>
    %c1_51 = arith.constant 1 : index
    %c1_52 = arith.constant 1 : index
    %c0_53 = arith.constant 0 : index
    %c0_54 = arith.constant 0 : index
    %40 = vector.load %arg2[%c1_51, %c1_52, %c0_53, %c0_54] : memref<4x4x16x3xf32, #tpu.memory_space<vmem>>, vector<1x1x16x3xf32>
    %41 = vector.shape_cast %40 : vector<1x1x16x3xf32> to vector<16x3xf32>
    %cst_55 = arith.constant dense<0.000000e+00> : vector<256x3xf32>
    %42 = tpu.matmul %39, %41, %cst_55 {dimension_numbers = #tpu.dot_dimension_numbers<[1], [0], [0], [1], [0, 0, 1, 1], [], []>} : vector<256x16xf32>, vector<16x3xf32>, vector<256x3xf32> -> vector<256x3xf32>
    %43 = arith.addf %37, %42 : vector<256x3xf32>
    %c0_56 = arith.constant 0 : index
    %c1_57 = arith.constant 1 : index
    %c1_58 = arith.constant 1 : index
    %c0_59 = arith.constant 0 : index
    %44 = vector.load %arg1[%c0_56, %c1_57, %c1_58, %c0_59] : memref<1x18x18x16xf32, #tpu.memory_space<vmem>>, vector<1x16x16x16xf32>
    %45 = vector.shape_cast %44 : vector<1x16x16x16xf32> to vector<256x16xf32>
    %c1_60 = arith.constant 1 : index
    %c2_61 = arith.constant 2 : index
    %c0_62 = arith.constant 0 : index
    %c0_63 = arith.constant 0 : index
    %46 = vector.load %arg2[%c1_60, %c2_61, %c0_62, %c0_63] : memref<4x4x16x3xf32, #tpu.memory_space<vmem>>, vector<1x1x16x3xf32>
    %47 = vector.shape_cast %46 : vector<1x1x16x3xf32> to vector<16x3xf32>
    %cst_64 = arith.constant dense<0.000000e+00> : vector<256x3xf32>
    %48 = tpu.matmul %45, %47, %cst_64 {dimension_numbers = #tpu.dot_dimension_numbers<[1], [0], [0], [1], [0, 0, 1, 1], [], []>} : vector<256x16xf32>, vector<16x3xf32>, vector<256x3xf32> -> vector<256x3xf32>
    %49 = arith.addf %43, %48 : vector<256x3xf32>
    %c0_65 = arith.constant 0 : index
    %c1_66 = arith.constant 1 : index
    %c2_67 = arith.constant 2 : index
    %c0_68 = arith.constant 0 : index
    %50 = vector.load %arg1[%c0_65, %c1_66, %c2_67, %c0_68] : memref<1x18x18x16xf32, #tpu.memory_space<vmem>>, vector<1x16x16x16xf32>
    %51 = vector.shape_cast %50 : vector<1x16x16x16xf32> to vector<256x16xf32>
    %c1_69 = arith.constant 1 : index
    %c3_70 = arith.constant 3 : index
    %c0_71 = arith.constant 0 : index
    %c0_72 = arith.constant 0 : index
    %52 = vector.load %arg2[%c1_69, %c3_70, %c0_71, %c0_72] : memref<4x4x16x3xf32, #tpu.memory_space<vmem>>, vector<1x1x16x3xf32>
    %53 = vector.shape_cast %52 : vector<1x1x16x3xf32> to vector<16x3xf32>
    %cst_73 = arith.constant dense<0.000000e+00> : vector<256x3xf32>
    %54 = tpu.matmul %51, %53, %cst_73 {dimension_numbers = #tpu.dot_dimension_numbers<[1], [0], [0], [1], [0, 0, 1, 1], [], []>} : vector<256x16xf32>, vector<16x3xf32>, vector<256x3xf32> -> vector<256x3xf32>
    %55 = arith.addf %49, %54 : vector<256x3xf32>
    %c0_74 = arith.constant 0 : index
    %c0_75 = arith.constant 0 : index
    %56 = vector.load %arg3[%c0_74, %c0_75] : memref<1x3xf32, #tpu.memory_space<vmem>>, vector<1x3xf32>
    %57 = vector.broadcast %56 : vector<1x3xf32> to vector<256x3xf32>
    %58 = arith.addf %55, %57 : vector<256x3xf32>
    %c1_76 = arith.constant 1 : index
    %c0_77 = arith.constant 0 : index
    %c0_78 = arith.constant 0 : index
    %59 = vector.load %arg4[%c1_76, %c0_77, %c0_78] : memref<4x256x3xf32, #tpu.memory_space<vmem>>, vector<1x256x3xf32>
    %60 = vector.shape_cast %59 : vector<1x256x3xf32> to vector<256x3xf32>
    %61 = vector.shape_cast %58 : vector<256x3xf32> to vector<1x256x3xf32>
    tpu.vector_store %arg4[%c1_76, %c0_77, %c0_78], %61 {strides = array<i32>} : memref<4x256x3xf32, #tpu.memory_space<vmem>>, vector<1x256x3xf32>,
    %cst_79 = arith.constant 0.000000e+00 : f32
    %62 = vector.broadcast %cst_79 : f32 to vector<256x3xf32>
    %c0_80 = arith.constant 0 : index
    %c1_81 = arith.constant 1 : index
    %c0_82 = arith.constant 0 : index
    %c0_83 = arith.constant 0 : index
    %63 = vector.load %arg1[%c0_80, %c1_81, %c0_82, %c0_83] : memref<1x18x18x16xf32, #tpu.memory_space<vmem>>, vector<1x16x16x16xf32>
    %64 = vector.shape_cast %63 : vector<1x16x16x16xf32> to vector<256x16xf32>
    %c2_84 = arith.constant 2 : index
    %c0_85 = arith.constant 0 : index
    %c0_86 = arith.constant 0 : index
    %c0_87 = arith.constant 0 : index
    %65 = vector.load %arg2[%c2_84, %c0_85, %c0_86, %c0_87] : memref<4x4x16x3xf32, #tpu.memory_space<vmem>>, vector<1x1x16x3xf32>
    %66 = vector.shape_cast %65 : vector<1x1x16x3xf32> to vector<16x3xf32>
    %cst_88 = arith.constant dense<0.000000e+00> : vector<256x3xf32>
    %67 = tpu.matmul %64, %66, %cst_88 {dimension_numbers = #tpu.dot_dimension_numbers<[1], [0], [0], [1], [0, 0, 1, 1], [], []>} : vector<256x16xf32>, vector<16x3xf32>, vector<256x3xf32> -> vector<256x3xf32>
    %68 = arith.addf %62, %67 : vector<256x3xf32>
    %c0_89 = arith.constant 0 : index
    %c1_90 = arith.constant 1 : index
    %c1_91 = arith.constant 1 : index
    %c0_92 = arith.constant 0 : index
    %69 = vector.load %arg1[%c0_89, %c1_90, %c1_91, %c0_92] : memref<1x18x18x16xf32, #tpu.memory_space<vmem>>, vector<1x16x16x16xf32>
    %70 = vector.shape_cast %69 : vector<1x16x16x16xf32> to vector<256x16xf32>
    %c2_93 = arith.constant 2 : index
    %c1_94 = arith.constant 1 : index
    %c0_95 = arith.constant 0 : index
    %c0_96 = arith.constant 0 : index
    %71 = vector.load %arg2[%c2_93, %c1_94, %c0_95, %c0_96] : memref<4x4x16x3xf32, #tpu.memory_space<vmem>>, vector<1x1x16x3xf32>
    %72 = vector.shape_cast %71 : vector<1x1x16x3xf32> to vector<16x3xf32>
    %cst_97 = arith.constant dense<0.000000e+00> : vector<256x3xf32>
    %73 = tpu.matmul %70, %72, %cst_97 {dimension_numbers = #tpu.dot_dimension_numbers<[1], [0], [0], [1], [0, 0, 1, 1], [], []>} : vector<256x16xf32>, vector<16x3xf32>, vector<256x3xf32> -> vector<256x3xf32>
    %74 = arith.addf %68, %73 : vector<256x3xf32>
    %c0_98 = arith.constant 0 : index
    %c2_99 = arith.constant 2 : index
    %c0_100 = arith.constant 0 : index
    %c0_101 = arith.constant 0 : index
    %75 = vector.load %arg1[%c0_98, %c2_99, %c0_100, %c0_101] : memref<1x18x18x16xf32, #tpu.memory_space<vmem>>, vector<1x16x16x16xf32>
    %76 = vector.shape_cast %75 : vector<1x16x16x16xf32> to vector<256x16xf32>
    %c2_102 = arith.constant 2 : index
    %c2_103 = arith.constant 2 : index
    %c0_104 = arith.constant 0 : index
    %c0_105 = arith.constant 0 : index
    %77 = vector.load %arg2[%c2_102, %c2_103, %c0_104, %c0_105] : memref<4x4x16x3xf32, #tpu.memory_space<vmem>>, vector<1x1x16x3xf32>
    %78 = vector.shape_cast %77 : vector<1x1x16x3xf32> to vector<16x3xf32>
    %cst_106 = arith.constant dense<0.000000e+00> : vector<256x3xf32>
    %79 = tpu.matmul %76, %78, %cst_106 {dimension_numbers = #tpu.dot_dimension_numbers<[1], [0], [0], [1], [0, 0, 1, 1], [], []>} : vector<256x16xf32>, vector<16x3xf32>, vector<256x3xf32> -> vector<256x3xf32>
    %80 = arith.addf %74, %79 : vector<256x3xf32>
    %c0_107 = arith.constant 0 : index
    %c2_108 = arith.constant 2 : index
    %c1_109 = arith.constant 1 : index
    %c0_110 = arith.constant 0 : index
    %81 = vector.load %arg1[%c0_107, %c2_108, %c1_109, %c0_110] : memref<1x18x18x16xf32, #tpu.memory_space<vmem>>, vector<1x16x16x16xf32>
    %82 = vector.shape_cast %81 : vector<1x16x16x16xf32> to vector<256x16xf32>
    %c2_111 = arith.constant 2 : index
    %c3_112 = arith.constant 3 : index
    %c0_113 = arith.constant 0 : index
    %c0_114 = arith.constant 0 : index
    %83 = vector.load %arg2[%c2_111, %c3_112, %c0_113, %c0_114] : memref<4x4x16x3xf32, #tpu.memory_space<vmem>>, vector<1x1x16x3xf32>
    %84 = vector.shape_cast %83 : vector<1x1x16x3xf32> to vector<16x3xf32>
    %cst_115 = arith.constant dense<0.000000e+00> : vector<256x3xf32>
    %85 = tpu.matmul %82, %84, %cst_115 {dimension_numbers = #tpu.dot_dimension_numbers<[1], [0], [0], [1], [0, 0, 1, 1], [], []>} : vector<256x16xf32>, vector<16x3xf32>, vector<256x3xf32> -> vector<256x3xf32>
    %86 = arith.addf %80, %85 : vector<256x3xf32>
    %c0_116 = arith.constant 0 : index
    %c0_117 = arith.constant 0 : index
    %87 = vector.load %arg3[%c0_116, %c0_117] : memref<1x3xf32, #tpu.memory_space<vmem>>, vector<1x3xf32>
    %88 = vector.broadcast %87 : vector<1x3xf32> to vector<256x3xf32>
    %89 = arith.addf %86, %88 : vector<256x3xf32>
    %c2_118 = arith.constant 2 : index
    %c0_119 = arith.constant 0 : index
    %c0_120 = arith.constant 0 : index
    %90 = vector.load %arg4[%c2_118, %c0_119, %c0_120] : memref<4x256x3xf32, #tpu.memory_space<vmem>>, vector<1x256x3xf32>
    %91 = vector.shape_cast %90 : vector<1x256x3xf32> to vector<256x3xf32>
    %92 = vector.shape_cast %89 : vector<256x3xf32> to vector<1x256x3xf32>
    tpu.vector_store %arg4[%c2_118, %c0_119, %c0_120], %92 {strides = array<i32>} : memref<4x256x3xf32, #tpu.memory_space<vmem>>, vector<1x256x3xf32>,
    %cst_121 = arith.constant 0.000000e+00 : f32
    %93 = vector.broadcast %cst_121 : f32 to vector<256x3xf32>
    %c0_122 = arith.constant 0 : index
    %c1_123 = arith.constant 1 : index
    %c1_124 = arith.constant 1 : index
    %c0_125 = arith.constant 0 : index
    %94 = vector.load %arg1[%c0_122, %c1_123, %c1_124, %c0_125] : memref<1x18x18x16xf32, #tpu.memory_space<vmem>>, vector<1x16x16x16xf32>
    %95 = vector.shape_cast %94 : vector<1x16x16x16xf32> to vector<256x16xf32>
    %c3_126 = arith.constant 3 : index
    %c0_127 = arith.constant 0 : index
    %c0_128 = arith.constant 0 : index
    %c0_129 = arith.constant 0 : index
    %96 = vector.load %arg2[%c3_126, %c0_127, %c0_128, %c0_129] : memref<4x4x16x3xf32, #tpu.memory_space<vmem>>, vector<1x1x16x3xf32>
    %97 = vector.shape_cast %96 : vector<1x1x16x3xf32> to vector<16x3xf32>
    %cst_130 = arith.constant dense<0.000000e+00> : vector<256x3xf32>
    %98 = tpu.matmul %95, %97, %cst_130 {dimension_numbers = #tpu.dot_dimension_numbers<[1], [0], [0], [1], [0, 0, 1, 1], [], []>} : vector<256x16xf32>, vector<16x3xf32>, vector<256x3xf32> -> vector<256x3xf32>
    %99 = arith.addf %93, %98 : vector<256x3xf32>
    %c0_131 = arith.constant 0 : index
    %c1_132 = arith.constant 1 : index
    %c2_133 = arith.constant 2 : index
    %c0_134 = arith.constant 0 : index
    %100 = vector.load %arg1[%c0_131, %c1_132, %c2_133, %c0_134] : memref<1x18x18x16xf32, #tpu.memory_space<vmem>>, vector<1x16x16x16xf32>
    %101 = vector.shape_cast %100 : vector<1x16x16x16xf32> to vector<256x16xf32>
    %c3_135 = arith.constant 3 : index
    %c1_136 = arith.constant 1 : index
    %c0_137 = arith.constant 0 : index
    %c0_138 = arith.constant 0 : index
    %102 = vector.load %arg2[%c3_135, %c1_136, %c0_137, %c0_138] : memref<4x4x16x3xf32, #tpu.memory_space<vmem>>, vector<1x1x16x3xf32>
    %103 = vector.shape_cast %102 : vector<1x1x16x3xf32> to vector<16x3xf32>
    %cst_139 = arith.constant dense<0.000000e+00> : vector<256x3xf32>
    %104 = tpu.matmul %101, %103, %cst_139 {dimension_numbers = #tpu.dot_dimension_numbers<[1], [0], [0], [1], [0, 0, 1, 1], [], []>} : vector<256x16xf32>, vector<16x3xf32>, vector<256x3xf32> -> vector<256x3xf32>
    %105 = arith.addf %99, %104 : vector<256x3xf32>
    %c0_140 = arith.constant 0 : index
    %c2_141 = arith.constant 2 : index
    %c1_142 = arith.constant 1 : index
    %c0_143 = arith.constant 0 : index
    %106 = vector.load %arg1[%c0_140, %c2_141, %c1_142, %c0_143] : memref<1x18x18x16xf32, #tpu.memory_space<vmem>>, vector<1x16x16x16xf32>
    %107 = vector.shape_cast %106 : vector<1x16x16x16xf32> to vector<256x16xf32>
    %c3_144 = arith.constant 3 : index
    %c2_145 = arith.constant 2 : index
    %c0_146 = arith.constant 0 : index
    %c0_147 = arith.constant 0 : index
    %108 = vector.load %arg2[%c3_144, %c2_145, %c0_146, %c0_147] : memref<4x4x16x3xf32, #tpu.memory_space<vmem>>, vector<1x1x16x3xf32>
    %109 = vector.shape_cast %108 : vector<1x1x16x3xf32> to vector<16x3xf32>
    %cst_148 = arith.constant dense<0.000000e+00> : vector<256x3xf32>
    %110 = tpu.matmul %107, %109, %cst_148 {dimension_numbers = #tpu.dot_dimension_numbers<[1], [0], [0], [1], [0, 0, 1, 1], [], []>} : vector<256x16xf32>, vector<16x3xf32>, vector<256x3xf32> -> vector<256x3xf32>
    %111 = arith.addf %105, %110 : vector<256x3xf32>
    %c0_149 = arith.constant 0 : index
    %c2_150 = arith.constant 2 : index
    %c2_151 = arith.constant 2 : index
    %c0_152 = arith.constant 0 : index
    %112 = vector.load %arg1[%c0_149, %c2_150, %c2_151, %c0_152] : memref<1x18x18x16xf32, #tpu.memory_space<vmem>>, vector<1x16x16x16xf32>
    %113 = vector.shape_cast %112 : vector<1x16x16x16xf32> to vector<256x16xf32>
    %c3_153 = arith.constant 3 : index
    %c3_154 = arith.constant 3 : index
    %c0_155 = arith.constant 0 : index
    %c0_156 = arith.constant 0 : index
    %114 = vector.load %arg2[%c3_153, %c3_154, %c0_155, %c0_156] : memref<4x4x16x3xf32, #tpu.memory_space<vmem>>, vector<1x1x16x3xf32>
    %115 = vector.shape_cast %114 : vector<1x1x16x3xf32> to vector<16x3xf32>
    %cst_157 = arith.constant dense<0.000000e+00> : vector<256x3xf32>
    %116 = tpu.matmul %113, %115, %cst_157 {dimension_numbers = #tpu.dot_dimension_numbers<[1], [0], [0], [1], [0, 0, 1, 1], [], []>} : vector<256x16xf32>, vector<16x3xf32>, vector<256x3xf32> -> vector<256x3xf32>
    %117 = arith.addf %111, %116 : vector<256x3xf32>
    %c0_158 = arith.constant 0 : index
    %c0_159 = arith.constant 0 : index
    %118 = vector.load %arg3[%c0_158, %c0_159] : memref<1x3xf32, #tpu.memory_space<vmem>>, vector<1x3xf32>
    %119 = vector.broadcast %118 : vector<1x3xf32> to vector<256x3xf32>
    %120 = arith.addf %117, %119 : vector<256x3xf32>
    %c3_160 = arith.constant 3 : index
    %c0_161 = arith.constant 0 : index
    %c0_162 = arith.constant 0 : index
    %121 = vector.load %arg4[%c3_160, %c0_161, %c0_162] : memref<4x256x3xf32, #tpu.memory_space<vmem>>, vector<1x256x3xf32>
    %122 = vector.shape_cast %121 : vector<1x256x3xf32> to vector<256x3xf32>
    %123 = vector.shape_cast %120 : vector<256x3xf32> to vector<1x256x3xf32>
    tpu.vector_store %arg4[%c3_160, %c0_161, %c0_162], %123 {strides = array<i32>} : memref<4x256x3xf32, #tpu.memory_space<vmem>>, vector<1x256x3xf32>,
    return
  }
  func.func @transform_0(%arg0: i32) -> (i32, i32, i32, i32) {
    %c0_i32 = arith.constant 0 : i32
    %c0_i32_0 = arith.constant 0 : i32
    %c0_i32_1 = arith.constant 0 : i32
    %c0_i32_2 = arith.constant 0 : i32
    return %arg0, %c0_i32, %c0_i32_0, %c0_i32_1 : i32, i32, i32, i32
  }
  func.func @transform_1(%arg0: i32) -> (i32, i32, i32, i32) {
    %c0_i32 = arith.constant 0 : i32
    %c0_i32_0 = arith.constant 0 : i32
    %c0_i32_1 = arith.constant 0 : i32
    %c0_i32_2 = arith.constant 0 : i32
    %c0_i32_3 = arith.constant 0 : i32
    return %c0_i32, %c0_i32_0, %c0_i32_1, %c0_i32_2 : i32, i32, i32, i32
  }
  func.func @transform_2(%arg0: i32) -> (i32, i32) {
    %c0_i32 = arith.constant 0 : i32
    %c0_i32_0 = arith.constant 0 : i32
    %c0_i32_1 = arith.constant 0 : i32
    return %c0_i32, %c0_i32_0 : i32, i32
  }
  func.func @transform_3(%arg0: i32) -> (i32, i32, i32) {
    %c0_i32 = arith.constant 0 : i32
    %c0_i32_0 = arith.constant 0 : i32
    %c0_i32_1 = arith.constant 0 : i32
    return %c0_i32, %arg0, %c0_i32_0 : i32, i32, i32
  }
}

</mosaic_0001>

<bundles_post_ra>
// kernel: _lambda_.3
= control target key start
LH: loop header
LB: loop body
LE: loop exit
PB: predicated region body
PF: predicated region fallthrough
CT: control target
= control target key end

     0   :  { %s9941_s12 = smov 0   ;;  %s9943_s13 = smov 0   ;;  %s12278_s0 = inlined_call_operand.vmem [shape: f32[2,18,18,16], index: 0, kind: input, shape index: {}]   ;;  %s12279_s1 = inlined_call_operand.vmem [shape: f32[4,4,16,3], index: 1, kind: input, shape index: {}]   ;;  %s12280_s2 = inlined_call_operand.vmem [shape: f32[1,3], index: 2, kind: input, shape index: {}]   ;;  %s12281_s3 = inlined_call_operand.vmem [shape: f32[4,512,3], index: 3, kind: output, shape index: {}]  }
   0x1   :  { %s9945_s14 = smov 0  }
   0x2 LB: > { %s9954_s15 = sadd.s32 4294967295, %s9919_s14   ;;  %s9956_s16 = sadd.s32 1, %s9919_s14   ;;  %s9919_s14 = sphi %s9945_s14, %s12389_s14   ;;  %s9915_s13 = sphi %s9943_s13, %s12388_s13   ;;  %s9911_s12 = sphi %s9941_s12, %s12387_s12  }
   0x3   : > { %s85_s17 = ssub.s32 %s9919_s14, %s9956_s16  ;;  %s88_s18 = sadd.s32 1, %s9915_s13 }
   0x4   : > { %p86_p0 = scmp.eq.s32.totalorder %s85_s17, 0  ;;  %p98_p1 = scmp.ne.s32.totalorder %s9915_s13, %s9911_s12 }
   0x5   : > { %p99_p2 = scmp.eq.s32.totalorder %s9954_s15, 1  ;;  %p7012_p3 = scmp.ge.s32.totalorder %s9919_s14, 1 }
   0x6   : > { %s9964_s19 = scalar_select %p86_p0, %s9915_s13, %s88_s18  }
   0x7   : > { %p9966_p4 = por %p99_p2, %p98_p1  ;;  %p137_p5 = scmp.lt.s32.totalorder %s9919_s14, 3 }
   0x9   : > { %p138_p6 = pnand %p7012_p3, %p137_p5 }
   0xb   : > { %141 = sbr.rel (%p138_p6) target bundleno = 801 (0x321), region = 32 }
  0x12   : > { %v7015_v0 = vld [vmem:[%s12279_s1 + $0x10] sm:$0xff]  ;;  %v7016_v1 = vld [vmem:[%s12279_s1 + $0x18] sm:$0xff]  ;;  %p160_p7 = scmp.lt.s32.totalorder %s9954_s15, 1  ;;  %v198_v5 = vld [vmem:[%s12279_s1] sm:$0xff]  ;;  %vm235_vm0 = vcmask 130048   ;;  %s157_s29 = sand.u32 1, %s9911_s12  }
  0x13   : > { %v7216_v2 = vld [vmem:[%s12279_s1 + $0x50] sm:$0xff]  ;;  %v9423_v3 = vpack.c.bf16 %v7016_v1, %v7015_v0  ;;  %v7217_v4 = vld [vmem:[%s12279_s1 + $0x58] sm:$0xff]  ;;  %v199_v6 = vld [vmem:[%s12279_s1 + $0x8] sm:$0xff]  ;;  %s7013_s30 = sshll.u32 %s157_s29, 10  ;;  %vm1694_vm1 = vcmask 23552   ;;  %s8046_s7 = sshll.u32 (%p9966_p4), %s9954_s15, 8 }
  0x14   : > { %v9439_v7 = vpack.c.bf16 %v7217_v4, %v7216_v2  ;;  %s161_s6 = scalar_select %p160_p7, %s9954_s15, 1  ;;  %v9427_v8 = vpack.c.bf16 %v199_v6, %v198_v5  ;;  %v7214_v9 = vld [vmem:[%s12279_s1 + $0x40] sm:$0xff]  ;;  %v7215_v10 = vld [vmem:[%s12279_s1 + $0x48] sm:$0xff] }
  0x15   : > { %9424 = vmatprep.subr.bf16.mxu0 %v9423_v3  ;;  %v9443_v11 = vpack.c.bf16 %v7215_v10, %v7214_v9  ;;  %v7113_v12 = vld [vmem:[%s12279_s1 + $0x20] sm:$0xff]  ;;  %v7114_v13 = vld [vmem:[%s12279_s1 + $0x28] sm:$0xff]  ;;  %s11419_s12 = scalar_lea.vmem [#allocation2], %s7013_s30  ;;  %s12013_s10 = scalar_lea.vmem (%p9966_p4), %s12281_s3, %s8046_s7 }
  0x16   : > { %9440 = vmatprep.subr.bf16.mxu1 %v9439_v7  ;;  %9426 = vmatpush3.bf16.msra.mxu0 %v9423_v3  ;;  %s9871_s11 = smul.u32 432, %s161_s6  ;;  %v7314_v14 = vld [vmem:[%s12279_s1 + $0x60] sm:$0xff]  ;;  %v7315_v15 = vld [vmem:[%s12279_s1 + $0x68] sm:$0xff]  ;;  %v10030_v22 = vpack.c.bf16 %v7114_v13, %v7113_v12 }
  0x17   : > { %9442 = vmatpush3.bf16.msra.mxu1 %v9439_v7  ;;  %9428 = vmatprep.subr.bf16.mxu0 %v9427_v8  ;;  %v10032_v23 = vpack.c.bf16 %v7315_v15, %v7314_v14 }
  0x18   : > { %s10011_s28 = scalar_lea.vmem %s12278_s0, %s9871_s11  ;;  %9444 = vmatprep.subr.bf16.mxu1 %v9443_v11 }
  0x19   : > { %v10014_v16 = vld [vmem:[%s10011_s28 + $0x1] sm:$0xff]  ;;  %v10018_v18 = vld [vmem:[%s10011_s28 + $0x9] sm:$0xff]  ;;  %v10025_v20 = vld [vmem:[%s10011_s28 + $0x19] sm:$0xff] }
  0x1a   : > { %v1762_v17 = vld [vmem:[%s10011_s28 + $0x2] sm:$0xff]  ;;  %8595 = vmatprep.mubr.msk.f32.mxu0 %vm235_vm0, %v10014_v16  ;;  %v1763_v19 = vld [vmem:[%s10011_s28 + $0xa] sm:$0xff]  ;;  %v10028_v21 = vld [vmem:[%s10011_s28 + $0x1a] sm:$0xff] }
  0x1b   : > { %8803 = vmatprep.mubr.msk.f32.mxu1 %vm235_vm0, %v1762_v17  ;;  %12319 = vst [vmem:[#allocation3_spill] sm:$0xff] %v10028_v21  ;;  %8596 = vmatmul.mubr.msk.f32.vlgmr.msra.gmra.mrb[0].mxu0 %vm235_vm0, %v10018_v18  ;;  %v10038_v24 = vld [vmem:[%s10011_s28 + $0x21] sm:$0xff]  ;;  %v10048_v26 = vld [vmem:[%s10011_s28 + $0x31] sm:$0xff]  ;;  %v10064_v28 = vld [vmem:[%s10011_s28 + $0x39] sm:$0xff] }
  0x1c   : > { %8804 = vmatmul.mubr.msk.f32.vlgmr.msra.gmra.mrb[0].mxu1 %vm235_vm0, %v1763_v19  ;;  %9430 = vmatpush3.bf16.msra.mxu0 %v9427_v8  ;;  %v10041_v25 = vld [vmem:[%s10011_s28 + $0x22] sm:$0xff]  ;;  %v10051_v27 = vld [vmem:[%s10011_s28 + $0x32] sm:$0xff]  ;;  %v10067_v29 = vld [vmem:[%s10011_s28 + $0x3a] sm:$0xff] }
  0x1d   : > { %9446 = vmatpush3.bf16.msra.mxu1 %v9443_v11  ;;  %12320 = vst [vmem:[#allocation4_spill] sm:$0xff] %v10041_v25  ;;  %8598 = vmatprep.mubr.msk.f32.mxu0 %vm235_vm0, %v10025_v20  ;;  %12321 = vst [vmem:[#allocation5_spill] sm:$0xff] %v10051_v27  ;;  %v10070_v30 = vld [vmem:[%s10011_s28 + $0x49] sm:$0xff]  ;;  %v10084_v32 = vld [vmem:[%s10011_s28 + $0x51] sm:$0xff] }
  0x1e   : > { %8806 = vmatprep.mubr.msk.f32.mxu1 %vm235_vm0, %v10028_v21  ;;  %9432 = vmatprep.subr.bf16.mxu0 %v10030_v22  ;;  %12322 = vst [vmem:[#allocation6_spill] sm:$0xff] %v10067_v29  ;;  %v10073_v31 = vld [vmem:[%s10011_s28 + $0x4a] sm:$0xff]  ;;  %v10087_v33 = vld [vmem:[%s10011_s28 + $0x52] sm:$0xff]  ;;  %v10090_v34 = vld [vmem:[%s10011_s28 + $0x61] sm:$0xff] }
  0x1f   : > { %9448 = vmatprep.subr.bf16.mxu1 %v10032_v23  ;;  %8599 = vmatmul.mubr.msk.f32.gmra.mrb[2].mxu0 %vm235_vm0, %v10038_v24  ;;  %12323 = vst [vmem:[#allocation7_spill] sm:$0xff] %v10073_v31  ;;  %12324 = vst [vmem:[#allocation8_spill] sm:$0xff] %v10087_v33  ;;  %v10093_v35 = vld [vmem:[%s10011_s28 + $0x62] sm:$0xff]  ;;  %v10107_v37 = vld [vmem:[%s10011_s28 + $0x6a] sm:$0xff] }
  0x20   : > { %8807 = vmatmul.mubr.msk.f32.gmra.mrb[2].mxu1 %vm235_vm0, %v10041_v25  ;;  %8601 = vmatprep.mubr.msk.f32.mxu0 %vm235_vm0, %v10048_v26  ;;  %12325 = vst [vmem:[#allocation9_spill] sm:$0xff] %v10093_v35  ;;  %v10104_v36 = vld [vmem:[%s10011_s28 + $0x69] sm:$0xff]  ;;  %12326 = vst [vmem:[#allocation10_spill] sm:$0xff] %v10107_v37  ;;  %v10110_v38 = vld [vmem:[%s10011_s28 + $0x79] sm:$0xff] }
  0x21   : > { %8809 = vmatprep.mubr.msk.f32.mxu1 %vm235_vm0, %v10051_v27  ;;  %v10113_v39 = vld [vmem:[%s10011_s28 + $0x7a] sm:$0xff]  ;;  %v10127_v41 = vld [vmem:[%s10011_s28 + $0x82] sm:$0xff]  ;;  %v10130_v42 = vld [vmem:[%s10011_s28 + $0x91] sm:$0xff] }
  0x22   : > { %12327 = vst [vmem:[#allocation11_spill] sm:$0xff] %v10113_v39  ;;  %v10124_v40 = vld [vmem:[%s10011_s28 + $0x81] sm:$0xff]  ;;  %12328 = vst [vmem:[#allocation12_spill] sm:$0xff] %v10127_v41  ;;  %v10133_v43 = vld [vmem:[%s10011_s28 + $0x92] sm:$0xff] }
  0x23   : > { %8602 = vmatmul.mubr.msk.f32.gmra.mrb[4].mxu0 %vm235_vm0, %v10064_v28  ;;  %12329 = vst [vmem:[#allocation13_spill] sm:$0xff] %v10133_v43  ;;  %v10144_v44 = vld [vmem:[%s10011_s28 + $0x99] sm:$0xff]  ;;  %v10150_v46 = vld [vmem:[%s10011_s28 + $0xa9] sm:$0xff]  ;;  %v10164_v48 = vld [vmem:[%s10011_s28 + $0xb1] sm:$0xff] }
  0x24   : > { %8810 = vmatmul.mubr.msk.f32.gmra.mrb[4].mxu1 %vm235_vm0, %v10067_v29  ;;  %8604 = vmatprep.mubr.msk.f32.mxu0 %vm235_vm0, %v10070_v30  ;;  %v10147_v45 = vld [vmem:[%s10011_s28 + $0x9a] sm:$0xff]  ;;  %v10153_v47 = vld [vmem:[%s10011_s28 + $0xaa] sm:$0xff]  ;;  %v10167_v49 = vld [vmem:[%s10011_s28 + $0xb2] sm:$0xff] }
  0x25   : > { %8812 = vmatprep.mubr.msk.f32.mxu1 %vm235_vm0, %v10073_v31  ;;  %12330 = vst [vmem:[#allocation14_spill] sm:$0xff] %v10147_v45  ;;  %12331 = vst [vmem:[#allocation15_spill] sm:$0xff] %v10153_v47  ;;  %v10170_v50 = vld [vmem:[%s10011_s28 + $0xc1] sm:$0xff]  ;;  %v10184_v52 = vld [vmem:[%s10011_s28 + $0xc9] sm:$0xff] }
  0x26   : > { %12332 = vst [vmem:[#allocation16_spill] sm:$0xff] %v10167_v49  ;;  %v10173_v51 = vld [vmem:[%s10011_s28 + $0xc2] sm:$0xff]  ;;  %v10187_v53 = vld [vmem:[%s10011_s28 + $0xca] sm:$0xff]  ;;  %v10190_v54 = vld [vmem:[%s10011_s28 + $0xd9] sm:$0xff] }
  0x27   : > { %8605 = vmatmul.mubr.msk.f32.gmra.mrb[6].mxu0 %vm235_vm0, %v10084_v32  ;;  %12333 = vst [vmem:[#allocation17_spill] sm:$0xff] %v10173_v51  ;;  %12334 = vst [vmem:[#allocation18_spill] sm:$0xff] %v10187_v53  ;;  %v10193_v55 = vld [vmem:[%s10011_s28 + $0xda] sm:$0xff]  ;;  %v10207_v57 = vld [vmem:[%s10011_s28 + $0xe2] sm:$0xff] }
  0x28   : > { %8813 = vmatmul.mubr.msk.f32.gmra.mrb[6].mxu1 %vm235_vm0, %v10087_v33  ;;  %8607 = vmatprep.mubr.msk.f32.mxu0 %vm235_vm0, %v10090_v34  ;;  %12335 = vst [vmem:[#allocation19_spill] sm:$0xff] %v10193_v55  ;;  %v10204_v56 = vld [vmem:[%s10011_s28 + $0xe1] sm:$0xff]  ;;  %12336 = vst [vmem:[#allocation20_spill] sm:$0xff] %v10207_v57  ;;  %v10210_v58 = vld [vmem:[%s10011_s28 + $0xf1] sm:$0xff] }
  0x29   : > { %8815 = vmatprep.mubr.msk.f32.mxu1 %vm235_vm0, %v10093_v35  ;;  %v10213_v59 = vld [vmem:[%s10011_s28 + $0xf2] sm:$0xff]  ;;  %v10227_v61 = vld [vmem:[%s10011_s28 + $0xfa] sm:$0xff]  ;;  %v10230_v62 = vld [vmem:[%s10011_s28 + $0x109] sm:$0xff] }
  0x2a   : > { %12337 = vst [vmem:[#allocation21_spill] sm:$0xff] %v10213_v59  ;;  %v10224_v60 = vld [vmem:[%s10011_s28 + $0xf9] sm:$0xff]  ;;  %12338 = vst [vmem:[#allocation22_spill] sm:$0xff] %v10227_v61  ;;  %v10233_v63 = vld [vmem:[%s10011_s28 + $0x10a] sm:$0xff] }
  0x2b   : > { %8608 = vmatmul.mubr.msk.f32.gmra.mrb[8].mxu0 %vm235_vm0, %v10104_v36  ;;  %12339 = vst [vmem:[#allocation23_spill] sm:$0xff] %v10233_v63  ;;  %v10244_v0 = vld [vmem:[%s10011_s28 + $0x111] sm:$0xff]  ;;  %v10250_v2 = vld [vmem:[%s10011_s28 + $0x121] sm:$0xff]  ;;  %v10264_v4 = vld [vmem:[%s10011_s28 + $0x129] sm:$0xff] }
  0x2c   : > { %8816 = vmatmul.mubr.msk.f32.gmra.mrb[8].mxu1 %vm235_vm0, %v10107_v37  ;;  %8610 = vmatprep.mubr.msk.f32.mxu0 %vm235_vm0, %v10110_v38  ;;  %v10247_v1 = vld [vmem:[%s10011_s28 + $0x112] sm:$0xff]  ;;  %v10253_v3 = vld [vmem:[%s10011_s28 + $0x122] sm:$0xff]  ;;  %v10267_v5 = vld [vmem:[%s10011_s28 + $0x12a] sm:$0xff] }
  0x2d   : > { %8818 = vmatprep.mubr.msk.f32.mxu1 %vm235_vm0, %v10113_v39  ;;  %12340 = vst [vmem:[#allocation24_spill] sm:$0xff] %v10247_v1  ;;  %12341 = vst [vmem:[#allocation25_spill] sm:$0xff] %v10253_v3  ;;  %v10270_v6 = vld [vmem:[%s10011_s28 + $0x139] sm:$0xff]  ;;  %v10284_v8 = vld [vmem:[%s10011_s28 + $0x141] sm:$0xff] }
  0x2e   : > { %12342 = vst [vmem:[#allocation26_spill] sm:$0xff] %v10267_v5  ;;  %v10273_v7 = vld [vmem:[%s10011_s28 + $0x13a] sm:$0xff]  ;;  %v10287_v9 = vld [vmem:[%s10011_s28 + $0x142] sm:$0xff]  ;;  %v10290_v10 = vld [vmem:[%s10011_s28 + $0x151] sm:$0xff] }
  0x2f   : > { %8611 = vmatmul.mubr.msk.f32.gmra.mrb[10].mxu0 %vm235_vm0, %v10124_v40  ;;  %12343 = vst [vmem:[#allocation27_spill] sm:$0xff] %v10273_v7  ;;  %12344 = vst [vmem:[#allocation28_spill] sm:$0xff] %v10287_v9  ;;  %v10293_v11 = vld [vmem:[%s10011_s28 + $0x152] sm:$0xff]  ;;  %v10307_v13 = vld [vmem:[%s10011_s28 + $0x15a] sm:$0xff] }
  0x30   : > { %8819 = vmatmul.mubr.msk.f32.gmra.mrb[10].mxu1 %vm235_vm0, %v10127_v41  ;;  %8613 = vmatprep.mubr.msk.f32.mxu0 %vm235_vm0, %v10130_v42  ;;  %12345 = vst [vmem:[#allocation29_spill] sm:$0xff] %v10293_v11  ;;  %v10304_v12 = vld [vmem:[%s10011_s28 + $0x159] sm:$0xff]  ;;  %12346 = vst [vmem:[#allocation30_spill] sm:$0xff] %v10307_v13  ;;  %v10310_v14 = vld [vmem:[%s10011_s28 + $0x169] sm:$0xff] }
  0x31   : > { %8821 = vmatprep.mubr.msk.f32.mxu1 %vm235_vm0, %v10133_v43  ;;  %12347 = vst [vmem:[#allocation31_spill] sm:$0xff] %v10310_v14  ;;  %v10313_v15 = vld [vmem:[%s10011_s28 + $0x16a] sm:$0xff]  ;;  %v10327_v19 = vld [vmem:[%s10011_s28 + $0x172] sm:$0xff]  ;;  %v10512_v41 = vld [vmem:[%s10011_s28 + $0x120] sm:$0xff] }
  0x32   : > { %12348 = vst [vmem:[#allocation32_spill] sm:$0xff] %v10313_v15  ;;  %v10324_v17 = vld [vmem:[%s10011_s28 + $0x171] sm:$0xff]  ;;  %12350 = vst [vmem:[#allocation34_spill] sm:$0xff] %v10327_v19  ;;  %v10523_v39 = vld [vmem:[%s10011_s28 + $0x128] sm:$0xff] }
  0x33   : > { %8614 = vmatmul.mubr.msk.f32.gmra.mrb[12].mxu0 %vm235_vm0, %v10144_v44  ;;  %12349 = vst [vmem:[#allocation33_spill] sm:$0xff] %v10324_v17  ;;  %v10509_v43 = vld [vmem:[%s10011_s28 + $0x110] sm:$0xff]  ;;  %v10526_v37 = vld [vmem:[%s10011_s28 + $0x138] sm:$0xff]  ;;  %v10537_v35 = vld [vmem:[%s10011_s28 + $0x140] sm:$0xff] }
  0x34   : > { %8822 = vmatmul.mubr.msk.f32.gmra.mrb[12].mxu1 %vm235_vm0, %v10147_v45  ;;  %8616 = vmatprep.mubr.msk.f32.mxu0 %vm235_vm0, %v10150_v46  ;;  %v10498_v45 = vld [vmem:[%s10011_s28 + $0x108] sm:$0xff]  ;;  %v10540_v33 = vld [vmem:[%s10011_s28 + $0x150] sm:$0xff]  ;;  %v10551_v31 = vld [vmem:[%s10011_s28 + $0x158] sm:$0xff] }
  0x35   : > { %8824 = vmatprep.mubr.msk.f32.mxu1 %vm235_vm0, %v10153_v47  ;;  %v10495_v47 = vld [vmem:[%s10011_s28 + $0xf8] sm:$0xff]  ;;  %v10554_v29 = vld [vmem:[%s10011_s28 + $0x168] sm:$0xff]  ;;  %v10565_v27 = vld [vmem:[%s10011_s28 + $0x170] sm:$0xff] }
  0x36   : > { %12351 = vst [vmem:[#allocation35_spill] sm:$0xff] %v10554_v29  ;;  %12352 = vst [vmem:[#allocation36_spill] sm:$0xff] %v10565_v27  ;;  %v7513_v25 = vld [vmem:[%s12279_s1 + $0x90] sm:$0xff]  ;;  %v7514_v21 = vld [vmem:[%s12279_s1 + $0x98] sm:$0xff] }
  0x37   : > { %8617 = vmatmul.mubr.msk.f32.gmra.mrb[14].mxu0 %vm235_vm0, %v10164_v48 }
  0x38   : > { %8825 = vmatmul.mubr.msk.f32.gmra.mrb[14].mxu1 %vm235_vm0, %v10167_v49  ;;  %8619 = vmatprep.mubr.msk.f32.mxu0 %vm235_vm0, %v10170_v50  ;;  %v10484_v49 = vld [vmem:[%s10011_s28 + $0xf0] sm:$0xff] }
  0x39   : > { %8827 = vmatprep.mubr.msk.f32.mxu1 %vm235_vm0, %v10173_v51  ;;  %v10481_v51 = vld [vmem:[%s10011_s28 + $0xe0] sm:$0xff] }
  0x3b   : > { %8620 = vmatmul.mubr.msk.f32.gmra.mrb[16].mxu0 %vm235_vm0, %v10184_v52 }
  0x3c   : > { %8828 = vmatmul.mubr.msk.f32.gmra.mrb[16].mxu1 %vm235_vm0, %v10187_v53  ;;  %8622 = vmatprep.mubr.msk.f32.mxu0 %vm235_vm0, %v10190_v54  ;;  %v10470_v53 = vld [vmem:[%s10011_s28 + $0xd8] sm:$0xff] }
  0x3d   : > { %8830 = vmatprep.mubr.msk.f32.mxu1 %vm235_vm0, %v10193_v55  ;;  %v10467_v55 = vld [vmem:[%s10011_s28 + $0xc8] sm:$0xff] }
  0x3f   : > { %8623 = vmatmul.mubr.msk.f32.gmra.mrb[18].mxu0 %vm235_vm0, %v10204_v56 }
  0x40   : > { %8831 = vmatmul.mubr.msk.f32.gmra.mrb[18].mxu1 %vm235_vm0, %v10207_v57  ;;  %8625 = vmatprep.mubr.msk.f32.mxu0 %vm235_vm0, %v10210_v58  ;;  %v10456_v57 = vld [vmem:[%s10011_s28 + $0xc0] sm:$0xff] }
  0x41   : > { %8833 = vmatprep.mubr.msk.f32.mxu1 %vm235_vm0, %v10213_v59  ;;  %v10453_v59 = vld [vmem:[%s10011_s28 + $0xb0] sm:$0xff] }
  0x43   : > { %8626 = vmatmul.mubr.msk.f32.gmra.mrb[20].mxu0 %vm235_vm0, %v10224_v60 }
  0x44   : > { %8834 = vmatmul.mubr.msk.f32.gmra.mrb[20].mxu1 %vm235_vm0, %v10227_v61  ;;  %8628 = vmatprep.mubr.msk.f32.mxu0 %vm235_vm0, %v10230_v62  ;;  %v10442_v61 = vld [vmem:[%s10011_s28 + $0xa8] sm:$0xff] }
  0x45   : > { %8836 = vmatprep.mubr.msk.f32.mxu1 %vm235_vm0, %v10233_v63  ;;  %v10439_v63 = vld [vmem:[%s10011_s28 + $0x98] sm:$0xff] }
  0x47   : > { %8629 = vmatmul.mubr.msk.f32.gmra.mrb[22].mxu0 %vm235_vm0, %v10244_v0 }
  0x48   : > { %8837 = vmatmul.mubr.msk.f32.gmra.mrb[22].mxu1 %vm235_vm0, %v10247_v1  ;;  %8631 = vmatprep.mubr.msk.f32.mxu0 %vm235_vm0, %v10250_v2 }
  0x49   : > { %8839 = vmatprep.mubr.msk.f32.mxu1 %vm235_vm0, %v10253_v3 }
  0x4b   : > { %8632 = vmatmul.mubr.msk.f32.gmra.mrb[24].mxu0 %vm235_vm0, %v10264_v4 }
  0x4c   : > { %8840 = vmatmul.mubr.msk.f32.gmra.mrb[24].mxu1 %vm235_vm0, %v10267_v5  ;;  %8634 = vmatprep.mubr.msk.f32.mxu0 %vm235_vm0, %v10270_v6  ;;  %v167_v5 = vld [vmem:[%s10011_s28 + $0x8] sm:$0xff] }
  0x4d   : > { %8842 = vmatprep.mubr.msk.f32.mxu1 %vm235_vm0, %v10273_v7  ;;  %v7381_v7 = vld [vmem:[%s12279_s1 + $0x78] sm:$0xff] }
  0x4f   : > { %8635 = vmatmul.mubr.msk.f32.gmra.mrb[26].mxu0 %vm235_vm0, %v10284_v8 }
  0x50   : > { %8843 = vmatmul.mubr.msk.f32.gmra.mrb[26].mxu1 %vm235_vm0, %v10287_v9  ;;  %8637 = vmatprep.mubr.msk.f32.mxu0 %vm235_vm0, %v10290_v10  ;;  %v7179_v9 = vld [vmem:[%s12279_s1 + $0x30] sm:$0xff] }
  0x51   : > { %8845 = vmatprep.mubr.msk.f32.mxu1 %vm235_vm0, %v10293_v11  ;;  %v166_v11 = vld [vmem:[%s10011_s28] sm:$0xff] }
  0x53   : > { %8638 = vmatmul.mubr.msk.f32.gmra.mrb[28].mxu0 %vm235_vm0, %v10304_v12 }
  0x54   : > { %8846 = vmatmul.mubr.msk.f32.gmra.mrb[28].mxu1 %vm235_vm0, %v10307_v13  ;;  %8640 = vmatprep.mubr.msk.f32.mxu0 %vm235_vm0, %v10310_v14  ;;  %v7380_v13 = vld [vmem:[%s12279_s1 + $0x70] sm:$0xff] }
  0x55   : > { %8848 = vmatprep.mubr.msk.f32.mxu1 %vm235_vm0, %v10313_v15  ;;  %v7180_v15 = vld [vmem:[%s12279_s1 + $0x38] sm:$0xff]  ;;  %v10355_v1 = vpack.c.bf16 %v7381_v7, %v7380_v13  ;;  %v10411_v7 = vld [vmem:[%s10011_s28 + $0x68] sm:$0xff]  ;;  %v10425_v13 = vld [vmem:[%s10011_s28 + $0x80] sm:$0xff] }
  0x56   : > { %v10353_v3 = vpack.c.bf16 %v7180_v15, %v7179_v9  ;;  %v10414_v9 = vld [vmem:[%s10011_s28 + $0x78] sm:$0xff]  ;;  %v10428_v15 = vld [vmem:[%s10011_s28 + $0x90] sm:$0xff] }
  0x57   : > { %8641 = vmatmul.mubr.msk.f32.gmra.mrb[30].mxu0 %vm235_vm0, %v10324_v17 }
  0x58   : > { %8849 = vmatmul.mubr.msk.f32.gmra.mrb[30].mxu1 %vm235_vm0, %v10327_v19  ;;  %8647 = vmatprep.mubr.msk.f32.mxu0 %vm235_vm0, %v166_v11  ;;  %v10351_v19 = vld [vmem:[%s10011_s28 + $0x18] sm:$0xff]  ;;  %v10363_v11 = vld [vmem:[%s10011_s28 + $0x20] sm:$0xff] }
  0x59   : > { %8855 = vmatprep.mubr.msk.f32.mxu1 %vm235_vm0, %v10014_v16  ;;  %v10370_v16 = vld [vmem:[%s10011_s28 + $0x30] sm:$0xff] }
  0x5b   : > { %8648 = vmatmul.mubr.msk.f32.vlgmr.msra.gmra.mrb[0].mxu0 %vm235_vm0, %v167_v5  ;;  %v10400_v5 = vld [vmem:[%s10011_s28 + $0x60] sm:$0xff] }
  0x5c   : > { %8856 = vmatmul.mubr.msk.f32.vlgmr.msra.gmra.mrb[0].mxu1 %vm235_vm0, %v10018_v18  ;;  %9434 = vmatpush3.bf16.msra.mxu0 %v10030_v22  ;;  %v10383_v18 = vld [vmem:[%s10011_s28 + $0x38] sm:$0xff]  ;;  %v10386_v22 = vld [vmem:[%s10011_s28 + $0x48] sm:$0xff] }
  0x5d   : > { %9450 = vmatpush3.bf16.msra.mxu1 %v10032_v23  ;;  %8650 = vmatprep.mubr.msk.f32.mxu0 %vm235_vm0, %v10351_v19  ;;  %v10397_v23 = vld [vmem:[%s10011_s28 + $0x50] sm:$0xff] }
  0x5e   : > { %8858 = vmatprep.mubr.msk.f32.mxu1 %vm235_vm0, %v10025_v20  ;;  %9436 = vmatprep.subr.bf16.mxu0 %v10353_v3 }
  0x5f   : > { %9452 = vmatprep.subr.bf16.mxu1 %v10355_v1  ;;  %8651 = vmatmul.mubr.msk.f32.gmra.mrb[2].mxu0 %vm235_vm0, %v10363_v11 }
  0x60   : > { %8859 = vmatmul.mubr.msk.f32.gmra.mrb[2].mxu1 %vm235_vm0, %v10038_v24  ;;  %8653 = vmatprep.mubr.msk.f32.mxu0 %vm235_vm0, %v10370_v16 }
  0x61   : > { %8861 = vmatprep.mubr.msk.f32.mxu1 %vm235_vm0, %v10048_v26 }
  0x63   : > { %8654 = vmatmul.mubr.msk.f32.gmra.mrb[4].mxu0 %vm235_vm0, %v10383_v18 }
  0x64   : > { %8862 = vmatmul.mubr.msk.f32.gmra.mrb[4].mxu1 %vm235_vm0, %v10064_v28  ;;  %8656 = vmatprep.mubr.msk.f32.mxu0 %vm235_vm0, %v10386_v22 }
  0x65   : > { %8864 = vmatprep.mubr.msk.f32.mxu1 %vm235_vm0, %v10070_v30 }
  0x67   : > { %8657 = vmatmul.mubr.msk.f32.gmra.mrb[6].mxu0 %vm235_vm0, %v10397_v23 }
  0x68   : > { %8865 = vmatmul.mubr.msk.f32.gmra.mrb[6].mxu1 %vm235_vm0, %v10084_v32  ;;  %8659 = vmatprep.mubr.msk.f32.mxu0 %vm235_vm0, %v10400_v5 }
  0x69   : > { %8867 = vmatprep.mubr.msk.f32.mxu1 %vm235_vm0, %v10090_v34 }
  0x6b   : > { %8660 = vmatmul.mubr.msk.f32.gmra.mrb[8].mxu0 %vm235_vm0, %v10411_v7 }
  0x6c   : > { %8868 = vmatmul.mubr.msk.f32.gmra.mrb[8].mxu1 %vm235_vm0, %v10104_v36  ;;  %8662 = vmatprep.mubr.msk.f32.mxu0 %vm235_vm0, %v10414_v9 }
  0x6d   : > { %8870 = vmatprep.mubr.msk.f32.mxu1 %vm235_vm0, %v10110_v38 }
  0x6f   : > { %8663 = vmatmul.mubr.msk.f32.gmra.mrb[10].mxu0 %vm235_vm0, %v10425_v13 }
  0x70   : > { %8871 = vmatmul.mubr.msk.f32.gmra.mrb[10].mxu1 %vm235_vm0, %v10124_v40  ;;  %8665 = vmatprep.mubr.msk.f32.mxu0 %vm235_vm0, %v10428_v15 }
  0x71   : > { %8873 = vmatprep.mubr.msk.f32.mxu1 %vm235_vm0, %v10130_v42 }
  0x73   : > { %8666 = vmatmul.mubr.msk.f32.gmra.mrb[12].mxu0 %vm235_vm0, %v10439_v63 }
  0x74   : > { %8874 = vmatmul.mubr.msk.f32.gmra.mrb[12].mxu1 %vm235_vm0, %v10144_v44  ;;  %8668 = vmatprep.mubr.msk.f32.mxu0 %vm235_vm0, %v10442_v61 }
  0x75   : > { %8876 = vmatprep.mubr.msk.f32.mxu1 %vm235_vm0, %v10150_v46 }
  0x77   : > { %8669 = vmatmul.mubr.msk.f32.gmra.mrb[14].mxu0 %vm235_vm0, %v10453_v59 }
  0x78   : > { %8877 = vmatmul.mubr.msk.f32.gmra.mrb[14].mxu1 %vm235_vm0, %v10164_v48  ;;  %8671 = vmatprep.mubr.msk.f32.mxu0 %vm235_vm0, %v10456_v57 }
  0x79   : > { %8879 = vmatprep.mubr.msk.f32.mxu1 %vm235_vm0, %v10170_v50 }
  0x7b   : > { %8672 = vmatmul.mubr.msk.f32.gmra.mrb[16].mxu0 %vm235_vm0, %v10467_v55 }
  0x7c   : > { %8880 = vmatmul.mubr.msk.f32.gmra.mrb[16].mxu1 %vm235_vm0, %v10184_v52  ;;  %8674 = vmatprep.mubr.msk.f32.mxu0 %vm235_vm0, %v10470_v53 }
  0x7d   : > { %8882 = vmatprep.mubr.msk.f32.mxu1 %vm235_vm0, %v10190_v54 }
  0x7f   : > { %8675 = vmatmul.mubr.msk.f32.gmra.mrb[18].mxu0 %vm235_vm0, %v10481_v51 }
  0x80   : > { %8883 = vmatmul.mubr.msk.f32.gmra.mrb[18].mxu1 %vm235_vm0, %v10204_v56  ;;  %8677 = vmatprep.mubr.msk.f32.mxu0 %vm235_vm0, %v10484_v49 }
  0x81   : > { %8885 = vmatprep.mubr.msk.f32.mxu1 %vm235_vm0, %v10210_v58 }
  0x83   : > { %8678 = vmatmul.mubr.msk.f32.gmra.mrb[20].mxu0 %vm235_vm0, %v10495_v47 }
  0x84   : > { %8886 = vmatmul.mubr.msk.f32.gmra.mrb[20].mxu1 %vm235_vm0, %v10224_v60  ;;  %8680 = vmatprep.mubr.msk.f32.mxu0 %vm235_vm0, %v10498_v45 }
  0x85   : > { %8888 = vmatprep.mubr.msk.f32.mxu1 %vm235_vm0, %v10230_v62 }
  0x87   : > { %8681 = vmatmul.mubr.msk.f32.gmra.mrb[22].mxu0 %vm235_vm0, %v10509_v43 }
  0x88   : > { %8889 = vmatmul.mubr.msk.f32.gmra.mrb[22].mxu1 %vm235_vm0, %v10244_v0  ;;  %8683 = vmatprep.mubr.msk.f32.mxu0 %vm235_vm0, %v10512_v41 }
  0x89   : > { %8891 = vmatprep.mubr.msk.f32.mxu1 %vm235_vm0, %v10250_v2 }
  0x8b   : > { %8684 = vmatmul.mubr.msk.f32.gmra.mrb[24].mxu0 %vm235_vm0, %v10523_v39 }
  0x8c   : > { %8892 = vmatmul.mubr.msk.f32.gmra.mrb[24].mxu1 %vm235_vm0, %v10264_v4  ;;  %8686 = vmatprep.mubr.msk.f32.mxu0 %vm235_vm0, %v10526_v37 }
  0x8d   : > { %8894 = vmatprep.mubr.msk.f32.mxu1 %vm235_vm0, %v10270_v6 }
  0x8f   : > { %8687 = vmatmul.mubr.msk.f32.gmra.mrb[26].mxu0 %vm235_vm0, %v10537_v35 }
  0x90   : > { %8895 = vmatmul.mubr.msk.f32.gmra.mrb[26].mxu1 %vm235_vm0, %v10284_v8  ;;  %8689 = vmatprep.mubr.msk.f32.mxu0 %vm235_vm0, %v10540_v33 }
  0x91   : > { %8897 = vmatprep.mubr.msk.f32.mxu1 %vm235_vm0, %v10290_v10 }
  0x93   : > { %8690 = vmatmul.mubr.msk.f32.gmra.mrb[28].mxu0 %vm235_vm0, %v10551_v31 }
  0x94   : > { %8898 = vmatmul.mubr.msk.f32.gmra.mrb[28].mxu1 %vm235_vm0, %v10304_v12  ;;  %8692 = vmatprep.mubr.msk.f32.mxu0 %vm235_vm0, %v10554_v29  ;;  %v7811_v29 = vld [vmem:[%s12279_s1 + $0xd8] sm:$0xff] }
  0x95   : > { %8900 = vmatprep.mubr.msk.f32.mxu1 %vm235_vm0, %v10310_v14  ;;  %v7810_v14 = vld [vmem:[%s12279_s1 + $0xd0] sm:$0xff] }
  0x97   : > { %8693 = vmatmul.mubr.msk.f32.gmra.mrb[30].mxu0 %vm235_vm0, %v10565_v27  ;;  %v10587_v27 = vpack.c.bf16 %v7514_v21, %v7513_v25  ;;  %v12353_v21 = vld [vmem:[#allocation35_spill] sm:$0xff] }
  0x98   : > { %8901 = vmatmul.mubr.msk.f32.gmra.mrb[30].mxu1 %vm235_vm0, %v10324_v17  ;;  %8699 = vmatprep.mubr.msk.f32.mxu0 %vm235_vm0, %v10351_v19  ;;  %v10589_v17 = vpack.c.bf16 %v7811_v29, %v7810_v14  ;;  %v12354_v25 = vld [vmem:[#allocation31_spill] sm:$0xff]  ;;  %v7909_v14 = vld [vmem:[%s12279_s1 + $0xe8] sm:$0xff] }
  0x99   : > { %8907 = vmatprep.mubr.msk.f32.mxu1 %vm235_vm0, %v10025_v20  ;;  %v10708_v29 = vld [vmem:[%s10011_s28 + $0x180] sm:$0xff] }
  0x9a   : > { %v7779_v19 = vld [vmem:[%s10011_s28 + $0x22] sm:$0xff] }
  0x9b   : > { %8700 = vmatmul.mubr.msk.f32.vlgmr.msra.gmra.mrb[0].mxu0 %vm235_vm0, %v10363_v11  ;;  %v10909_v11 = vld [vmem:[%s10011_s28 + $0x31] sm:$0xff] }
  0x9c   : > { %8908 = vmatmul.mubr.msk.f32.vlgmr.msra.gmra.mrb[0].mxu1 %vm235_vm0, %v10038_v24  ;;  %9438 = vmatpush3.bf16.msra.mxu0 %v10353_v3  ;;  %v10879_v3 = vld [vmem:[%s10011_s28 + $0x18a] sm:$0xff] }
  0x9d   : > { %9454 = vmatpush3.bf16.msra.mxu1 %v10355_v1  ;;  %8702 = vmatprep.mubr.msk.f32.mxu0 %vm235_vm0, %v10370_v16  ;;  %v10868_v1 = vld [vmem:[%s10011_s28 + $0x182] sm:$0xff]  ;;  %v7780_v16 = vld [vmem:[%s10011_s28 + $0x32] sm:$0xff] }
  0x9e   : > { %8910 = vmatprep.mubr.msk.f32.mxu1 %vm235_vm0, %v10048_v26  ;;  %9456 = vmatprep.subr.bf16.mxu0 %v10587_v27 }
  0x9f   : > { %9472 = vmatprep.subr.bf16.mxu1 %v10589_v17  ;;  %8703 = vmatmul.mubr.msk.f32.gmra.mrb[2].mxu0 %vm235_vm0, %v10383_v18 }
  0xa0   : > { %8911 = vmatmul.mubr.msk.f32.gmra.mrb[2].mxu1 %vm235_vm0, %v10064_v28  ;;  %8705 = vmatprep.mubr.msk.f32.mxu0 %vm235_vm0, %v10386_v22 }
  0xa1   : > { %8913 = vmatprep.mubr.msk.f32.mxu1 %vm235_vm0, %v10070_v30 }
  0xa3   : > { %8706 = vmatmul.mubr.msk.f32.gmra.mrb[4].mxu0 %vm235_vm0, %v10397_v23  ;;  %v10922_v23 = vld [vmem:[%s10011_s28 + $0x39] sm:$0xff] }
  0xa4   : > { %8914 = vmatmul.mubr.msk.f32.gmra.mrb[4].mxu1 %vm235_vm0, %v10084_v32  ;;  %8708 = vmatprep.mubr.msk.f32.mxu0 %vm235_vm0, %v10400_v5  ;;  %v7781_v5 = vld [vmem:[%s10011_s28 + $0x3a] sm:$0xff] }
  0xa5   : > { %8916 = vmatprep.mubr.msk.f32.mxu1 %vm235_vm0, %v10090_v34 }
  0xa7   : > { %8709 = vmatmul.mubr.msk.f32.gmra.mrb[6].mxu0 %vm235_vm0, %v10411_v7  ;;  %v10929_v7 = vld [vmem:[%s10011_s28 + $0x49] sm:$0xff] }
  0xa8   : > { %8917 = vmatmul.mubr.msk.f32.gmra.mrb[6].mxu1 %vm235_vm0, %v10104_v36  ;;  %8711 = vmatprep.mubr.msk.f32.mxu0 %vm235_vm0, %v10414_v9  ;;  %v7782_v9 = vld [vmem:[%s10011_s28 + $0x4a] sm:$0xff] }
  0xa9   : > { %8919 = vmatprep.mubr.msk.f32.mxu1 %vm235_vm0, %v10110_v38 }
  0xab   : > { %8712 = vmatmul.mubr.msk.f32.gmra.mrb[8].mxu0 %vm235_vm0, %v10425_v13  ;;  %v10941_v13 = vld [vmem:[%s10011_s28 + $0x51] sm:$0xff] }
  0xac   : > { %8920 = vmatmul.mubr.msk.f32.gmra.mrb[8].mxu1 %vm235_vm0, %v10124_v40  ;;  %8714 = vmatprep.mubr.msk.f32.mxu0 %vm235_vm0, %v10428_v15  ;;  %v7783_v15 = vld [vmem:[%s10011_s28 + $0x52] sm:$0xff] }
  0xad   : > { %8922 = vmatprep.mubr.msk.f32.mxu1 %vm235_vm0, %v10130_v42 }
  0xaf   : > { %8715 = vmatmul.mubr.msk.f32.gmra.mrb[10].mxu0 %vm235_vm0, %v10439_v63  ;;  %v12384_v63 = vld [vmem:[#allocation30_spill] sm:$0xff] }
  0xb0   : > { %8923 = vmatmul.mubr.msk.f32.gmra.mrb[10].mxu1 %vm235_vm0, %v10144_v44  ;;  %8717 = vmatprep.mubr.msk.f32.mxu0 %vm235_vm0, %v10442_v61  ;;  %v12382_v61 = vld [vmem:[#allocation28_spill] sm:$0xff] }
  0xb1   : > { %8925 = vmatprep.mubr.msk.f32.mxu1 %vm235_vm0, %v10150_v46 }
  0xb3   : > { %8718 = vmatmul.mubr.msk.f32.gmra.mrb[12].mxu0 %vm235_vm0, %v10453_v59  ;;  %v12380_v59 = vld [vmem:[#allocation26_spill] sm:$0xff] }
  0xb4   : > { %8926 = vmatmul.mubr.msk.f32.gmra.mrb[12].mxu1 %vm235_vm0, %v10164_v48  ;;  %8720 = vmatprep.mubr.msk.f32.mxu0 %vm235_vm0, %v10456_v57  ;;  %v12363_v57 = vld [vmem:[#allocation9_spill] sm:$0xff] }
  0xb5   : > { %8928 = vmatprep.mubr.msk.f32.mxu1 %vm235_vm0, %v10170_v50 }
  0xb7   : > { %8721 = vmatmul.mubr.msk.f32.gmra.mrb[14].mxu0 %vm235_vm0, %v10467_v55  ;;  %v12358_v55 = vld [vmem:[#allocation4_spill] sm:$0xff] }
  0xb8   : > { %8929 = vmatmul.mubr.msk.f32.gmra.mrb[14].mxu1 %vm235_vm0, %v10184_v52  ;;  %8723 = vmatprep.mubr.msk.f32.mxu0 %vm235_vm0, %v10470_v53 }
  0xb9   : > { %8931 = vmatprep.mubr.msk.f32.mxu1 %vm235_vm0, %v10190_v54 }
  0xbb   : > { %8724 = vmatmul.mubr.msk.f32.gmra.mrb[16].mxu0 %vm235_vm0, %v10481_v51 }
  0xbc   : > { %8932 = vmatmul.mubr.msk.f32.gmra.mrb[16].mxu1 %vm235_vm0, %v10204_v56  ;;  %8726 = vmatprep.mubr.msk.f32.mxu0 %vm235_vm0, %v10484_v49  ;;  %v12357_v49 = vld [vmem:[#allocation3_spill] sm:$0xff] }
  0xbd   : > { %8934 = vmatprep.mubr.msk.f32.mxu1 %vm235_vm0, %v10210_v58 }
  0xbf   : > { %8727 = vmatmul.mubr.msk.f32.gmra.mrb[18].mxu0 %vm235_vm0, %v10495_v47  ;;  %v7777_v47 = vld [vmem:[%s12279_s1 + $0xc8] sm:$0xff] }
  0xc0   : > { %8935 = vmatmul.mubr.msk.f32.gmra.mrb[18].mxu1 %vm235_vm0, %v10224_v60  ;;  %8729 = vmatprep.mubr.msk.f32.mxu0 %vm235_vm0, %v10498_v45  ;;  %v7776_v45 = vld [vmem:[%s12279_s1 + $0xc0] sm:$0xff] }
  0xc1   : > { %8937 = vmatprep.mubr.msk.f32.mxu1 %vm235_vm0, %v10230_v62  ;;  %v10749_v53 = vpack.c.bf16 %v7777_v47, %v7776_v45  ;;  %v10969_v45 = vld [vmem:[%s10011_s28 + $0x81] sm:$0xff] }
  0xc2   : > { %v7787_v47 = vld [vmem:[%s10011_s28 + $0x82] sm:$0xff] }
  0xc3   : > { %8730 = vmatmul.mubr.msk.f32.gmra.mrb[20].mxu0 %vm235_vm0, %v10509_v43  ;;  %v7480_v43 = vld [vmem:[%s12279_s1 + $0x88] sm:$0xff] }
  0xc4   : > { %8938 = vmatmul.mubr.msk.f32.gmra.mrb[20].mxu1 %vm235_vm0, %v10244_v0  ;;  %8732 = vmatprep.mubr.msk.f32.mxu0 %vm235_vm0, %v10512_v41  ;;  %v7479_v41 = vld [vmem:[%s12279_s1 + $0x80] sm:$0xff] }
  0xc5   : > { %8940 = vmatprep.mubr.msk.f32.mxu1 %vm235_vm0, %v10250_v2  ;;  %v10747_v51 = vpack.c.bf16 %v7480_v43, %v7479_v41  ;;  %v10959_v41 = vld [vmem:[%s10011_s28 + $0x79] sm:$0xff] }
  0xc6   : > { %v7786_v43 = vld [vmem:[%s10011_s28 + $0x7a] sm:$0xff] }
  0xc7   : > { %8733 = vmatmul.mubr.msk.f32.gmra.mrb[22].mxu0 %vm235_vm0, %v10523_v39  ;;  %v10725_v39 = vld [vmem:[%s10011_s28 + $0x189] sm:$0xff] }
  0xc8   : > { %8941 = vmatmul.mubr.msk.f32.gmra.mrb[22].mxu1 %vm235_vm0, %v10264_v4  ;;  %8735 = vmatprep.mubr.msk.f32.mxu0 %vm235_vm0, %v10526_v37  ;;  %v12356_v37 = vld [vmem:[#allocation33_spill] sm:$0xff] }
  0xc9   : > { %8943 = vmatprep.mubr.msk.f32.mxu1 %vm235_vm0, %v10270_v6 }
  0xcb   : > { %8736 = vmatmul.mubr.msk.f32.gmra.mrb[24].mxu0 %vm235_vm0, %v10537_v35  ;;  %v10711_v35 = vld [vmem:[%s10011_s28 + $0x181] sm:$0xff] }
  0xcc   : > { %8944 = vmatmul.mubr.msk.f32.gmra.mrb[24].mxu1 %vm235_vm0, %v10284_v8  ;;  %8738 = vmatprep.mubr.msk.f32.mxu0 %vm235_vm0, %v10540_v33  ;;  %v12355_v33 = vld [vmem:[#allocation36_spill] sm:$0xff] }
  0xcd   : > { %8946 = vmatprep.mubr.msk.f32.mxu1 %vm235_vm0, %v10290_v10 }
  0xcf   : > { %8739 = vmatmul.mubr.msk.f32.gmra.mrb[26].mxu0 %vm235_vm0, %v10551_v31  ;;  %v10722_v31 = vld [vmem:[%s10011_s28 + $0x188] sm:$0xff] }
  0xd0   : > { %8947 = vmatmul.mubr.msk.f32.gmra.mrb[26].mxu1 %vm235_vm0, %v10304_v12  ;;  %8741 = vmatprep.mubr.msk.f32.mxu0 %vm235_vm0, %v12353_v21  ;;  %v10945_v21 = vld [vmem:[%s10011_s28 + $0x61] sm:$0xff] }
  0xd1   : > { %8949 = vmatprep.mubr.msk.f32.mxu1 %vm235_vm0, %v12354_v25 }
  0xd3   : > { %8742 = vmatmul.mubr.msk.f32.gmra.mrb[28].mxu0 %vm235_vm0, %v12355_v33  ;;  %v10955_v33 = vld [vmem:[%s10011_s28 + $0x69] sm:$0xff] }
  0xd4   : > { %8950 = vmatmul.mubr.msk.f32.gmra.mrb[28].mxu1 %vm235_vm0, %v12356_v37  ;;  %8744 = vmatprep.mubr.msk.f32.mxu0 %vm235_vm0, %v10708_v29 }
  0xd5   : > { %8952 = vmatprep.mubr.msk.f32.mxu1 %vm235_vm0, %v10711_v35 }
  0xd7   : > { %8745 = vmatmul.mubr.msk.f32.gmra.mrb[30].mxu0 %vm235_vm0, %v10722_v31 }
  0xd8   : > { %8953 = vmatmul.mubr.msk.f32.gmra.mrb[30].mxu1 %vm235_vm0, %v10725_v39  ;;  %8751 = vmatprep.mubr.msk.f32.mxu0 %vm235_vm0, %v10025_v20  ;;  %v12359_v20 = vld [vmem:[#allocation5_spill] sm:$0xff] }
  0xd9   : > { %8959 = vmatprep.mubr.msk.f32.mxu1 %vm235_vm0, %v12357_v49  ;;  %v10973_v49 = vld [vmem:[%s10011_s28 + $0x91] sm:$0xff] }
  0xdb   : > { %8752 = vmatmul.mubr.msk.f32.vlgmr.msra.gmra.mrb[0].mxu0 %vm235_vm0, %v10038_v24  ;;  %v12360_v24 = vld [vmem:[#allocation6_spill] sm:$0xff] }
  0xdc   : > { %8960 = vmatmul.mubr.msk.f32.vlgmr.msra.gmra.mrb[0].mxu1 %vm235_vm0, %v12358_v55  ;;  %9458 = vmatpush3.bf16.msra.mxu0 %v10587_v27  ;;  %v12361_v27 = vld [vmem:[#allocation7_spill] sm:$0xff] }
  0xdd   : > { %9474 = vmatpush3.bf16.msra.mxu1 %v10589_v17  ;;  %8754 = vmatprep.mubr.msk.f32.mxu0 %vm235_vm0, %v10048_v26  ;;  %v12362_v26 = vld [vmem:[#allocation8_spill] sm:$0xff]  ;;  %v7789_v55 = vld [vmem:[%s10011_s28 + $0x9a] sm:$0xff] }
  0xde   : > { %8962 = vmatprep.mubr.msk.f32.mxu1 %vm235_vm0, %v12359_v20  ;;  %9460 = vmatprep.subr.bf16.mxu0 %v10747_v51  ;;  %v10905_v17 = vld [vmem:[%s10011_s28 + $0x21] sm:$0xff]  ;;  %v10987_v20 = vld [vmem:[%s10011_s28 + $0xa9] sm:$0xff] }
  0xdf   : > { %9476 = vmatprep.subr.bf16.mxu1 %v10749_v53  ;;  %8755 = vmatmul.mubr.msk.f32.gmra.mrb[2].mxu0 %vm235_vm0, %v10064_v28  ;;  %v12364_v28 = vld [vmem:[#allocation10_spill] sm:$0xff] }
  0xe0   : > { %8963 = vmatmul.mubr.msk.f32.gmra.mrb[2].mxu1 %vm235_vm0, %v12360_v24  ;;  %8757 = vmatprep.mubr.msk.f32.mxu0 %vm235_vm0, %v10070_v30  ;;  %v12365_v30 = vld [vmem:[#allocation11_spill] sm:$0xff]  ;;  %v7790_v24 = vld [vmem:[%s10011_s28 + $0xaa] sm:$0xff] }
  0xe1   : > { %8965 = vmatprep.mubr.msk.f32.mxu1 %vm235_vm0, %v12361_v27  ;;  %v10997_v27 = vld [vmem:[%s10011_s28 + $0xb1] sm:$0xff] }
  0xe3   : > { %8758 = vmatmul.mubr.msk.f32.gmra.mrb[4].mxu0 %vm235_vm0, %v10084_v32  ;;  %v12366_v32 = vld [vmem:[#allocation12_spill] sm:$0xff] }
  0xe4   : > { %8966 = vmatmul.mubr.msk.f32.gmra.mrb[4].mxu1 %vm235_vm0, %v12362_v26  ;;  %8760 = vmatprep.mubr.msk.f32.mxu0 %vm235_vm0, %v10090_v34  ;;  %v12367_v34 = vld [vmem:[#allocation13_spill] sm:$0xff] }
  0xe5   : > { %8968 = vmatprep.mubr.msk.f32.mxu1 %vm235_vm0, %v12363_v57  ;;  %v7791_v26 = vld [vmem:[%s10011_s28 + $0xb2] sm:$0xff]  ;;  %v11001_v57 = vld [vmem:[%s10011_s28 + $0xc1] sm:$0xff] }
  0xe7   : > { %8761 = vmatmul.mubr.msk.f32.gmra.mrb[6].mxu0 %vm235_vm0, %v10104_v36  ;;  %v12368_v36 = vld [vmem:[#allocation14_spill] sm:$0xff] }
  0xe8   : > { %8969 = vmatmul.mubr.msk.f32.gmra.mrb[6].mxu1 %vm235_vm0, %v12364_v28  ;;  %8763 = vmatprep.mubr.msk.f32.mxu0 %vm235_vm0, %v10110_v38  ;;  %v12369_v38 = vld [vmem:[#allocation15_spill] sm:$0xff] }
  0xe9   : > { %8971 = vmatprep.mubr.msk.f32.mxu1 %vm235_vm0, %v12365_v30  ;;  %v7792_v28 = vld [vmem:[%s10011_s28 + $0xc2] sm:$0xff] }
  0xea   : > { %v11011_v30 = vld [vmem:[%s10011_s28 + $0xc9] sm:$0xff] }
  0xeb   : > { %8764 = vmatmul.mubr.msk.f32.gmra.mrb[8].mxu0 %vm235_vm0, %v10124_v40  ;;  %v12370_v40 = vld [vmem:[#allocation16_spill] sm:$0xff] }
  0xec   : > { %8972 = vmatmul.mubr.msk.f32.gmra.mrb[8].mxu1 %vm235_vm0, %v12366_v32  ;;  %8766 = vmatprep.mubr.msk.f32.mxu0 %vm235_vm0, %v10130_v42  ;;  %v12371_v42 = vld [vmem:[#allocation17_spill] sm:$0xff] }
  0xed   : > { %8974 = vmatprep.mubr.msk.f32.mxu1 %vm235_vm0, %v12367_v34  ;;  %v7793_v32 = vld [vmem:[%s10011_s28 + $0xca] sm:$0xff]  ;;  %v11015_v34 = vld [vmem:[%s10011_s28 + $0xd9] sm:$0xff] }
  0xef   : > { %8767 = vmatmul.mubr.msk.f32.gmra.mrb[10].mxu0 %vm235_vm0, %v10144_v44  ;;  %v12372_v44 = vld [vmem:[#allocation18_spill] sm:$0xff] }
  0xf0   : > { %8975 = vmatmul.mubr.msk.f32.gmra.mrb[10].mxu1 %vm235_vm0, %v12368_v36  ;;  %8769 = vmatprep.mubr.msk.f32.mxu0 %vm235_vm0, %v10150_v46  ;;  %v12373_v46 = vld [vmem:[#allocation19_spill] sm:$0xff] }
  0xf1   : > { %8977 = vmatprep.mubr.msk.f32.mxu1 %vm235_vm0, %v12369_v38  ;;  %v7794_v36 = vld [vmem:[%s10011_s28 + $0xda] sm:$0xff] }
  0xf2   : > { %v11025_v38 = vld [vmem:[%s10011_s28 + $0xe1] sm:$0xff] }
  0xf3   : > { %8770 = vmatmul.mubr.msk.f32.gmra.mrb[12].mxu0 %vm235_vm0, %v10164_v48  ;;  %v12374_v48 = vld [vmem:[#allocation20_spill] sm:$0xff] }
  0xf4   : > { %8978 = vmatmul.mubr.msk.f32.gmra.mrb[12].mxu1 %vm235_vm0, %v12370_v40  ;;  %8772 = vmatprep.mubr.msk.f32.mxu0 %vm235_vm0, %v10170_v50  ;;  %v12375_v50 = vld [vmem:[#allocation21_spill] sm:$0xff]  ;;  %v7795_v40 = vld [vmem:[%s10011_s28 + $0xe2] sm:$0xff] }
  0xf5   : > { %8980 = vmatprep.mubr.msk.f32.mxu1 %vm235_vm0, %v12371_v42  ;;  %v11029_v42 = vld [vmem:[%s10011_s28 + $0xf1] sm:$0xff] }
  0xf7   : > { %8773 = vmatmul.mubr.msk.f32.gmra.mrb[14].mxu0 %vm235_vm0, %v10184_v52  ;;  %v12376_v52 = vld [vmem:[#allocation22_spill] sm:$0xff] }
  0xf8   : > { %8981 = vmatmul.mubr.msk.f32.gmra.mrb[14].mxu1 %vm235_vm0, %v12372_v44  ;;  %8775 = vmatprep.mubr.msk.f32.mxu0 %vm235_vm0, %v10190_v54  ;;  %v12377_v54 = vld [vmem:[#allocation23_spill] sm:$0xff]  ;;  %v7796_v44 = vld [vmem:[%s10011_s28 + $0xf2] sm:$0xff] }
  0xf9   : > { %8983 = vmatprep.mubr.msk.f32.mxu1 %vm235_vm0, %v12373_v46  ;;  %v11039_v46 = vld [vmem:[%s10011_s28 + $0xf9] sm:$0xff] }
  0xfb   : > { %8776 = vmatmul.mubr.msk.f32.gmra.mrb[16].mxu0 %vm235_vm0, %v10204_v56  ;;  %v12378_v56 = vld [vmem:[#allocation24_spill] sm:$0xff] }
  0xfc   : > { %8984 = vmatmul.mubr.msk.f32.gmra.mrb[16].mxu1 %vm235_vm0, %v12374_v48  ;;  %8778 = vmatprep.mubr.msk.f32.mxu0 %vm235_vm0, %v10210_v58  ;;  %v12379_v58 = vld [vmem:[#allocation25_spill] sm:$0xff]  ;;  %v7797_v48 = vld [vmem:[%s10011_s28 + $0xfa] sm:$0xff] }
  0xfd   : > { %8986 = vmatprep.mubr.msk.f32.mxu1 %vm235_vm0, %v12375_v50  ;;  %v11043_v50 = vld [vmem:[%s10011_s28 + $0x109] sm:$0xff] }
  0xff   : > { %8779 = vmatmul.mubr.msk.f32.gmra.mrb[18].mxu0 %vm235_vm0, %v10224_v60  ;;  %v12381_v60 = vld [vmem:[#allocation27_spill] sm:$0xff] }
 0x100   : > { %8987 = vmatmul.mubr.msk.f32.gmra.mrb[18].mxu1 %vm235_vm0, %v12376_v52  ;;  %8781 = vmatprep.mubr.msk.f32.mxu0 %vm235_vm0, %v10230_v62  ;;  %v12383_v62 = vld [vmem:[#allocation29_spill] sm:$0xff] }
 0x101   : > { %8989 = vmatprep.mubr.msk.f32.mxu1 %vm235_vm0, %v12377_v54  ;;  %v7798_v52 = vld [vmem:[%s10011_s28 + $0x10a] sm:$0xff] }
 0x102   : > { %v11053_v54 = vld [vmem:[%s10011_s28 + $0x111] sm:$0xff] }
 0x103   : > { %8782 = vmatmul.mubr.msk.f32.gmra.mrb[20].mxu0 %vm235_vm0, %v10244_v0  ;;  %v12385_v0 = vld [vmem:[#allocation32_spill] sm:$0xff] }
 0x104   : > { %8990 = vmatmul.mubr.msk.f32.gmra.mrb[20].mxu1 %vm235_vm0, %v12378_v56  ;;  %8784 = vmatprep.mubr.msk.f32.mxu0 %vm235_vm0, %v10250_v2  ;;  %v12386_v2 = vld [vmem:[#allocation34_spill] sm:$0xff] }
 0x105   : > { %8992 = vmatprep.mubr.msk.f32.mxu1 %vm235_vm0, %v12379_v58  ;;  %v7799_v56 = vld [vmem:[%s10011_s28 + $0x112] sm:$0xff]  ;;  %v11057_v58 = vld [vmem:[%s10011_s28 + $0x121] sm:$0xff] }
 0x107   : > { %8785 = vmatmul.mubr.msk.f32.gmra.mrb[22].mxu0 %vm235_vm0, %v10264_v4  ;;  %v10882_v4 = vld [vmem:[%s10011_s28 + $0x19] sm:$0xff] }
 0x108   : > { %8993 = vmatmul.mubr.msk.f32.gmra.mrb[22].mxu1 %vm235_vm0, %v12380_v59  ;;  %8787 = vmatprep.mubr.msk.f32.mxu0 %vm235_vm0, %v10270_v6  ;;  %v7778_v6 = vld [vmem:[%s10011_s28 + $0x1a] sm:$0xff]  ;;  %v7800_v59 = vld [vmem:[%s10011_s28 + $0x122] sm:$0xff] }
 0x109   : > { %8995 = vmatprep.mubr.msk.f32.mxu1 %vm235_vm0, %v12381_v60  ;;  %v11067_v60 = vld [vmem:[%s10011_s28 + $0x129] sm:$0xff] }
 0x10b   : > { %8788 = vmatmul.mubr.msk.f32.gmra.mrb[24].mxu0 %vm235_vm0, %v10284_v8  ;;  %v7611_v8 = vld [vmem:[%s12279_s1 + $0xa0] sm:$0xff] }
 0x10c   : > { %8996 = vmatmul.mubr.msk.f32.gmra.mrb[24].mxu1 %vm235_vm0, %v12382_v61  ;;  %8790 = vmatprep.mubr.msk.f32.mxu0 %vm235_vm0, %v10290_v10  ;;  %v7612_v10 = vld [vmem:[%s12279_s1 + $0xa8] sm:$0xff] }
 0x10d   : > { %8998 = vmatprep.mubr.msk.f32.mxu1 %vm235_vm0, %v12383_v62  ;;  %v10912_v18 = vpack.c.bf16 %v7612_v10, %v7611_v8  ;;  %v7801_v61 = vld [vmem:[%s10011_s28 + $0x12a] sm:$0xff]  ;;  %v11071_v62 = vld [vmem:[%s10011_s28 + $0x139] sm:$0xff] }
 0x10e   : > { %v7804_v8 = vld [vmem:[%s10011_s28 + $0x152] sm:$0xff] }
 0x10f   : > { %8791 = vmatmul.mubr.msk.f32.gmra.mrb[26].mxu0 %vm235_vm0, %v10304_v12  ;;  %v7908_v12 = vld [vmem:[%s12279_s1 + $0xe0] sm:$0xff] }
 0x110   : > { %8999 = vmatmul.mubr.msk.f32.gmra.mrb[26].mxu1 %vm235_vm0, %v12384_v63  ;;  %8793 = vmatprep.mubr.msk.f32.mxu0 %vm235_vm0, %v12354_v25  ;;  %v10914_v22 = vpack.c.bf16 %v7909_v14, %v7908_v12  ;;  %v7784_v25 = vld [vmem:[%s10011_s28 + $0x62] sm:$0xff]  ;;  %v7802_v63 = vld [vmem:[%s10011_s28 + $0x13a] sm:$0xff] }
 0x111   : > { %9001 = vmatprep.mubr.msk.f32.mxu1 %vm235_vm0, %v12385_v0  ;;  %v11081_v0 = vld [vmem:[%s10011_s28 + $0x141] sm:$0xff]  ;;  %v11095_v10 = vld [vmem:[%s10011_s28 + $0x159] sm:$0xff]  ;;  %v11099_v14 = vld [vmem:[%s10011_s28 + $0x169] sm:$0xff] }
 0x112   : > { %v7805_v12 = vld [vmem:[%s10011_s28 + $0x15a] sm:$0xff] }
 0x113   : > { %8794 = vmatmul.mubr.msk.f32.gmra.mrb[28].mxu0 %vm235_vm0, %v12356_v37  ;;  %v7785_v37 = vld [vmem:[%s10011_s28 + $0x6a] sm:$0xff] }
 0x114   : > { %9002 = vmatmul.mubr.msk.f32.gmra.mrb[28].mxu1 %vm235_vm0, %v12386_v2  ;;  %8796 = vmatprep.mubr.msk.f32.mxu0 %vm235_vm0, %v10711_v35  ;;  %v7803_v2 = vld [vmem:[%s10011_s28 + $0x142] sm:$0xff] }
 0x115   : > { %9004 = vmatprep.mubr.msk.f32.mxu1 %vm235_vm0, %v10868_v1 }
 0x117   : > { %8797 = vmatmul.mubr.msk.f32.gmra.mrb[30].mxu0 %vm235_vm0, %v10725_v39 }
 0x118   : > { %9005 = vmatmul.mubr.msk.f32.gmra.mrb[30].mxu1 %vm235_vm0, %v10879_v3  ;;  %9011 = vmatprep.mubr.msk.f32.mxu0 %vm235_vm0, %v10882_v4 }
 0x119   : > { %9219 = vmatprep.mubr.msk.f32.mxu1 %vm235_vm0, %v7778_v6  ;;  %v11085_v6 = vld [vmem:[%s10011_s28 + $0x151] sm:$0xff] }
 0x11b   : > { %9012 = vmatmul.mubr.msk.f32.vlgmr.msra.gmra.mrb[32].mxu0 %vm235_vm0, %v10905_v17 }
 0x11c   : > { %9220 = vmatmul.mubr.msk.f32.vlgmr.msra.gmra.mrb[32].mxu1 %vm235_vm0, %v7779_v19  ;;  %9462 = vmatpush3.bf16.msra.mxu0 %v10747_v51  ;;  %v7788_v51 = vld [vmem:[%s10011_s28 + $0x92] sm:$0xff]  ;;  %v7806_v19 = vld [vmem:[%s10011_s28 + $0x16a] sm:$0xff] }
 0x11d   : > { %9478 = vmatpush3.bf16.msra.mxu1 %v10749_v53  ;;  %9014 = vmatprep.mubr.msk.f32.mxu0 %vm235_vm0, %v10909_v11  ;;  %v10983_v53 = vld [vmem:[%s10011_s28 + $0x99] sm:$0xff] }
 0x11e   : > { %9222 = vmatprep.mubr.msk.f32.mxu1 %vm235_vm0, %v7780_v16  ;;  %9464 = vmatprep.subr.bf16.mxu0 %v10912_v18  ;;  %v11109_v16 = vld [vmem:[%s10011_s28 + $0x171] sm:$0xff] }
 0x11f   : > { %9480 = vmatprep.subr.bf16.mxu1 %v10914_v22  ;;  %9015 = vmatmul.mubr.msk.f32.gmra.mrb[34].mxu0 %vm235_vm0, %v10922_v23 }
 0x120   : > { %9223 = vmatmul.mubr.msk.f32.gmra.mrb[34].mxu1 %vm235_vm0, %v7781_v5  ;;  %9017 = vmatprep.mubr.msk.f32.mxu0 %vm235_vm0, %v10929_v7  ;;  %v7807_v5 = vld [vmem:[%s10011_s28 + $0x172] sm:$0xff] }
 0x121   : > { %9225 = vmatprep.mubr.msk.f32.mxu1 %vm235_vm0, %v7782_v9  ;;  %v7447_v9 = vld [vmem:[%s10011_s28 + $0x18] sm:$0xff] }
 0x123   : > { %9018 = vmatmul.mubr.msk.f32.gmra.mrb[36].mxu0 %vm235_vm0, %v10941_v13 }
 0x124   : > { %9226 = vmatmul.mubr.msk.f32.gmra.mrb[36].mxu1 %vm235_vm0, %v7783_v15  ;;  %9020 = vmatprep.mubr.msk.f32.mxu0 %vm235_vm0, %v10945_v21  ;;  %v7677_v15 = vld [vmem:[%s12279_s1 + $0xb0] sm:$0xff] }
 0x125   : > { %9228 = vmatprep.mubr.msk.f32.mxu1 %vm235_vm0, %v7784_v25  ;;  %v7678_v25 = vld [vmem:[%s12279_s1 + $0xb8] sm:$0xff] }
 0x127   : > { %9021 = vmatmul.mubr.msk.f32.gmra.mrb[38].mxu0 %vm235_vm0, %v10955_v33 }
 0x128   : > { %9229 = vmatmul.mubr.msk.f32.gmra.mrb[38].mxu1 %vm235_vm0, %v7785_v37  ;;  %9023 = vmatprep.mubr.msk.f32.mxu0 %vm235_vm0, %v10959_v41  ;;  %v7975_v37 = vld [vmem:[%s12279_s1 + $0xf8] sm:$0xff] }
 0x129   : > { %9231 = vmatprep.mubr.msk.f32.mxu1 %vm235_vm0, %v7786_v43  ;;  %v7448_v43 = vld [vmem:[%s10011_s28 + $0x20] sm:$0xff] }
 0x12b   : > { %9024 = vmatmul.mubr.msk.f32.gmra.mrb[40].mxu0 %vm235_vm0, %v10969_v45 }
 0x12c   : > { %9232 = vmatmul.mubr.msk.f32.gmra.mrb[40].mxu1 %vm235_vm0, %v7787_v47  ;;  %9026 = vmatprep.mubr.msk.f32.mxu0 %vm235_vm0, %v10973_v49  ;;  %v11143_v47 = vpack.c.bf16 %v7678_v25, %v7677_v15  ;;  %v11327_v15 = vld [vmem:[%s10011_s28 + $0x158] sm:$0xff]  ;;  %v11330_v25 = vld [vmem:[%s10011_s28 + $0x168] sm:$0xff] }
 0x12d   : > { %9234 = vmatprep.mubr.msk.f32.mxu1 %vm235_vm0, %v7788_v51 }
 0x12f   : > { %9027 = vmatmul.mubr.msk.f32.gmra.mrb[42].mxu0 %vm235_vm0, %v10983_v53 }
 0x130   : > { %9235 = vmatmul.mubr.msk.f32.gmra.mrb[42].mxu1 %vm235_vm0, %v7789_v55  ;;  %9029 = vmatprep.mubr.msk.f32.mxu0 %vm235_vm0, %v10987_v20  ;;  %v11153_v55 = vld [vmem:[%s10011_s28 + $0x38] sm:$0xff] }
 0x131   : > { %9237 = vmatprep.mubr.msk.f32.mxu1 %vm235_vm0, %v7790_v24  ;;  %v11190_v24 = vld [vmem:[%s10011_s28 + $0x78] sm:$0xff] }
 0x133   : > { %9030 = vmatmul.mubr.msk.f32.gmra.mrb[44].mxu0 %vm235_vm0, %v10997_v27 }
 0x134   : > { %9238 = vmatmul.mubr.msk.f32.gmra.mrb[44].mxu1 %vm235_vm0, %v7791_v26  ;;  %9032 = vmatprep.mubr.msk.f32.mxu0 %vm235_vm0, %v11001_v57  ;;  %v11201_v26 = vld [vmem:[%s10011_s28 + $0x80] sm:$0xff] }
 0x135   : > { %9240 = vmatprep.mubr.msk.f32.mxu1 %vm235_vm0, %v7792_v28  ;;  %v11204_v28 = vld [vmem:[%s10011_s28 + $0x90] sm:$0xff] }
 0x137   : > { %9033 = vmatmul.mubr.msk.f32.gmra.mrb[46].mxu0 %vm235_vm0, %v11011_v30 }
 0x138   : > { %9241 = vmatmul.mubr.msk.f32.gmra.mrb[46].mxu1 %vm235_vm0, %v7793_v32  ;;  %9035 = vmatprep.mubr.msk.f32.mxu0 %vm235_vm0, %v11015_v34  ;;  %v11215_v32 = vld [vmem:[%s10011_s28 + $0x98] sm:$0xff] }
 0x139   : > { %9243 = vmatprep.mubr.msk.f32.mxu1 %vm235_vm0, %v7794_v36  ;;  %v11218_v36 = vld [vmem:[%s10011_s28 + $0xa8] sm:$0xff] }
 0x13b   : > { %9036 = vmatmul.mubr.msk.f32.gmra.mrb[48].mxu0 %vm235_vm0, %v11025_v38 }
 0x13c   : > { %9244 = vmatmul.mubr.msk.f32.gmra.mrb[48].mxu1 %vm235_vm0, %v7795_v40  ;;  %9038 = vmatprep.mubr.msk.f32.mxu0 %vm235_vm0, %v11029_v42  ;;  %v11229_v40 = vld [vmem:[%s10011_s28 + $0xb0] sm:$0xff] }
 0x13d   : > { %9246 = vmatprep.mubr.msk.f32.mxu1 %vm235_vm0, %v7796_v44  ;;  %v11232_v44 = vld [vmem:[%s10011_s28 + $0xc0] sm:$0xff] }
 0x13f   : > { %9039 = vmatmul.mubr.msk.f32.gmra.mrb[50].mxu0 %vm235_vm0, %v11039_v46 }
 0x140   : > { %9247 = vmatmul.mubr.msk.f32.gmra.mrb[50].mxu1 %vm235_vm0, %v7797_v48  ;;  %9041 = vmatprep.mubr.msk.f32.mxu0 %vm235_vm0, %v11043_v50  ;;  %v11243_v48 = vld [vmem:[%s10011_s28 + $0xc8] sm:$0xff] }
 0x141   : > { %9249 = vmatprep.mubr.msk.f32.mxu1 %vm235_vm0, %v7798_v52  ;;  %v11246_v52 = vld [vmem:[%s10011_s28 + $0xd8] sm:$0xff] }
 0x143   : > { %9042 = vmatmul.mubr.msk.f32.gmra.mrb[52].mxu0 %vm235_vm0, %v11053_v54 }
 0x144   : > { %9250 = vmatmul.mubr.msk.f32.gmra.mrb[52].mxu1 %vm235_vm0, %v7799_v56  ;;  %9044 = vmatprep.mubr.msk.f32.mxu0 %vm235_vm0, %v11057_v58  ;;  %v11257_v56 = vld [vmem:[%s10011_s28 + $0xe0] sm:$0xff] }
 0x145   : > { %9252 = vmatprep.mubr.msk.f32.mxu1 %vm235_vm0, %v7800_v59  ;;  %v11260_v59 = vld [vmem:[%s10011_s28 + $0xf0] sm:$0xff] }
 0x147   : > { %9045 = vmatmul.mubr.msk.f32.gmra.mrb[54].mxu0 %vm235_vm0, %v11067_v60 }
 0x148   : > { %9253 = vmatmul.mubr.msk.f32.gmra.mrb[54].mxu1 %vm235_vm0, %v7801_v61  ;;  %9047 = vmatprep.mubr.msk.f32.mxu0 %vm235_vm0, %v11071_v62  ;;  %v11271_v61 = vld [vmem:[%s10011_s28 + $0xf8] sm:$0xff] }
 0x149   : > { %9255 = vmatprep.mubr.msk.f32.mxu1 %vm235_vm0, %v7802_v63  ;;  %v11274_v63 = vld [vmem:[%s10011_s28 + $0x108] sm:$0xff] }
 0x14b   : > { %9048 = vmatmul.mubr.msk.f32.gmra.mrb[56].mxu0 %vm235_vm0, %v11081_v0 }
 0x14c   : > { %9256 = vmatmul.mubr.msk.f32.gmra.mrb[56].mxu1 %vm235_vm0, %v7803_v2  ;;  %9050 = vmatprep.mubr.msk.f32.mxu0 %vm235_vm0, %v11085_v6  ;;  %v11285_v2 = vld [vmem:[%s10011_s28 + $0x110] sm:$0xff] }
 0x14d   : > { %9258 = vmatprep.mubr.msk.f32.mxu1 %vm235_vm0, %v7804_v8  ;;  %v11288_v8 = vld [vmem:[%s10011_s28 + $0x120] sm:$0xff] }
 0x14f   : > { %9051 = vmatmul.mubr.msk.f32.gmra.mrb[58].mxu0 %vm235_vm0, %v11095_v10 }
 0x150   : > { %9259 = vmatmul.mubr.msk.f32.gmra.mrb[58].mxu1 %vm235_vm0, %v7805_v12  ;;  %9053 = vmatprep.mubr.msk.f32.mxu0 %vm235_vm0, %v11099_v14  ;;  %v11299_v12 = vld [vmem:[%s10011_s28 + $0x128] sm:$0xff] }
 0x151   : > { %9261 = vmatprep.mubr.msk.f32.mxu1 %vm235_vm0, %v7806_v19  ;;  %v11302_v19 = vld [vmem:[%s10011_s28 + $0x138] sm:$0xff] }
 0x153   : > { %9054 = vmatmul.mubr.msk.f32.gmra.mrb[60].mxu0 %vm235_vm0, %v11109_v16 }
 0x154   : > { %9262 = vmatmul.mubr.msk.f32.gmra.mrb[60].mxu1 %vm235_vm0, %v7807_v5  ;;  %9056 = vmatprep.mubr.msk.f32.mxu0 %vm235_vm0, %v10711_v35  ;;  %v11313_v5 = vld [vmem:[%s10011_s28 + $0x140] sm:$0xff] }
 0x155   : > { %9264 = vmatprep.mubr.msk.f32.mxu1 %vm235_vm0, %v10868_v1  ;;  %v7974_v1 = vld [vmem:[%s12279_s1 + $0xf0] sm:$0xff] }
 0x156   : > { %v11145_v51 = vpack.c.bf16 %v7975_v37, %v7974_v1  ;;  %v11341_v1 = vld [vmem:[%s10011_s28 + $0x170] sm:$0xff] }
 0x157   : > { %9057 = vmatmul.mubr.msk.f32.gmra.mrb[62].mxu0 %vm235_vm0, %v10725_v39 }
 0x158   : > { %9265 = vmatmul.mubr.msk.f32.gmra.mrb[62].mxu1 %vm235_vm0, %v10879_v3  ;;  %9063 = vmatprep.mubr.msk.f32.mxu0 %vm235_vm0, %v7447_v9  ;;  %v11141_v3 = vld [vmem:[%s10011_s28 + $0x30] sm:$0xff] }
 0x159   : > { %9271 = vmatprep.mubr.msk.f32.mxu1 %vm235_vm0, %v10882_v4  ;;  %v11160_v4 = vld [vmem:[%s10011_s28 + $0x48] sm:$0xff]  ;;  %v11316_v9 = vld [vmem:[%s10011_s28 + $0x150] sm:$0xff] }
 0x15b   : > { %9064 = vmatmul.mubr.msk.f32.vlgmr.msra.gmra.mrb[32].mxu0 %vm235_vm0, %v7448_v43 }
 0x15c   : > { %9272 = vmatmul.mubr.msk.f32.vlgmr.msra.gmra.mrb[32].mxu1 %vm235_vm0, %v10905_v17  ;;  %9466 = vmatpush3.bf16.msra.mxu0 %v10912_v18  ;;  %v11173_v17 = vld [vmem:[%s10011_s28 + $0x50] sm:$0xff]  ;;  %v11176_v18 = vld [vmem:[%s10011_s28 + $0x60] sm:$0xff] }
 0x15d   : > { %9482 = vmatpush3.bf16.msra.mxu1 %v10914_v22  ;;  %9066 = vmatprep.mubr.msk.f32.mxu0 %vm235_vm0, %v11141_v3  ;;  %v11187_v22 = vld [vmem:[%s10011_s28 + $0x68] sm:$0xff] }
 0x15e   : > { %9274 = vmatprep.mubr.msk.f32.mxu1 %vm235_vm0, %v10909_v11  ;;  %9468 = vmatprep.subr.bf16.mxu0 %v11143_v47 }
 0x15f   : > { %9484 = vmatprep.subr.bf16.mxu1 %v11145_v51  ;;  %9067 = vmatmul.mubr.msk.f32.gmra.mrb[34].mxu0 %vm235_vm0, %v11153_v55 }
 0x160   : > { %9275 = vmatmul.mubr.msk.f32.gmra.mrb[34].mxu1 %vm235_vm0, %v10922_v23  ;;  %9069 = vmatprep.mubr.msk.f32.mxu0 %vm235_vm0, %v11160_v4 }
 0x161   : > { %9277 = vmatprep.mubr.msk.f32.mxu1 %vm235_vm0, %v10929_v7 }
 0x163   : > { %9070 = vmatmul.mubr.msk.f32.gmra.mrb[36].mxu0 %vm235_vm0, %v11173_v17 }
 0x164   : > { %9278 = vmatmul.mubr.msk.f32.gmra.mrb[36].mxu1 %vm235_vm0, %v10941_v13  ;;  %9072 = vmatprep.mubr.msk.f32.mxu0 %vm235_vm0, %v11176_v18 }
 0x165   : > { %9280 = vmatprep.mubr.msk.f32.mxu1 %vm235_vm0, %v10945_v21 }
 0x167   : > { %9073 = vmatmul.mubr.msk.f32.gmra.mrb[38].mxu0 %vm235_vm0, %v11187_v22 }
 0x168   : > { %9281 = vmatmul.mubr.msk.f32.gmra.mrb[38].mxu1 %vm235_vm0, %v10955_v33  ;;  %9075 = vmatprep.mubr.msk.f32.mxu0 %vm235_vm0, %v11190_v24 }
 0x169   : > { %9283 = vmatprep.mubr.msk.f32.mxu1 %vm235_vm0, %v10959_v41 }
 0x16b   : > { %9076 = vmatmul.mubr.msk.f32.gmra.mrb[40].mxu0 %vm235_vm0, %v11201_v26 }
 0x16c   : > { %9284 = vmatmul.mubr.msk.f32.gmra.mrb[40].mxu1 %vm235_vm0, %v10969_v45  ;;  %9078 = vmatprep.mubr.msk.f32.mxu0 %vm235_vm0, %v11204_v28 }
 0x16d   : > { %9286 = vmatprep.mubr.msk.f32.mxu1 %vm235_vm0, %v10973_v49 }
 0x16f   : > { %9079 = vmatmul.mubr.msk.f32.gmra.mrb[42].mxu0 %vm235_vm0, %v11215_v32 }
 0x170   : > { %9287 = vmatmul.mubr.msk.f32.gmra.mrb[42].mxu1 %vm235_vm0, %v10983_v53  ;;  %9081 = vmatprep.mubr.msk.f32.mxu0 %vm235_vm0, %v11218_v36 }
 0x171   : > { %9289 = vmatprep.mubr.msk.f32.mxu1 %vm235_vm0, %v10987_v20 }
 0x173   : > { %9082 = vmatmul.mubr.msk.f32.gmra.mrb[44].mxu0 %vm235_vm0, %v11229_v40 }
 0x174   : > { %9290 = vmatmul.mubr.msk.f32.gmra.mrb[44].mxu1 %vm235_vm0, %v10997_v27  ;;  %9084 = vmatprep.mubr.msk.f32.mxu0 %vm235_vm0, %v11232_v44 }
 0x175   : > { %9292 = vmatprep.mubr.msk.f32.mxu1 %vm235_vm0, %v11001_v57 }
 0x177   : > { %9085 = vmatmul.mubr.msk.f32.gmra.mrb[46].mxu0 %vm235_vm0, %v11243_v48 }
 0x178   : > { %9293 = vmatmul.mubr.msk.f32.gmra.mrb[46].mxu1 %vm235_vm0, %v11011_v30  ;;  %9087 = vmatprep.mubr.msk.f32.mxu0 %vm235_vm0, %v11246_v52 }
 0x179   : > { %9295 = vmatprep.mubr.msk.f32.mxu1 %vm235_vm0, %v11015_v34 }
 0x17b   : > { %9088 = vmatmul.mubr.msk.f32.gmra.mrb[48].mxu0 %vm235_vm0, %v11257_v56 }
 0x17c   : > { %9296 = vmatmul.mubr.msk.f32.gmra.mrb[48].mxu1 %vm235_vm0, %v11025_v38  ;;  %9090 = vmatprep.mubr.msk.f32.mxu0 %vm235_vm0, %v11260_v59 }
 0x17d   : > { %9298 = vmatprep.mubr.msk.f32.mxu1 %vm235_vm0, %v11029_v42 }
 0x17f   : > { %9091 = vmatmul.mubr.msk.f32.gmra.mrb[50].mxu0 %vm235_vm0, %v11271_v61 }
 0x180   : > { %9299 = vmatmul.mubr.msk.f32.gmra.mrb[50].mxu1 %vm235_vm0, %v11039_v46  ;;  %9093 = vmatprep.mubr.msk.f32.mxu0 %vm235_vm0, %v11274_v63 }
 0x181   : > { %9301 = vmatprep.mubr.msk.f32.mxu1 %vm235_vm0, %v11043_v50 }
 0x183   : > { %9094 = vmatmul.mubr.msk.f32.gmra.mrb[52].mxu0 %vm235_vm0, %v11285_v2 }
 0x184   : > { %9302 = vmatmul.mubr.msk.f32.gmra.mrb[52].mxu1 %vm235_vm0, %v11053_v54  ;;  %9096 = vmatprep.mubr.msk.f32.mxu0 %vm235_vm0, %v11288_v8 }
 0x185   : > { %9304 = vmatprep.mubr.msk.f32.mxu1 %vm235_vm0, %v11057_v58 }
 0x187   : > { %9097 = vmatmul.mubr.msk.f32.gmra.mrb[54].mxu0 %vm235_vm0, %v11299_v12 }
 0x188   : > { %9305 = vmatmul.mubr.msk.f32.gmra.mrb[54].mxu1 %vm235_vm0, %v11067_v60  ;;  %9099 = vmatprep.mubr.msk.f32.mxu0 %vm235_vm0, %v11302_v19 }
 0x189   : > { %9307 = vmatprep.mubr.msk.f32.mxu1 %vm235_vm0, %v11071_v62 }
 0x18b   : > { %9100 = vmatmul.mubr.msk.f32.gmra.mrb[56].mxu0 %vm235_vm0, %v11313_v5 }
 0x18c   : > { %9308 = vmatmul.mubr.msk.f32.gmra.mrb[56].mxu1 %vm235_vm0, %v11081_v0  ;;  %9102 = vmatprep.mubr.msk.f32.mxu0 %vm235_vm0, %v11316_v9 }
 0x18d   : > { %9310 = vmatprep.mubr.msk.f32.mxu1 %vm235_vm0, %v11085_v6 }
 0x18f   : > { %9103 = vmatmul.mubr.msk.f32.gmra.mrb[58].mxu0 %vm235_vm0, %v11327_v15 }
 0x190   : > { %9311 = vmatmul.mubr.msk.f32.gmra.mrb[58].mxu1 %vm235_vm0, %v11095_v10  ;;  %9105 = vmatprep.mubr.msk.f32.mxu0 %vm235_vm0, %v11330_v25 }
 0x191   : > { %9313 = vmatprep.mubr.msk.f32.mxu1 %vm235_vm0, %v11099_v14 }
 0x193   : > { %9106 = vmatmul.mubr.msk.f32.gmra.mrb[60].mxu0 %vm235_vm0, %v11341_v1 }
 0x194   : > { %9314 = vmatmul.mubr.msk.f32.gmra.mrb[60].mxu1 %vm235_vm0, %v11109_v16  ;;  %9108 = vmatprep.mubr.msk.f32.mxu0 %vm235_vm0, %v10708_v29  ;;  %v11401_v29 = vld [vmem:[%s12280_s2] ss:$0 sm:$0xff] }
 0x195   : > { %9316 = vmatprep.mubr.msk.f32.mxu1 %vm235_vm0, %v10711_v35 }
 0x197   : > { %9109 = vmatmul.mubr.msk.f32.gmra.mrb[62].mxu0 %vm235_vm0, %v10722_v31 }
 0x198   : > { %9317 = vmatmul.mubr.msk.f32.gmra.mrb[62].mxu1 %vm235_vm0, %v10725_v39  ;;  %9115 = vmatprep.mubr.msk.f32.mxu0 %vm235_vm0, %v11141_v3 }
 0x199   : > { %9323 = vmatprep.mubr.msk.f32.mxu1 %vm235_vm0, %v10909_v11 }
 0x19b   : > { %9116 = vmatmul.mubr.msk.f32.vlgmr.msra.gmra.mrb[32].mxu0 %vm235_vm0, %v11153_v55 }
 0x19c   : > { %9324 = vmatmul.mubr.msk.f32.vlgmr.msra.gmra.mrb[32].mxu1 %vm235_vm0, %v10922_v23  ;;  %9470 = vmatpush3.bf16.msra.mxu0 %v11143_v47 }
 0x19d   : > { %9486 = vmatpush3.bf16.msra.mxu1 %v11145_v51  ;;  %9118 = vmatprep.mubr.msk.f32.mxu0 %vm235_vm0, %v11160_v4 }
 0x19e   : > { %9326 = vmatprep.mubr.msk.f32.mxu1 %vm235_vm0, %v10929_v7 }
 0x19f   : > { %9119 = vmatmul.mubr.msk.f32.gmra.mrb[34].mxu0 %vm235_vm0, %v11173_v17 }
 0x1a0   : > { %9327 = vmatmul.mubr.msk.f32.gmra.mrb[34].mxu1 %vm235_vm0, %v10941_v13  ;;  %9121 = vmatprep.mubr.msk.f32.mxu0 %vm235_vm0, %v11176_v18 }
 0x1a1   : > { %9329 = vmatprep.mubr.msk.f32.mxu1 %vm235_vm0, %v10945_v21 }
 0x1a3   : > { %9122 = vmatmul.mubr.msk.f32.gmra.mrb[36].mxu0 %vm235_vm0, %v11187_v22 }
 0x1a4   : > { %9330 = vmatmul.mubr.msk.f32.gmra.mrb[36].mxu1 %vm235_vm0, %v10955_v33  ;;  %9124 = vmatprep.mubr.msk.f32.mxu0 %vm235_vm0, %v11190_v24 }
 0x1a5   : > { %9332 = vmatprep.mubr.msk.f32.mxu1 %vm235_vm0, %v10959_v41 }
 0x1a7   : > { %9125 = vmatmul.mubr.msk.f32.gmra.mrb[38].mxu0 %vm235_vm0, %v11201_v26 }
 0x1a8   : > { %9333 = vmatmul.mubr.msk.f32.gmra.mrb[38].mxu1 %vm235_vm0, %v10969_v45  ;;  %9127 = vmatprep.mubr.msk.f32.mxu0 %vm235_vm0, %v11204_v28 }
 0x1a9   : > { %9335 = vmatprep.mubr.msk.f32.mxu1 %vm235_vm0, %v10973_v49 }
 0x1ab   : > { %9128 = vmatmul.mubr.msk.f32.gmra.mrb[40].mxu0 %vm235_vm0, %v11215_v32 }
 0x1ac   : > { %9336 = vmatmul.mubr.msk.f32.gmra.mrb[40].mxu1 %vm235_vm0, %v10983_v53  ;;  %9130 = vmatprep.mubr.msk.f32.mxu0 %vm235_vm0, %v11218_v36 }
 0x1ad   : > { %9338 = vmatprep.mubr.msk.f32.mxu1 %vm235_vm0, %v10987_v20 }
 0x1ae   : > { %v8753_v35 = vpop.f32.mrb[0].mxu0 }
 0x1af   : > { %v8961_v31 = vpop.f32.mrb[0].mxu1  ;;  %v1663_v39 = vadd.f32 %v8753_v35, %v11401_v29  ;;  %v1464_v23 = vpop.f32.mrb[1].mxu0  ;;  %9131 = vmatmul.mubr.msk.f32.gmra.mrb[42].mxu0 %vm235_vm0, %v11229_v40 }
 0x1b0   : > { %v3223_v11 = vadd.f32 %v8961_v31, %v11401_v29  ;;  %v3024_v7 = vpop.f32.mrb[1].mxu1  ;;  %9339 = vmatmul.mubr.msk.f32.gmra.mrb[42].mxu1 %vm235_vm0, %v10997_v27  ;;  %v1662_v13 = vadd.f32 %v11401_v29, %v1464_v23  ;;  %9133 = vmatprep.mubr.msk.f32.mxu0 %vm235_vm0, %v11232_v44 }
 0x1b1   : > { %v3222_v21 = vadd.f32 %v11401_v29, %v3024_v7  ;;  %9341 = vmatprep.mubr.msk.f32.mxu1 %vm235_vm0, %v11001_v57  ;;  %1696 = vst.msk [vmem:[%s11419_s12 + $0x8] sm:$0xff] %vm1694_vm1, %v1663_v39 }
 0x1b2   : > { %7416 = vst.msk [vmem:[%s11419_s12 + $0x108] sm:$0xff] %vm1694_vm1, %v3223_v11  ;;  %1695 = vst.msk [vmem:[%s11419_s12] sm:$0xff] %vm1694_vm1, %v1662_v13  ;;  %v8756_v33 = vpop.f32.mrb[2].mxu0 }
 0x1b3   : > { %7415 = vst.msk [vmem:[%s11419_s12 + $0x100] sm:$0xff] %vm1694_vm1, %v3222_v21  ;;  %v8964_v41 = vpop.f32.mrb[2].mxu1  ;;  %v1665_v45 = vadd.f32 %v8756_v33, %v11401_v29  ;;  %v1474_v53 = vpop.f32.mrb[3].mxu0  ;;  %9134 = vmatmul.mubr.msk.f32.gmra.mrb[44].mxu0 %vm235_vm0, %v11243_v48  ;;  %v7607_v21 = vld [vmem:[%s10011_s28 + $0x180] sm:$0xff] }
 0x1b4   : > { %v3225_v49 = vadd.f32 %v8964_v41, %v11401_v29  ;;  %v3034_v20 = vpop.f32.mrb[3].mxu1  ;;  %9342 = vmatmul.mubr.msk.f32.gmra.mrb[44].mxu1 %vm235_vm0, %v11011_v30  ;;  %v1664_v27 = vadd.f32 %v11401_v29, %v1474_v53  ;;  %9136 = vmatprep.mubr.msk.f32.mxu0 %vm235_vm0, %v11246_v52 }
 0x1b5   : > { %v3224_v57 = vadd.f32 %v11401_v29, %v3034_v20  ;;  %9344 = vmatprep.mubr.msk.f32.mxu1 %vm235_vm0, %v11015_v34  ;;  %1698 = vst.msk [vmem:[%s11419_s12 + $0x18] sm:$0xff] %vm1694_vm1, %v1665_v45  ;;  %v7608_v20 = vld [vmem:[%s10011_s28 + $0x188] sm:$0xff] }
 0x1b6   : > { %7418 = vst.msk [vmem:[%s11419_s12 + $0x118] sm:$0xff] %vm1694_vm1, %v3225_v49  ;;  %1697 = vst.msk [vmem:[%s11419_s12 + $0x10] sm:$0xff] %vm1694_vm1, %v1664_v27  ;;  %v8759_v30 = vpop.f32.mrb[4].mxu0  ;;  %v11586_v27 = vld [vmem:[%s10011_s28 + $0x189] sm:$0xff] }
 0x1b7   : > { %7417 = vst.msk [vmem:[%s11419_s12 + $0x110] sm:$0xff] %vm1694_vm1, %v3224_v57  ;;  %v8967_v37 = vpop.f32.mrb[4].mxu1  ;;  %v1667_v43 = vadd.f32 %v8759_v30, %v11401_v29  ;;  %v1484_v47 = vpop.f32.mrb[5].mxu0  ;;  %9137 = vmatmul.mubr.msk.f32.gmra.mrb[46].mxu0 %vm235_vm0, %v11257_v56  ;;  %v11594_v57 = vld [vmem:[%s10011_s28 + $0x199] sm:$0xff] }
 0x1b8   : > { %v3227_v3 = vadd.f32 %v8967_v37, %v11401_v29  ;;  %v3044_v34 = vpop.f32.mrb[5].mxu1  ;;  %9345 = vmatmul.mubr.msk.f32.gmra.mrb[46].mxu1 %vm235_vm0, %v11025_v38  ;;  %v1666_v51 = vadd.f32 %v11401_v29, %v1484_v47  ;;  %9139 = vmatprep.mubr.msk.f32.mxu0 %vm235_vm0, %v11260_v59 }
 0x1b9   : > { %v3226_v55 = vadd.f32 %v11401_v29, %v3044_v34  ;;  %9347 = vmatprep.mubr.msk.f32.mxu1 %vm235_vm0, %v11029_v42  ;;  %1700 = vst.msk [vmem:[%s11419_s12 + $0x28] sm:$0xff] %vm1694_vm1, %v1667_v43 }
 0x1ba   : > { %7420 = vst.msk [vmem:[%s11419_s12 + $0x128] sm:$0xff] %vm1694_vm1, %v3227_v3  ;;  %1699 = vst.msk [vmem:[%s11419_s12 + $0x20] sm:$0xff] %vm1694_vm1, %v1666_v51  ;;  %v8762_v38 = vpop.f32.mrb[6].mxu0 }
 0x1bb   : > { %7419 = vst.msk [vmem:[%s11419_s12 + $0x120] sm:$0xff] %vm1694_vm1, %v3226_v55  ;;  %v8970_v4 = vpop.f32.mrb[6].mxu1  ;;  %v1669_v17 = vadd.f32 %v8762_v38, %v11401_v29  ;;  %v1494_v22 = vpop.f32.mrb[7].mxu0  ;;  %9140 = vmatmul.mubr.msk.f32.gmra.mrb[48].mxu0 %vm235_vm0, %v11271_v61  ;;  %v7610_v55 = vld [vmem:[%s10011_s28 + $0x1a0] sm:$0xff] }
 0x1bc   : > { %v3229_v18 = vadd.f32 %v8970_v4, %v11401_v29  ;;  %v3054_v42 = vpop.f32.mrb[7].mxu1  ;;  %9348 = vmatmul.mubr.msk.f32.gmra.mrb[48].mxu1 %vm235_vm0, %v11039_v46  ;;  %v1668_v24 = vadd.f32 %v11401_v29, %v1494_v22  ;;  %9142 = vmatprep.mubr.msk.f32.mxu0 %vm235_vm0, %v11274_v63  ;;  %v11612_v38 = vld [vmem:[%s10011_s28 + $0x1a1] sm:$0xff]  ;;  %v7645_v4 = vld [vmem:[%s10011_s28 + $0x31] sm:$0xff] }
 0x1bd   : > { %v3228_v26 = vadd.f32 %v11401_v29, %v3054_v42  ;;  %9350 = vmatprep.mubr.msk.f32.mxu1 %vm235_vm0, %v11043_v50  ;;  %1702 = vst.msk [vmem:[%s11419_s12 + $0x38] sm:$0xff] %vm1694_vm1, %v1669_v17  ;;  %v7942_v17 = vld [vmem:[%s10011_s28 + $0x32] sm:$0xff] }
 0x1be   : > { %7422 = vst.msk [vmem:[%s11419_s12 + $0x138] sm:$0xff] %vm1694_vm1, %v3229_v18  ;;  %1701 = vst.msk [vmem:[%s11419_s12 + $0x30] sm:$0xff] %vm1694_vm1, %v1668_v24  ;;  %v8765_v46 = vpop.f32.mrb[8].mxu0 }
 0x1bf   : > { %7421 = vst.msk [vmem:[%s11419_s12 + $0x130] sm:$0xff] %vm1694_vm1, %v3228_v26  ;;  %v8973_v28 = vpop.f32.mrb[8].mxu1  ;;  %v1671_v32 = vadd.f32 %v8765_v46, %v11401_v29  ;;  %v1504_v40 = vpop.f32.mrb[9].mxu0  ;;  %9143 = vmatmul.mubr.msk.f32.gmra.mrb[50].mxu0 %vm235_vm0, %v11285_v2 }
 0x1c0   : > { %v3231_v36 = vadd.f32 %v8973_v28, %v11401_v29  ;;  %v3064_v50 = vpop.f32.mrb[9].mxu1  ;;  %9351 = vmatmul.mubr.msk.f32.gmra.mrb[50].mxu1 %vm235_vm0, %v11053_v54  ;;  %v1670_v44 = vadd.f32 %v11401_v29, %v1504_v40  ;;  %9145 = vmatprep.mubr.msk.f32.mxu0 %vm235_vm0, %v11288_v8  ;;  %v7943_v40 = vld [vmem:[%s10011_s28 + $0x3a] sm:$0xff] }
 0x1c1   : > { %v3230_v48 = vadd.f32 %v11401_v29, %v3064_v50  ;;  %9353 = vmatprep.mubr.msk.f32.mxu1 %vm235_vm0, %v11057_v58  ;;  %1704 = vst.msk [vmem:[%s11419_s12 + $0x48] sm:$0xff] %vm1694_vm1, %v1671_v32  ;;  %v7647_v50 = vld [vmem:[%s10011_s28 + $0x49] sm:$0xff] }
 0x1c2   : > { %7424 = vst.msk [vmem:[%s11419_s12 + $0x148] sm:$0xff] %vm1694_vm1, %v3231_v36  ;;  %1703 = vst.msk [vmem:[%s11419_s12 + $0x40] sm:$0xff] %vm1694_vm1, %v1670_v44  ;;  %v8768_v54 = vpop.f32.mrb[10].mxu0  ;;  %v7646_v36 = vld [vmem:[%s10011_s28 + $0x39] sm:$0xff]  ;;  %v7944_v44 = vld [vmem:[%s10011_s28 + $0x4a] sm:$0xff] }
 0x1c3   : > { %7423 = vst.msk [vmem:[%s11419_s12 + $0x140] sm:$0xff] %vm1694_vm1, %v3230_v48  ;;  %v8976_v52 = vpop.f32.mrb[10].mxu1  ;;  %v1673_v56 = vadd.f32 %v8768_v54, %v11401_v29  ;;  %v1514_v61 = vpop.f32.mrb[11].mxu0  ;;  %9146 = vmatmul.mubr.msk.f32.gmra.mrb[52].mxu0 %vm235_vm0, %v11299_v12 }
 0x1c4   : > { %v3233_v59 = vadd.f32 %v8976_v52, %v11401_v29  ;;  %v3074_v58 = vpop.f32.mrb[11].mxu1  ;;  %9354 = vmatmul.mubr.msk.f32.gmra.mrb[52].mxu1 %vm235_vm0, %v11067_v60  ;;  %v1672_v63 = vadd.f32 %v11401_v29, %v1514_v61  ;;  %9148 = vmatprep.mubr.msk.f32.mxu0 %vm235_vm0, %v11302_v19 }
 0x1c5   : > { %v3232_v2 = vadd.f32 %v11401_v29, %v3074_v58  ;;  %9356 = vmatprep.mubr.msk.f32.mxu1 %vm235_vm0, %v11071_v62  ;;  %1706 = vst.msk [vmem:[%s11419_s12 + $0x58] sm:$0xff] %vm1694_vm1, %v1673_v56 }
 0x1c6   : > { %7426 = vst.msk [vmem:[%s11419_s12 + $0x158] sm:$0xff] %vm1694_vm1, %v3233_v59  ;;  %1705 = vst.msk [vmem:[%s11419_s12 + $0x50] sm:$0xff] %vm1694_vm1, %v1672_v63  ;;  %v8771_v60 = vpop.f32.mrb[12].mxu0 }
 0x1c7   : > { %7425 = vst.msk [vmem:[%s11419_s12 + $0x150] sm:$0xff] %vm1694_vm1, %v3232_v2  ;;  %v8979_v8 = vpop.f32.mrb[12].mxu1  ;;  %v1675_v12 = vadd.f32 %v8771_v60, %v11401_v29  ;;  %v1524_v35 = vpop.f32.mrb[13].mxu0  ;;  %9149 = vmatmul.mubr.msk.f32.gmra.mrb[54].mxu0 %vm235_vm0, %v11313_v5  ;;  %v7648_v2 = vld [vmem:[%s10011_s28 + $0x51] sm:$0xff] }
 0x1c8   : > { %v3235_v19 = vadd.f32 %v8979_v8, %v11401_v29  ;;  %v3084_v62 = vpop.f32.mrb[13].mxu1  ;;  %9357 = vmatmul.mubr.msk.f32.gmra.mrb[54].mxu1 %vm235_vm0, %v11081_v0  ;;  %v1674_v31 = vadd.f32 %v11401_v29, %v1524_v35  ;;  %9151 = vmatprep.mubr.msk.f32.mxu0 %vm235_vm0, %v11316_v9  ;;  %v7945_v60 = vld [vmem:[%s10011_s28 + $0x52] sm:$0xff]  ;;  %v7649_v8 = vld [vmem:[%s10011_s28 + $0x61] sm:$0xff] }
 0x1c9   : > { %v3234_v39 = vadd.f32 %v11401_v29, %v3084_v62  ;;  %9359 = vmatprep.mubr.msk.f32.mxu1 %vm235_vm0, %v11085_v6  ;;  %1708 = vst.msk [vmem:[%s11419_s12 + $0x68] sm:$0xff] %vm1694_vm1, %v1675_v12  ;;  %v7946_v12 = vld [vmem:[%s10011_s28 + $0x62] sm:$0xff] }
 0x1ca   : > { %7428 = vst.msk [vmem:[%s11419_s12 + $0x168] sm:$0xff] %vm1694_vm1, %v3235_v19  ;;  %1707 = vst.msk [vmem:[%s11419_s12 + $0x60] sm:$0xff] %vm1694_vm1, %v1674_v31  ;;  %v8774_v0 = vpop.f32.mrb[14].mxu0 }
 0x1cb   : > { %7427 = vst.msk [vmem:[%s11419_s12 + $0x160] sm:$0xff] %vm1694_vm1, %v3234_v39  ;;  %v8982_v5 = vpop.f32.mrb[14].mxu1  ;;  %v1677_v9 = vadd.f32 %v8774_v0, %v11401_v29  ;;  %v1534_v11 = vpop.f32.mrb[15].mxu0  ;;  %9152 = vmatmul.mubr.msk.f32.gmra.mrb[56].mxu0 %vm235_vm0, %v11327_v15  ;;  %v11567_v15 = vld [vmem:[%s10011_s28 + $0x181] sm:$0xff] }
 0x1cc   : > { %v3237_v6 = vadd.f32 %v8982_v5, %v11401_v29  ;;  %v3094_v23 = vpop.f32.mrb[15].mxu1  ;;  %9360 = vmatmul.mubr.msk.f32.gmra.mrb[56].mxu1 %vm235_vm0, %v11095_v10  ;;  %v1676_v7 = vadd.f32 %v11401_v29, %v1534_v11  ;;  %9154 = vmatprep.mubr.msk.f32.mxu0 %vm235_vm0, %v11330_v25  ;;  %v7947_v11 = vld [vmem:[%s10011_s28 + $0x6a] sm:$0xff] }
 0x1cd   : > { %v3236_v13 = vadd.f32 %v11401_v29, %v3094_v23  ;;  %9362 = vmatprep.mubr.msk.f32.mxu1 %vm235_vm0, %v11099_v14  ;;  %1710 = vst.msk [vmem:[%s11419_s12 + $0x78] sm:$0xff] %vm1694_vm1, %v1677_v9  ;;  %v7651_v23 = vld [vmem:[%s10011_s28 + $0x79] sm:$0xff] }
 0x1ce   : > { %7430 = vst.msk [vmem:[%s11419_s12 + $0x178] sm:$0xff] %vm1694_vm1, %v3237_v6  ;;  %1709 = vst.msk [vmem:[%s11419_s12 + $0x70] sm:$0xff] %vm1694_vm1, %v1676_v7  ;;  %v8777_v10 = vpop.f32.mrb[16].mxu0  ;;  %v7650_v6 = vld [vmem:[%s10011_s28 + $0x69] sm:$0xff]  ;;  %v7948_v7 = vld [vmem:[%s10011_s28 + $0x7a] sm:$0xff] }
 0x1cf   : > { %7429 = vst.msk [vmem:[%s11419_s12 + $0x170] sm:$0xff] %vm1694_vm1, %v3236_v13  ;;  %v8985_v25 = vpop.f32.mrb[16].mxu1  ;;  %v1679_v14 = vadd.f32 %v8777_v10, %v11401_v29  ;;  %v1544_v41 = vpop.f32.mrb[17].mxu0  ;;  %9155 = vmatmul.mubr.msk.f32.gmra.mrb[58].mxu0 %vm235_vm0, %v11341_v1  ;;  %v7609_v1 = vld [vmem:[%s10011_s28 + $0x198] sm:$0xff] }
 0x1d0   : > { %v3239_v33 = vadd.f32 %v8985_v25, %v11401_v29  ;;  %v3104_v45 = vpop.f32.mrb[17].mxu1  ;;  %9363 = vmatmul.mubr.msk.f32.gmra.mrb[58].mxu1 %vm235_vm0, %v11109_v16  ;;  %v1678_v49 = vadd.f32 %v11401_v29, %v1544_v41  ;;  %9157 = vmatprep.mubr.msk.f32.mxu0 %vm235_vm0, %v7607_v21 }
 0x1d1   : > { %v3238_v53 = vadd.f32 %v11401_v29, %v3104_v45  ;;  %9365 = vmatprep.mubr.msk.f32.mxu1 %vm235_vm0, %v11567_v15  ;;  %1712 = vst.msk [vmem:[%s11419_s12 + $0x88] sm:$0xff] %vm1694_vm1, %v1679_v14 }
 0x1d2   : > { %7432 = vst.msk [vmem:[%s11419_s12 + $0x188] sm:$0xff] %vm1694_vm1, %v3239_v33  ;;  %1711 = vst.msk [vmem:[%s11419_s12 + $0x80] sm:$0xff] %vm1694_vm1, %v1678_v49  ;;  %v8780_v16 = vpop.f32.mrb[18].mxu0  ;;  %v7652_v49 = vld [vmem:[%s10011_s28 + $0x81] sm:$0xff] }
 0x1d3   : > { %7431 = vst.msk [vmem:[%s11419_s12 + $0x180] sm:$0xff] %vm1694_vm1, %v3238_v53  ;;  %v8988_v30 = vpop.f32.mrb[18].mxu1  ;;  %v1681_v37 = vadd.f32 %v8780_v16, %v11401_v29  ;;  %v1554_v3 = vpop.f32.mrb[19].mxu0  ;;  %9158 = vmatmul.mubr.msk.f32.gmra.mrb[60].mxu0 %vm235_vm0, %v7608_v20  ;;  %v7949_v53 = vld [vmem:[%s10011_s28 + $0x82] sm:$0xff]  ;;  %v7653_v20 = vld [vmem:[%s10011_s28 + $0x91] sm:$0xff] }
 0x1d4   : > { %v3241_v43 = vadd.f32 %v8988_v30, %v11401_v29  ;;  %v3114_v47 = vpop.f32.mrb[19].mxu1  ;;  %9366 = vmatmul.mubr.msk.f32.gmra.mrb[60].mxu1 %vm235_vm0, %v11586_v27  ;;  %v1680_v34 = vadd.f32 %v11401_v29, %v1554_v3  ;;  %9160 = vmatprep.mubr.msk.f32.mxu0 %vm235_vm0, %v7609_v1  ;;  %v7950_v1 = vld [vmem:[%s10011_s28 + $0x92] sm:$0xff] }
 0x1d5   : > { %v3240_v51 = vadd.f32 %v11401_v29, %v3114_v47  ;;  %9368 = vmatprep.mubr.msk.f32.mxu1 %vm235_vm0, %v11594_v57  ;;  %1714 = vst.msk [vmem:[%s11419_s12 + $0x98] sm:$0xff] %vm1694_vm1, %v1681_v37 }
 0x1d6   : > { %7434 = vst.msk [vmem:[%s11419_s12 + $0x198] sm:$0xff] %vm1694_vm1, %v3241_v43  ;;  %1713 = vst.msk [vmem:[%s11419_s12 + $0x90] sm:$0xff] %vm1694_vm1, %v1680_v34  ;;  %v8783_v18 = vpop.f32.mrb[20].mxu0 }
 0x1d7   : > { %7433 = vst.msk [vmem:[%s11419_s12 + $0x190] sm:$0xff] %vm1694_vm1, %v3240_v51  ;;  %v8991_v22 = vpop.f32.mrb[20].mxu1  ;;  %v1683_v42 = vadd.f32 %v8783_v18, %v11401_v29  ;;  %v1564_v26 = vpop.f32.mrb[21].mxu0  ;;  %9161 = vmatmul.mubr.msk.f32.gmra.mrb[62].mxu0 %vm235_vm0, %v7610_v55  ;;  %v7654_v55 = vld [vmem:[%s10011_s28 + $0x99] sm:$0xff]  ;;  %v7952_v18 = vld [vmem:[%s10011_s28 + $0xaa] sm:$0xff] }
 0x1d8   : > { %v3243_v24 = vadd.f32 %v8991_v22, %v11401_v29  ;;  %v3124_v46 = vpop.f32.mrb[21].mxu1  ;;  %9369 = vmatmul.mubr.msk.f32.gmra.mrb[62].mxu1 %vm235_vm0, %v11612_v38  ;;  %v1682_v28 = vadd.f32 %v11401_v29, %v1564_v26  ;;  %9167 = vmatprep.mubr.msk.f32.mxu0 %vm235_vm0, %v7645_v4  ;;  %v7951_v4 = vld [vmem:[%s10011_s28 + $0x9a] sm:$0xff] }
 0x1d9   : > { %v3242_v32 = vadd.f32 %v11401_v29, %v3124_v46  ;;  %9375 = vmatprep.mubr.msk.f32.mxu1 %vm235_vm0, %v7942_v17  ;;  %1716 = vst.msk [vmem:[%s11419_s12 + $0xa8] sm:$0xff] %vm1694_vm1, %v1683_v42  ;;  %v7655_v17 = vld [vmem:[%s10011_s28 + $0xa9] sm:$0xff] }
 0x1da   : > { %7436 = vst.msk [vmem:[%s11419_s12 + $0x1a8] sm:$0xff] %vm1694_vm1, %v3243_v24  ;;  %1715 = vst.msk [vmem:[%s11419_s12 + $0xa0] sm:$0xff] %vm1694_vm1, %v1682_v28  ;;  %v8786_v48 = vpop.f32.mrb[22].mxu0 }
 0x1db   : > { %7435 = vst.msk [vmem:[%s11419_s12 + $0x1a0] sm:$0xff] %vm1694_vm1, %v3242_v32  ;;  %v8994_v54 = vpop.f32.mrb[22].mxu1  ;;  %v1685_v52 = vadd.f32 %v8786_v48, %v11401_v29  ;;  %v1574_v59 = vpop.f32.mrb[23].mxu0  ;;  %9168 = vmatmul.mubr.msk.f32.vlgmr.msra.gmra.mrb[32].mxu0 %vm235_vm0, %v7646_v36  ;;  %v7954_v48 = vld [vmem:[%s10011_s28 + $0xc2] sm:$0xff] }
 0x1dc   : > { %v3245_v56 = vadd.f32 %v8994_v54, %v11401_v29  ;;  %v3134_v61 = vpop.f32.mrb[23].mxu1  ;;  %9376 = vmatmul.mubr.msk.f32.vlgmr.msra.gmra.mrb[32].mxu1 %vm235_vm0, %v7943_v40  ;;  %v1684_v58 = vadd.f32 %v11401_v29, %v1574_v59  ;;  %9170 = vmatprep.mubr.msk.f32.mxu0 %vm235_vm0, %v7647_v50  ;;  %v7656_v40 = vld [vmem:[%s10011_s28 + $0xb1] sm:$0xff]  ;;  %v7658_v54 = vld [vmem:[%s10011_s28 + $0xc9] sm:$0xff]  ;;  %v7956_v59 = vld [vmem:[%s10011_s28 + $0xda] sm:$0xff] }
 0x1dd   : > { %v3244_v63 = vadd.f32 %v11401_v29, %v3134_v61  ;;  %9378 = vmatprep.mubr.msk.f32.mxu1 %vm235_vm0, %v7944_v44  ;;  %1718 = vst.msk [vmem:[%s11419_s12 + $0xb8] sm:$0xff] %vm1694_vm1, %v1685_v52  ;;  %v7953_v50 = vld [vmem:[%s10011_s28 + $0xb2] sm:$0xff]  ;;  %v7657_v44 = vld [vmem:[%s10011_s28 + $0xc1] sm:$0xff]  ;;  %v7955_v52 = vld [vmem:[%s10011_s28 + $0xca] sm:$0xff] }
 0x1de   : > { %7438 = vst.msk [vmem:[%s11419_s12 + $0x1b8] sm:$0xff] %vm1694_vm1, %v3245_v56  ;;  %1717 = vst.msk [vmem:[%s11419_s12 + $0xb0] sm:$0xff] %vm1694_vm1, %v1684_v58  ;;  %v8789_v19 = vpop.f32.mrb[24].mxu0  ;;  %v7659_v56 = vld [vmem:[%s10011_s28 + $0xd9] sm:$0xff]  ;;  %v7660_v61 = vld [vmem:[%s10011_s28 + $0xe1] sm:$0xff] }
 0x1df   : > { %7437 = vst.msk [vmem:[%s11419_s12 + $0x1b0] sm:$0xff] %vm1694_vm1, %v3244_v63  ;;  %v8997_v35 = vpop.f32.mrb[24].mxu1  ;;  %v1687_v62 = vadd.f32 %v8789_v19, %v11401_v29  ;;  %v1584_v39 = vpop.f32.mrb[25].mxu0  ;;  %9171 = vmatmul.mubr.msk.f32.gmra.mrb[34].mxu0 %vm235_vm0, %v7648_v2  ;;  %v7957_v58 = vld [vmem:[%s10011_s28 + $0xe2] sm:$0xff]  ;;  %v7661_v63 = vld [vmem:[%s10011_s28 + $0xf1] sm:$0xff] }
 0x1e0   : > { %v3247_v31 = vadd.f32 %v8997_v35, %v11401_v29  ;;  %v3144_v0 = vpop.f32.mrb[25].mxu1  ;;  %9379 = vmatmul.mubr.msk.f32.gmra.mrb[34].mxu1 %vm235_vm0, %v7945_v60  ;;  %v1686_v5 = vadd.f32 %v11401_v29, %v1584_v39  ;;  %9173 = vmatprep.mubr.msk.f32.mxu0 %vm235_vm0, %v7649_v8  ;;  %v7958_v2 = vld [vmem:[%s10011_s28 + $0xf2] sm:$0xff]  ;;  %v7959_v8 = vld [vmem:[%s10011_s28 + $0xfa] sm:$0xff]  ;;  %v7960_v19 = vld [vmem:[%s10011_s28 + $0x10a] sm:$0xff] }
 0x1e1   : > { %v3246_v9 = vadd.f32 %v11401_v29, %v3144_v0  ;;  %9381 = vmatprep.mubr.msk.f32.mxu1 %vm235_vm0, %v7946_v12  ;;  %1720 = vst.msk [vmem:[%s11419_s12 + $0xc8] sm:$0xff] %vm1694_vm1, %v1687_v62  ;;  %v7662_v60 = vld [vmem:[%s10011_s28 + $0xf9] sm:$0xff]  ;;  %v7663_v12 = vld [vmem:[%s10011_s28 + $0x109] sm:$0xff]  ;;  %v7664_v35 = vld [vmem:[%s10011_s28 + $0x111] sm:$0xff] }
 0x1e2   : > { %7440 = vst.msk [vmem:[%s11419_s12 + $0x1c8] sm:$0xff] %vm1694_vm1, %v3247_v31  ;;  %1719 = vst.msk [vmem:[%s11419_s12 + $0xc0] sm:$0xff] %vm1694_vm1, %v1686_v5  ;;  %v8792_v13 = vpop.f32.mrb[26].mxu0  ;;  %v7961_v62 = vld [vmem:[%s10011_s28 + $0x112] sm:$0xff]  ;;  %v7665_v31 = vld [vmem:[%s10011_s28 + $0x121] sm:$0xff] }
 0x1e3   : > { %7439 = vst.msk [vmem:[%s11419_s12 + $0x1c0] sm:$0xff] %vm1694_vm1, %v3246_v9  ;;  %v9000_v21 = vpop.f32.mrb[26].mxu1  ;;  %v1689_v10 = vadd.f32 %v8792_v13, %v11401_v29  ;;  %v1594_v14 = vpop.f32.mrb[27].mxu0  ;;  %9174 = vmatmul.mubr.msk.f32.gmra.mrb[36].mxu0 %vm235_vm0, %v7650_v6  ;;  %v7962_v39 = vld [vmem:[%s10011_s28 + $0x122] sm:$0xff]  ;;  %v7963_v5 = vld [vmem:[%s10011_s28 + $0x12a] sm:$0xff]  ;;  %v7667_v9 = vld [vmem:[%s10011_s28 + $0x139] sm:$0xff] }
 0x1e4   : > { %v3249_v25 = vadd.f32 %v9000_v21, %v11401_v29  ;;  %v3154_v33 = vpop.f32.mrb[27].mxu1  ;;  %9382 = vmatmul.mubr.msk.f32.gmra.mrb[36].mxu1 %vm235_vm0, %v7947_v11  ;;  %v1688_v41 = vadd.f32 %v11401_v29, %v1594_v14  ;;  %9176 = vmatprep.mubr.msk.f32.mxu0 %vm235_vm0, %v7651_v23  ;;  %v7666_v0 = vld [vmem:[%s10011_s28 + $0x129] sm:$0xff]  ;;  %v7964_v6 = vld [vmem:[%s10011_s28 + $0x13a] sm:$0xff]  ;;  %v7966_v13 = vld [vmem:[%s10011_s28 + $0x152] sm:$0xff] }
 0x1e5   : > { %v3248_v45 = vadd.f32 %v11401_v29, %v3154_v33  ;;  %9384 = vmatprep.mubr.msk.f32.mxu1 %vm235_vm0, %v7948_v7  ;;  %1722 = vst.msk [vmem:[%s11419_s12 + $0xd8] sm:$0xff] %vm1694_vm1, %v1689_v10  ;;  %v7668_v11 = vld [vmem:[%s10011_s28 + $0x141] sm:$0xff]  ;;  %v7669_v7 = vld [vmem:[%s10011_s28 + $0x151] sm:$0xff]  ;;  %v7670_v21 = vld [vmem:[%s10011_s28 + $0x159] sm:$0xff] }
 0x1e6   : > { %7442 = vst.msk [vmem:[%s11419_s12 + $0x1d8] sm:$0xff] %vm1694_vm1, %v3249_v25  ;;  %1721 = vst.msk [vmem:[%s11419_s12 + $0xd0] sm:$0xff] %vm1694_vm1, %v1688_v41  ;;  %v8795_v16 = vpop.f32.mrb[28].mxu0  ;;  %v7965_v23 = vld [vmem:[%s10011_s28 + $0x142] sm:$0xff]  ;;  %v7967_v10 = vld [vmem:[%s10011_s28 + $0x15a] sm:$0xff] }
 0x1e7   : > { %7441 = vst.msk [vmem:[%s11419_s12 + $0x1d0] sm:$0xff] %vm1694_vm1, %v3248_v45  ;;  %v9003_v30 = vpop.f32.mrb[28].mxu1  ;;  %v1691_v37 = vadd.f32 %v8795_v16, %v11401_v29  ;;  %v1604_v3 = vpop.f32.mrb[29].mxu0  ;;  %9177 = vmatmul.mubr.msk.f32.gmra.mrb[38].mxu0 %vm235_vm0, %v7652_v49  ;;  %v7671_v25 = vld [vmem:[%s10011_s28 + $0x169] sm:$0xff]  ;;  %v7672_v33 = vld [vmem:[%s10011_s28 + $0x171] sm:$0xff] }
 0x1e8   : > { %v3251_v43 = vadd.f32 %v9003_v30, %v11401_v29  ;;  %v3164_v47 = vpop.f32.mrb[29].mxu1  ;;  %9385 = vmatmul.mubr.msk.f32.gmra.mrb[38].mxu1 %vm235_vm0, %v7949_v53  ;;  %v1690_v34 = vadd.f32 %v11401_v29, %v1604_v3  ;;  %9179 = vmatprep.mubr.msk.f32.mxu0 %vm235_vm0, %v7653_v20  ;;  %v7968_v14 = vld [vmem:[%s10011_s28 + $0x16a] sm:$0xff]  ;;  %v7969_v41 = vld [vmem:[%s10011_s28 + $0x172] sm:$0xff]  ;;  %v7970_v45 = vld [vmem:[%s10011_s28 + $0x182] sm:$0xff] }
 0x1e9   : > { %v3250_v51 = vadd.f32 %v11401_v29, %v3164_v47  ;;  %9387 = vmatprep.mubr.msk.f32.mxu1 %vm235_vm0, %v7950_v1  ;;  %1724 = vst.msk [vmem:[%s11419_s12 + $0xe8] sm:$0xff] %vm1694_vm1, %v1691_v37  ;;  %v7971_v49 = vld [vmem:[%s10011_s28 + $0x18a] sm:$0xff]  ;;  %v7972_v53 = vld [vmem:[%s10011_s28 + $0x19a] sm:$0xff]  ;;  %v7973_v20 = vld [vmem:[%s10011_s28 + $0x1a2] sm:$0xff] }
 0x1ea   : > { %7444 = vst.msk [vmem:[%s11419_s12 + $0x1e8] sm:$0xff] %vm1694_vm1, %v3251_v43  ;;  %1723 = vst.msk [vmem:[%s11419_s12 + $0xe0] sm:$0xff] %vm1694_vm1, %v1690_v34  ;;  %v8798_v22 = vpop.f32.mrb[30].mxu0 }
 0x1eb   : > { %7443 = vst.msk [vmem:[%s11419_s12 + $0x1e0] sm:$0xff] %vm1694_vm1, %v3250_v51  ;;  %v9006_v42 = vpop.f32.mrb[30].mxu1  ;;  %v1693_v24 = vadd.f32 %v8798_v22, %v11401_v29  ;;  %v1614_v46 = vpop.f32.mrb[31].mxu0  ;;  %9180 = vmatmul.mubr.msk.f32.gmra.mrb[40].mxu0 %vm235_vm0, %v7654_v55 }
 0x1ec   : > { %v3253_v26 = vadd.f32 %v9006_v42, %v11401_v29  ;;  %v3174_v28 = vpop.f32.mrb[31].mxu1  ;;  %9388 = vmatmul.mubr.msk.f32.gmra.mrb[40].mxu1 %vm235_vm0, %v7951_v4  ;;  %v1692_v32 = vadd.f32 %v11401_v29, %v1614_v46  ;;  %9182 = vmatprep.mubr.msk.f32.mxu0 %vm235_vm0, %v7655_v17 }
 0x1ed   : > { %v3252_v36 = vadd.f32 %v11401_v29, %v3174_v28  ;;  %9390 = vmatprep.mubr.msk.f32.mxu1 %vm235_vm0, %v7952_v18  ;;  %1726 = vst.msk [vmem:[%s11419_s12 + $0xf8] sm:$0xff] %vm1694_vm1, %v1693_v24 }
 0x1ee   : > { %7446 = vst.msk [vmem:[%s11419_s12 + $0x1f8] sm:$0xff] %vm1694_vm1, %v3253_v26  ;;  %1725 = vst.msk [vmem:[%s11419_s12 + $0xf0] sm:$0xff] %vm1694_vm1, %v1692_v32 }
 0x1ef   : > { %7445 = vst.msk [vmem:[%s11419_s12 + $0x1f0] sm:$0xff] %vm1694_vm1, %v3252_v36  ;;  %9183 = vmatmul.mubr.msk.f32.gmra.mrb[42].mxu0 %vm235_vm0, %v7656_v40 }
 0x1f0   : > { %9391 = vmatmul.mubr.msk.f32.gmra.mrb[42].mxu1 %vm235_vm0, %v7953_v50  ;;  %9185 = vmatprep.mubr.msk.f32.mxu0 %vm235_vm0, %v7657_v44 }
 0x1f1   : > { %9393 = vmatprep.mubr.msk.f32.mxu1 %vm235_vm0, %v7954_v48 }
 0x1f3   : > { %9186 = vmatmul.mubr.msk.f32.gmra.mrb[44].mxu0 %vm235_vm0, %v7658_v54 }
 0x1f4   : > { %9394 = vmatmul.mubr.msk.f32.gmra.mrb[44].mxu1 %vm235_vm0, %v7955_v52  ;;  %9188 = vmatprep.mubr.msk.f32.mxu0 %vm235_vm0, %v7659_v56 }
 0x1f5   : > { %9396 = vmatprep.mubr.msk.f32.mxu1 %vm235_vm0, %v7956_v59 }
 0x1f7   : > { %9189 = vmatmul.mubr.msk.f32.gmra.mrb[46].mxu0 %vm235_vm0, %v7660_v61 }
 0x1f8   : > { %9397 = vmatmul.mubr.msk.f32.gmra.mrb[46].mxu1 %vm235_vm0, %v7957_v58  ;;  %9191 = vmatprep.mubr.msk.f32.mxu0 %vm235_vm0, %v7661_v63 }
 0x1f9   : > { %9399 = vmatprep.mubr.msk.f32.mxu1 %vm235_vm0, %v7958_v2 }
 0x1fb   : > { %9192 = vmatmul.mubr.msk.f32.gmra.mrb[48].mxu0 %vm235_vm0, %v7662_v60 }
 0x1fc   : > { %9400 = vmatmul.mubr.msk.f32.gmra.mrb[48].mxu1 %vm235_vm0, %v7959_v8  ;;  %9194 = vmatprep.mubr.msk.f32.mxu0 %vm235_vm0, %v7663_v12 }
 0x1fd   : > { %9402 = vmatprep.mubr.msk.f32.mxu1 %vm235_vm0, %v7960_v19 }
 0x1ff   : > { %9195 = vmatmul.mubr.msk.f32.gmra.mrb[50].mxu0 %vm235_vm0, %v7664_v35 }
 0x200   : > { %9403 = vmatmul.mubr.msk.f32.gmra.mrb[50].mxu1 %vm235_vm0, %v7961_v62  ;;  %9197 = vmatprep.mubr.msk.f32.mxu0 %vm235_vm0, %v7665_v31 }
 0x201   : > { %9405 = vmatprep.mubr.msk.f32.mxu1 %vm235_vm0, %v7962_v39 }
 0x203   : > { %9198 = vmatmul.mubr.msk.f32.gmra.mrb[52].mxu0 %vm235_vm0, %v7666_v0 }
 0x204   : > { %9406 = vmatmul.mubr.msk.f32.gmra.mrb[52].mxu1 %vm235_vm0, %v7963_v5  ;;  %9200 = vmatprep.mubr.msk.f32.mxu0 %vm235_vm0, %v7667_v9 }
 0x205   : > { %9408 = vmatprep.mubr.msk.f32.mxu1 %vm235_vm0, %v7964_v6 }
 0x207   : > { %9201 = vmatmul.mubr.msk.f32.gmra.mrb[54].mxu0 %vm235_vm0, %v7668_v11 }
 0x208   : > { %9409 = vmatmul.mubr.msk.f32.gmra.mrb[54].mxu1 %vm235_vm0, %v7965_v23  ;;  %9203 = vmatprep.mubr.msk.f32.mxu0 %vm235_vm0, %v7669_v7 }
 0x209   : > { %9411 = vmatprep.mubr.msk.f32.mxu1 %vm235_vm0, %v7966_v13 }
 0x20b   : > { %9204 = vmatmul.mubr.msk.f32.gmra.mrb[56].mxu0 %vm235_vm0, %v7670_v21 }
 0x20c   : > { %9412 = vmatmul.mubr.msk.f32.gmra.mrb[56].mxu1 %vm235_vm0, %v7967_v10  ;;  %9206 = vmatprep.mubr.msk.f32.mxu0 %vm235_vm0, %v7671_v25 }
 0x20d   : > { %9414 = vmatprep.mubr.msk.f32.mxu1 %vm235_vm0, %v7968_v14 }
 0x20f   : > { %9207 = vmatmul.mubr.msk.f32.gmra.mrb[58].mxu0 %vm235_vm0, %v7672_v33 }
 0x210   : > { %9415 = vmatmul.mubr.msk.f32.gmra.mrb[58].mxu1 %vm235_vm0, %v7969_v41  ;;  %9209 = vmatprep.mubr.msk.f32.mxu0 %vm235_vm0, %v11567_v15 }
 0x211   : > { %9417 = vmatprep.mubr.msk.f32.mxu1 %vm235_vm0, %v7970_v45 }
 0x213   : > { %9210 = vmatmul.mubr.msk.f32.gmra.mrb[60].mxu0 %vm235_vm0, %v11586_v27 }
 0x214   : > { %9418 = vmatmul.mubr.msk.f32.gmra.mrb[60].mxu1 %vm235_vm0, %v7971_v49  ;;  %9212 = vmatprep.mubr.msk.f32.mxu0 %vm235_vm0, %v11594_v57 }
 0x215   : > { %9420 = vmatprep.mubr.msk.f32.mxu1 %vm235_vm0, %v7972_v53 }
 0x217   : > { %9213 = vmatmul.mubr.msk.f32.gmra.mrb[62].mxu0 %vm235_vm0, %v11612_v38 }
 0x218   : > { %9421 = vmatmul.mubr.msk.f32.gmra.mrb[62].mxu1 %vm235_vm0, %v7973_v20 }
 0x2ae   : > { %v9169_v15 = vpop.f32.mrb[32].mxu0 }
 0x2af   : > { %v9377_v1 = vpop.f32.mrb[32].mxu1  ;;  %v4784_v27 = vadd.f32 %v9169_v15, %v11401_v29  ;;  %v4585_v30 = vpop.f32.mrb[33].mxu0 }
 0x2b0   : > { %v6344_v16 = vadd.f32 %v9377_v1, %v11401_v29  ;;  %v6145_v37 = vpop.f32.mrb[33].mxu1  ;;  %v4783_v57 = vadd.f32 %v11401_v29, %v4585_v30 }
 0x2b1   : > { %v6343_v43 = vadd.f32 %v11401_v29, %v6145_v37  ;;  %7713 = vst.msk [vmem:[%s11419_s12 + $0x208] sm:$0xff] %vm1694_vm1, %v4784_v27 }
 0x2b2   : > { %8010 = vst.msk [vmem:[%s11419_s12 + $0x308] sm:$0xff] %vm1694_vm1, %v6344_v16  ;;  %7712 = vst.msk [vmem:[%s11419_s12 + $0x200] sm:$0xff] %vm1694_vm1, %v4783_v57  ;;  %v9172_v38 = vpop.f32.mrb[34].mxu0 }
 0x2b3   : > { %8009 = vst.msk [vmem:[%s11419_s12 + $0x300] sm:$0xff] %vm1694_vm1, %v6343_v43  ;;  %v9380_v3 = vpop.f32.mrb[34].mxu1  ;;  %v4786_v47 = vadd.f32 %v9172_v38, %v11401_v29  ;;  %v4595_v51 = vpop.f32.mrb[35].mxu0 }
 0x2b4   : > { %v6346_v34 = vadd.f32 %v9380_v3, %v11401_v29  ;;  %v6155_v55 = vpop.f32.mrb[35].mxu1  ;;  %v4785_v4 = vadd.f32 %v11401_v29, %v4595_v51 }
 0x2b5   : > { %v6345_v17 = vadd.f32 %v11401_v29, %v6155_v55  ;;  %7715 = vst.msk [vmem:[%s11419_s12 + $0x218] sm:$0xff] %vm1694_vm1, %v4786_v47 }
 0x2b6   : > { %8012 = vst.msk [vmem:[%s11419_s12 + $0x318] sm:$0xff] %vm1694_vm1, %v6346_v34  ;;  %7714 = vst.msk [vmem:[%s11419_s12 + $0x210] sm:$0xff] %vm1694_vm1, %v4785_v4  ;;  %v9175_v18 = vpop.f32.mrb[36].mxu0 }
 0x2b7   : > { %8011 = vst.msk [vmem:[%s11419_s12 + $0x310] sm:$0xff] %vm1694_vm1, %v6345_v17  ;;  %v9383_v22 = vpop.f32.mrb[36].mxu1  ;;  %v4788_v42 = vadd.f32 %v9175_v18, %v11401_v29  ;;  %v4605_v26 = vpop.f32.mrb[37].mxu0 }
 0x2b8   : > { %v6348_v24 = vadd.f32 %v9383_v22, %v11401_v29  ;;  %v6165_v46 = vpop.f32.mrb[37].mxu1  ;;  %v4787_v28 = vadd.f32 %v11401_v29, %v4605_v26 }
 0x2b9   : > { %v6347_v32 = vadd.f32 %v11401_v29, %v6165_v46  ;;  %7717 = vst.msk [vmem:[%s11419_s12 + $0x228] sm:$0xff] %vm1694_vm1, %v4788_v42 }
 0x2ba   : > { %8014 = vst.msk [vmem:[%s11419_s12 + $0x328] sm:$0xff] %vm1694_vm1, %v6348_v24  ;;  %7716 = vst.msk [vmem:[%s11419_s12 + $0x220] sm:$0xff] %vm1694_vm1, %v4787_v28  ;;  %v9178_v36 = vpop.f32.mrb[38].mxu0 }
 0x2bb   : > { %8013 = vst.msk [vmem:[%s11419_s12 + $0x320] sm:$0xff] %vm1694_vm1, %v6347_v32  ;;  %v9386_v40 = vpop.f32.mrb[38].mxu1  ;;  %v4790_v50 = vadd.f32 %v9178_v36, %v11401_v29  ;;  %v4615_v48 = vpop.f32.mrb[39].mxu0 }
 0x2bc   : > { %v6350_v44 = vadd.f32 %v9386_v40, %v11401_v29  ;;  %v6175_v54 = vpop.f32.mrb[39].mxu1  ;;  %v4789_v52 = vadd.f32 %v11401_v29, %v4615_v48 }
 0x2bd   : > { %v6349_v56 = vadd.f32 %v11401_v29, %v6175_v54  ;;  %7719 = vst.msk [vmem:[%s11419_s12 + $0x238] sm:$0xff] %vm1694_vm1, %v4790_v50 }
 0x2be   : > { %8016 = vst.msk [vmem:[%s11419_s12 + $0x338] sm:$0xff] %vm1694_vm1, %v6350_v44  ;;  %7718 = vst.msk [vmem:[%s11419_s12 + $0x230] sm:$0xff] %vm1694_vm1, %v4789_v52  ;;  %v9181_v59 = vpop.f32.mrb[40].mxu0 }
 0x2bf   : > { %8015 = vst.msk [vmem:[%s11419_s12 + $0x330] sm:$0xff] %vm1694_vm1, %v6349_v56  ;;  %v9389_v61 = vpop.f32.mrb[40].mxu1  ;;  %v4792_v58 = vadd.f32 %v9181_v59, %v11401_v29  ;;  %v4625_v2 = vpop.f32.mrb[41].mxu0 }
 0x2c0   : > { %v6352_v63 = vadd.f32 %v9389_v61, %v11401_v29  ;;  %v6185_v60 = vpop.f32.mrb[41].mxu1  ;;  %v4791_v8 = vadd.f32 %v11401_v29, %v4625_v2 }
 0x2c1   : > { %v6351_v12 = vadd.f32 %v11401_v29, %v6185_v60  ;;  %7721 = vst.msk [vmem:[%s11419_s12 + $0x248] sm:$0xff] %vm1694_vm1, %v4792_v58 }
 0x2c2   : > { %8018 = vst.msk [vmem:[%s11419_s12 + $0x348] sm:$0xff] %vm1694_vm1, %v6352_v63  ;;  %7720 = vst.msk [vmem:[%s11419_s12 + $0x240] sm:$0xff] %vm1694_vm1, %v4791_v8  ;;  %v9184_v19 = vpop.f32.mrb[42].mxu0  ;;  %v9896_v63 = vld [vmem:[%s12280_s2] ss:$0 sm:$0xff] }
 0x2c3   : > { %8017 = vst.msk [vmem:[%s11419_s12 + $0x340] sm:$0xff] %vm1694_vm1, %v6351_v12  ;;  %v9392_v35 = vpop.f32.mrb[42].mxu1  ;;  %v4794_v62 = vadd.f32 %v9184_v19, %v11401_v29  ;;  %v4635_v39 = vpop.f32.mrb[43].mxu0 }
 0x2c4   : > { %v6354_v31 = vadd.f32 %v9392_v35, %v11401_v29  ;;  %v6195_v0 = vpop.f32.mrb[43].mxu1  ;;  %v4793_v5 = vadd.f32 %v11401_v29, %v4635_v39 }
 0x2c5   : > { %v6353_v9 = vadd.f32 %v11401_v29, %v6195_v0  ;;  %7723 = vst.msk [vmem:[%s11419_s12 + $0x258] sm:$0xff] %vm1694_vm1, %v4794_v62 }
 0x2c6   : > { %8020 = vst.msk [vmem:[%s11419_s12 + $0x358] sm:$0xff] %vm1694_vm1, %v6354_v31  ;;  %7722 = vst.msk [vmem:[%s11419_s12 + $0x250] sm:$0xff] %vm1694_vm1, %v4793_v5  ;;  %v9187_v6 = vpop.f32.mrb[44].mxu0 }
 0x2c7   : > { %8019 = vst.msk [vmem:[%s11419_s12 + $0x350] sm:$0xff] %vm1694_vm1, %v6353_v9  ;;  %v9395_v11 = vpop.f32.mrb[44].mxu1  ;;  %v4796_v23 = vadd.f32 %v9187_v6, %v11401_v29  ;;  %v4645_v13 = vpop.f32.mrb[45].mxu0 }
 0x2c8   : > { %v6356_v7 = vadd.f32 %v9395_v11, %v11401_v29  ;;  %v6205_v21 = vpop.f32.mrb[45].mxu1  ;;  %v4795_v10 = vadd.f32 %v11401_v29, %v4645_v13 }
 0x2c9   : > { %v6355_v25 = vadd.f32 %v11401_v29, %v6205_v21  ;;  %7725 = vst.msk [vmem:[%s11419_s12 + $0x268] sm:$0xff] %vm1694_vm1, %v4796_v23 }
 0x2ca   : > { %8022 = vst.msk [vmem:[%s11419_s12 + $0x368] sm:$0xff] %vm1694_vm1, %v6356_v7  ;;  %7724 = vst.msk [vmem:[%s11419_s12 + $0x260] sm:$0xff] %vm1694_vm1, %v4795_v10  ;;  %v9190_v14 = vpop.f32.mrb[46].mxu0 }
 0x2cb   : > { %8021 = vst.msk [vmem:[%s11419_s12 + $0x360] sm:$0xff] %vm1694_vm1, %v6355_v25  ;;  %v9398_v33 = vpop.f32.mrb[46].mxu1  ;;  %v4798_v41 = vadd.f32 %v9190_v14, %v11401_v29  ;;  %v4655_v49 = vpop.f32.mrb[47].mxu0 }
 0x2cc   : > { %v6358_v45 = vadd.f32 %v9398_v33, %v11401_v29  ;;  %v6215_v53 = vpop.f32.mrb[47].mxu1  ;;  %v4797_v20 = vadd.f32 %v11401_v29, %v4655_v49 }
 0x2cd   : > { %v6357_v15 = vadd.f32 %v11401_v29, %v6215_v53  ;;  %7727 = vst.msk [vmem:[%s11419_s12 + $0x278] sm:$0xff] %vm1694_vm1, %v4798_v41 }
 0x2ce   : > { %8024 = vst.msk [vmem:[%s11419_s12 + $0x378] sm:$0xff] %vm1694_vm1, %v6358_v45  ;;  %7726 = vst.msk [vmem:[%s11419_s12 + $0x270] sm:$0xff] %vm1694_vm1, %v4797_v20  ;;  %v9193_v1 = vpop.f32.mrb[48].mxu0 }
 0x2cf   : > { %8023 = vst.msk [vmem:[%s11419_s12 + $0x370] sm:$0xff] %vm1694_vm1, %v6357_v15  ;;  %v9401_v27 = vpop.f32.mrb[48].mxu1  ;;  %v4800_v16 = vadd.f32 %v9193_v1, %v11401_v29  ;;  %v4665_v37 = vpop.f32.mrb[49].mxu0 }
 0x2d0   : > { %v6360_v30 = vadd.f32 %v9401_v27, %v11401_v29  ;;  %v6225_v57 = vpop.f32.mrb[49].mxu1  ;;  %v4799_v43 = vadd.f32 %v11401_v29, %v4665_v37  ;;  %v6699_v27 = vld [vmem:[%s11419_s12] sm:$0xff] (%p9966_p4)  ;;  %v6705_v37 = vld [vmem:[%s11419_s12 + $0x18] sm:$0xff] (%p9966_p4) }
 0x2d1   : > { %v6359_v38 = vadd.f32 %v11401_v29, %v6225_v57  ;;  %7729 = vst.msk [vmem:[%s11419_s12 + $0x288] sm:$0xff] %vm1694_vm1, %v4800_v16  ;;  %v6701_v16 = vld [vmem:[%s11419_s12 + $0x8] sm:$0xff] (%p9966_p4)  ;;  %v6707_v57 = vld [vmem:[%s11419_s12 + $0x20] sm:$0xff] (%p9966_p4)  ;;  %6700 = vst [vmem:[%s12013_s10] sm:$0xff] (%p9966_p4), %v6699_v27 }
 0x2d2   : > { %8026 = vst.msk [vmem:[%s11419_s12 + $0x388] sm:$0xff] %vm1694_vm1, %v6360_v30  ;;  %7728 = vst.msk [vmem:[%s11419_s12 + $0x280] sm:$0xff] %vm1694_vm1, %v4799_v43  ;;  %v9196_v3 = vpop.f32.mrb[50].mxu0  ;;  %v6703_v30 = vld [vmem:[%s11419_s12 + $0x10] sm:$0xff] (%p9966_p4)  ;;  %v6709_v43 = vld [vmem:[%s11419_s12 + $0x28] sm:$0xff] (%p9966_p4) }
 0x2d3   : > { %8025 = vst.msk [vmem:[%s11419_s12 + $0x380] sm:$0xff] %vm1694_vm1, %v6359_v38  ;;  %v9404_v47 = vpop.f32.mrb[50].mxu1  ;;  %v4802_v34 = vadd.f32 %v9196_v3, %v11401_v29  ;;  %v4675_v55 = vpop.f32.mrb[51].mxu0  ;;  %6702 = vst [vmem:[%s12013_s10 + $0x8] sm:$0xff] (%p9966_p4), %v6701_v16  ;;  %v6711_v38 = vld [vmem:[%s11419_s12 + $0x30] sm:$0xff] (%p9966_p4)  ;;  %v6713_v3 = vld [vmem:[%s11419_s12 + $0x38] sm:$0xff] (%p9966_p4) }
 0x2d4   : > { %v6362_v51 = vadd.f32 %v9404_v47, %v11401_v29  ;;  %v6235_v4 = vpop.f32.mrb[51].mxu1  ;;  %v4801_v17 = vadd.f32 %v11401_v29, %v4675_v55  ;;  %6704 = vst [vmem:[%s12013_s10 + $0x10] sm:$0xff] (%p9966_p4), %v6703_v30  ;;  %6706 = vst [vmem:[%s12013_s10 + $0x18] sm:$0xff] (%p9966_p4), %v6705_v37  ;;  %v6715_v47 = vld [vmem:[%s11419_s12 + $0x40] sm:$0xff] (%p9966_p4)  ;;  %v6721_v55 = vld [vmem:[%s11419_s12 + $0x58] sm:$0xff] (%p9966_p4) }
 0x2d5   : > { %v6361_v18 = vadd.f32 %v11401_v29, %v6235_v4  ;;  %7731 = vst.msk [vmem:[%s11419_s12 + $0x298] sm:$0xff] %vm1694_vm1, %v4802_v34  ;;  %6708 = vst [vmem:[%s12013_s10 + $0x20] sm:$0xff] (%p9966_p4), %v6707_v57  ;;  %v6717_v34 = vld [vmem:[%s11419_s12 + $0x48] sm:$0xff] (%p9966_p4)  ;;  %v6723_v4 = vld [vmem:[%s11419_s12 + $0x60] sm:$0xff] (%p9966_p4) }
 0x2d6   : > { %8028 = vst.msk [vmem:[%s11419_s12 + $0x398] sm:$0xff] %vm1694_vm1, %v6362_v51  ;;  %7730 = vst.msk [vmem:[%s11419_s12 + $0x290] sm:$0xff] %vm1694_vm1, %v4801_v17  ;;  %v9199_v22 = vpop.f32.mrb[52].mxu0  ;;  %v6719_v51 = vld [vmem:[%s11419_s12 + $0x50] sm:$0xff] (%p9966_p4)  ;;  %v6725_v17 = vld [vmem:[%s11419_s12 + $0x68] sm:$0xff] (%p9966_p4) }
 0x2d7   : > { %8027 = vst.msk [vmem:[%s11419_s12 + $0x390] sm:$0xff] %vm1694_vm1, %v6361_v18  ;;  %v9407_v42 = vpop.f32.mrb[52].mxu1  ;;  %v4804_v24 = vadd.f32 %v9199_v22, %v11401_v29  ;;  %v4685_v46 = vpop.f32.mrb[53].mxu0  ;;  %6710 = vst [vmem:[%s12013_s10 + $0x28] sm:$0xff] (%p9966_p4), %v6709_v43  ;;  %v6727_v18 = vld [vmem:[%s11419_s12 + $0x70] sm:$0xff] (%p9966_p4)  ;;  %v6729_v22 = vld [vmem:[%s11419_s12 + $0x78] sm:$0xff] (%p9966_p4) }
 0x2d8   : > { %v6364_v26 = vadd.f32 %v9407_v42, %v11401_v29  ;;  %v6245_v28 = vpop.f32.mrb[53].mxu1  ;;  %v4803_v32 = vadd.f32 %v11401_v29, %v4685_v46  ;;  %6712 = vst [vmem:[%s12013_s10 + $0x30] sm:$0xff] (%p9966_p4), %v6711_v38  ;;  %6714 = vst [vmem:[%s12013_s10 + $0x38] sm:$0xff] (%p9966_p4), %v6713_v3  ;;  %v6731_v42 = vld [vmem:[%s11419_s12 + $0x80] sm:$0xff] (%p9966_p4)  ;;  %v6737_v46 = vld [vmem:[%s11419_s12 + $0x98] sm:$0xff] (%p9966_p4) }
 0x2d9   : > { %v6363_v36 = vadd.f32 %v11401_v29, %v6245_v28  ;;  %7733 = vst.msk [vmem:[%s11419_s12 + $0x2a8] sm:$0xff] %vm1694_vm1, %v4804_v24  ;;  %6716 = vst [vmem:[%s12013_s10 + $0x40] sm:$0xff] (%p9966_p4), %v6715_v47  ;;  %v6733_v24 = vld [vmem:[%s11419_s12 + $0x88] sm:$0xff] (%p9966_p4)  ;;  %v6739_v28 = vld [vmem:[%s11419_s12 + $0xa0] sm:$0xff] (%p9966_p4) }
 0x2da   : > { %8030 = vst.msk [vmem:[%s11419_s12 + $0x3a8] sm:$0xff] %vm1694_vm1, %v6364_v26  ;;  %7732 = vst.msk [vmem:[%s11419_s12 + $0x2a0] sm:$0xff] %vm1694_vm1, %v4803_v32  ;;  %v9202_v40 = vpop.f32.mrb[54].mxu0  ;;  %v6735_v26 = vld [vmem:[%s11419_s12 + $0x90] sm:$0xff] (%p9966_p4)  ;;  %v6741_v32 = vld [vmem:[%s11419_s12 + $0xa8] sm:$0xff] (%p9966_p4) }
 0x2db   : > { %8029 = vst.msk [vmem:[%s11419_s12 + $0x3a0] sm:$0xff] %vm1694_vm1, %v6363_v36  ;;  %v9410_v50 = vpop.f32.mrb[54].mxu1  ;;  %v4806_v44 = vadd.f32 %v9202_v40, %v11401_v29  ;;  %v4695_v54 = vpop.f32.mrb[55].mxu0  ;;  %6718 = vst [vmem:[%s12013_s10 + $0x48] sm:$0xff] (%p9966_p4), %v6717_v34  ;;  %v6743_v36 = vld [vmem:[%s11419_s12 + $0xb0] sm:$0xff] (%p9966_p4)  ;;  %v6745_v40 = vld [vmem:[%s11419_s12 + $0xb8] sm:$0xff] (%p9966_p4) }
 0x2dc   : > { %v6366_v48 = vadd.f32 %v9410_v50, %v11401_v29  ;;  %v6255_v52 = vpop.f32.mrb[55].mxu1  ;;  %v4805_v56 = vadd.f32 %v11401_v29, %v4695_v54  ;;  %6720 = vst [vmem:[%s12013_s10 + $0x50] sm:$0xff] (%p9966_p4), %v6719_v51  ;;  %6722 = vst [vmem:[%s12013_s10 + $0x58] sm:$0xff] (%p9966_p4), %v6721_v55  ;;  %v6747_v50 = vld [vmem:[%s11419_s12 + $0xc0] sm:$0xff] (%p9966_p4)  ;;  %v6753_v54 = vld [vmem:[%s11419_s12 + $0xd8] sm:$0xff] (%p9966_p4) }
 0x2dd   : > { %v6365_v59 = vadd.f32 %v11401_v29, %v6255_v52  ;;  %7735 = vst.msk [vmem:[%s11419_s12 + $0x2b8] sm:$0xff] %vm1694_vm1, %v4806_v44  ;;  %6724 = vst [vmem:[%s12013_s10 + $0x60] sm:$0xff] (%p9966_p4), %v6723_v4  ;;  %v6749_v44 = vld [vmem:[%s11419_s12 + $0xc8] sm:$0xff] (%p9966_p4)  ;;  %v6755_v52 = vld [vmem:[%s11419_s12 + $0xe0] sm:$0xff] (%p9966_p4) }
 0x2de   : > { %8032 = vst.msk [vmem:[%s11419_s12 + $0x3b8] sm:$0xff] %vm1694_vm1, %v6366_v48  ;;  %7734 = vst.msk [vmem:[%s11419_s12 + $0x2b0] sm:$0xff] %vm1694_vm1, %v4805_v56  ;;  %v9205_v61 = vpop.f32.mrb[56].mxu0  ;;  %v6751_v48 = vld [vmem:[%s11419_s12 + $0xd0] sm:$0xff] (%p9966_p4)  ;;  %v6757_v56 = vld [vmem:[%s11419_s12 + $0xe8] sm:$0xff] (%p9966_p4) }
 0x2df   : > { %8031 = vst.msk [vmem:[%s11419_s12 + $0x3b0] sm:$0xff] %vm1694_vm1, %v6365_v59  ;;  %v9413_v58 = vpop.f32.mrb[56].mxu1  ;;  %v4808_v2 = vadd.f32 %v9896_v63, %v9205_v61  ;;  %v4705_v8 = vpop.f32.mrb[57].mxu0  ;;  %6726 = vst [vmem:[%s12013_s10 + $0x68] sm:$0xff] (%p9966_p4), %v6725_v17  ;;  %v6759_v59 = vld [vmem:[%s11419_s12 + $0xf0] sm:$0xff] (%p9966_p4)  ;;  %v6761_v61 = vld [vmem:[%s11419_s12 + $0xf8] sm:$0xff] (%p9966_p4) }
 0x2e0   : > { %v6368_v60 = vadd.f32 %v9896_v63, %v9413_v58  ;;  %v6265_v29 = vpop.f32.mrb[57].mxu1  ;;  %v4807_v12 = vadd.f32 %v9896_v63, %v4705_v8  ;;  %6728 = vst [vmem:[%s12013_s10 + $0x70] sm:$0xff] (%p9966_p4), %v6727_v18  ;;  %6730 = vst [vmem:[%s12013_s10 + $0x78] sm:$0xff] (%p9966_p4), %v6729_v22  ;;  %v6763_v58 = vld [vmem:[%s11419_s12 + $0x100] sm:$0xff] (%p9966_p4)  ;;  %v6829_v16 = vld [vmem:[%s11419_s12 + $0x208] sm:$0xff] (%p9966_p4) }
 0x2e1   : > { %v6367_v19 = vadd.f32 %v9896_v63, %v6265_v29  ;;  %7737 = vst.msk [vmem:[%s11419_s12 + $0x2c8] sm:$0xff] %vm1694_vm1, %v4808_v2  ;;  %6732 = vst [vmem:[%s12013_s10 + $0x80] sm:$0xff] (%p9966_p4), %v6731_v42  ;;  %v6767_v2 = vld [vmem:[%s11419_s12 + $0x110] sm:$0xff] (%p9966_p4)  ;;  %v6771_v8 = vld [vmem:[%s11419_s12 + $0x120] sm:$0xff] (%p9966_p4) }
 0x2e2   : > { %8034 = vst.msk [vmem:[%s11419_s12 + $0x3c8] sm:$0xff] %vm1694_vm1, %v6368_v60  ;;  %7736 = vst.msk [vmem:[%s11419_s12 + $0x2c0] sm:$0xff] %vm1694_vm1, %v4807_v12  ;;  %v9208_v35 = vpop.f32.mrb[58].mxu0  ;;  %v6769_v60 = vld [vmem:[%s11419_s12 + $0x118] sm:$0xff] (%p9966_p4)  ;;  %v6773_v29 = vld [vmem:[%s11419_s12 + $0x128] sm:$0xff] (%p9966_p4) }
 0x2e3   : > { %8033 = vst.msk [vmem:[%s11419_s12 + $0x3c0] sm:$0xff] %vm1694_vm1, %v6367_v19  ;;  %v9416_v62 = vpop.f32.mrb[58].mxu1  ;;  %v4810_v31 = vadd.f32 %v9896_v63, %v9208_v35  ;;  %v4715_v0 = vpop.f32.mrb[59].mxu0  ;;  %6734 = vst [vmem:[%s12013_s10 + $0x88] sm:$0xff] (%p9966_p4), %v6733_v24  ;;  %v6775_v12 = vld [vmem:[%s11419_s12 + $0x130] sm:$0xff] (%p9966_p4)  ;;  %v6777_v19 = vld [vmem:[%s11419_s12 + $0x138] sm:$0xff] (%p9966_p4) }
 0x2e4   : > { %v6370_v39 = vadd.f32 %v9896_v63, %v9416_v62  ;;  %v6275_v5 = vpop.f32.mrb[59].mxu1  ;;  %v4809_v9 = vadd.f32 %v9896_v63, %v4715_v0  ;;  %6736 = vst [vmem:[%s12013_s10 + $0x90] sm:$0xff] (%p9966_p4), %v6735_v26  ;;  %6738 = vst [vmem:[%s12013_s10 + $0x98] sm:$0xff] (%p9966_p4), %v6737_v46  ;;  %v6779_v35 = vld [vmem:[%s11419_s12 + $0x140] sm:$0xff] (%p9966_p4)  ;;  %v6781_v62 = vld [vmem:[%s11419_s12 + $0x148] sm:$0xff] (%p9966_p4) }
 0x2e5   : > { %v6369_v6 = vadd.f32 %v9896_v63, %v6275_v5  ;;  %7739 = vst.msk [vmem:[%s11419_s12 + $0x2d8] sm:$0xff] %vm1694_vm1, %v4810_v31  ;;  %6740 = vst [vmem:[%s12013_s10 + $0xa0] sm:$0xff] (%p9966_p4), %v6739_v28  ;;  %v6783_v31 = vld [vmem:[%s11419_s12 + $0x150] sm:$0xff] (%p9966_p4)  ;;  %v6787_v0 = vld [vmem:[%s11419_s12 + $0x160] sm:$0xff] (%p9966_p4) }
 0x2e6   : > { %8036 = vst.msk [vmem:[%s11419_s12 + $0x3d8] sm:$0xff] %vm1694_vm1, %v6370_v39  ;;  %7738 = vst.msk [vmem:[%s11419_s12 + $0x2d0] sm:$0xff] %vm1694_vm1, %v4809_v9  ;;  %v9211_v11 = vpop.f32.mrb[60].mxu0  ;;  %v6785_v39 = vld [vmem:[%s11419_s12 + $0x158] sm:$0xff] (%p9966_p4)  ;;  %v6789_v5 = vld [vmem:[%s11419_s12 + $0x168] sm:$0xff] (%p9966_p4) }
 0x2e7   : > { %8035 = vst.msk [vmem:[%s11419_s12 + $0x3d0] sm:$0xff] %vm1694_vm1, %v6369_v6  ;;  %v9419_v23 = vpop.f32.mrb[60].mxu1  ;;  %v4812_v7 = vadd.f32 %v9896_v63, %v9211_v11  ;;  %v4725_v21 = vpop.f32.mrb[61].mxu0  ;;  %6742 = vst [vmem:[%s12013_s10 + $0xa8] sm:$0xff] (%p9966_p4), %v6741_v32  ;;  %v6791_v9 = vld [vmem:[%s11419_s12 + $0x170] sm:$0xff] (%p9966_p4)  ;;  %v6793_v6 = vld [vmem:[%s11419_s12 + $0x178] sm:$0xff] (%p9966_p4) }
 0x2e8   : > { %v6372_v13 = vadd.f32 %v9896_v63, %v9419_v23  ;;  %v6285_v10 = vpop.f32.mrb[61].mxu1  ;;  %v4811_v25 = vadd.f32 %v9896_v63, %v4725_v21  ;;  %6744 = vst [vmem:[%s12013_s10 + $0xb0] sm:$0xff] (%p9966_p4), %v6743_v36  ;;  %6746 = vst [vmem:[%s12013_s10 + $0xb8] sm:$0xff] (%p9966_p4), %v6745_v40  ;;  %v6795_v11 = vld [vmem:[%s11419_s12 + $0x180] sm:$0xff] (%p9966_p4)  ;;  %v6797_v23 = vld [vmem:[%s11419_s12 + $0x188] sm:$0xff] (%p9966_p4) }
 0x2e9   : > { %v6371_v14 = vadd.f32 %v9896_v63, %v6285_v10  ;;  %7741 = vst.msk [vmem:[%s11419_s12 + $0x2e8] sm:$0xff] %vm1694_vm1, %v4812_v7  ;;  %6414 = sbr.rel (!%p9966_p4) target bundleno = 801 (0x321), region = 36  ;;  %6748 = vst [vmem:[%s12013_s10 + $0xc0] sm:$0xff] (%p9966_p4), %v6747_v50  ;;  %v6799_v7 = vld [vmem:[%s11419_s12 + $0x190] sm:$0xff] (%p9966_p4)  ;;  %v6803_v21 = vld [vmem:[%s11419_s12 + $0x1a0] sm:$0xff] (%p9966_p4) }
 0x2ea   : > { %8038 = vst.msk [vmem:[%s11419_s12 + $0x3e8] sm:$0xff] %vm1694_vm1, %v6372_v13  ;;  %7740 = vst.msk [vmem:[%s11419_s12 + $0x2e0] sm:$0xff] %vm1694_vm1, %v4811_v25  ;;  %v9214_v33 = vpop.f32.mrb[62].mxu0  ;;  %v6801_v13 = vld [vmem:[%s11419_s12 + $0x198] sm:$0xff] (%p9966_p4)  ;;  %v6805_v10 = vld [vmem:[%s11419_s12 + $0x1a8] sm:$0xff] (%p9966_p4) }
 0x2eb   : > { %8037 = vst.msk [vmem:[%s11419_s12 + $0x3e0] sm:$0xff] %vm1694_vm1, %v6371_v14  ;;  %v9422_v41 = vpop.f32.mrb[62].mxu1  ;;  %v4814_v45 = vadd.f32 %v9896_v63, %v9214_v33  ;;  %v4735_v53 = vpop.f32.mrb[63].mxu0  ;;  %6750 = vst [vmem:[%s12013_s10 + $0xc8] sm:$0xff] (%p9966_p4), %v6749_v44  ;;  %v6807_v25 = vld [vmem:[%s11419_s12 + $0x1b0] sm:$0xff] (%p9966_p4)  ;;  %v6809_v14 = vld [vmem:[%s11419_s12 + $0x1b8] sm:$0xff] (%p9966_p4) }
 0x2ec   : > { %v6374_v49 = vadd.f32 %v9896_v63, %v9422_v41  ;;  %v6295_v20 = vpop.f32.mrb[63].mxu1  ;;  %v4813_v15 = vadd.f32 %v9896_v63, %v4735_v53  ;;  %6752 = vst [vmem:[%s12013_s10 + $0xd0] sm:$0xff] (%p9966_p4), %v6751_v48  ;;  %6754 = vst [vmem:[%s12013_s10 + $0xd8] sm:$0xff] (%p9966_p4), %v6753_v54  ;;  %v6811_v33 = vld [vmem:[%s11419_s12 + $0x1c0] sm:$0xff] (%p9966_p4)  ;;  %v6813_v41 = vld [vmem:[%s11419_s12 + $0x1c8] sm:$0xff] (%p9966_p4) }
 0x2ed   : > { %v6373_v1 = vadd.f32 %v9896_v63, %v6295_v20  ;;  %7743 = vst.msk [vmem:[%s11419_s12 + $0x2f8] sm:$0xff] %vm1694_vm1, %v4814_v45  ;;  %6756 = vst [vmem:[%s12013_s10 + $0xe0] sm:$0xff] (%p9966_p4), %v6755_v52  ;;  %v6765_v63 = vld [vmem:[%s11419_s12 + $0x108] sm:$0xff] (%p9966_p4)  ;;  %v6815_v45 = vld [vmem:[%s11419_s12 + $0x1d0] sm:$0xff] (%p9966_p4) }
 0x2ee   : > { %8040 = vst.msk [vmem:[%s11419_s12 + $0x3f8] sm:$0xff] %vm1694_vm1, %v6374_v49  ;;  %7742 = vst.msk [vmem:[%s11419_s12 + $0x2f0] sm:$0xff] %vm1694_vm1, %v4813_v15  ;;  %v6817_v49 = vld [vmem:[%s11419_s12 + $0x1d8] sm:$0xff] (%p9966_p4)  ;;  %v6819_v53 = vld [vmem:[%s11419_s12 + $0x1e0] sm:$0xff] (%p9966_p4) }
 0x2ef   : > { %8039 = vst.msk [vmem:[%s11419_s12 + $0x3f0] sm:$0xff] %vm1694_vm1, %v6373_v1  ;;  %6758 = vst [vmem:[%s12013_s10 + $0xe8] sm:$0xff] (%p9966_p4), %v6757_v56  ;;  %v6821_v20 = vld [vmem:[%s11419_s12 + $0x1e8] sm:$0xff] (%p9966_p4)  ;;  %v6823_v15 = vld [vmem:[%s11419_s12 + $0x1f0] sm:$0xff] (%p9966_p4) }
 0x2f0   : > { %6760 = vst [vmem:[%s12013_s10 + $0xf0] sm:$0xff] %v6759_v59  ;;  %6762 = vst [vmem:[%s12013_s10 + $0xf8] sm:$0xff] %v6761_v61  ;;  %v6825_v1 = vld [vmem:[%s11419_s12 + $0x1f8] sm:$0xff]  ;;  %v6827_v27 = vld [vmem:[%s11419_s12 + $0x200] sm:$0xff] }
 0x2f1   : > { %6764 = vst [vmem:[%s12013_s10 + $0x200] sm:$0xff] %v6763_v58  ;;  %6766 = vst [vmem:[%s12013_s10 + $0x208] sm:$0xff] %v6765_v63  ;;  %v6831_v30 = vld [vmem:[%s11419_s12 + $0x210] sm:$0xff]  ;;  %v6833_v37 = vld [vmem:[%s11419_s12 + $0x218] sm:$0xff] }
 0x2f2   : > { %6768 = vst [vmem:[%s12013_s10 + $0x210] sm:$0xff] %v6767_v2  ;;  %6770 = vst [vmem:[%s12013_s10 + $0x218] sm:$0xff] %v6769_v60  ;;  %v6835_v57 = vld [vmem:[%s11419_s12 + $0x220] sm:$0xff]  ;;  %v6837_v43 = vld [vmem:[%s11419_s12 + $0x228] sm:$0xff] }
 0x2f3   : > { %6772 = vst [vmem:[%s12013_s10 + $0x220] sm:$0xff] %v6771_v8  ;;  %6774 = vst [vmem:[%s12013_s10 + $0x228] sm:$0xff] %v6773_v29  ;;  %v6839_v38 = vld [vmem:[%s11419_s12 + $0x230] sm:$0xff]  ;;  %v6841_v3 = vld [vmem:[%s11419_s12 + $0x238] sm:$0xff] }
 0x2f4   : > { %6776 = vst [vmem:[%s12013_s10 + $0x230] sm:$0xff] %v6775_v12  ;;  %6778 = vst [vmem:[%s12013_s10 + $0x238] sm:$0xff] %v6777_v19  ;;  %v6843_v47 = vld [vmem:[%s11419_s12 + $0x240] sm:$0xff]  ;;  %v6845_v34 = vld [vmem:[%s11419_s12 + $0x248] sm:$0xff] }
 0x2f5   : > { %6780 = vst [vmem:[%s12013_s10 + $0x240] sm:$0xff] %v6779_v35  ;;  %6782 = vst [vmem:[%s12013_s10 + $0x248] sm:$0xff] %v6781_v62  ;;  %v6847_v51 = vld [vmem:[%s11419_s12 + $0x250] sm:$0xff]  ;;  %v6849_v55 = vld [vmem:[%s11419_s12 + $0x258] sm:$0xff] }
 0x2f6   : > { %6784 = vst [vmem:[%s12013_s10 + $0x250] sm:$0xff] %v6783_v31  ;;  %6786 = vst [vmem:[%s12013_s10 + $0x258] sm:$0xff] %v6785_v39  ;;  %v6851_v4 = vld [vmem:[%s11419_s12 + $0x260] sm:$0xff]  ;;  %v6853_v17 = vld [vmem:[%s11419_s12 + $0x268] sm:$0xff] }
 0x2f7   : > { %6788 = vst [vmem:[%s12013_s10 + $0x260] sm:$0xff] %v6787_v0  ;;  %6790 = vst [vmem:[%s12013_s10 + $0x268] sm:$0xff] %v6789_v5  ;;  %v6855_v18 = vld [vmem:[%s11419_s12 + $0x270] sm:$0xff]  ;;  %v6857_v22 = vld [vmem:[%s11419_s12 + $0x278] sm:$0xff] }
 0x2f8   : > { %6792 = vst [vmem:[%s12013_s10 + $0x270] sm:$0xff] %v6791_v9  ;;  %6794 = vst [vmem:[%s12013_s10 + $0x278] sm:$0xff] %v6793_v6  ;;  %v6859_v42 = vld [vmem:[%s11419_s12 + $0x280] sm:$0xff]  ;;  %v6861_v24 = vld [vmem:[%s11419_s12 + $0x288] sm:$0xff] }
 0x2f9   : > { %6796 = vst [vmem:[%s12013_s10 + $0x280] sm:$0xff] %v6795_v11  ;;  %6798 = vst [vmem:[%s12013_s10 + $0x288] sm:$0xff] %v6797_v23  ;;  %v6863_v26 = vld [vmem:[%s11419_s12 + $0x290] sm:$0xff]  ;;  %v6865_v46 = vld [vmem:[%s11419_s12 + $0x298] sm:$0xff] }
 0x2fa   : > { %6800 = vst [vmem:[%s12013_s10 + $0x290] sm:$0xff] %v6799_v7  ;;  %6802 = vst [vmem:[%s12013_s10 + $0x298] sm:$0xff] %v6801_v13  ;;  %v6867_v28 = vld [vmem:[%s11419_s12 + $0x2a0] sm:$0xff]  ;;  %v6869_v32 = vld [vmem:[%s11419_s12 + $0x2a8] sm:$0xff] }
 0x2fb   : > { %6804 = vst [vmem:[%s12013_s10 + $0x2a0] sm:$0xff] %v6803_v21  ;;  %6806 = vst [vmem:[%s12013_s10 + $0x2a8] sm:$0xff] %v6805_v10  ;;  %v6871_v36 = vld [vmem:[%s11419_s12 + $0x2b0] sm:$0xff]  ;;  %v6873_v40 = vld [vmem:[%s11419_s12 + $0x2b8] sm:$0xff] }
 0x2fc   : > { %6808 = vst [vmem:[%s12013_s10 + $0x2b0] sm:$0xff] %v6807_v25  ;;  %6810 = vst [vmem:[%s12013_s10 + $0x2b8] sm:$0xff] %v6809_v14  ;;  %v6875_v50 = vld [vmem:[%s11419_s12 + $0x2c0] sm:$0xff]  ;;  %v6877_v44 = vld [vmem:[%s11419_s12 + $0x2c8] sm:$0xff] }
 0x2fd   : > { %6812 = vst [vmem:[%s12013_s10 + $0x2c0] sm:$0xff] %v6811_v33  ;;  %6814 = vst [vmem:[%s12013_s10 + $0x2c8] sm:$0xff] %v6813_v41  ;;  %v6879_v48 = vld [vmem:[%s11419_s12 + $0x2d0] sm:$0xff]  ;;  %v6881_v54 = vld [vmem:[%s11419_s12 + $0x2d8] sm:$0xff] }
 0x2fe   : > { %6816 = vst [vmem:[%s12013_s10 + $0x2d0] sm:$0xff] %v6815_v45  ;;  %6818 = vst [vmem:[%s12013_s10 + $0x2d8] sm:$0xff] %v6817_v49  ;;  %v6883_v52 = vld [vmem:[%s11419_s12 + $0x2e0] sm:$0xff]  ;;  %v6885_v56 = vld [vmem:[%s11419_s12 + $0x2e8] sm:$0xff] }
 0x2ff   : > { %6820 = vst [vmem:[%s12013_s10 + $0x2e0] sm:$0xff] %v6819_v53  ;;  %6822 = vst [vmem:[%s12013_s10 + $0x2e8] sm:$0xff] %v6821_v20  ;;  %v6887_v59 = vld [vmem:[%s11419_s12 + $0x2f0] sm:$0xff]  ;;  %v6889_v61 = vld [vmem:[%s11419_s12 + $0x2f8] sm:$0xff] }
 0x300   : > { %6824 = vst [vmem:[%s12013_s10 + $0x2f0] sm:$0xff] %v6823_v15  ;;  %6826 = vst [vmem:[%s12013_s10 + $0x2f8] sm:$0xff] %v6825_v1  ;;  %v6891_v58 = vld [vmem:[%s11419_s12 + $0x300] sm:$0xff]  ;;  %v6893_v63 = vld [vmem:[%s11419_s12 + $0x308] sm:$0xff] }
 0x301   : > { %6828 = vst [vmem:[%s12013_s10 + $0x400] sm:$0xff] %v6827_v27  ;;  %6830 = vst [vmem:[%s12013_s10 + $0x408] sm:$0xff] %v6829_v16  ;;  %v6895_v2 = vld [vmem:[%s11419_s12 + $0x310] sm:$0xff]  ;;  %v6897_v60 = vld [vmem:[%s11419_s12 + $0x318] sm:$0xff] }
 0x302   : > { %6832 = vst [vmem:[%s12013_s10 + $0x410] sm:$0xff] %v6831_v30  ;;  %6834 = vst [vmem:[%s12013_s10 + $0x418] sm:$0xff] %v6833_v37  ;;  %v6899_v8 = vld [vmem:[%s11419_s12 + $0x320] sm:$0xff]  ;;  %v6901_v29 = vld [vmem:[%s11419_s12 + $0x328] sm:$0xff] }
 0x303   : > { %6836 = vst [vmem:[%s12013_s10 + $0x420] sm:$0xff] %v6835_v57  ;;  %6838 = vst [vmem:[%s12013_s10 + $0x428] sm:$0xff] %v6837_v43  ;;  %v6903_v12 = vld [vmem:[%s11419_s12 + $0x330] sm:$0xff]  ;;  %v6905_v19 = vld [vmem:[%s11419_s12 + $0x338] sm:$0xff] }
 0x304   : > { %6840 = vst [vmem:[%s12013_s10 + $0x430] sm:$0xff] %v6839_v38  ;;  %6842 = vst [vmem:[%s12013_s10 + $0x438] sm:$0xff] %v6841_v3  ;;  %v6907_v35 = vld [vmem:[%s11419_s12 + $0x340] sm:$0xff]  ;;  %v6909_v62 = vld [vmem:[%s11419_s12 + $0x348] sm:$0xff] }
 0x305   : > { %6844 = vst [vmem:[%s12013_s10 + $0x440] sm:$0xff] %v6843_v47  ;;  %6846 = vst [vmem:[%s12013_s10 + $0x448] sm:$0xff] %v6845_v34  ;;  %v6911_v31 = vld [vmem:[%s11419_s12 + $0x350] sm:$0xff]  ;;  %v6913_v39 = vld [vmem:[%s11419_s12 + $0x358] sm:$0xff] }
 0x306   : > { %6848 = vst [vmem:[%s12013_s10 + $0x450] sm:$0xff] %v6847_v51  ;;  %6850 = vst [vmem:[%s12013_s10 + $0x458] sm:$0xff] %v6849_v55  ;;  %v6915_v0 = vld [vmem:[%s11419_s12 + $0x360] sm:$0xff]  ;;  %v6917_v5 = vld [vmem:[%s11419_s12 + $0x368] sm:$0xff] }
 0x307   : > { %6852 = vst [vmem:[%s12013_s10 + $0x460] sm:$0xff] %v6851_v4  ;;  %6854 = vst [vmem:[%s12013_s10 + $0x468] sm:$0xff] %v6853_v17  ;;  %v6919_v9 = vld [vmem:[%s11419_s12 + $0x370] sm:$0xff]  ;;  %v6921_v6 = vld [vmem:[%s11419_s12 + $0x378] sm:$0xff] }
 0x308   : > { %6856 = vst [vmem:[%s12013_s10 + $0x470] sm:$0xff] %v6855_v18  ;;  %6858 = vst [vmem:[%s12013_s10 + $0x478] sm:$0xff] %v6857_v22  ;;  %v6923_v11 = vld [vmem:[%s11419_s12 + $0x380] sm:$0xff]  ;;  %v6925_v23 = vld [vmem:[%s11419_s12 + $0x388] sm:$0xff] }
 0x309   : > { %6860 = vst [vmem:[%s12013_s10 + $0x480] sm:$0xff] %v6859_v42  ;;  %6862 = vst [vmem:[%s12013_s10 + $0x488] sm:$0xff] %v6861_v24  ;;  %v6927_v7 = vld [vmem:[%s11419_s12 + $0x390] sm:$0xff]  ;;  %v6929_v13 = vld [vmem:[%s11419_s12 + $0x398] sm:$0xff] }
 0x30a   : > { %6864 = vst [vmem:[%s12013_s10 + $0x490] sm:$0xff] %v6863_v26  ;;  %6866 = vst [vmem:[%s12013_s10 + $0x498] sm:$0xff] %v6865_v46  ;;  %v6931_v21 = vld [vmem:[%s11419_s12 + $0x3a0] sm:$0xff]  ;;  %v6933_v10 = vld [vmem:[%s11419_s12 + $0x3a8] sm:$0xff] }
 0x30b   : > { %6868 = vst [vmem:[%s12013_s10 + $0x4a0] sm:$0xff] %v6867_v28  ;;  %6870 = vst [vmem:[%s12013_s10 + $0x4a8] sm:$0xff] %v6869_v32  ;;  %v6935_v25 = vld [vmem:[%s11419_s12 + $0x3b0] sm:$0xff]  ;;  %v6937_v14 = vld [vmem:[%s11419_s12 + $0x3b8] sm:$0xff] }
 0x30c   : > { %6872 = vst [vmem:[%s12013_s10 + $0x4b0] sm:$0xff] %v6871_v36  ;;  %6874 = vst [vmem:[%s12013_s10 + $0x4b8] sm:$0xff] %v6873_v40  ;;  %v6939_v33 = vld [vmem:[%s11419_s12 + $0x3c0] sm:$0xff]  ;;  %v6941_v41 = vld [vmem:[%s11419_s12 + $0x3c8] sm:$0xff] }
 0x30d   : > { %6876 = vst [vmem:[%s12013_s10 + $0x4c0] sm:$0xff] %v6875_v50  ;;  %6878 = vst [vmem:[%s12013_s10 + $0x4c8] sm:$0xff] %v6877_v44  ;;  %v6943_v45 = vld [vmem:[%s11419_s12 + $0x3d0] sm:$0xff]  ;;  %v6945_v49 = vld [vmem:[%s11419_s12 + $0x3d8] sm:$0xff] }
 0x30e   : > { %6880 = vst [vmem:[%s12013_s10 + $0x4d0] sm:$0xff] %v6879_v48  ;;  %6882 = vst [vmem:[%s12013_s10 + $0x4d8] sm:$0xff] %v6881_v54  ;;  %v6947_v53 = vld [vmem:[%s11419_s12 + $0x3e0] sm:$0xff]  ;;  %v6949_v20 = vld [vmem:[%s11419_s12 + $0x3e8] sm:$0xff] }
 0x30f   : > { %6884 = vst [vmem:[%s12013_s10 + $0x4e0] sm:$0xff] %v6883_v52  ;;  %6886 = vst [vmem:[%s12013_s10 + $0x4e8] sm:$0xff] %v6885_v56  ;;  %v6951_v15 = vld [vmem:[%s11419_s12 + $0x3f0] sm:$0xff]  ;;  %v6953_v1 = vld [vmem:[%s11419_s12 + $0x3f8] sm:$0xff] }
 0x310   : > { %6888 = vst [vmem:[%s12013_s10 + $0x4f0] sm:$0xff] %v6887_v59  ;;  %6890 = vst [vmem:[%s12013_s10 + $0x4f8] sm:$0xff] %v6889_v61 }
 0x311   : > { %6892 = vst [vmem:[%s12013_s10 + $0x600] sm:$0xff] %v6891_v58  ;;  %6894 = vst [vmem:[%s12013_s10 + $0x608] sm:$0xff] %v6893_v63 }
 0x312   : > { %6896 = vst [vmem:[%s12013_s10 + $0x610] sm:$0xff] %v6895_v2  ;;  %6898 = vst [vmem:[%s12013_s10 + $0x618] sm:$0xff] %v6897_v60 }
 0x313   : > { %6900 = vst [vmem:[%s12013_s10 + $0x620] sm:$0xff] %v6899_v8  ;;  %6902 = vst [vmem:[%s12013_s10 + $0x628] sm:$0xff] %v6901_v29 }
 0x314   : > { %6904 = vst [vmem:[%s12013_s10 + $0x630] sm:$0xff] %v6903_v12  ;;  %6906 = vst [vmem:[%s12013_s10 + $0x638] sm:$0xff] %v6905_v19 }
 0x315   : > { %6908 = vst [vmem:[%s12013_s10 + $0x640] sm:$0xff] %v6907_v35  ;;  %6910 = vst [vmem:[%s12013_s10 + $0x648] sm:$0xff] %v6909_v62 }
 0x316   : > { %6912 = vst [vmem:[%s12013_s10 + $0x650] sm:$0xff] %v6911_v31  ;;  %6914 = vst [vmem:[%s12013_s10 + $0x658] sm:$0xff] %v6913_v39 }
 0x317   : > { %6916 = vst [vmem:[%s12013_s10 + $0x660] sm:$0xff] %v6915_v0  ;;  %6918 = vst [vmem:[%s12013_s10 + $0x668] sm:$0xff] %v6917_v5 }
 0x318   : > { %6920 = vst [vmem:[%s12013_s10 + $0x670] sm:$0xff] %v6919_v9  ;;  %6922 = vst [vmem:[%s12013_s10 + $0x678] sm:$0xff] %v6921_v6 }
 0x319   : > { %6924 = vst [vmem:[%s12013_s10 + $0x680] sm:$0xff] %v6923_v11  ;;  %6926 = vst [vmem:[%s12013_s10 + $0x688] sm:$0xff] %v6925_v23 }
 0x31a   : > { %6928 = vst [vmem:[%s12013_s10 + $0x690] sm:$0xff] %v6927_v7  ;;  %6930 = vst [vmem:[%s12013_s10 + $0x698] sm:$0xff] %v6929_v13 }
 0x31b   : > { %6932 = vst [vmem:[%s12013_s10 + $0x6a0] sm:$0xff] %v6931_v21  ;;  %6934 = vst [vmem:[%s12013_s10 + $0x6a8] sm:$0xff] %v6933_v10 }
 0x31c   : > { %6936 = vst [vmem:[%s12013_s10 + $0x6b0] sm:$0xff] %v6935_v25  ;;  %6938 = vst [vmem:[%s12013_s10 + $0x6b8] sm:$0xff] %v6937_v14 }
 0x31d   : > { %6940 = vst [vmem:[%s12013_s10 + $0x6c0] sm:$0xff] %v6939_v33  ;;  %6942 = vst [vmem:[%s12013_s10 + $0x6c8] sm:$0xff] %v6941_v41 }
 0x31e   : > { %6944 = vst [vmem:[%s12013_s10 + $0x6d0] sm:$0xff] %v6943_v45  ;;  %6946 = vst [vmem:[%s12013_s10 + $0x6d8] sm:$0xff] %v6945_v49 }
 0x31f   : > { %6948 = vst [vmem:[%s12013_s10 + $0x6e0] sm:$0xff] %v6947_v53  ;;  %6950 = vst [vmem:[%s12013_s10 + $0x6e8] sm:$0xff] %v6949_v20 }
 0x320   : > { %6952 = vst [vmem:[%s12013_s10 + $0x6f0] sm:$0xff] %v6951_v15  ;;  %6954 = vst [vmem:[%s12013_s10 + $0x6f8] sm:$0xff] %v6953_v1 }
 0x321 PF: > { %p10_p8 = scmp.ge.s32.totalorder %s9956_s16, 4   ;;  %s12387_s12 = smov %s9915_s13 }
 0x322   : > { %s12388_s13 = smov %s9964_s19  ;;  %s12389_s14 = smov %s9956_s16 }
 0x323   :  { %12 = sbr.rel (!%p10_p8) target bundleno = 2 (0x2), region = 120 }

// kernel: _lambda_.2
= control target key start
LH: loop header
LB: loop body
LE: loop exit
PB: predicated region body
PF: predicated region fallthrough
CT: control target
= control target key end

     0   :  { %s11538_s0 = inlined_call_operand.vmem [shape: f32[2,10,10,4], index: 0, kind: input, shape index: {}]   ;;  %s11539_s1 = inlined_call_operand.hbm [shape: f32[9,4,32], index: 1, kind: input, shape index: {}]   ;;  %s11540_s2 = inlined_call_operand.hbm [shape: f32[1,32], index: 2, kind: input, shape index: {}]   ;;  %s11541_s3 = inlined_call_operand.hbm [shape: f32[2,9,32,8], index: 3, kind: input, shape index: {}]   ;;  %s11542_s4 = inlined_call_operand.hbm [shape: f32[2,8,32], index: 4, kind: input, shape index: {}]   ;;  %s11543_s5 = inlined_call_operand.hbm [shape: f32[4,4,32,16], index: 5, kind: input, shape index: {}]   ;;  %s11544_s6 = inlined_call_operand.hbm [shape: f32[1,16], index: 6, kind: input, shape index: {}]   ;;  %s11545_s7 = inlined_call_operand.vmem [shape: f32[4,128,16], index: 7, kind: output, shape index: {}]  }
   0x1   :  { %11552 = sst [smem:[#allocation18_spill]] %s11540_s2 }
   0x2   :  { %11553 = sst [smem:[#allocation19_spill]] %s11542_s4 }
   0x3   :  { %12 = vsyncpa [#allocation4], 0 }
   0x4   :  { %13 = vsyncpa [#allocation6], 0 }
   0x5   :  { %14 = vsyncpa [#allocation9], 0 }
   0x6   :  { %15 = vsyncpa [#allocation12], 0  ;;  %s10206_s24 = smov 0   ;;  %s10208_s25 = smov 0  }
   0x7   :  { %s10210_s26 = smov 0  }
   0x8 LB: > { %s10219_s27 = sadd.s32 4294967295, %s10153_s26   ;;  %s10221_s28 = sadd.s32 1, %s10153_s26   ;;  %s10153_s26 = sphi %s10210_s26, %s11574_s26   ;;  %s10149_s25 = sphi %s10208_s25, %s11573_s25   ;;  %s10145_s24 = sphi %s10206_s24, %s11572_s24  }
   0x9   : > { %s177_s29 = ssub.s32 %s10153_s26, %s10221_s28  ;;  %s180_s30 = sadd.s32 1, %s10149_s25 }
   0xa   : > { %p178_p0 = scmp.eq.s32.totalorder %s177_s29, 0  ;;  %p190_p1 = scmp.ne.s32.totalorder %s10149_s25, %s10145_s24 }
   0xb   : > { %p191_p2 = scmp.eq.s32.totalorder %s10219_s27, 1  ;;  %p7484_p3 = scmp.ge.s32.totalorder %s10153_s26, 1 }
   0xc   : > { %s10229_s8 = scalar_select %p178_p0, %s10149_s25, %s180_s30  }
   0xd   : > { %p10231_p4 = por %p191_p2, %p190_p1  ;;  %p204_p5 = scmp.lt.s32.totalorder %s10153_s26, 3 }
   0xe   : > { %p11546_p6 = scmp.eq.s32.totalorder %s10219_s27, 0  ;;  %s10155_s11 = smov [#allocation5]  }
   0xf   : > { %s11554_s9 = scalar_select %p10231_p4, 1, 0 }
  0x10   : > { %p10236_p7 = pnand %p7484_p3, %p204_p5  ;;  %s230_s12 = sshll.u32 %s10155_s11, 4  ;;  %s231_s12 = int_to_ptr.vmem [resolvable:$true] %s230_s12 }
  0x11   : > { %s10156_s14 = smov [#allocation8]   ;;  %s10157_s16 = smov [#allocation3]  }
  0x12   : > { %s11555_s10 = scalar_select %p10236_p7, 1, 0 }
  0x13   : > { %p9881_p8 = pneg %p10236_p7  ;;  %s253_s15 = sshll.u32 %s10156_s14, 4  ;;  %s10248_s15 = int_to_ptr.vmem [resolvable:$true] %s253_s15 }
  0x14   : > { %s10250_s17 = sshll.u32 %s10157_s16, 4  ;;  %s11557_s2 = sld [smem:[#allocation18_spill]]  ;;  %s217_s17 = int_to_ptr.vmem [resolvable:$true] %s10250_s17 }
  0x15   : > { %p10244_p9 = pnand %p11546_p6, %p9881_p8 }
  0x17   : > { %p10260_p11 = pneg %p10244_p9 }
  0x1a   : > { %s9947_s20 = scalar_lea.hbm %s11557_s2, 16 }
  0x1b   : > { %p9948_p10 = scmp.ne.s32.totalorder %s11557_s2, %s9947_s20  ;;  %p9954_p0 = scmp.lt.u32.totalorder %s9947_s20, %s11557_s2 }
  0x1d   : > { %p9950_p12 = pnand %p10260_p11, %p9948_p10 }
  0x1f   : > { %p9951_p13 = pneg %p9950_p12 }
  0x21   : > { %p9956_p1 = pnand %p9954_p0, %p9951_p13 }
  0x23   : > { %9959 = shalt.err (!%p9956_p1)
}
  0x24   : > { %s9960_s30 = scalar_lea.vmem %s231_s12, 16  ;;  %s9967_s11 = scalar_lea.vmem %s231_s12, 32 }
  0x25   : > { %p9961_p2 = scmp.ne.s32.totalorder %s231_s12, %s9960_s30  ;;  %p9968_p8 = scmp.lt.s32.totalorder %s231_s12, %s231_s12 }
  0x26   : > { %p9969_p6 = scmp.lt.s32.totalorder %s9967_s11, %s9960_s30 }
  0x27   : > { %p9963_p3 = pnand %p9961_p2, %p10260_p11 }
  0x28   : > { %p9970_p4 = por %p9969_p6, %p9968_p8 }
  0x29   : > { %p9964_p5 = pneg %p9963_p3 }
  0x2b   : > { %p9971_p7 = pnand %p9970_p4, %p9964_p5 }
  0x2d   : > { %9974 = shalt.err (!%p9971_p7)
}
  0x2e   : > { %9887 = dma.hbm_to_vmem [thread:$0]  (!%p10244_p9), %s11557_s2, 16, %s231_s12, [#allocation6]  }
  0x2f   : > { %s11559_s4 = sld [smem:[#allocation19_spill]] }
  0x35   : > { %s9975_s20 = scalar_lea.hbm %s11559_s4, 256 }
  0x36   : > { %p9976_p10 = scmp.ne.s32.totalorder %s11559_s4, %s9975_s20  ;;  %p9982_p4 = scmp.lt.u32.totalorder %s9975_s20, %s11559_s4 }
  0x38   : > { %p9978_p12 = pnand %p9976_p10, %p10260_p11 }
  0x3a   : > { %p9979_p6 = pneg %p9978_p12 }
  0x3c   : > { %p9984_p7 = pnand %p9982_p4, %p9979_p6 }
  0x3e   : > { %9987 = shalt.err (!%p9984_p7)
}
  0x3f   : > { %s9988_s12 = scalar_lea.vmem %s10248_s15, 256  ;;  %p9996_p2 = scmp.lt.s32.totalorder %s10248_s15, %s10248_s15 }
  0x40   : > { %p9989_p13 = scmp.ne.s32.totalorder %s10248_s15, %s9988_s12  ;;  %p9997_p3 = scmp.lt.s32.totalorder %s9988_s12, %s9988_s12 }
  0x42   : > { %p9991_p0 = pnand %p9989_p13, %p10260_p11  ;;  %p9998_p5 = por %p9997_p3, %p9996_p2 }
  0x44   : > { %p9992_p1 = pneg %p9991_p0 }
  0x46   : > { %p9999_p8 = pnand %p9998_p5, %p9992_p1 }
  0x48   : > { %10002 = shalt.err (!%p9999_p8)
}
  0x49   : > { %s11548_s30 = smov 128   ;;  %s11550_s11 = smov 8  }
  0x4a   : > { %9893 = dma.hbm_to_vmem [thread:$0]  (!%p10244_p9), %s11559_s4, 256, %s10248_s15, [#allocation9], %s11548_s30, %s11548_s30, %s11550_s11  }
  0x4b   : > { %s10003_s20 = scalar_lea.hbm %s11539_s1, 576 }
  0x4c   : > { %p10004_p10 = scmp.ne.s32.totalorder %s11539_s1, %s10003_s20  ;;  %p10010_p4 = scmp.lt.u32.totalorder %s10003_s20, %s11539_s1 }
  0x4e   : > { %p10006_p12 = pnand %p10004_p10, %p10260_p11 }
  0x50   : > { %p10007_p6 = pneg %p10006_p12 }
  0x52   : > { %p10012_p7 = pnand %p10010_p4, %p10007_p6 }
  0x54   : > { %10015 = shalt.err (!%p10012_p7)
}
  0x55   : > { %s10016_s12 = scalar_lea.vmem %s217_s17, 576  ;;  %p10024_p2 = scmp.lt.s32.totalorder %s217_s17, %s217_s17 }
  0x56   : > { %p10017_p13 = scmp.ne.s32.totalorder %s217_s17, %s10016_s12  ;;  %p10025_p3 = scmp.lt.s32.totalorder %s10016_s12, %s10016_s12 }
  0x58   : > { %p10019_p0 = pnand %p10017_p13, %p10260_p11  ;;  %p10026_p5 = por %p10025_p3, %p10024_p2 }
  0x5a   : > { %p10020_p1 = pneg %p10019_p0 }
  0x5c   : > { %p10027_p8 = pnand %p10026_p5, %p10020_p1 }
  0x5e   : > { %10030 = shalt.err (!%p10027_p8)
}
  0x5f   : > { %s10160_s15 = smov 64   ;;  %s10161_s14 = smov 4  }
  0x60   : > { %9884 = dma.hbm_to_vmem [thread:$0]  (!%p10244_p9), %s11539_s1, 576, %s217_s17, [#allocation4], %s10160_s15, %s10160_s15, %s10161_s14  }
  0x61   : > { %s10162_s19 = smov [#allocation7]   ;;  %s10163_s21 = smov [#allocation10]  }
  0x62   : > { %s240_s20 = sshll.u32 %s10162_s19, 4  ;;  %s266_s22 = sshll.u32 %s10163_s21, 4  ;;  %s241_s20 = int_to_ptr.vmem [resolvable:$true] %s240_s20  ;;  %s267_s22 = int_to_ptr.vmem [resolvable:$true] %s266_s22 }
  0x63   : > { %s10031_s12 = scalar_lea.hbm %s11541_s3, 9216 }
  0x64   : > { %p10032_p10 = scmp.ne.s32.totalorder %s11541_s3, %s10031_s12  ;;  %p10038_p4 = scmp.lt.u32.totalorder %s10031_s12, %s11541_s3 }
  0x66   : > { %p10034_p12 = pnand %p10032_p10, %p10260_p11 }
  0x68   : > { %p10035_p6 = pneg %p10034_p12 }
  0x6a   : > { %p10040_p7 = pnand %p10038_p4, %p10035_p6 }
  0x6c   : > { %10043 = shalt.err (!%p10040_p7)
}
  0x6d   : > { %s10044_s17 = scalar_lea.vmem %s241_s20, 9216  ;;  %p10052_p2 = scmp.lt.s32.totalorder %s241_s20, %s241_s20 }
  0x6e   : > { %p10045_p13 = scmp.ne.s32.totalorder %s241_s20, %s10044_s17  ;;  %p10053_p3 = scmp.lt.s32.totalorder %s10044_s17, %s10044_s17 }
  0x70   : > { %p10047_p0 = pnand %p10045_p13, %p10260_p11  ;;  %p10054_p5 = por %p10053_p3, %p10052_p2 }
  0x72   : > { %p10048_p1 = pneg %p10047_p0 }
  0x74   : > { %p10055_p8 = pnand %p10054_p5, %p10048_p1 }
  0x76   : > { %10058 = shalt.err (!%p10055_p8)
}
  0x77   : > { %s11560_s30 = smov 8   ;;  %s11561_s11 = smov 128  }
  0x78   : > { %9890 = dma.hbm_to_vmem [thread:$0]  (!%p10244_p9), %s11541_s3, 9216, %s241_s20, [#allocation6], %s11561_s11, %s11561_s11, %s11560_s30  }
  0x79   : > { %s10059_s16 = scalar_lea.hbm %s11543_s5, 8192 }
  0x7a   : > { %p10060_p10 = scmp.ne.s32.totalorder %s11543_s5, %s10059_s16  ;;  %p10066_p4 = scmp.lt.u32.totalorder %s10059_s16, %s11543_s5 }
  0x7c   : > { %p10062_p12 = pnand %p10060_p10, %p10260_p11 }
  0x7e   : > { %p10063_p6 = pneg %p10062_p12 }
  0x80   : > { %p10068_p7 = pnand %p10066_p4, %p10063_p6 }
  0x82   : > { %10071 = shalt.err (!%p10068_p7)
}
  0x83   : > { %s10072_s29 = scalar_lea.vmem %s267_s22, 8192  ;;  %p10080_p2 = scmp.lt.s32.totalorder %s267_s22, %s267_s22 }
  0x84   : > { %p10073_p13 = scmp.ne.s32.totalorder %s267_s22, %s10072_s29  ;;  %p10081_p3 = scmp.lt.s32.totalorder %s10072_s29, %s10072_s29 }
  0x86   : > { %p10075_p0 = pnand %p10073_p13, %p10260_p11  ;;  %p10082_p5 = por %p10081_p3, %p10080_p2 }
  0x88   : > { %p10076_p1 = pneg %p10075_p0 }
  0x8a   : > { %p10083_p8 = pnand %p10082_p5, %p10076_p1 }
  0x8c   : > { %10086 = shalt.err (!%p10083_p8)
}
  0x8d   : > { %9896 = dma.hbm_to_vmem [thread:$0]  (!%p10244_p9), %s11543_s5, 8192, %s267_s22, [#allocation9], %s11561_s11, %s11561_s11, %s11560_s30  }
  0x8e   : > { %s10164_s17 = smov [#allocation11]   ;;  %s10087_s14 = scalar_lea.hbm %s11544_s6, 16 }
  0x8f   : > { %s280_s2 = sshll.u32 %s10164_s17, 4  ;;  %p10088_p10 = scmp.ne.s32.totalorder %s11544_s6, %s10087_s14  ;;  %s281_s2 = int_to_ptr.vmem [resolvable:$true] %s280_s2 }
  0x90   : > { %p10094_p4 = scmp.lt.u32.totalorder %s10087_s14, %s11544_s6 }
  0x91   : > { %p10090_p12 = pnand %p10088_p10, %p10260_p11 }
  0x93   : > { %p10091_p6 = pneg %p10090_p12 }
  0x95   : > { %p10096_p7 = pnand %p10094_p4, %p10091_p6 }
  0x97   : > { %10099 = shalt.err (!%p10096_p7)
}
  0x98   : > { %s10100_s22 = scalar_lea.vmem %s281_s2, 16  ;;  %s10107_s30 = scalar_lea.vmem %s281_s2, 32 }
  0x99   : > { %p10101_p13 = scmp.ne.s32.totalorder %s281_s2, %s10100_s22  ;;  %p10108_p2 = scmp.lt.s32.totalorder %s281_s2, %s281_s2 }
  0x9a   : > { %p10109_p3 = scmp.lt.s32.totalorder %s10107_s30, %s10100_s22 }
  0x9b   : > { %p10103_p0 = pnand %p10101_p13, %p10260_p11 }
  0x9c   : > { %p10110_p5 = por %p10109_p3, %p10108_p2 }
  0x9d   : > { %p10104_p1 = pneg %p10103_p0 }
  0x9f   : > { %p10111_p8 = pnand %p10110_p5, %p10104_p1 }
  0xa1   : > { %10114 = shalt.err (!%p10111_p8)
}
  0xa2   : > { %9899 = dma.hbm_to_vmem [thread:$0]  (!%p10244_p9), %s11544_s6, 16, %s281_s2, [#allocation12]  }
  0xa3   : > { %p11562_p10 = scmp.ne.s32.totalorder %s11555_s10, 0 }
  0xa4   : > { %p11563_p12 = scmp.eq.s32.totalorder (!%p11562_p10), %s10219_s27, 0 }
  0xa5   : > { %301 = sbr.rel (%p11562_p10) target bundleno = 2092 (0x82c), region = 48 }
  0xac   : > { %10128 = dma.done.wait (%p11563_p12), [#allocation4], 576   ;;  %p11564_p11 = pmov %p11563_p12 }
  0xae   : > { %10130 = vsyncadd (%p11564_p11), [#allocation4], 4294966720  ;;  %p11565_p6 = pmov %p11564_p11 }
  0xb0   : > { %10132 = dma.done.wait (%p11565_p6), [#allocation6], 9232   ;;  %p11566_p4 = pmov %p11565_p6 }
  0xb2   : > { %10134 = vsyncadd (%p11566_p4), [#allocation6], 4294958064  ;;  %p11567_p7 = pmov %p11566_p4 }
  0xb3   : > { %p11568_p9 = pmov %p11566_p4 }
  0xb4   : > { %10136 = dma.done.wait (%p11567_p7), [#allocation9], 8448  }
  0xb5   : > { %10138 = vsyncadd (%p11568_p9), [#allocation9], 4294958848  ;;  %p11569_p13 = pmov %p11566_p4 }
  0xb6   : > { %p11570_p0 = pmov %p11566_p4 }
  0xb7   : > { %10140 = dma.done.wait (%p11569_p13), [#allocation12], 16  }
  0xb8   : > { %10142 = vsyncadd (%p11570_p0), [#allocation12], 4294967280  ;;  %p352_p1 = scmp.lt.s32.totalorder %s10219_s27, 1  ;;  %vm402_vm0 = vcmask 1043456   ;;  %vm377_vm1 = vcmask 31744   ;;  %vm1710_vm2 = vcmask 261120  }
  0xb9   : > { %v376_v0 = vld [vmem:[#allocation3 + $0x4] sm:$0xf]  ;;  %v366_v3 = vld [vmem:[#allocation3] sm:$0xf]  ;;  %v652_v5 = vld [vmem:[#allocation3 + $0x8] sm:$0xf] }
  0xba   : > { %s353_s10 = scalar_select %p352_p1, %s10219_s27, 1  ;;  %8460 = vmatprep.subr.msk.mxu0 %vm402_vm0, %v376_v0  ;;  %9566 = vmatprep.subr.msk.mxu1 %vm402_vm0, %v376_v0  ;;  %v803_v11 = vld [vmem:[#allocation3 + $0xc] sm:$0xf]  ;;  %v953_v23 = vld [vmem:[#allocation3 + $0x10] sm:$0xf]  ;;  %vm1712_vm3 = vcmask 254976  }
  0xbb   : > { %8461 = vmatpush3.msk.msra.mxu0 %vm402_vm0, %v376_v0  ;;  %9567 = vmatpush3.msk.msra.mxu1 %vm402_vm0, %v376_v0  ;;  %v1103_v29 = vld [vmem:[#allocation3 + $0x14] sm:$0xf]  ;;  %v1254_v31 = vld [vmem:[#allocation3 + $0x18] sm:$0xf]  ;;  %v1404_v33 = vld [vmem:[#allocation3 + $0x1c] sm:$0xf] }
  0xbc   : > { %s9856_s13 = smul.u32 160, %s353_s10  ;;  %8474 = vmatprep.subr.msk.mxu0 %vm402_vm0, %v366_v3  ;;  %v1554_v35 = vld [vmem:[#allocation3 + $0x20] sm:$0xf]  ;;  %v10165_v39 = vmov 0.0   ;;  %v1770_v40 = vld [vmem:[#allocation7 + $0x20] sm:$0xff]  ;;  %v1771_v41 = vld [vmem:[#allocation7 + $0x28] sm:$0xff] }
  0xbd   : > { %1716 = vst.msk [vmem:[#allocation2 + $0x20] sm:$0xff] %vm1710_vm2, %v10165_v39  ;;  %1711 = vst.msk [vmem:[#allocation2] sm:$0xff] %vm1710_vm2, %v10165_v39  ;;  %v9294_v42 = vpack.c.bf16 %v1771_v41, %v1770_v40  ;;  %v1772_v43 = vld [vmem:[#allocation7 + $0x30] sm:$0xff]  ;;  %v1773_v44 = vld [vmem:[#allocation7 + $0x38] sm:$0xff]  ;;  %vm3092_vm4 = vcmask 64512   ;;  %s349_s12 = sand.u32 1, %s10145_s24  }
  0xbe   : > { %s10404_s20 = scalar_lea.vmem %s11538_s0, %s9856_s13  ;;  %1717 = vst.msk [vmem:[#allocation2 + $0x28] sm:$0x3] %vm1712_vm3, %v10165_v39  ;;  %1713 = vst.msk [vmem:[#allocation2 + $0x8] sm:$0x3] %vm1712_vm3, %v10165_v39  ;;  %v9298_v45 = vpack.c.bf16 %v1773_v44, %v1772_v43  ;;  %v1757_v50 = vld [vmem:[#allocation7] sm:$0xff]  ;;  %v1758_v51 = vld [vmem:[#allocation7 + $0x8] sm:$0xff] }
  0xbf   : > { %v367_v1 = vld [vmem:[%s10404_s20 + $0x1] sm:$0xff]  ;;  %v10408_v2 = vld [vmem:[%s10404_s20 + $0x11] sm:$0xff]  ;;  %1714 = vst.msk [vmem:[#allocation2 + $0x10] sm:$0xff] %vm1710_vm2, %v10165_v39  ;;  %1718 = vst.msk [vmem:[#allocation2 + $0x30] sm:$0xff] %vm1710_vm2, %v10165_v39  ;;  %9295 = vmatprep.subr.bf16.mxu1 %v9294_v42  ;;  %v9302_v53 = vpack.c.bf16 %v1758_v51, %v1757_v50  ;;  %s7499_s17 = sshll.u32 %s349_s12, 8  ;;  %vm5349_vm5 = vcmask 130048  }
  0xc0   : > { %8462 = vmatprep.mubr.msk.f32.mxu0 %vm377_vm1, %v367_v1  ;;  %v10413_v4 = vld [vmem:[%s10404_s20 + $0x21] sm:$0xff]  ;;  %v10424_v6 = vld [vmem:[%s10404_s20 + $0x31] sm:$0xff]  ;;  %1715 = vst.msk [vmem:[#allocation2 + $0x18] sm:$0x3] %vm1712_vm3, %v10165_v39  ;;  %1719 = vst.msk [vmem:[#allocation2 + $0x38] sm:$0x3] %vm1712_vm3, %v10165_v39 }
  0xc1   : > { %8463 = vmatmul.mubr.msk.f32.vlgmr.msra.gmra.mrb[0].mxu0 %vm377_vm1, %v10408_v2  ;;  %v358_v7 = vld [vmem:[%s10404_s20] sm:$0xff]  ;;  %v359_v8 = vld [vmem:[%s10404_s20 + $0x10] sm:$0xff]  ;;  %1720 = vst.msk [vmem:[#allocation2 + $0x40] sm:$0xff] %vm1710_vm2, %v10165_v39  ;;  %1722 = vst.msk [vmem:[#allocation2 + $0x50] sm:$0xff] %vm1710_vm2, %v10165_v39  ;;  %s11362_s24 = scalar_lea.vmem [#allocation13], %s7499_s17  ;;  %p11571_p2 = scmp.ne.s32.totalorder %s11554_s9, 0 }
  0xc2   : > { %8475 = vmatpush3.msk.msra.mxu0 %vm402_vm0, %v366_v3  ;;  %8465 = vmatprep.mubr.msk.f32.mxu0 %vm377_vm1, %v10413_v4  ;;  %v10434_v9 = vld [vmem:[%s10404_s20 + $0x20] sm:$0xff]  ;;  %v10440_v12 = vld [vmem:[%s10404_s20 + $0x51] sm:$0xff]  ;;  %1721 = vst.msk [vmem:[#allocation2 + $0x48] sm:$0x3] %vm1712_vm3, %v10165_v39  ;;  %1723 = vst.msk [vmem:[#allocation2 + $0x58] sm:$0x3] %vm1712_vm3, %v10165_v39 }
  0xc3   : > { %8488 = vmatprep.subr.msk.mxu0 %vm402_vm0, %v652_v5  ;;  %v10437_v10 = vld [vmem:[%s10404_s20 + $0x41] sm:$0xff]  ;;  %v10451_v13 = vld [vmem:[%s10404_s20 + $0x30] sm:$0xff]  ;;  %1724 = vst.msk [vmem:[#allocation2 + $0x60] sm:$0xff] %vm1710_vm2, %v10165_v39  ;;  %1726 = vst.msk [vmem:[#allocation2 + $0x70] sm:$0xff] %vm1710_vm2, %v10165_v39  ;;  %s7952_s2 = sshll.u32 (%p11571_p2), %s10219_s27, 6 }
  0xc4   : > { %8468 = vmatprep.mubr.msk.f32.mxu1 %vm377_vm1, %v10437_v10  ;;  %v10454_v14 = vld [vmem:[%s10404_s20 + $0x61] sm:$0xff]  ;;  %v10463_v16 = vld [vmem:[%s10404_s20 + $0x71] sm:$0xff]  ;;  %1725 = vst.msk [vmem:[#allocation2 + $0x68] sm:$0x3] %vm1712_vm3, %v10165_v39  ;;  %1727 = vst.msk [vmem:[#allocation2 + $0x78] sm:$0x3] %vm1712_vm3, %v10165_v39  ;;  %s11465_s14 = scalar_lea.vmem (%p11571_p2), %s11545_s7, %s7952_s2 }
  0xc5   : > { %8466 = vmatmul.mubr.msk.f32.gmra.mrb[2].mxu0 %vm377_vm1, %v10424_v6  ;;  %8469 = vmatmul.mubr.msk.f32.vlgmr.msra.gmra.mrb[0].mxu1 %vm377_vm1, %v10440_v12  ;;  %v10457_v15 = vld [vmem:[%s10404_s20 + $0x40] sm:$0xff]  ;;  %v10472_v17 = vld [vmem:[%s10404_s20 + $0x50] sm:$0xff]  ;;  %1728 = vst.msk [vmem:[#allocation2 + $0x80] sm:$0xff] %vm1710_vm2, %v10165_v39  ;;  %1730 = vst.msk [vmem:[#allocation2 + $0x90] sm:$0xff] %vm1710_vm2, %v10165_v39 }
  0xc6   : > { %8476 = vmatprep.mubr.msk.f32.mxu0 %vm377_vm1, %v358_v7  ;;  %8471 = vmatprep.mubr.msk.f32.mxu1 %vm377_vm1, %v10454_v14  ;;  %v10475_v18 = vld [vmem:[%s10404_s20 + $0x60] sm:$0xff]  ;;  %v10482_v19 = vld [vmem:[%s10404_s20 + $0x70] sm:$0xff]  ;;  %1729 = vst.msk [vmem:[#allocation2 + $0x88] sm:$0x3] %vm1712_vm3, %v10165_v39  ;;  %1731 = vst.msk [vmem:[#allocation2 + $0x98] sm:$0x3] %vm1712_vm3, %v10165_v39 }
  0xc7   : > { %v643_v20 = vld [vmem:[%s10404_s20 + $0x2] sm:$0xff]  ;;  %v644_v21 = vld [vmem:[%s10404_s20 + $0x12] sm:$0xff]  ;;  %9297 = vmatpush3.bf16.msra.mxu1 %v9294_v42 }
  0xc8   : > { %v10490_v22 = vld [vmem:[%s10404_s20 + $0x22] sm:$0xff]  ;;  %v10497_v24 = vld [vmem:[%s10404_s20 + $0x32] sm:$0xff]  ;;  %9299 = vmatprep.subr.bf16.mxu1 %v9298_v45 }
  0xc9   : > { %8477 = vmatmul.mubr.msk.f32.vlgmr.msra.gmra.mrb[0].mxu0 %vm377_vm1, %v359_v8  ;;  %8472 = vmatmul.mubr.msk.f32.gmra.mrb[2].mxu1 %vm377_vm1, %v10463_v16  ;;  %v10500_v25 = vld [vmem:[%s10404_s20 + $0x42] sm:$0xff]  ;;  %v10508_v26 = vld [vmem:[%s10404_s20 + $0x52] sm:$0xff] }
  0xca   : > { %8489 = vmatpush3.msk.msra.mxu0 %vm402_vm0, %v652_v5  ;;  %8479 = vmatprep.mubr.msk.f32.mxu0 %vm377_vm1, %v10434_v9  ;;  %v10511_v27 = vld [vmem:[%s10404_s20 + $0x62] sm:$0xff]  ;;  %v10518_v28 = vld [vmem:[%s10404_s20 + $0x72] sm:$0xff] }
  0xcb   : > { %8502 = vmatprep.subr.msk.mxu0 %vm402_vm0, %v803_v11  ;;  %v7535_v30 = vld [vmem:[%s10404_s20 + $0x80] sm:$0xff]  ;;  %v7586_v36 = vld [vmem:[%s10404_s20 + $0x90] sm:$0xff]  ;;  %9301 = vmatpush3.bf16.msra.mxu1 %v9298_v45 }
  0xcc   : > { %v7552_v32 = vld [vmem:[%s10404_s20 + $0x81] sm:$0xff]  ;;  %v7603_v37 = vld [vmem:[%s10404_s20 + $0x91] sm:$0xff]  ;;  %9303 = vmatprep.subr.bf16.mxu1 %v9302_v53 }
  0xcd   : > { %8480 = vmatmul.mubr.msk.f32.gmra.mrb[2].mxu0 %vm377_vm1, %v10451_v13  ;;  %v7569_v34 = vld [vmem:[%s10404_s20 + $0x82] sm:$0xff]  ;;  %v7620_v38 = vld [vmem:[%s10404_s20 + $0x92] sm:$0xff] }
  0xce   : > { %8482 = vmatprep.mubr.msk.f32.mxu0 %vm377_vm1, %v10457_v15  ;;  %v10642_v46 = vld [vmem:[#allocation2 + $0x1] sm:$0xff]  ;;  %v2192_v39 = vld [vmem:[#allocation7 + $0x68] sm:$0xff] }
  0xcf   : > { %8594 = vmatprep.mubr.msk.f32.mxu1 %vm1710_vm2, %v10642_v46  ;;  %v7630_v54 = vld [vmem:[#allocation5] ss:$0 sm:$0xff] }
  0xd0   : > { %v1760_v7 = vld [vmem:[#allocation7 + $0x18] sm:$0xff] }
  0xd1   : > { %8483 = vmatmul.mubr.msk.f32.gmra.mrb[4].mxu0 %vm377_vm1, %v10472_v17  ;;  %v2194_v50 = vld [vmem:[#allocation7 + $0x78] sm:$0xff] }
  0xd2   : > { %8485 = vmatprep.mubr.msk.f32.mxu0 %vm377_vm1, %v10475_v18 }
  0xd5   : > { %8486 = vmatmul.mubr.msk.f32.gmra.mrb[6].mxu0 %vm377_vm1, %v10482_v19 }
  0xd6   : > { %8490 = vmatprep.mubr.msk.f32.mxu0 %vm377_vm1, %v643_v20 }
  0xd9   : > { %8491 = vmatmul.mubr.msk.f32.vlgmr.msra.gmra.mrb[0].mxu0 %vm377_vm1, %v644_v21 }
  0xda   : > { %8503 = vmatpush3.msk.msra.mxu0 %vm402_vm0, %v803_v11  ;;  %8493 = vmatprep.mubr.msk.f32.mxu0 %vm377_vm1, %v10490_v22 }
  0xdb   : > { %8516 = vmatprep.subr.msk.mxu0 %vm402_vm0, %v953_v23 }
  0xdd   : > { %8494 = vmatmul.mubr.msk.f32.gmra.mrb[2].mxu0 %vm377_vm1, %v10497_v24 }
  0xde   : > { %8496 = vmatprep.mubr.msk.f32.mxu0 %vm377_vm1, %v10500_v25 }
  0xe1   : > { %8497 = vmatmul.mubr.msk.f32.gmra.mrb[4].mxu0 %vm377_vm1, %v10508_v26 }
  0xe2   : > { %8499 = vmatprep.mubr.msk.f32.mxu0 %vm377_vm1, %v10511_v27 }
  0xe5   : > { %8500 = vmatmul.mubr.msk.f32.gmra.mrb[6].mxu0 %vm377_vm1, %v10518_v28 }
  0xe6   : > { %8504 = vmatprep.mubr.msk.f32.mxu0 %vm377_vm1, %v359_v8 }
  0xe9   : > { %8505 = vmatmul.mubr.msk.f32.vlgmr.msra.gmra.mrb[0].mxu0 %vm377_vm1, %v10434_v9 }
  0xea   : > { %8517 = vmatpush3.msk.msra.mxu0 %vm402_vm0, %v953_v23  ;;  %8507 = vmatprep.mubr.msk.f32.mxu0 %vm377_vm1, %v10451_v13 }
  0xeb   : > { %8530 = vmatprep.subr.msk.mxu0 %vm402_vm0, %v1103_v29 }
  0xed   : > { %8508 = vmatmul.mubr.msk.f32.gmra.mrb[2].mxu0 %vm377_vm1, %v10457_v15 }
  0xee   : > { %8510 = vmatprep.mubr.msk.f32.mxu0 %vm377_vm1, %v10472_v17 }
  0xf1   : > { %8511 = vmatmul.mubr.msk.f32.gmra.mrb[4].mxu0 %vm377_vm1, %v10475_v18 }
  0xf2   : > { %8513 = vmatprep.mubr.msk.f32.mxu0 %vm377_vm1, %v10482_v19 }
  0xf5   : > { %8514 = vmatmul.mubr.msk.f32.gmra.mrb[6].mxu0 %vm377_vm1, %v7535_v30 }
  0xf6   : > { %8518 = vmatprep.mubr.msk.f32.mxu0 %vm377_vm1, %v10408_v2 }
  0xf9   : > { %8519 = vmatmul.mubr.msk.f32.vlgmr.msra.gmra.mrb[0].mxu0 %vm377_vm1, %v10413_v4 }
  0xfa   : > { %8531 = vmatpush3.msk.msra.mxu0 %vm402_vm0, %v1103_v29  ;;  %8521 = vmatprep.mubr.msk.f32.mxu0 %vm377_vm1, %v10424_v6 }
  0xfb   : > { %8544 = vmatprep.subr.msk.mxu0 %vm402_vm0, %v1254_v31 }
  0xfd   : > { %8522 = vmatmul.mubr.msk.f32.gmra.mrb[2].mxu0 %vm377_vm1, %v10437_v10 }
  0xfe   : > { %8524 = vmatprep.mubr.msk.f32.mxu0 %vm377_vm1, %v10440_v12 }
 0x101   : > { %8525 = vmatmul.mubr.msk.f32.gmra.mrb[4].mxu0 %vm377_vm1, %v10454_v14 }
 0x102   : > { %8527 = vmatprep.mubr.msk.f32.mxu0 %vm377_vm1, %v10463_v16 }
 0x105   : > { %8528 = vmatmul.mubr.msk.f32.gmra.mrb[6].mxu0 %vm377_vm1, %v7552_v32 }
 0x106   : > { %8532 = vmatprep.mubr.msk.f32.mxu0 %vm377_vm1, %v644_v21 }
 0x109   : > { %8533 = vmatmul.mubr.msk.f32.vlgmr.msra.gmra.mrb[0].mxu0 %vm377_vm1, %v10490_v22 }
 0x10a   : > { %8545 = vmatpush3.msk.msra.mxu0 %vm402_vm0, %v1254_v31  ;;  %8535 = vmatprep.mubr.msk.f32.mxu0 %vm377_vm1, %v10497_v24  ;;  %v10702_v31 = vld [vmem:[#allocation2] sm:$0xff] }
 0x10b   : > { %8558 = vmatprep.subr.msk.mxu0 %vm402_vm0, %v1404_v33 }
 0x10d   : > { %8536 = vmatmul.mubr.msk.f32.gmra.mrb[2].mxu0 %vm377_vm1, %v10500_v25 }
 0x10e   : > { %8538 = vmatprep.mubr.msk.f32.mxu0 %vm377_vm1, %v10508_v26 }
 0x111   : > { %8539 = vmatmul.mubr.msk.f32.gmra.mrb[4].mxu0 %vm377_vm1, %v10511_v27 }
 0x112   : > { %8541 = vmatprep.mubr.msk.f32.mxu0 %vm377_vm1, %v10518_v28 }
 0x115   : > { %8542 = vmatmul.mubr.msk.f32.gmra.mrb[6].mxu0 %vm377_vm1, %v7569_v34 }
 0x116   : > { %8546 = vmatprep.mubr.msk.f32.mxu0 %vm377_vm1, %v10434_v9 }
 0x119   : > { %8547 = vmatmul.mubr.msk.f32.vlgmr.msra.gmra.mrb[0].mxu0 %vm377_vm1, %v10451_v13 }
 0x11a   : > { %8559 = vmatpush3.msk.msra.mxu0 %vm402_vm0, %v1404_v33  ;;  %8549 = vmatprep.mubr.msk.f32.mxu0 %vm377_vm1, %v10457_v15  ;;  %v2043_v33 = vld [vmem:[#allocation7 + $0x50] sm:$0xff] }
 0x11b   : > { %8572 = vmatprep.subr.msk.mxu0 %vm402_vm0, %v1554_v35 }
 0x11d   : > { %8550 = vmatmul.mubr.msk.f32.gmra.mrb[2].mxu0 %vm377_vm1, %v10472_v17  ;;  %v2041_v17 = vld [vmem:[#allocation7 + $0x40] sm:$0xff] }
 0x11e   : > { %8552 = vmatprep.mubr.msk.f32.mxu0 %vm377_vm1, %v10475_v18  ;;  %v2042_v18 = vld [vmem:[#allocation7 + $0x48] sm:$0xff] }
 0x121   : > { %8553 = vmatmul.mubr.msk.f32.gmra.mrb[4].mxu0 %vm377_vm1, %v10482_v19 }
 0x122   : > { %8555 = vmatprep.mubr.msk.f32.mxu0 %vm377_vm1, %v7535_v30 }
 0x125   : > { %8556 = vmatmul.mubr.msk.f32.gmra.mrb[6].mxu0 %vm377_vm1, %v7586_v36 }
 0x126   : > { %8560 = vmatprep.mubr.msk.f32.mxu0 %vm377_vm1, %v10413_v4 }
 0x129   : > { %8561 = vmatmul.mubr.msk.f32.vlgmr.msra.gmra.mrb[0].mxu0 %vm377_vm1, %v10424_v6  ;;  %v1759_v6 = vld [vmem:[#allocation7 + $0x10] sm:$0xff] }
 0x12a   : > { %8573 = vmatpush3.msk.msra.mxu0 %vm402_vm0, %v1554_v35  ;;  %8563 = vmatprep.mubr.msk.f32.mxu0 %vm377_vm1, %v10437_v10  ;;  %v3091_v35 = vld [vmem:[#allocation8] sm:$0xff] }
 0x12b   : > { %8766 = vmatprep.subr.mxu0 %v3091_v35 }
 0x12d   : > { %8564 = vmatmul.mubr.msk.f32.gmra.mrb[2].mxu0 %vm377_vm1, %v10440_v12  ;;  %v9306_v12 = vpack.c.bf16 %v1760_v7, %v1759_v6  ;;  %v2492_v6 = vld [vmem:[#allocation7 + $0xa8] sm:$0xff] }
 0x12e   : > { %8566 = vmatprep.mubr.msk.f32.mxu0 %vm377_vm1, %v10454_v14 }
 0x131   : > { %8567 = vmatmul.mubr.msk.f32.gmra.mrb[4].mxu0 %vm377_vm1, %v10463_v16 }
 0x132   : > { %8569 = vmatprep.mubr.msk.f32.mxu0 %vm377_vm1, %v7552_v32 }
 0x135   : > { %8570 = vmatmul.mubr.msk.f32.gmra.mrb[6].mxu0 %vm377_vm1, %v7603_v37 }
 0x136   : > { %8574 = vmatprep.mubr.msk.f32.mxu0 %vm377_vm1, %v10490_v22 }
 0x139   : > { %8575 = vmatmul.mubr.msk.f32.vlgmr.msra.gmra.mrb[0].mxu0 %vm377_vm1, %v10497_v24  ;;  %v9310_v24 = vpack.c.bf16 %v2042_v18, %v2041_v17  ;;  %v2644_v18 = vld [vmem:[#allocation7 + $0xd0] sm:$0xff] }
 0x13a   : > { %8577 = vmatprep.mubr.msk.f32.mxu0 %vm377_vm1, %v10500_v25  ;;  %8767 = vmatpush3.msra.mxu0 %v3091_v35  ;;  %v2795_v35 = vld [vmem:[#allocation7 + $0xf8] sm:$0xff] }
 0x13d   : > { %8578 = vmatmul.mubr.msk.f32.gmra.mrb[2].mxu0 %vm377_vm1, %v10508_v26 }
 0x13e   : > { %8580 = vmatprep.mubr.msk.f32.mxu0 %vm377_vm1, %v10511_v27 }
 0x141   : > { %8581 = vmatmul.mubr.msk.f32.gmra.mrb[4].mxu0 %vm377_vm1, %v10518_v28 }
 0x142   : > { %8583 = vmatprep.mubr.msk.f32.mxu0 %vm377_vm1, %v7569_v34  ;;  %v2044_v34 = vld [vmem:[#allocation7 + $0x58] sm:$0xff] }
 0x143   : > { %v9314_v36 = vpack.c.bf16 %v2044_v34, %v2043_v33  ;;  %v2794_v34 = vld [vmem:[#allocation7 + $0xf0] sm:$0xff] }
 0x145   : > { %8584 = vmatmul.mubr.msk.f32.gmra.mrb[6].mxu0 %vm377_vm1, %v7620_v38  ;;  %v2191_v38 = vld [vmem:[#allocation7 + $0x60] sm:$0xff] }
 0x146   : > { %v9318_v41 = vpack.c.bf16 %v2192_v39, %v2191_v38  ;;  %v2943_v38 = vld [vmem:[#allocation7 + $0x108] sm:$0xff] }
 0x198   : > { %v8470_v47 = vpop.f32.mrb[0].mxu1 }
 0x199   : > { %v492_v48 = vpop.f32.mrb[1].mxu1 }
 0x19c   : > { %v8473_v49 = vpop.f32.mrb[2].mxu1 }
 0x19d   : > { %v502_v52 = vpop.f32.mrb[3].mxu1 }
 0x20c   : > { %v8576_v55 = vpop.f32.mrb[0].mxu0 }
 0x20d   : > { %v10646_v56 = vadd.f32 %v8576_v55, %v7630_v54  ;;  %v1648_v57 = vpop.f32.mrb[1].mxu0 }
 0x20e   : > { %v10648_v58 = vadd.f32 %v7630_v54, %v1648_v57 }
 0x20f   : > { %v1733_v59 = vmax.f32 %v10646_v56, 0.0 }
 0x210   : > { %v1732_v60 = vmax.f32 %v10648_v58, 0.0  ;;  %v8579_v61 = vpop.f32.mrb[2].mxu0 }
 0x211   : > { %1742 = vst.msk [vmem:[#allocation2 + $0x21] sm:$0xff] %vm1710_vm2, %v1733_v59  ;;  %v10653_v62 = vadd.f32 %v8579_v61, %v7630_v54  ;;  %v1658_v63 = vpop.f32.mrb[3].mxu0 }
 0x212   : > { %1741 = vst.msk [vmem:[#allocation2 + $0x11] sm:$0xff] %vm1710_vm2, %v1732_v60  ;;  %v10656_v0 = vadd.f32 %v7630_v54, %v1658_v63 }
 0x213   : > { %v1735_v1 = vmax.f32 %v10653_v62, 0.0 }
 0x214   : > { %v1734_v2 = vmax.f32 %v10656_v0, 0.0  ;;  %v8582_v3 = vpop.f32.mrb[4].mxu0 }
 0x215   : > { %1744 = vst.msk [vmem:[#allocation2 + $0x41] sm:$0xff] %vm1710_vm2, %v1735_v1  ;;  %v9568_v4 = vadd.f32 %v8582_v3, %v8470_v47  ;;  %v1668_v5 = vpop.f32.mrb[5].mxu0  ;;  %v10731_v47 = vld [vmem:[#allocation2 + $0x2] sm:$0xff] }
 0x216   : > { %1743 = vst.msk [vmem:[#allocation2 + $0x31] sm:$0xff] %vm1710_vm2, %v1734_v2  ;;  %v9569_v8 = vadd.f32 %v1668_v5, %v492_v48  ;;  %v2343_v2 = vld [vmem:[#allocation7 + $0x90] sm:$0xff]  ;;  %v2344_v3 = vld [vmem:[#allocation7 + $0x98] sm:$0xff]  ;;  %v2491_v5 = vld [vmem:[#allocation7 + $0xa0] sm:$0xff] }
 0x217   : > { %v10662_v9 = vadd.f32 %v9568_v4, %v7630_v54  ;;  %v9330_v4 = vpack.c.bf16 %v2344_v3, %v2343_v2  ;;  %v9334_v7 = vpack.c.bf16 %v2492_v6, %v2491_v5  ;;  %v3255_v3 = vld [vmem:[#allocation7 + $0x120] sm:$0xff] }
 0x218   : > { %v10664_v10 = vadd.f32 %v9569_v8, %v7630_v54  ;;  %v8585_v11 = vpop.f32.mrb[6].mxu0  ;;  %v10672_v21 = vld [vmem:[#allocation2 + $0x21] sm:$0xff] }
 0x219   : > { %v1737_v13 = vmax.f32 %v10662_v9, 0.0  ;;  %v9570_v14 = vadd.f32 %v8585_v11, %v8473_v49  ;;  %v1678_v15 = vpop.f32.mrb[7].mxu0  ;;  %v10667_v16 = vld [vmem:[#allocation2 + $0x11] sm:$0xff]  ;;  %v10711_v40 = vld [vmem:[#allocation2 + $0x20] sm:$0xff] }
 0x21a   : > { %v1736_v19 = vmax.f32 %v10664_v10, 0.0  ;;  %v9571_v20 = vadd.f32 %v1678_v15, %v502_v52  ;;  %8595 = vmatmul.mubr.msk.f32.vlgmr.msra.gmra.mrb[4].mxu1 %vm1710_vm2, %v10667_v16  ;;  %v1750_v37 = vld [vmem:[#allocation2 + $0x10] sm:$0xff]  ;;  %v10740_v55 = vld [vmem:[#allocation2 + $0x22] sm:$0xff] }
 0x21b   : > { %1746 = vst.msk [vmem:[#allocation2 + $0x61] sm:$0xff] %vm1710_vm2, %v1737_v13  ;;  %v10675_v22 = vadd.f32 %v9570_v14, %v7630_v54  ;;  %8597 = vmatprep.mubr.msk.f32.mxu1 %vm1710_vm2, %v10672_v21  ;;  %9305 = vmatpush3.bf16.msra.mxu1 %v9302_v53  ;;  %v2193_v49 = vld [vmem:[#allocation7 + $0x70] sm:$0xff]  ;;  %v2341_v53 = vld [vmem:[#allocation7 + $0x80] sm:$0xff]  ;;  %v2643_v15 = vld [vmem:[#allocation7 + $0xc8] sm:$0xff] }
 0x21c   : > { %1745 = vst.msk [vmem:[#allocation2 + $0x51] sm:$0xff] %vm1710_vm2, %v1736_v19  ;;  %v10680_v23 = vadd.f32 %v9571_v20, %v7630_v54  ;;  %9307 = vmatprep.subr.bf16.mxu1 %v9306_v12  ;;  %v10688_v28 = vld [vmem:[#allocation2 + $0x41] sm:$0xff]  ;;  %v9322_v51 = vpack.c.bf16 %v2194_v50, %v2193_v49  ;;  %v2033_v52 = vld [vmem:[#allocation2 + $0x12] sm:$0xff] }
 0x21d   : > { %v1739_v25 = vmax.f32 %v10675_v22, 0.0  ;;  %v10683_v26 = vld [vmem:[#allocation2 + $0x31] sm:$0xff]  ;;  %v10719_v43 = vld [vmem:[#allocation2 + $0x40] sm:$0xff] }
 0x21e   : > { %v1738_v27 = vmax.f32 %v10680_v23, 0.0  ;;  %8598 = vmatmul.mubr.msk.f32.gmra.mrb[6].mxu1 %vm1710_vm2, %v10683_v26  ;;  %v10715_v42 = vld [vmem:[#allocation2 + $0x30] sm:$0xff]  ;;  %v10748_v60 = vld [vmem:[#allocation2 + $0x42] sm:$0xff] }
 0x21f   : > { %1748 = vst.msk [vmem:[#allocation2 + $0x81] sm:$0xff] %vm1710_vm2, %v1739_v25  ;;  %8600 = vmatprep.mubr.msk.f32.mxu1 %vm1710_vm2, %v10688_v28  ;;  %9309 = vmatpush3.bf16.msra.mxu1 %v9306_v12  ;;  %v2342_v54 = vld [vmem:[#allocation7 + $0x88] sm:$0xff]  ;;  %v2493_v11 = vld [vmem:[#allocation7 + $0xb0] sm:$0xff]  ;;  %v2494_v12 = vld [vmem:[#allocation7 + $0xb8] sm:$0xff] }
 0x220   : > { %1747 = vst.msk [vmem:[#allocation2 + $0x71] sm:$0xff] %vm1710_vm2, %v1738_v27  ;;  %9311 = vmatprep.subr.bf16.mxu1 %v9310_v24  ;;  %v9326_v57 = vpack.c.bf16 %v2342_v54, %v2341_v53  ;;  %v10744_v59 = vld [vmem:[#allocation2 + $0x32] sm:$0xff]  ;;  %v9338_v13 = vpack.c.bf16 %v2494_v12, %v2493_v11  ;;  %v2642_v14 = vld [vmem:[#allocation7 + $0xc0] sm:$0xff]  ;;  %v2645_v19 = vld [vmem:[#allocation7 + $0xd8] sm:$0xff] }
 0x221   : > { %v9342_v17 = vpack.c.bf16 %v2643_v15, %v2642_v14  ;;  %v9346_v20 = vpack.c.bf16 %v2645_v19, %v2644_v18  ;;  %v2793_v25 = vld [vmem:[#allocation7 + $0xe8] sm:$0xff] }
 0x222   : > { %v10698_v30 = vld [vmem:[#allocation2 + $0x61] sm:$0xff] }
 0x223   : > { %v10694_v29 = vld [vmem:[#allocation2 + $0x51] sm:$0xff]  ;;  %v10727_v45 = vld [vmem:[#allocation2 + $0x60] sm:$0xff] }
 0x224   : > { %8601 = vmatmul.mubr.msk.f32.gmra.mrb[8].mxu1 %vm1710_vm2, %v10694_v29  ;;  %v10723_v44 = vld [vmem:[#allocation2 + $0x50] sm:$0xff]  ;;  %v10756_v63 = vld [vmem:[#allocation2 + $0x62] sm:$0xff] }
 0x225   : > { %8603 = vmatprep.mubr.msk.f32.mxu1 %vm1710_vm2, %v10698_v30  ;;  %v10752_v61 = vld [vmem:[#allocation2 + $0x52] sm:$0xff] }
 0x226   : > { %v2189_v8 = vld [vmem:[#allocation2 + $0x80] sm:$0xff] }
 0x227   : > { %v10704_v32 = vld [vmem:[#allocation2 + $0x71] sm:$0xff]  ;;  %v2489_v33 = vld [vmem:[#allocation2 + $0x82] sm:$0xff] }
 0x228   : > { %8604 = vmatmul.mubr.msk.f32.gmra.mrb[10].mxu1 %vm1710_vm2, %v10704_v32  ;;  %v10733_v48 = vld [vmem:[#allocation2 + $0x70] sm:$0xff] }
 0x229   : > { %8614 = vmatprep.mubr.msk.f32.mxu1 %vm1710_vm2, %v10702_v31  ;;  %v10760_v1 = vld [vmem:[#allocation2 + $0x72] sm:$0xff] }
 0x22c   : > { %8615 = vmatmul.mubr.msk.f32.vlgmr.msra.gmra.mrb[4].mxu1 %vm1710_vm2, %v1750_v37 }
 0x22d   : > { %8617 = vmatprep.mubr.msk.f32.mxu1 %vm1710_vm2, %v10711_v40  ;;  %9313 = vmatpush3.bf16.msra.mxu1 %v9310_v24  ;;  %v2792_v24 = vld [vmem:[#allocation7 + $0xe0] sm:$0xff] }
 0x22e   : > { %9315 = vmatprep.subr.bf16.mxu1 %v9314_v36  ;;  %v9350_v27 = vpack.c.bf16 %v2793_v25, %v2792_v24  ;;  %v3257_v24 = vld [vmem:[#allocation7 + $0x130] sm:$0xff] }
 0x230   : > { %8618 = vmatmul.mubr.msk.f32.gmra.mrb[6].mxu1 %vm1710_vm2, %v10715_v42 }
 0x231   : > { %8620 = vmatprep.mubr.msk.f32.mxu1 %vm1710_vm2, %v10719_v43  ;;  %9317 = vmatpush3.bf16.msra.mxu1 %v9314_v36  ;;  %v9354_v36 = vpack.c.bf16 %v2795_v35, %v2794_v34 }
 0x232   : > { %9319 = vmatprep.subr.bf16.mxu1 %v9318_v41 }
 0x234   : > { %8621 = vmatmul.mubr.msk.f32.gmra.mrb[8].mxu1 %vm1710_vm2, %v10723_v44 }
 0x235   : > { %8623 = vmatprep.mubr.msk.f32.mxu1 %vm1710_vm2, %v10727_v45 }
 0x238   : > { %8624 = vmatmul.mubr.msk.f32.gmra.mrb[10].mxu1 %vm1710_vm2, %v10733_v48 }
 0x239   : > { %8634 = vmatprep.mubr.msk.f32.mxu1 %vm1710_vm2, %v10731_v47 }
 0x23c   : > { %8635 = vmatmul.mubr.msk.f32.vlgmr.msra.gmra.mrb[4].mxu1 %vm1710_vm2, %v2033_v52 }
 0x23d   : > { %8637 = vmatprep.mubr.msk.f32.mxu1 %vm1710_vm2, %v10740_v55  ;;  %9321 = vmatpush3.bf16.msra.mxu1 %v9318_v41  ;;  %v2944_v41 = vld [vmem:[#allocation7 + $0x110] sm:$0xff] }
 0x23e   : > { %9323 = vmatprep.subr.bf16.mxu1 %v9322_v51 }
 0x240   : > { %8638 = vmatmul.mubr.msk.f32.gmra.mrb[6].mxu1 %vm1710_vm2, %v10744_v59 }
 0x241   : > { %8640 = vmatprep.mubr.msk.f32.mxu1 %vm1710_vm2, %v10748_v60  ;;  %9325 = vmatpush3.bf16.msra.mxu1 %v9322_v51 }
 0x242   : > { %9327 = vmatprep.subr.bf16.mxu1 %v9326_v57 }
 0x244   : > { %8641 = vmatmul.mubr.msk.f32.gmra.mrb[8].mxu1 %vm1710_vm2, %v10752_v61 }
 0x245   : > { %8643 = vmatprep.mubr.msk.f32.mxu1 %vm1710_vm2, %v10756_v63 }
 0x248   : > { %8644 = vmatmul.mubr.msk.f32.gmra.mrb[10].mxu1 %vm1710_vm2, %v10760_v1 }
 0x249   : > { %8654 = vmatprep.mubr.msk.f32.mxu1 %vm1710_vm2, %v1750_v37  ;;  %v2942_v37 = vld [vmem:[#allocation7 + $0x100] sm:$0xff] }
 0x24a   : > { %v9358_v39 = vpack.c.bf16 %v2943_v38, %v2942_v37  ;;  %v3539_v37 = vld [vmem:[#allocation7 + $0x160] sm:$0xff]  ;;  %v3540_v38 = vld [vmem:[#allocation7 + $0x168] sm:$0xff] }
 0x24c   : > { %8655 = vmatmul.mubr.msk.f32.vlgmr.msra.gmra.mrb[4].mxu1 %vm1710_vm2, %v10711_v40 }
 0x24d   : > { %8657 = vmatprep.mubr.msk.f32.mxu1 %vm1710_vm2, %v10715_v42  ;;  %9329 = vmatpush3.bf16.msra.mxu1 %v9326_v57 }
 0x24e   : > { %9331 = vmatprep.subr.bf16.mxu1 %v9330_v4 }
 0x250   : > { %8658 = vmatmul.mubr.msk.f32.gmra.mrb[6].mxu1 %vm1710_vm2, %v10719_v43 }
 0x251   : > { %8660 = vmatprep.mubr.msk.f32.mxu1 %vm1710_vm2, %v10723_v44  ;;  %9333 = vmatpush3.bf16.msra.mxu1 %v9330_v4  ;;  %v3256_v4 = vld [vmem:[#allocation7 + $0x128] sm:$0xff] }
 0x252   : > { %9335 = vmatprep.subr.bf16.mxu1 %v9334_v7  ;;  %v9374_v5 = vpack.c.bf16 %v3256_v4, %v3255_v3 }
 0x254   : > { %8661 = vmatmul.mubr.msk.f32.gmra.mrb[8].mxu1 %vm1710_vm2, %v10727_v45 }
 0x255   : > { %8663 = vmatprep.mubr.msk.f32.mxu1 %vm1710_vm2, %v10733_v48 }
 0x258   : > { %8664 = vmatmul.mubr.msk.f32.gmra.mrb[10].mxu1 %vm1710_vm2, %v2189_v8 }
 0x259   : > { %8674 = vmatprep.mubr.msk.f32.mxu1 %vm1710_vm2, %v10667_v16  ;;  %v2339_v16 = vld [vmem:[#allocation2 + $0x81] sm:$0xff] }
 0x25c   : > { %8675 = vmatmul.mubr.msk.f32.vlgmr.msra.gmra.mrb[4].mxu1 %vm1710_vm2, %v10672_v21 }
 0x25d   : > { %8677 = vmatprep.mubr.msk.f32.mxu1 %vm1710_vm2, %v10683_v26  ;;  %9337 = vmatpush3.bf16.msra.mxu1 %v9334_v7 }
 0x25e   : > { %9339 = vmatprep.subr.bf16.mxu1 %v9338_v13 }
 0x260   : > { %8678 = vmatmul.mubr.msk.f32.gmra.mrb[6].mxu1 %vm1710_vm2, %v10688_v28 }
 0x261   : > { %8680 = vmatprep.mubr.msk.f32.mxu1 %vm1710_vm2, %v10694_v29  ;;  %9341 = vmatpush3.bf16.msra.mxu1 %v9338_v13 }
 0x262   : > { %9343 = vmatprep.subr.bf16.mxu1 %v9342_v17 }
 0x264   : > { %8681 = vmatmul.mubr.msk.f32.gmra.mrb[8].mxu1 %vm1710_vm2, %v10698_v30 }
 0x265   : > { %8683 = vmatprep.mubr.msk.f32.mxu1 %vm1710_vm2, %v10704_v32 }
 0x268   : > { %8684 = vmatmul.mubr.msk.f32.gmra.mrb[10].mxu1 %vm1710_vm2, %v2339_v16 }
 0x269   : > { %8694 = vmatprep.mubr.msk.f32.mxu1 %vm1710_vm2, %v2033_v52 }
 0x26c   : > { %8695 = vmatmul.mubr.msk.f32.vlgmr.msra.gmra.mrb[4].mxu1 %vm1710_vm2, %v10740_v55 }
 0x26d   : > { %8697 = vmatprep.mubr.msk.f32.mxu1 %vm1710_vm2, %v10744_v59  ;;  %9345 = vmatpush3.bf16.msra.mxu1 %v9342_v17 }
 0x26e   : > { %9347 = vmatprep.subr.bf16.mxu1 %v9346_v20 }
 0x270   : > { %8698 = vmatmul.mubr.msk.f32.gmra.mrb[6].mxu1 %vm1710_vm2, %v10748_v60 }
 0x271   : > { %8700 = vmatprep.mubr.msk.f32.mxu1 %vm1710_vm2, %v10752_v61  ;;  %9349 = vmatpush3.bf16.msra.mxu1 %v9346_v20 }
 0x272   : > { %9351 = vmatprep.subr.bf16.mxu1 %v9350_v27 }
 0x274   : > { %8701 = vmatmul.mubr.msk.f32.gmra.mrb[8].mxu1 %vm1710_vm2, %v10756_v63 }
 0x275   : > { %8703 = vmatprep.mubr.msk.f32.mxu1 %vm1710_vm2, %v10760_v1 }
 0x278   : > { %8704 = vmatmul.mubr.msk.f32.gmra.mrb[10].mxu1 %vm1710_vm2, %v2489_v33 }
 0x279   : > { %8714 = vmatprep.mubr.msk.f32.mxu1 %vm1710_vm2, %v10711_v40  ;;  %v10820_v40 = vld [vmem:[#allocation2 + $0x90] sm:$0xff] }
 0x27c   : > { %8715 = vmatmul.mubr.msk.f32.vlgmr.msra.gmra.mrb[4].mxu1 %vm1710_vm2, %v10715_v42  ;;  %v2945_v42 = vld [vmem:[#allocation7 + $0x118] sm:$0xff] }
 0x27d   : > { %8717 = vmatprep.mubr.msk.f32.mxu1 %vm1710_vm2, %v10719_v43  ;;  %9353 = vmatpush3.bf16.msra.mxu1 %v9350_v27  ;;  %v9362_v43 = vpack.c.bf16 %v2945_v42, %v2944_v41  ;;  %v9382_v42 = vpack.c.bf16 %v3540_v38, %v3539_v37  ;;  %v4142_v37 = vld [vmem:[#allocation7 + $0x1f8] sm:$0xff] }
 0x27e   : > { %9355 = vmatprep.subr.bf16.mxu1 %v9354_v36 }
 0x280   : > { %8718 = vmatmul.mubr.msk.f32.gmra.mrb[6].mxu1 %vm1710_vm2, %v10723_v44 }
 0x281   : > { %8720 = vmatprep.mubr.msk.f32.mxu1 %vm1710_vm2, %v10727_v45  ;;  %9357 = vmatpush3.bf16.msra.mxu1 %v9354_v36 }
 0x282   : > { %9359 = vmatprep.subr.bf16.mxu1 %v9358_v39 }
 0x284   : > { %8721 = vmatmul.mubr.msk.f32.gmra.mrb[8].mxu1 %vm1710_vm2, %v10733_v48 }
 0x285   : > { %8723 = vmatprep.mubr.msk.f32.mxu1 %vm1710_vm2, %v2189_v8 }
 0x288   : > { %8724 = vmatmul.mubr.msk.f32.gmra.mrb[10].mxu1 %vm1710_vm2, %v10820_v40 }
 0x289   : > { %8734 = vmatprep.mubr.msk.f32.mxu1 %vm1710_vm2, %v10672_v21  ;;  %v10837_v21 = vld [vmem:[#allocation2 + $0x91] sm:$0xff] }
 0x28c   : > { %8735 = vmatmul.mubr.msk.f32.vlgmr.msra.gmra.mrb[4].mxu1 %vm1710_vm2, %v10683_v26  ;;  %v10854_v26 = vld [vmem:[#allocation2 + $0x92] sm:$0xff] }
 0x28d   : > { %8737 = vmatprep.mubr.msk.f32.mxu1 %vm1710_vm2, %v10688_v28  ;;  %9361 = vmatpush3.bf16.msra.mxu1 %v9358_v39  ;;  %v3268_v28 = vld [vmem:[#allocation7 + $0x140] sm:$0xff] }
 0x28e   : > { %9363 = vmatprep.subr.bf16.mxu1 %v9362_v43 }
 0x290   : > { %8738 = vmatmul.mubr.msk.f32.gmra.mrb[6].mxu1 %vm1710_vm2, %v10694_v29  ;;  %v3269_v29 = vld [vmem:[#allocation7 + $0x148] sm:$0xff] }
 0x291   : > { %8740 = vmatprep.mubr.msk.f32.mxu1 %vm1710_vm2, %v10698_v30  ;;  %9365 = vmatpush3.bf16.msra.mxu1 %v9362_v43  ;;  %v9366_v30 = vpack.c.bf16 %v3269_v29, %v3268_v28 }
 0x293   : > { %9367 = vmatprep.subr.bf16.mxu1 %v9366_v30 }
 0x294   : > { %8741 = vmatmul.mubr.msk.f32.gmra.mrb[8].mxu1 %vm1710_vm2, %v10704_v32 }
 0x295   : > { %8743 = vmatprep.mubr.msk.f32.mxu1 %vm1710_vm2, %v2339_v16 }
 0x298   : > { %8744 = vmatmul.mubr.msk.f32.gmra.mrb[10].mxu1 %vm1710_vm2, %v10837_v21 }
 0x299   : > { %8754 = vmatprep.mubr.msk.f32.mxu1 %vm1710_vm2, %v10740_v55 }
 0x29c   : > { %8755 = vmatmul.mubr.msk.f32.vlgmr.msra.gmra.mrb[4].mxu1 %vm1710_vm2, %v10744_v59 }
 0x29d   : > { %8757 = vmatprep.mubr.msk.f32.mxu1 %vm1710_vm2, %v10748_v60  ;;  %9369 = vmatpush3.bf16.msra.mxu1 %v9366_v30 }
 0x2a0   : > { %8758 = vmatmul.mubr.msk.f32.gmra.mrb[6].mxu1 %vm1710_vm2, %v10752_v61 }
 0x2a1   : > { %8760 = vmatprep.mubr.msk.f32.mxu1 %vm1710_vm2, %v10756_v63  ;;  %v3270_v63 = vld [vmem:[#allocation7 + $0x150] sm:$0xff] }
 0x2a4   : > { %8761 = vmatmul.mubr.msk.f32.gmra.mrb[8].mxu1 %vm1710_vm2, %v10760_v1  ;;  %v3271_v1 = vld [vmem:[#allocation7 + $0x158] sm:$0xff] }
 0x2a5   : > { %8763 = vmatprep.mubr.msk.f32.mxu1 %vm1710_vm2, %v2489_v33  ;;  %v9370_v2 = vpack.c.bf16 %v3271_v1, %v3270_v63  ;;  %v3839_v1 = vld [vmem:[#allocation7 + $0x1a0] sm:$0xff] }
 0x2a7   : > { %9371 = vmatprep.subr.bf16.mxu1 %v9370_v2 }
 0x2a8   : > { %8764 = vmatmul.mubr.msk.f32.gmra.mrb[10].mxu1 %vm1710_vm2, %v10854_v26 }
 0x2a9   : > { %8788 = vmatprep.mubr.msk.f32.mxu1 %vm1710_vm2, %v10642_v46  ;;  %9373 = vmatpush3.bf16.msra.mxu1 %v9370_v2  ;;  %v3840_v2 = vld [vmem:[#allocation7 + $0x1a8] sm:$0xff] }
 0x2aa   : > { %9375 = vmatprep.subr.bf16.mxu1 %v9374_v5  ;;  %v9398_v4 = vpack.c.bf16 %v3840_v2, %v3839_v1 }
 0x36f   : > { %v8756_v32 = vpop.f32.mrb[4].mxu1 }
 0x370   : > { %v3036_v44 = vpop.f32.mrb[5].mxu1  ;;  %v3084_v48 = vmax.f32 %v8756_v32, 0.0  ;;  %v3541_v32 = vld [vmem:[#allocation7 + $0x170] sm:$0xff] }
 0x371   : > { %v3083_v45 = vmax.f32 %v3036_v44, 0.0  ;;  %v3542_v44 = vld [vmem:[#allocation7 + $0x178] sm:$0xff] }
 0x373   : > { %v8759_v49 = vpop.f32.mrb[6].mxu1  ;;  %8768 = vmatprep.mubr.msk.f32.mxu0 %vm3092_vm4, %v3083_v45  ;;  %v4589_v45 = vld [vmem:[#allocation8 + $0x8] sm:$0xff] }
 0x374   : > { %v3046_v50 = vpop.f32.mrb[7].mxu1  ;;  %8769 = vmatmul.mubr.msk.f32.vlgmr.msra.gmra.mrb[8].mxu0 %vm3092_vm4, %v3084_v48  ;;  %v3086_v52 = vmax.f32 %v8759_v49, 0.0  ;;  %8960 = vmatprep.subr.mxu0 %v4589_v45  ;;  %v9386_v48 = vpack.c.bf16 %v3542_v44, %v3541_v32  ;;  %v4291_v44 = vld [vmem:[#allocation7 + $0x210] sm:$0xff] }
 0x375   : > { %v3085_v51 = vmax.f32 %v3046_v50, 0.0  ;;  %8961 = vmatpush3.msra.mxu0 %v4589_v45  ;;  %v3689_v50 = vld [vmem:[#allocation7 + $0x180] sm:$0xff]  ;;  %v4292_v45 = vld [vmem:[#allocation7 + $0x218] sm:$0xff] }
 0x377   : > { %v8762_v53 = vpop.f32.mrb[8].mxu1  ;;  %8771 = vmatprep.mubr.msk.f32.mxu0 %vm3092_vm4, %v3085_v51  ;;  %v3690_v51 = vld [vmem:[#allocation7 + $0x188] sm:$0xff] }
 0x378   : > { %v3056_v46 = vpop.f32.mrb[9].mxu1  ;;  %8772 = vmatmul.mubr.msk.f32.gmra.mrb[10].mxu0 %vm3092_vm4, %v3086_v52  ;;  %v3088_v55 = vmax.f32 %v8762_v53, 0.0  ;;  %v9390_v53 = vpack.c.bf16 %v3690_v51, %v3689_v50  ;;  %v4440_v50 = vld [vmem:[#allocation7 + $0x228] sm:$0xff] }
 0x379   : > { %v3087_v54 = vmax.f32 %v3056_v46, 0.0 }
 0x37b   : > { %v8765_v57 = vpop.f32.mrb[10].mxu1  ;;  %8774 = vmatprep.mubr.msk.f32.mxu0 %vm3092_vm4, %v3087_v54 }
 0x37c   : > { %v3066_v59 = vpop.f32.mrb[11].mxu1  ;;  %8775 = vmatmul.mubr.msk.f32.gmra.mrb[12].mxu0 %vm3092_vm4, %v3088_v55  ;;  %v3090_v61 = vmax.f32 %v8765_v57, 0.0 }
 0x37d   : > { %v3089_v60 = vmax.f32 %v3066_v59, 0.0  ;;  %v3691_v59 = vld [vmem:[#allocation7 + $0x190] sm:$0xff] }
 0x37f   : > { %8777 = vmatprep.mubr.msk.f32.mxu0 %vm3092_vm4, %v3089_v60  ;;  %v3692_v60 = vld [vmem:[#allocation7 + $0x198] sm:$0xff] }
 0x380   : > { %8778 = vmatmul.mubr.msk.f32.gmra.mrb[14].mxu0 %vm3092_vm4, %v3090_v61  ;;  %v9394_v61 = vpack.c.bf16 %v3692_v60, %v3691_v59 }
 0x447   : > { %v8770_v6 = vpop.f32.mrb[8].mxu0 }
 0x448   : > { %v10869_v7 = vadd.f32 %v8770_v6, %v10646_v56  ;;  %v3183_v8 = vpop.f32.mrb[9].mxu0 }
 0x449   : > { %v10872_v11 = vadd.f32 %v3183_v8, %v10648_v58 }
 0x44a   : > { %v3231_v12 = vmax.f32 %v10869_v7, 0.0 }
 0x44b   : > { %v3230_v13 = vmax.f32 %v10872_v11, 0.0  ;;  %v8773_v14 = vpop.f32.mrb[10].mxu0 }
 0x44c   : > { %3239 = vst.msk [vmem:[#allocation2 + $0x21] sm:$0xff] %vm1710_vm2, %v3231_v12  ;;  %v10878_v15 = vadd.f32 %v8773_v14, %v10653_v62  ;;  %v3193_v17 = vpop.f32.mrb[11].mxu0  ;;  %v3258_v62 = vld [vmem:[#allocation7 + $0x138] sm:$0xff] }
 0x44d   : > { %3238 = vst.msk [vmem:[#allocation2 + $0x11] sm:$0xff] %vm1710_vm2, %v3230_v13  ;;  %v10882_v56 = vadd.f32 %v3193_v17, %v10656_v0  ;;  %v9378_v34 = vpack.c.bf16 %v3258_v62, %v3257_v24  ;;  %v3841_v13 = vld [vmem:[#allocation7 + $0x1b0] sm:$0xff]  ;;  %v3842_v14 = vld [vmem:[#allocation7 + $0x1b8] sm:$0xff] }
 0x44e   : > { %v3233_v16 = vmax.f32 %v10878_v15, 0.0  ;;  %v9402_v17 = vpack.c.bf16 %v3842_v14, %v3841_v13  ;;  %v3991_v24 = vld [vmem:[#allocation7 + $0x1d0] sm:$0xff]  ;;  %v3992_v62 = vld [vmem:[#allocation7 + $0x1d8] sm:$0xff]  ;;  %v5999_v13 = vld [vmem:[#allocation10 + $0x138] sm:$0xff] }
 0x44f   : > { %v3232_v58 = vmax.f32 %v10882_v56, 0.0  ;;  %v8776_v18 = vpop.f32.mrb[12].mxu0 }
 0x450   : > { %3241 = vst.msk [vmem:[#allocation2 + $0x41] sm:$0xff] %vm1710_vm2, %v3233_v16  ;;  %v10888_v19 = vadd.f32 %v8776_v18, %v10662_v9  ;;  %v3203_v20 = vpop.f32.mrb[13].mxu0  ;;  %v3989_v16 = vld [vmem:[#allocation7 + $0x1c0] sm:$0xff] }
 0x451   : > { %3240 = vst.msk [vmem:[#allocation2 + $0x31] sm:$0xff] %vm1710_vm2, %v3232_v58  ;;  %v10892_v25 = vadd.f32 %v3203_v20, %v10664_v10  ;;  %v3990_v58 = vld [vmem:[#allocation7 + $0x1c8] sm:$0xff] }
 0x452   : > { %v3235_v0 = vmax.f32 %v10888_v19, 0.0  ;;  %v9406_v18 = vpack.c.bf16 %v3990_v58, %v3989_v16  ;;  %v4751_v16 = vld [vmem:[#allocation10] sm:$0xff]  ;;  %v4752_v58 = vld [vmem:[#allocation10 + $0x8] sm:$0xff] }
 0x453   : > { %v3234_v27 = vmax.f32 %v10892_v25, 0.0  ;;  %v8779_v33 = vpop.f32.mrb[14].mxu0  ;;  %v10908_v39 = vld [vmem:[#allocation2 + $0x21] sm:$0xff] }
 0x454   : > { %3243 = vst.msk [vmem:[#allocation2 + $0x61] sm:$0xff] %vm1710_vm2, %v3235_v0  ;;  %v10898_v35 = vadd.f32 %v8779_v33, %v10675_v22  ;;  %v3213_v9 = vpop.f32.mrb[15].mxu0  ;;  %v10900_v36 = vld [vmem:[#allocation2 + $0x11] sm:$0xff]  ;;  %v10939_v52 = vld [vmem:[#allocation2 + $0x20] sm:$0xff]  ;;  %v9410_v0 = vpack.c.bf16 %v3992_v62, %v3991_v24 }
 0x455   : > { %3242 = vst.msk [vmem:[#allocation2 + $0x51] sm:$0xff] %vm1710_vm2, %v3234_v27  ;;  %v10904_v10 = vadd.f32 %v3213_v9, %v10680_v23  ;;  %8789 = vmatmul.mubr.msk.f32.vlgmr.msra.gmra.mrb[12].mxu1 %vm1710_vm2, %v10900_v36  ;;  %v3247_v49 = vld [vmem:[#allocation2 + $0x10] sm:$0xff]  ;;  %v10966_v3 = vld [vmem:[#allocation2 + $0x22] sm:$0xff] }
 0x456   : > { %v3237_v41 = vmax.f32 %v10898_v35, 0.0  ;;  %8791 = vmatprep.mubr.msk.f32.mxu1 %vm1710_vm2, %v10908_v39  ;;  %9377 = vmatpush3.bf16.msra.mxu1 %v9374_v5  ;;  %v3531_v63 = vld [vmem:[#allocation2 + $0x12] sm:$0xff]  ;;  %v4139_v27 = vld [vmem:[#allocation7 + $0x1e0] sm:$0xff]  ;;  %v5984_v24 = vld [vmem:[#allocation10 + $0x108] sm:$0xff] }
 0x457   : > { %v3236_v22 = vmax.f32 %v10904_v10, 0.0  ;;  %9379 = vmatprep.subr.bf16.mxu1 %v9378_v34  ;;  %v10920_v23 = vld [vmem:[#allocation2 + $0x41] sm:$0xff]  ;;  %v4140_v33 = vld [vmem:[#allocation7 + $0x1e8] sm:$0xff] }
 0x458   : > { %3245 = vst.msk [vmem:[#allocation2 + $0x81] sm:$0xff] %vm1710_vm2, %v3237_v41  ;;  %v10915_v43 = vld [vmem:[#allocation2 + $0x31] sm:$0xff]  ;;  %v4289_v41 = vld [vmem:[#allocation7 + $0x200] sm:$0xff] }
 0x459   : > { %3244 = vst.msk [vmem:[#allocation2 + $0x71] sm:$0xff] %vm1710_vm2, %v3236_v22  ;;  %8792 = vmatmul.mubr.msk.f32.gmra.mrb[14].mxu1 %vm1710_vm2, %v10915_v43  ;;  %v10943_v46 = vld [vmem:[#allocation2 + $0x30] sm:$0xff] }
 0x45a   : > { %8794 = vmatprep.mubr.msk.f32.mxu1 %vm1710_vm2, %v10920_v23  ;;  %9381 = vmatpush3.bf16.msra.mxu1 %v9378_v34  ;;  %v10970_v5 = vld [vmem:[#allocation2 + $0x32] sm:$0xff]  ;;  %v9414_v34 = vpack.c.bf16 %v4140_v33, %v4139_v27 }
 0x45b   : > { %9383 = vmatprep.subr.bf16.mxu1 %v9382_v42  ;;  %v10928_v29 = vld [vmem:[#allocation2 + $0x61] sm:$0xff]  ;;  %v4290_v22 = vld [vmem:[#allocation7 + $0x208] sm:$0xff] }
 0x45c   : > { %v10924_v28 = vld [vmem:[#allocation2 + $0x51] sm:$0xff]  ;;  %v10955_v55 = vld [vmem:[#allocation2 + $0x60] sm:$0xff] }
 0x45d   : > { %8795 = vmatmul.mubr.msk.f32.gmra.mrb[16].mxu1 %vm1710_vm2, %v10924_v28  ;;  %v10951_v54 = vld [vmem:[#allocation2 + $0x50] sm:$0xff]  ;;  %v10982_v8 = vld [vmem:[#allocation2 + $0x62] sm:$0xff] }
 0x45e   : > { %8797 = vmatprep.mubr.msk.f32.mxu1 %vm1710_vm2, %v10928_v29  ;;  %v10978_v6 = vld [vmem:[#allocation2 + $0x52] sm:$0xff] }
 0x45f   : > { %v3687_v20 = vld [vmem:[#allocation2 + $0x80] sm:$0xff] }
 0x460   : > { %v10932_v30 = vld [vmem:[#allocation2 + $0x71] sm:$0xff]  ;;  %v3837_v9 = vld [vmem:[#allocation2 + $0x81] sm:$0xff] }
 0x461   : > { %8798 = vmatmul.mubr.msk.f32.gmra.mrb[18].mxu1 %vm1710_vm2, %v10932_v30  ;;  %v10959_v57 = vld [vmem:[#allocation2 + $0x70] sm:$0xff]  ;;  %v3987_v32 = vld [vmem:[#allocation2 + $0x82] sm:$0xff] }
 0x462   : > { %8808 = vmatprep.mubr.msk.f32.mxu1 %vm1710_vm2, %v10702_v31  ;;  %v10947_v31 = vld [vmem:[#allocation2 + $0x40] sm:$0xff]  ;;  %v10986_v12 = vld [vmem:[#allocation2 + $0x72] sm:$0xff] }
 0x465   : > { %8809 = vmatmul.mubr.msk.f32.vlgmr.msra.gmra.mrb[12].mxu1 %vm1710_vm2, %v3247_v49 }
 0x466   : > { %8811 = vmatprep.mubr.msk.f32.mxu1 %vm1710_vm2, %v10939_v52  ;;  %9385 = vmatpush3.bf16.msra.mxu1 %v9382_v42  ;;  %v9422_v42 = vpack.c.bf16 %v4290_v22, %v4289_v41 }
 0x467   : > { %9387 = vmatprep.subr.bf16.mxu1 %v9386_v48 }
 0x469   : > { %8812 = vmatmul.mubr.msk.f32.gmra.mrb[14].mxu1 %vm1710_vm2, %v10943_v46 }
 0x46a   : > { %8814 = vmatprep.mubr.msk.f32.mxu1 %vm1710_vm2, %v10947_v31  ;;  %9389 = vmatpush3.bf16.msra.mxu1 %v9386_v48  ;;  %v9426_v48 = vpack.c.bf16 %v4292_v45, %v4291_v44  ;;  %v4753_v45 = vld [vmem:[#allocation10 + $0x10] sm:$0xff] }
 0x46b   : > { %9391 = vmatprep.subr.bf16.mxu1 %v9390_v53 }
 0x46d   : > { %8815 = vmatmul.mubr.msk.f32.gmra.mrb[16].mxu1 %vm1710_vm2, %v10951_v54 }
 0x46e   : > { %8817 = vmatprep.mubr.msk.f32.mxu1 %vm1710_vm2, %v10955_v55 }
 0x471   : > { %8818 = vmatmul.mubr.msk.f32.gmra.mrb[18].mxu1 %vm1710_vm2, %v10959_v57 }
 0x472   : > { %8828 = vmatprep.mubr.msk.f32.mxu1 %vm1710_vm2, %v10731_v47  ;;  %v10974_v47 = vld [vmem:[#allocation2 + $0x42] sm:$0xff] }
 0x475   : > { %8829 = vmatmul.mubr.msk.f32.vlgmr.msra.gmra.mrb[12].mxu1 %vm1710_vm2, %v3531_v63 }
 0x476   : > { %8831 = vmatprep.mubr.msk.f32.mxu1 %vm1710_vm2, %v10966_v3  ;;  %9393 = vmatpush3.bf16.msra.mxu1 %v9390_v53  ;;  %v4442_v53 = vld [vmem:[#allocation7 + $0x238] sm:$0xff] }
 0x477   : > { %9395 = vmatprep.subr.bf16.mxu1 %v9394_v61 }
 0x479   : > { %8832 = vmatmul.mubr.msk.f32.gmra.mrb[14].mxu1 %vm1710_vm2, %v10970_v5 }
 0x47a   : > { %8834 = vmatprep.mubr.msk.f32.mxu1 %vm1710_vm2, %v10974_v47  ;;  %9397 = vmatpush3.bf16.msra.mxu1 %v9394_v61 }
 0x47b   : > { %9399 = vmatprep.subr.bf16.mxu1 %v9398_v4 }
 0x47d   : > { %8835 = vmatmul.mubr.msk.f32.gmra.mrb[16].mxu1 %vm1710_vm2, %v10978_v6 }
 0x47e   : > { %8837 = vmatprep.mubr.msk.f32.mxu1 %vm1710_vm2, %v10982_v8 }
 0x481   : > { %8838 = vmatmul.mubr.msk.f32.gmra.mrb[18].mxu1 %vm1710_vm2, %v10986_v12 }
 0x482   : > { %8848 = vmatprep.mubr.msk.f32.mxu1 %vm1710_vm2, %v3247_v49  ;;  %v4439_v49 = vld [vmem:[#allocation7 + $0x220] sm:$0xff] }
 0x483   : > { %v9430_v51 = vpack.c.bf16 %v4440_v50, %v4439_v49 }
 0x485   : > { %8849 = vmatmul.mubr.msk.f32.vlgmr.msra.gmra.mrb[12].mxu1 %vm1710_vm2, %v10939_v52 }
 0x486   : > { %8851 = vmatprep.mubr.msk.f32.mxu1 %vm1710_vm2, %v10943_v46  ;;  %9401 = vmatpush3.bf16.msra.mxu1 %v9398_v4  ;;  %v5997_v4 = vld [vmem:[#allocation10 + $0x128] sm:$0xff] }
 0x487   : > { %9403 = vmatprep.subr.bf16.mxu1 %v9402_v17 }
 0x489   : > { %8852 = vmatmul.mubr.msk.f32.gmra.mrb[14].mxu1 %vm1710_vm2, %v10947_v31 }
 0x48a   : > { %8854 = vmatprep.mubr.msk.f32.mxu1 %vm1710_vm2, %v10951_v54  ;;  %9405 = vmatpush3.bf16.msra.mxu1 %v9402_v17  ;;  %v11086_v17 = vld [vmem:[#allocation2 + $0x1] sm:$0xff] }
 0x48b   : > { %9407 = vmatprep.subr.bf16.mxu1 %v9406_v18 }
 0x48d   : > { %8855 = vmatmul.mubr.msk.f32.gmra.mrb[16].mxu1 %vm1710_vm2, %v10955_v55 }
 0x48e   : > { %8857 = vmatprep.mubr.msk.f32.mxu1 %vm1710_vm2, %v10959_v57 }
 0x491   : > { %8858 = vmatmul.mubr.msk.f32.gmra.mrb[18].mxu1 %vm1710_vm2, %v3687_v20 }
 0x492   : > { %8868 = vmatprep.mubr.msk.f32.mxu1 %vm1710_vm2, %v10900_v36  ;;  %v4141_v36 = vld [vmem:[#allocation7 + $0x1f0] sm:$0xff] }
 0x493   : > { %v9418_v38 = vpack.c.bf16 %v4142_v37, %v4141_v36 }
 0x495   : > { %8869 = vmatmul.mubr.msk.f32.vlgmr.msra.gmra.mrb[12].mxu1 %vm1710_vm2, %v10908_v39 }
 0x496   : > { %8871 = vmatprep.mubr.msk.f32.mxu1 %vm1710_vm2, %v10915_v43  ;;  %9409 = vmatpush3.bf16.msra.mxu1 %v9406_v18  ;;  %v9446_v18 = vpack.c.bf16 %v4752_v58, %v4751_v16 }
 0x497   : > { %9411 = vmatprep.subr.bf16.mxu1 %v9410_v0 }
 0x499   : > { %8872 = vmatmul.mubr.msk.f32.gmra.mrb[14].mxu1 %vm1710_vm2, %v10920_v23 }
 0x49a   : > { %8874 = vmatprep.mubr.msk.f32.mxu1 %vm1710_vm2, %v10924_v28  ;;  %9413 = vmatpush3.bf16.msra.mxu1 %v9410_v0 }
 0x49b   : > { %9415 = vmatprep.subr.bf16.mxu1 %v9414_v34 }
 0x49d   : > { %8875 = vmatmul.mubr.msk.f32.gmra.mrb[16].mxu1 %vm1710_vm2, %v10928_v29 }
 0x49e   : > { %8877 = vmatprep.mubr.msk.f32.mxu1 %vm1710_vm2, %v10932_v30 }
 0x4a1   : > { %8878 = vmatmul.mubr.msk.f32.gmra.mrb[18].mxu1 %vm1710_vm2, %v3837_v9 }
 0x4a2   : > { %8888 = vmatprep.mubr.msk.f32.mxu1 %vm1710_vm2, %v3531_v63 }
 0x4a5   : > { %8889 = vmatmul.mubr.msk.f32.vlgmr.msra.gmra.mrb[12].mxu1 %vm1710_vm2, %v10966_v3 }
 0x4a6   : > { %8891 = vmatprep.mubr.msk.f32.mxu1 %vm1710_vm2, %v10970_v5  ;;  %9417 = vmatpush3.bf16.msra.mxu1 %v9414_v34 }
 0x4a7   : > { %9419 = vmatprep.subr.bf16.mxu1 %v9418_v38 }
 0x4a9   : > { %8892 = vmatmul.mubr.msk.f32.gmra.mrb[14].mxu1 %vm1710_vm2, %v10974_v47 }
 0x4aa   : > { %8894 = vmatprep.mubr.msk.f32.mxu1 %vm1710_vm2, %v10978_v6  ;;  %9421 = vmatpush3.bf16.msra.mxu1 %v9418_v38 }
 0x4ab   : > { %9423 = vmatprep.subr.bf16.mxu1 %v9422_v42 }
 0x4ad   : > { %8895 = vmatmul.mubr.msk.f32.gmra.mrb[16].mxu1 %vm1710_vm2, %v10982_v8 }
 0x4ae   : > { %8897 = vmatprep.mubr.msk.f32.mxu1 %vm1710_vm2, %v10986_v12 }
 0x4b1   : > { %8898 = vmatmul.mubr.msk.f32.gmra.mrb[18].mxu1 %vm1710_vm2, %v3987_v32 }
 0x4b2   : > { %8908 = vmatprep.mubr.msk.f32.mxu1 %vm1710_vm2, %v10939_v52  ;;  %v4441_v52 = vld [vmem:[#allocation7 + $0x230] sm:$0xff] }
 0x4b5   : > { %8909 = vmatmul.mubr.msk.f32.vlgmr.msra.gmra.mrb[12].mxu1 %vm1710_vm2, %v10943_v46  ;;  %v9434_v46 = vpack.c.bf16 %v4442_v53, %v4441_v52 }
 0x4b6   : > { %8911 = vmatprep.mubr.msk.f32.mxu1 %vm1710_vm2, %v10947_v31  ;;  %9425 = vmatpush3.bf16.msra.mxu1 %v9422_v42 }
 0x4b7   : > { %9427 = vmatprep.subr.bf16.mxu1 %v9426_v48 }
 0x4b9   : > { %8912 = vmatmul.mubr.msk.f32.gmra.mrb[14].mxu1 %vm1710_vm2, %v10951_v54 }
 0x4ba   : > { %8914 = vmatprep.mubr.msk.f32.mxu1 %vm1710_vm2, %v10955_v55  ;;  %9429 = vmatpush3.bf16.msra.mxu1 %v9426_v48  ;;  %v4754_v48 = vld [vmem:[#allocation10 + $0x18] sm:$0xff] }
 0x4bb   : > { %9431 = vmatprep.subr.bf16.mxu1 %v9430_v51  ;;  %v9450_v52 = vpack.c.bf16 %v4754_v48, %v4753_v45  ;;  %v5367_v45 = vld [vmem:[#allocation10 + $0x80] sm:$0xff]  ;;  %v5368_v48 = vld [vmem:[#allocation10 + $0x88] sm:$0xff] }
 0x4bd   : > { %8915 = vmatmul.mubr.msk.f32.gmra.mrb[16].mxu1 %vm1710_vm2, %v10959_v57 }
 0x4be   : > { %8917 = vmatprep.mubr.msk.f32.mxu1 %vm1710_vm2, %v3687_v20  ;;  %v5983_v20 = vld [vmem:[#allocation10 + $0x100] sm:$0xff] }
 0x4bf   : > { %v9510_v62 = vpack.c.bf16 %v5984_v24, %v5983_v20 }
 0x4c1   : > { %8918 = vmatmul.mubr.msk.f32.gmra.mrb[18].mxu1 %vm1710_vm2, %v10820_v40  ;;  %v4764_v40 = vld [vmem:[#allocation10 + $0x20] sm:$0xff] }
 0x4c2   : > { %8928 = vmatprep.mubr.msk.f32.mxu1 %vm1710_vm2, %v10908_v39 }
 0x4c5   : > { %8929 = vmatmul.mubr.msk.f32.vlgmr.msra.gmra.mrb[12].mxu1 %vm1710_vm2, %v10915_v43 }
 0x4c6   : > { %8931 = vmatprep.mubr.msk.f32.mxu1 %vm1710_vm2, %v10920_v23  ;;  %9433 = vmatpush3.bf16.msra.mxu1 %v9430_v51 }
 0x4c7   : > { %9435 = vmatprep.subr.bf16.mxu1 %v9434_v46 }
 0x4c9   : > { %8932 = vmatmul.mubr.msk.f32.gmra.mrb[14].mxu1 %vm1710_vm2, %v10924_v28 }
 0x4ca   : > { %8934 = vmatprep.mubr.msk.f32.mxu1 %vm1710_vm2, %v10928_v29  ;;  %9437 = vmatpush3.bf16.msra.mxu1 %v9434_v46 }
 0x4cd   : > { %8935 = vmatmul.mubr.msk.f32.gmra.mrb[16].mxu1 %vm1710_vm2, %v10932_v30 }
 0x4ce   : > { %8937 = vmatprep.mubr.msk.f32.mxu1 %vm1710_vm2, %v3837_v9 }
 0x4d1   : > { %8938 = vmatmul.mubr.msk.f32.gmra.mrb[18].mxu1 %vm1710_vm2, %v10837_v21  ;;  %v4765_v21 = vld [vmem:[#allocation10 + $0x28] sm:$0xff] }
 0x4d2   : > { %8948 = vmatprep.mubr.msk.f32.mxu1 %vm1710_vm2, %v10966_v3  ;;  %v9438_v39 = vpack.c.bf16 %v4765_v21, %v4764_v40  ;;  %v5996_v3 = vld [vmem:[#allocation10 + $0x120] sm:$0xff]  ;;  %v5985_v40 = vld [vmem:[#allocation10 + $0x110] sm:$0xff] }
 0x4d4   : > { %9439 = vmatprep.subr.bf16.mxu0 %v9438_v39 }
 0x4d5   : > { %8949 = vmatmul.mubr.msk.f32.vlgmr.msra.gmra.mrb[12].mxu1 %vm1710_vm2, %v10970_v5  ;;  %v9502_v5 = vpack.c.bf16 %v5997_v4, %v5996_v3  ;;  %v6270_v3 = vld [vmem:[#allocation10 + $0x158] sm:$0xff] }
 0x4d6   : > { %8951 = vmatprep.mubr.msk.f32.mxu1 %vm1710_vm2, %v10974_v47  ;;  %v4766_v47 = vld [vmem:[#allocation10 + $0x30] sm:$0xff] }
 0x4d7   : > { %9503 = vmatprep.subr.bf16.mxu1 %v9502_v5 }
 0x4d8   : > { %9505 = vmatpush3.bf16.msra.mxu1 %v9502_v5 }
 0x4d9   : > { %8952 = vmatmul.mubr.msk.f32.gmra.mrb[14].mxu1 %vm1710_vm2, %v10978_v6  ;;  %v4767_v6 = vld [vmem:[#allocation10 + $0x38] sm:$0xff] }
 0x4da   : > { %8954 = vmatprep.mubr.msk.f32.mxu1 %vm1710_vm2, %v10982_v8  ;;  %v9442_v8 = vpack.c.bf16 %v4767_v6, %v4766_v47  ;;  %v5185_v47 = vld [vmem:[#allocation10 + $0x60] sm:$0xff]  ;;  %v5186_v6 = vld [vmem:[#allocation10 + $0x68] sm:$0xff] }
 0x4db   : > { %v9462_v58 = vpack.c.bf16 %v5186_v6, %v5185_v47  ;;  %v6614_v6 = vld [vmem:[#allocation10 + $0x1b0] sm:$0xff] }
 0x4dd   : > { %8955 = vmatmul.mubr.msk.f32.gmra.mrb[16].mxu1 %vm1710_vm2, %v10986_v12  ;;  %v5998_v12 = vld [vmem:[#allocation10 + $0x130] sm:$0xff] }
 0x4de   : > { %8957 = vmatprep.mubr.msk.f32.mxu1 %vm1710_vm2, %v3987_v32  ;;  %v9506_v14 = vpack.c.bf16 %v5999_v13, %v5998_v12  ;;  %v6417_v13 = vld [vmem:[#allocation10 + $0x160] sm:$0xff] }
 0x4e0   : > { %9507 = vmatprep.subr.bf16.mxu1 %v9506_v14 }
 0x4e1   : > { %8958 = vmatmul.mubr.msk.f32.gmra.mrb[18].mxu1 %vm1710_vm2, %v10854_v26 }
 0x4e2   : > { %9509 = vmatpush3.bf16.msra.mxu1 %v9506_v14  ;;  %v6418_v14 = vld [vmem:[#allocation10 + $0x168] sm:$0xff] }
 0x4e3   : > { %9511 = vmatprep.subr.bf16.mxu1 %v9510_v62  ;;  %v9526_v20 = vpack.c.bf16 %v6418_v14, %v6417_v13  ;;  %v6599_v13 = vld [vmem:[#allocation10 + $0x180] sm:$0xff]  ;;  %v6600_v14 = vld [vmem:[#allocation10 + $0x188] sm:$0xff] }
 0x5a8   : > { %v8950_v43 = vpop.f32.mrb[12].mxu1 }
 0x5a9   : > { %v4533_v23 = vpop.f32.mrb[13].mxu1  ;;  %v4581_v29 = vmax.f32 %v8950_v43, 0.0  ;;  %v5036_v43 = vld [vmem:[#allocation10 + $0x48] sm:$0xff] }
 0x5aa   : > { %v4580_v28 = vmax.f32 %v4533_v23, 0.0 }
 0x5ac   : > { %v8953_v30 = vpop.f32.mrb[14].mxu1  ;;  %8962 = vmatprep.mubr.msk.f32.mxu0 %vm3092_vm4, %v4580_v28  ;;  %v6267_v28 = vld [vmem:[#allocation10 + $0x140] sm:$0xff] }
 0x5ad   : > { %v4543_v31 = vpop.f32.mrb[15].mxu1  ;;  %8963 = vmatmul.mubr.msk.f32.vlgmr.msra.gmra.mrb[16].mxu0 %vm3092_vm4, %v4581_v29  ;;  %v4583_v55 = vmax.f32 %v8953_v30, 0.0  ;;  %v6268_v29 = vld [vmem:[#allocation10 + $0x148] sm:$0xff] }
 0x5ae   : > { %v4582_v54 = vmax.f32 %v4543_v31, 0.0  ;;  %9441 = vmatpush3.bf16.msra.mxu0 %v9438_v39  ;;  %v5035_v39 = vld [vmem:[#allocation10 + $0x40] sm:$0xff] }
 0x5af   : > { %9443 = vmatprep.subr.bf16.mxu0 %v9442_v8  ;;  %v9454_v31 = vpack.c.bf16 %v5036_v43, %v5035_v39 }
 0x5b0   : > { %v8956_v57 = vpop.f32.mrb[16].mxu1  ;;  %8965 = vmatprep.mubr.msk.f32.mxu0 %vm3092_vm4, %v4582_v54 }
 0x5b1   : > { %v4553_v26 = vpop.f32.mrb[17].mxu1  ;;  %8966 = vmatmul.mubr.msk.f32.gmra.mrb[18].mxu0 %vm3092_vm4, %v4583_v55  ;;  %v4585_v60 = vmax.f32 %v8956_v57, 0.0  ;;  %v9518_v55 = vpack.c.bf16 %v6268_v29, %v6267_v28  ;;  %v5653_v29 = vld [vmem:[#allocation10 + $0xd0] sm:$0xff] }
 0x5b2   : > { %v4584_v59 = vmax.f32 %v4553_v26, 0.0  ;;  %9445 = vmatpush3.bf16.msra.mxu0 %v9442_v8 }
 0x5b3   : > { %9447 = vmatprep.subr.bf16.mxu0 %v9446_v18 }
 0x5b4   : > { %v8959_v61 = vpop.f32.mrb[18].mxu1  ;;  %8968 = vmatprep.mubr.msk.f32.mxu0 %vm3092_vm4, %v4584_v59  ;;  %v4743_v59 = vld [vmem:[#allocation2] sm:$0xff] }
 0x5b5   : > { %v4563_v63 = vpop.f32.mrb[19].mxu1  ;;  %8969 = vmatmul.mubr.msk.f32.gmra.mrb[20].mxu0 %vm3092_vm4, %v4585_v60  ;;  %v4587_v2 = vmax.f32 %v8959_v61, 0.0  ;;  %v5037_v61 = vld [vmem:[#allocation10 + $0x50] sm:$0xff] }
 0x5b6   : > { %v4586_v1 = vmax.f32 %v4563_v63, 0.0  ;;  %v5038_v63 = vld [vmem:[#allocation10 + $0x58] sm:$0xff] }
 0x5b7   : > { %v9458_v5 = vpack.c.bf16 %v5038_v63, %v5037_v61  ;;  %v5802_v61 = vld [vmem:[#allocation10 + $0xe8] sm:$0xff] }
 0x5b8   : > { %8971 = vmatprep.mubr.msk.f32.mxu0 %vm3092_vm4, %v4586_v1 }
 0x5b9   : > { %8972 = vmatmul.mubr.msk.f32.gmra.mrb[22].mxu0 %vm3092_vm4, %v4587_v2  ;;  %v6269_v2 = vld [vmem:[#allocation10 + $0x150] sm:$0xff] }
 0x5ba   : > { %8982 = vmatprep.mubr.msk.f32.mxu0 %vm1710_vm2, %v11086_v17  ;;  %v9522_v12 = vpack.c.bf16 %v6270_v3, %v6269_v2  ;;  %v5804_v2 = vld [vmem:[#allocation10 + $0xf8] sm:$0xff] }
 0x680   : > { %v8964_v0 = vpop.f32.mrb[16].mxu0 }
 0x681   : > { %v4720_v27 = vadd.f32 %v8964_v0, %v10869_v7  ;;  %v4680_v33 = vpop.f32.mrb[17].mxu0 }
 0x682   : > { %v4719_v34 = vadd.f32 %v4680_v33, %v10872_v11  ;;  %v5188_v33 = vld [vmem:[#allocation10 + $0x78] sm:$0xff] }
 0x683   : > { %v4728_v9 = vmax.f32 %v4720_v27, 0.0  ;;  %v5187_v27 = vld [vmem:[#allocation10 + $0x70] sm:$0xff] }
 0x684   : > { %v4727_v36 = vmax.f32 %v4719_v34, 0.0  ;;  %v8967_v37 = vpop.f32.mrb[18].mxu0 }
 0x685   : > { %4736 = vst.msk [vmem:[#allocation2 + $0x21] sm:$0xff] %vm1710_vm2, %v4728_v9  ;;  %v4722_v38 = vadd.f32 %v8967_v37, %v10878_v15  ;;  %v4690_v41 = vpop.f32.mrb[19].mxu0  ;;  %v6419_v9 = vld [vmem:[#allocation10 + $0x170] sm:$0xff]  ;;  %v9466_v37 = vpack.c.bf16 %v5188_v33, %v5187_v27 }
 0x686   : > { %4735 = vst.msk [vmem:[#allocation2 + $0x11] sm:$0xff] %vm1710_vm2, %v4727_v36  ;;  %v4721_v22 = vadd.f32 %v4690_v41, %v10882_v56  ;;  %v6420_v36 = vld [vmem:[#allocation10 + $0x178] sm:$0xff]  ;;  %v5381_v41 = vld [vmem:[#allocation10 + $0xa8] sm:$0xff]  ;;  %v6885_v33 = vld [vmem:[#allocation10 + $0x1d0] sm:$0xff] }
 0x687   : > { %v4730_v42 = vmax.f32 %v4722_v38, 0.0  ;;  %v5380_v38 = vld [vmem:[#allocation10 + $0xa0] sm:$0xff] }
 0x688   : > { %v4729_v32 = vmax.f32 %v4721_v22, 0.0  ;;  %v8970_v44 = vpop.f32.mrb[20].mxu0  ;;  %v9530_v22 = vpack.c.bf16 %v6420_v36, %v6419_v9  ;;  %v7033_v36 = vld [vmem:[#allocation10 + $0x1e0] sm:$0xff] }
 0x689   : > { %4738 = vst.msk [vmem:[#allocation2 + $0x41] sm:$0xff] %vm1710_vm2, %v4730_v42  ;;  %v4724_v7 = vadd.f32 %v8970_v44, %v10888_v19  ;;  %v4700_v11 = vpop.f32.mrb[21].mxu0  ;;  %v5986_v19 = vld [vmem:[#allocation10 + $0x118] sm:$0xff]  ;;  %v9470_v42 = vpack.c.bf16 %v5381_v41, %v5380_v38  ;;  %v5382_v44 = vld [vmem:[#allocation10 + $0xb0] sm:$0xff] }
 0x68a   : > { %4737 = vst.msk [vmem:[#allocation2 + $0x31] sm:$0xff] %vm1710_vm2, %v4729_v32  ;;  %v4723_v49 = vadd.f32 %v4700_v11, %v10892_v25  ;;  %v6265_v32 = vld [vmem:[#allocation2 + $0x90] sm:$0xff] }
 0x68b   : > { %v4732_v15 = vmax.f32 %v4724_v7, 0.0  ;;  %v5383_v7 = vld [vmem:[#allocation10 + $0xb8] sm:$0xff] }
 0x68c   : > { %v4731_v50 = vmax.f32 %v4723_v49, 0.0  ;;  %v8973_v51 = vpop.f32.mrb[22].mxu0  ;;  %v11110_v25 = vld [vmem:[#allocation2 + $0x21] sm:$0xff]  ;;  %v9474_v11 = vpack.c.bf16 %v5383_v7, %v5382_v44  ;;  %v9478_v49 = vpack.c.bf16 %v5368_v48, %v5367_v45  ;;  %v7036_v41 = vld [vmem:[#allocation10 + $0x1f8] sm:$0xff] }
 0x68d   : > { %4740 = vst.msk [vmem:[#allocation2 + $0x61] sm:$0xff] %vm1710_vm2, %v4732_v15  ;;  %v4726_v56 = vadd.f32 %v8973_v51, %v10898_v35  ;;  %v4710_v53 = vpop.f32.mrb[23].mxu0  ;;  %v11102_v46 = vld [vmem:[#allocation2 + $0x11] sm:$0xff]  ;;  %v4745_v8 = vld [vmem:[#allocation2 + $0x20] sm:$0xff] }
 0x68e   : > { %4739 = vst.msk [vmem:[#allocation2 + $0x51] sm:$0xff] %vm1710_vm2, %v4731_v50  ;;  %v4725_v21 = vadd.f32 %v4710_v53, %v10904_v10  ;;  %8983 = vmatmul.mubr.msk.f32.vlgmr.msra.gmra.mrb[24].mxu0 %vm1710_vm2, %v11102_v46  ;;  %9142 = vmatprep.mubr.msk.f32.mxu1 %vm1710_vm2, %v11102_v46  ;;  %v9514_v10 = vpack.c.bf16 %v5986_v19, %v5985_v40  ;;  %v5974_v4 = vld [vmem:[#allocation2 + $0x10] sm:$0xff]  ;;  %v5371_v15 = vld [vmem:[#allocation2 + $0x2] sm:$0xff] }
 0x68f   : > { %v4734_v35 = vmax.f32 %v4726_v56, 0.0  ;;  %8985 = vmatprep.mubr.msk.f32.mxu0 %vm1710_vm2, %v11110_v25  ;;  %9449 = vmatpush3.bf16.msra.mxu0 %v9446_v18  ;;  %v11212_v50 = vld [vmem:[#allocation2 + $0x91] sm:$0xff]  ;;  %v5369_v51 = vld [vmem:[#allocation10 + $0x90] sm:$0xff]  ;;  %v5652_v19 = vld [vmem:[#allocation10 + $0xc8] sm:$0xff] }
 0x690   : > { %v4733_v23 = vmax.f32 %v4725_v21, 0.0  ;;  %9143 = vmatmul.mubr.msk.f32.vlgmr.msra.gmra.mrb[20].mxu1 %vm1710_vm2, %v11110_v25  ;;  %9451 = vmatprep.subr.bf16.mxu0 %v9450_v52  ;;  %v11124_v54 = vld [vmem:[#allocation2 + $0x41] sm:$0xff]  ;;  %v11219_v53 = vld [vmem:[#allocation2 + $0x12] sm:$0xff] }
 0x691   : > { %4742 = vst.msk [vmem:[#allocation2 + $0x81] sm:$0xff] %vm1710_vm2, %v4734_v35  ;;  %v11117_v30 = vld [vmem:[#allocation2 + $0x31] sm:$0xff]  ;;  %9513 = vmatpush3.bf16.msra.mxu1 %v9510_v62  ;;  %v4747_v18 = vld [vmem:[#allocation2 + $0x40] sm:$0xff] }
 0x692   : > { %4741 = vst.msk [vmem:[#allocation2 + $0x71] sm:$0xff] %vm1710_vm2, %v4733_v23  ;;  %8986 = vmatmul.mubr.msk.f32.gmra.mrb[26].mxu0 %vm1710_vm2, %v11117_v30  ;;  %9145 = vmatprep.mubr.msk.f32.mxu1 %vm1710_vm2, %v11117_v30  ;;  %v5976_v16 = vld [vmem:[#allocation2 + $0x30] sm:$0xff]  ;;  %v11223_v21 = vld [vmem:[#allocation2 + $0x22] sm:$0xff] }
 0x693   : > { %8988 = vmatprep.mubr.msk.f32.mxu0 %vm1710_vm2, %v11124_v54  ;;  %9453 = vmatpush3.bf16.msra.mxu0 %v9450_v52  ;;  %v5370_v52 = vld [vmem:[#allocation10 + $0x98] sm:$0xff]  ;;  %v5651_v40 = vld [vmem:[#allocation10 + $0xc0] sm:$0xff]  ;;  %v11231_v35 = vld [vmem:[#allocation2 + $0x42] sm:$0xff] }
 0x694   : > { %9146 = vmatmul.mubr.msk.f32.gmra.mrb[22].mxu1 %vm1710_vm2, %v11124_v54  ;;  %9515 = vmatprep.subr.bf16.mxu1 %v9514_v10  ;;  %v11136_v26 = vld [vmem:[#allocation2 + $0x61] sm:$0xff]  ;;  %v9482_v56 = vpack.c.bf16 %v5370_v52, %v5369_v51  ;;  %v9486_v39 = vpack.c.bf16 %v5652_v19, %v5651_v40  ;;  %v11227_v43 = vld [vmem:[#allocation2 + $0x32] sm:$0xff] }
 0x695   : > { %v11130_v57 = vld [vmem:[#allocation2 + $0x51] sm:$0xff]  ;;  %9517 = vmatpush3.bf16.msra.mxu1 %v9514_v10  ;;  %9455 = vmatprep.subr.bf16.mxu0 %v9454_v31  ;;  %v4749_v62 = vld [vmem:[#allocation2 + $0x60] sm:$0xff] }
 0x696   : > { %8989 = vmatmul.mubr.msk.f32.gmra.mrb[28].mxu0 %vm1710_vm2, %v11130_v57  ;;  %9148 = vmatprep.mubr.msk.f32.mxu1 %vm1710_vm2, %v11130_v57  ;;  %v5978_v24 = vld [vmem:[#allocation2 + $0x50] sm:$0xff]  ;;  %v11239_v10 = vld [vmem:[#allocation2 + $0x62] sm:$0xff] }
 0x697   : > { %8991 = vmatprep.mubr.msk.f32.mxu0 %vm1710_vm2, %v11136_v26  ;;  %9519 = vmatprep.subr.bf16.mxu1 %v9518_v55  ;;  %v11235_v23 = vld [vmem:[#allocation2 + $0x52] sm:$0xff] }
 0x698   : > { %9149 = vmatmul.mubr.msk.f32.gmra.mrb[24].mxu1 %vm1710_vm2, %v11136_v26  ;;  %v11148_v1 = vld [vmem:[#allocation2 + $0x81] sm:$0xff] }
 0x699   : > { %v11142_v60 = vld [vmem:[#allocation2 + $0x71] sm:$0xff]  ;;  %v5981_v34 = vld [vmem:[#allocation2 + $0x80] sm:$0xff] }
 0x69a   : > { %8992 = vmatmul.mubr.msk.f32.gmra.mrb[30].mxu0 %vm1710_vm2, %v11142_v60  ;;  %9151 = vmatprep.mubr.msk.f32.mxu1 %vm1710_vm2, %v11142_v60  ;;  %v5980_v0 = vld [vmem:[#allocation2 + $0x70] sm:$0xff] }
 0x69b   : > { %9002 = vmatprep.mubr.msk.f32.mxu0 %vm1710_vm2, %v4743_v59  ;;  %v11243_v28 = vld [vmem:[#allocation2 + $0x72] sm:$0xff] }
 0x69c   : > { %9152 = vmatmul.mubr.msk.f32.gmra.mrb[26].mxu1 %vm1710_vm2, %v11148_v1  ;;  %v5801_v59 = vld [vmem:[#allocation10 + $0xe0] sm:$0xff] }
 0x69d   : > { %9162 = vmatprep.mubr.msk.f32.mxu1 %vm1710_vm2, %v5974_v4  ;;  %v9494_v63 = vpack.c.bf16 %v5802_v61, %v5801_v59 }
 0x69e   : > { %9003 = vmatmul.mubr.msk.f32.vlgmr.msra.gmra.mrb[24].mxu0 %vm1710_vm2, %v5974_v4 }
 0x69f   : > { %9005 = vmatprep.mubr.msk.f32.mxu0 %vm1710_vm2, %v4745_v8  ;;  %9457 = vmatpush3.bf16.msra.mxu0 %v9454_v31  ;;  %v5654_v31 = vld [vmem:[#allocation10 + $0xd8] sm:$0xff] }
 0x6a0   : > { %9163 = vmatmul.mubr.msk.f32.vlgmr.msra.gmra.mrb[20].mxu1 %vm1710_vm2, %v4745_v8  ;;  %9459 = vmatprep.subr.bf16.mxu0 %v9458_v5 }
 0x6a1   : > { %9165 = vmatprep.mubr.msk.f32.mxu1 %vm1710_vm2, %v5976_v16  ;;  %9521 = vmatpush3.bf16.msra.mxu1 %v9518_v55  ;;  %v9490_v55 = vpack.c.bf16 %v5654_v31, %v5653_v29 }
 0x6a2   : > { %9006 = vmatmul.mubr.msk.f32.gmra.mrb[26].mxu0 %vm1710_vm2, %v5976_v16  ;;  %9523 = vmatprep.subr.bf16.mxu1 %v9522_v12 }
 0x6a3   : > { %9008 = vmatprep.mubr.msk.f32.mxu0 %vm1710_vm2, %v4747_v18  ;;  %9461 = vmatpush3.bf16.msra.mxu0 %v9458_v5  ;;  %v6613_v5 = vld [vmem:[#allocation10 + $0x1a8] sm:$0xff] }
 0x6a4   : > { %9166 = vmatmul.mubr.msk.f32.gmra.mrb[22].mxu1 %vm1710_vm2, %v4747_v18  ;;  %9463 = vmatprep.subr.bf16.mxu0 %v9462_v58 }
 0x6a5   : > { %9168 = vmatprep.mubr.msk.f32.mxu1 %vm1710_vm2, %v5978_v24  ;;  %9525 = vmatpush3.bf16.msra.mxu1 %v9522_v12 }
 0x6a6   : > { %9009 = vmatmul.mubr.msk.f32.gmra.mrb[28].mxu0 %vm1710_vm2, %v5978_v24  ;;  %9527 = vmatprep.subr.bf16.mxu1 %v9526_v20 }
 0x6a7   : > { %9011 = vmatprep.mubr.msk.f32.mxu0 %vm1710_vm2, %v4749_v62 }
 0x6a8   : > { %9169 = vmatmul.mubr.msk.f32.gmra.mrb[24].mxu1 %vm1710_vm2, %v4749_v62 }
 0x6a9   : > { %9171 = vmatprep.mubr.msk.f32.mxu1 %vm1710_vm2, %v5980_v0 }
 0x6aa   : > { %9012 = vmatmul.mubr.msk.f32.gmra.mrb[30].mxu0 %vm1710_vm2, %v5980_v0 }
 0x6ab   : > { %9022 = vmatprep.mubr.msk.f32.mxu0 %vm1710_vm2, %v5974_v4  ;;  %v6612_v4 = vld [vmem:[#allocation10 + $0x1a0] sm:$0xff] }
 0x6ac   : > { %9172 = vmatmul.mubr.msk.f32.gmra.mrb[26].mxu1 %vm1710_vm2, %v5981_v34  ;;  %v9534_v47 = vpack.c.bf16 %v6613_v5, %v6612_v4 }
 0x6ad   : > { %9182 = vmatprep.mubr.msk.f32.mxu1 %vm1710_vm2, %v4745_v8 }
 0x6ae   : > { %9023 = vmatmul.mubr.msk.f32.vlgmr.msra.gmra.mrb[24].mxu0 %vm1710_vm2, %v4745_v8  ;;  %v6615_v8 = vld [vmem:[#allocation10 + $0x1b8] sm:$0xff] }
 0x6af   : > { %9025 = vmatprep.mubr.msk.f32.mxu0 %vm1710_vm2, %v5976_v16  ;;  %9465 = vmatpush3.bf16.msra.mxu0 %v9462_v58  ;;  %v9538_v12 = vpack.c.bf16 %v6615_v8, %v6614_v6  ;;  %v5799_v58 = vld [vmem:[#allocation2 + $0x82] sm:$0xff] }
 0x6b0   : > { %9183 = vmatmul.mubr.msk.f32.vlgmr.msra.gmra.mrb[20].mxu1 %vm1710_vm2, %v5976_v16  ;;  %9467 = vmatprep.subr.bf16.mxu0 %v9466_v37  ;;  %v9542_v16 = vpack.c.bf16 %v6600_v14, %v6599_v13 }
 0x6b1   : > { %9185 = vmatprep.mubr.msk.f32.mxu1 %vm1710_vm2, %v4747_v18  ;;  %9529 = vmatpush3.bf16.msra.mxu1 %v9526_v20  ;;  %v6602_v20 = vld [vmem:[#allocation10 + $0x198] sm:$0xff] }
 0x6b2   : > { %9026 = vmatmul.mubr.msk.f32.gmra.mrb[26].mxu0 %vm1710_vm2, %v4747_v18  ;;  %9531 = vmatprep.subr.bf16.mxu1 %v9530_v22  ;;  %v6601_v18 = vld [vmem:[#allocation10 + $0x190] sm:$0xff] }
 0x6b3   : > { %9028 = vmatprep.mubr.msk.f32.mxu0 %vm1710_vm2, %v5978_v24  ;;  %9469 = vmatpush3.bf16.msra.mxu0 %v9466_v37  ;;  %v7034_v37 = vld [vmem:[#allocation10 + $0x1e8] sm:$0xff] }
 0x6b4   : > { %9186 = vmatmul.mubr.msk.f32.gmra.mrb[22].mxu1 %vm1710_vm2, %v5978_v24  ;;  %9471 = vmatprep.subr.bf16.mxu0 %v9470_v42  ;;  %v9546_v24 = vpack.c.bf16 %v6602_v20, %v6601_v18  ;;  %v9558_v38 = vpack.c.bf16 %v7034_v37, %v7033_v36 }
 0x6b5   : > { %9188 = vmatprep.mubr.msk.f32.mxu1 %vm1710_vm2, %v4749_v62  ;;  %9533 = vmatpush3.bf16.msra.mxu1 %v9530_v22 }
 0x6b6   : > { %9029 = vmatmul.mubr.msk.f32.gmra.mrb[28].mxu0 %vm1710_vm2, %v4749_v62  ;;  %v6883_v62 = vld [vmem:[#allocation10 + $0x1c0] sm:$0xff] }
 0x6b7   : > { %9031 = vmatprep.mubr.msk.f32.mxu0 %vm1710_vm2, %v5980_v0 }
 0x6b8   : > { %9189 = vmatmul.mubr.msk.f32.gmra.mrb[24].mxu1 %vm1710_vm2, %v5980_v0  ;;  %v6884_v0 = vld [vmem:[#allocation10 + $0x1c8] sm:$0xff] }
 0x6b9   : > { %9191 = vmatprep.mubr.msk.f32.mxu1 %vm1710_vm2, %v5981_v34  ;;  %v9550_v27 = vpack.c.bf16 %v6884_v0, %v6883_v62 }
 0x6ba   : > { %9032 = vmatmul.mubr.msk.f32.gmra.mrb[30].mxu0 %vm1710_vm2, %v5981_v34  ;;  %v6886_v34 = vld [vmem:[#allocation10 + $0x1d8] sm:$0xff] }
 0x6bb   : > { %9042 = vmatprep.mubr.msk.f32.mxu0 %vm1710_vm2, %v11102_v46  ;;  %v9554_v9 = vpack.c.bf16 %v6886_v34, %v6885_v33 }
 0x6bc   : > { %9192 = vmatmul.mubr.msk.f32.gmra.mrb[26].mxu1 %vm1710_vm2, %v6265_v32 }
 0x6bd   : > { %9202 = vmatprep.mubr.msk.f32.mxu1 %vm1710_vm2, %v11110_v25 }
 0x6be   : > { %9043 = vmatmul.mubr.msk.f32.vlgmr.msra.gmra.mrb[24].mxu0 %vm1710_vm2, %v11110_v25 }
 0x6bf   : > { %9045 = vmatprep.mubr.msk.f32.mxu0 %vm1710_vm2, %v11117_v30  ;;  %9473 = vmatpush3.bf16.msra.mxu0 %v9470_v42 }
 0x6c0   : > { %9203 = vmatmul.mubr.msk.f32.vlgmr.msra.gmra.mrb[20].mxu1 %vm1710_vm2, %v11117_v30  ;;  %9475 = vmatprep.subr.bf16.mxu0 %v9474_v11 }
 0x6c1   : > { %9205 = vmatprep.mubr.msk.f32.mxu1 %vm1710_vm2, %v11124_v54 }
 0x6c2   : > { %9046 = vmatmul.mubr.msk.f32.gmra.mrb[26].mxu0 %vm1710_vm2, %v11124_v54 }
 0x6c3   : > { %9048 = vmatprep.mubr.msk.f32.mxu0 %vm1710_vm2, %v11130_v57  ;;  %9477 = vmatpush3.bf16.msra.mxu0 %v9474_v11 }
 0x6c4   : > { %9206 = vmatmul.mubr.msk.f32.gmra.mrb[22].mxu1 %vm1710_vm2, %v11130_v57  ;;  %9479 = vmatprep.subr.bf16.mxu0 %v9478_v49 }
 0x6c5   : > { %9208 = vmatprep.mubr.msk.f32.mxu1 %vm1710_vm2, %v11136_v26 }
 0x6c6   : > { %9049 = vmatmul.mubr.msk.f32.gmra.mrb[28].mxu0 %vm1710_vm2, %v11136_v26 }
 0x6c7   : > { %9051 = vmatprep.mubr.msk.f32.mxu0 %vm1710_vm2, %v11142_v60 }
 0x6c8   : > { %9209 = vmatmul.mubr.msk.f32.gmra.mrb[24].mxu1 %vm1710_vm2, %v11142_v60 }
 0x6c9   : > { %9211 = vmatprep.mubr.msk.f32.mxu1 %vm1710_vm2, %v11148_v1 }
 0x6ca   : > { %9052 = vmatmul.mubr.msk.f32.gmra.mrb[30].mxu0 %vm1710_vm2, %v11148_v1 }
 0x6cb   : > { %9062 = vmatprep.mubr.msk.f32.mxu0 %vm1710_vm2, %v5371_v15 }
 0x6cc   : > { %9212 = vmatmul.mubr.msk.f32.gmra.mrb[26].mxu1 %vm1710_vm2, %v11212_v50 }
 0x6ce   : > { %9063 = vmatmul.mubr.msk.f32.vlgmr.msra.gmra.mrb[32].mxu0 %vm1710_vm2, %v11219_v53 }
 0x6cf   : > { %9065 = vmatprep.mubr.msk.f32.mxu0 %vm1710_vm2, %v11223_v21  ;;  %9481 = vmatpush3.bf16.msra.mxu0 %v9478_v49 }
 0x6d0   : > { %9483 = vmatprep.subr.bf16.mxu0 %v9482_v56 }
 0x6d2   : > { %9066 = vmatmul.mubr.msk.f32.gmra.mrb[34].mxu0 %vm1710_vm2, %v11227_v43 }
 0x6d3   : > { %9068 = vmatprep.mubr.msk.f32.mxu0 %vm1710_vm2, %v11231_v35  ;;  %9485 = vmatpush3.bf16.msra.mxu0 %v9482_v56 }
 0x6d4   : > { %9487 = vmatprep.subr.bf16.mxu0 %v9486_v39 }
 0x6d6   : > { %9069 = vmatmul.mubr.msk.f32.gmra.mrb[36].mxu0 %vm1710_vm2, %v11235_v23 }
 0x6d7   : > { %9071 = vmatprep.mubr.msk.f32.mxu0 %vm1710_vm2, %v11239_v10 }
 0x6da   : > { %9072 = vmatmul.mubr.msk.f32.gmra.mrb[38].mxu0 %vm1710_vm2, %v11243_v28 }
 0x6db   : > { %9082 = vmatprep.mubr.msk.f32.mxu0 %vm1710_vm2, %v11086_v17  ;;  %v5803_v17 = vld [vmem:[#allocation10 + $0xf0] sm:$0xff] }
 0x6dc   : > { %v9498_v3 = vpack.c.bf16 %v5804_v2, %v5803_v17 }
 0x6de   : > { %9083 = vmatmul.mubr.msk.f32.vlgmr.msra.gmra.mrb[32].mxu0 %vm1710_vm2, %v11102_v46 }
 0x6df   : > { %9085 = vmatprep.mubr.msk.f32.mxu0 %vm1710_vm2, %v11110_v25  ;;  %9489 = vmatpush3.bf16.msra.mxu0 %v9486_v39 }
 0x6e0   : > { %9491 = vmatprep.subr.bf16.mxu0 %v9490_v55 }
 0x6e2   : > { %9086 = vmatmul.mubr.msk.f32.gmra.mrb[34].mxu0 %vm1710_vm2, %v11117_v30 }
 0x6e3   : > { %9088 = vmatprep.mubr.msk.f32.mxu0 %vm1710_vm2, %v11124_v54  ;;  %9493 = vmatpush3.bf16.msra.mxu0 %v9490_v55 }
 0x6e4   : > { %9495 = vmatprep.subr.bf16.mxu0 %v9494_v63 }
 0x6e6   : > { %9089 = vmatmul.mubr.msk.f32.gmra.mrb[36].mxu0 %vm1710_vm2, %v11130_v57 }
 0x6e7   : > { %9091 = vmatprep.mubr.msk.f32.mxu0 %vm1710_vm2, %v11136_v26 }
 0x6ea   : > { %9092 = vmatmul.mubr.msk.f32.gmra.mrb[38].mxu0 %vm1710_vm2, %v11142_v60 }
 0x6eb   : > { %9102 = vmatprep.mubr.msk.f32.mxu0 %vm1710_vm2, %v11102_v46 }
 0x6ee   : > { %9103 = vmatmul.mubr.msk.f32.vlgmr.msra.gmra.mrb[32].mxu0 %vm1710_vm2, %v11110_v25 }
 0x6ef   : > { %9105 = vmatprep.mubr.msk.f32.mxu0 %vm1710_vm2, %v11117_v30  ;;  %9497 = vmatpush3.bf16.msra.mxu0 %v9494_v63 }
 0x6f0   : > { %9499 = vmatprep.subr.bf16.mxu0 %v9498_v3 }
 0x6f2   : > { %9106 = vmatmul.mubr.msk.f32.gmra.mrb[34].mxu0 %vm1710_vm2, %v11124_v54 }
 0x6f3   : > { %9108 = vmatprep.mubr.msk.f32.mxu0 %vm1710_vm2, %v11130_v57  ;;  %9501 = vmatpush3.bf16.msra.mxu0 %v9498_v3 }
 0x6f4   : > { %9535 = vmatprep.subr.bf16.mxu0 %v9534_v47 }
 0x6f6   : > { %9109 = vmatmul.mubr.msk.f32.gmra.mrb[36].mxu0 %vm1710_vm2, %v11136_v26 }
 0x6f7   : > { %9111 = vmatprep.mubr.msk.f32.mxu0 %vm1710_vm2, %v11142_v60 }
 0x6fa   : > { %9112 = vmatmul.mubr.msk.f32.gmra.mrb[38].mxu0 %vm1710_vm2, %v11148_v1 }
 0x6fb   : > { %9122 = vmatprep.mubr.msk.f32.mxu0 %vm1710_vm2, %v11219_v53 }
 0x6fe   : > { %9123 = vmatmul.mubr.msk.f32.vlgmr.msra.gmra.mrb[32].mxu0 %vm1710_vm2, %v11223_v21 }
 0x6ff   : > { %9125 = vmatprep.mubr.msk.f32.mxu0 %vm1710_vm2, %v11227_v43  ;;  %9537 = vmatpush3.bf16.msra.mxu0 %v9534_v47 }
 0x700   : > { %9539 = vmatprep.subr.bf16.mxu0 %v9538_v12 }
 0x702   : > { %9126 = vmatmul.mubr.msk.f32.gmra.mrb[34].mxu0 %vm1710_vm2, %v11231_v35 }
 0x703   : > { %9128 = vmatprep.mubr.msk.f32.mxu0 %vm1710_vm2, %v11235_v23  ;;  %9541 = vmatpush3.bf16.msra.mxu0 %v9538_v12 }
 0x704   : > { %9543 = vmatprep.subr.bf16.mxu0 %v9542_v16 }
 0x706   : > { %9129 = vmatmul.mubr.msk.f32.gmra.mrb[36].mxu0 %vm1710_vm2, %v11239_v10 }
 0x707   : > { %9131 = vmatprep.mubr.msk.f32.mxu0 %vm1710_vm2, %v11243_v28 }
 0x70a   : > { %9132 = vmatmul.mubr.msk.f32.gmra.mrb[38].mxu0 %vm1710_vm2, %v5799_v58 }
 0x70b   : > { %9222 = vmatprep.mubr.msk.f32.mxu0 %vm1710_vm2, %v11219_v53 }
 0x70e   : > { %9223 = vmatmul.mubr.msk.f32.vlgmr.msra.gmra.mrb[40].mxu0 %vm1710_vm2, %v11223_v21 }
 0x70f   : > { %9225 = vmatprep.mubr.msk.f32.mxu0 %vm1710_vm2, %v11227_v43  ;;  %9545 = vmatpush3.bf16.msra.mxu0 %v9542_v16 }
 0x710   : > { %9547 = vmatprep.subr.bf16.mxu0 %v9546_v24 }
 0x712   : > { %9226 = vmatmul.mubr.msk.f32.gmra.mrb[42].mxu0 %vm1710_vm2, %v11231_v35 }
 0x713   : > { %9228 = vmatprep.mubr.msk.f32.mxu0 %vm1710_vm2, %v11235_v23  ;;  %9549 = vmatpush3.bf16.msra.mxu0 %v9546_v24 }
 0x714   : > { %9551 = vmatprep.subr.bf16.mxu0 %v9550_v27 }
 0x716   : > { %9229 = vmatmul.mubr.msk.f32.gmra.mrb[44].mxu0 %vm1710_vm2, %v11239_v10 }
 0x717   : > { %9231 = vmatprep.mubr.msk.f32.mxu0 %vm1710_vm2, %v11243_v28 }
 0x71a   : > { %9232 = vmatmul.mubr.msk.f32.gmra.mrb[46].mxu0 %vm1710_vm2, %v5799_v58 }
 0x71b   : > { %9242 = vmatprep.mubr.msk.f32.mxu0 %vm1710_vm2, %v11102_v46  ;;  %v7035_v46 = vld [vmem:[#allocation10 + $0x1f0] sm:$0xff] }
 0x71c   : > { %v9562_v22 = vpack.c.bf16 %v7036_v41, %v7035_v46 }
 0x71e   : > { %9243 = vmatmul.mubr.msk.f32.vlgmr.msra.gmra.mrb[40].mxu0 %vm1710_vm2, %v11110_v25 }
 0x71f   : > { %9245 = vmatprep.mubr.msk.f32.mxu0 %vm1710_vm2, %v11117_v30  ;;  %9553 = vmatpush3.bf16.msra.mxu0 %v9550_v27 }
 0x720   : > { %9555 = vmatprep.subr.bf16.mxu0 %v9554_v9 }
 0x722   : > { %9246 = vmatmul.mubr.msk.f32.gmra.mrb[42].mxu0 %vm1710_vm2, %v11124_v54 }
 0x723   : > { %9248 = vmatprep.mubr.msk.f32.mxu0 %vm1710_vm2, %v11130_v57  ;;  %9557 = vmatpush3.bf16.msra.mxu0 %v9554_v9 }
 0x724   : > { %9559 = vmatprep.subr.bf16.mxu0 %v9558_v38 }
 0x726   : > { %9249 = vmatmul.mubr.msk.f32.gmra.mrb[44].mxu0 %vm1710_vm2, %v11136_v26 }
 0x727   : > { %9251 = vmatprep.mubr.msk.f32.mxu0 %vm1710_vm2, %v11142_v60 }
 0x72a   : > { %9252 = vmatmul.mubr.msk.f32.gmra.mrb[46].mxu0 %vm1710_vm2, %v11148_v1 }
 0x72b   : > { %9262 = vmatprep.mubr.msk.f32.mxu0 %vm1710_vm2, %v11110_v25  ;;  %v7031_v25 = vld [vmem:[#allocation2 + $0x92] sm:$0xff] }
 0x72e   : > { %9263 = vmatmul.mubr.msk.f32.vlgmr.msra.gmra.mrb[40].mxu0 %vm1710_vm2, %v11117_v30  ;;  %v11356_v30 = vld [vmem:[#allocation11] ss:$0 sm:$0xff] }
 0x72f   : > { %9265 = vmatprep.mubr.msk.f32.mxu0 %vm1710_vm2, %v11124_v54  ;;  %9561 = vmatpush3.bf16.msra.mxu0 %v9558_v38 }
 0x730   : > { %9563 = vmatprep.subr.bf16.mxu0 %v9562_v22 }
 0x732   : > { %9266 = vmatmul.mubr.msk.f32.gmra.mrb[42].mxu0 %vm1710_vm2, %v11130_v57 }
 0x733   : > { %9268 = vmatprep.mubr.msk.f32.mxu0 %vm1710_vm2, %v11136_v26  ;;  %9565 = vmatpush3.bf16.msra.mxu0 %v9562_v22 }
 0x736   : > { %9269 = vmatmul.mubr.msk.f32.gmra.mrb[44].mxu0 %vm1710_vm2, %v11142_v60 }
 0x737   : > { %9271 = vmatprep.mubr.msk.f32.mxu0 %vm1710_vm2, %v11148_v1 }
 0x73a   : > { %9272 = vmatmul.mubr.msk.f32.gmra.mrb[46].mxu0 %vm1710_vm2, %v11212_v50 }
 0x73b   : > { %9282 = vmatprep.mubr.msk.f32.mxu0 %vm1710_vm2, %v11223_v21 }
 0x73e   : > { %9283 = vmatmul.mubr.msk.f32.vlgmr.msra.gmra.mrb[40].mxu0 %vm1710_vm2, %v11227_v43 }
 0x73f   : > { %9285 = vmatprep.mubr.msk.f32.mxu0 %vm1710_vm2, %v11231_v35 }
 0x742   : > { %9286 = vmatmul.mubr.msk.f32.gmra.mrb[42].mxu0 %vm1710_vm2, %v11235_v23 }
 0x743   : > { %9288 = vmatprep.mubr.msk.f32.mxu0 %vm1710_vm2, %v11239_v10 }
 0x746   : > { %9289 = vmatmul.mubr.msk.f32.gmra.mrb[44].mxu0 %vm1710_vm2, %v11243_v28 }
 0x747   : > { %9291 = vmatprep.mubr.msk.f32.mxu0 %vm1710_vm2, %v5799_v58 }
 0x74a   : > { %9292 = vmatmul.mubr.msk.f32.gmra.mrb[46].mxu0 %vm1710_vm2, %v7031_v25 }
 0x791   : > { %v9044_v54 = vpop.f32.mrb[24].mxu0 }
 0x792   : > { %v5334_v57 = vadd.f32 %v9044_v54, %v11356_v30  ;;  %v5279_v26 = vpop.f32.mrb[25].mxu0 }
 0x793   : > { %v5333_v60 = vadd.f32 %v11356_v30, %v5279_v26  ;;  %v9204_v1 = vpop.f32.mrb[20].mxu1 }
 0x794   : > { %v5342_v42 = vmax.f32 %v5334_v57, 0.0  ;;  %v6566_v32 = vadd.f32 %v9204_v1, %v11356_v30  ;;  %v6511_v44 = vpop.f32.mrb[21].mxu1 }
 0x795   : > { %v5341_v7 = vmax.f32 %v5333_v60, 0.0  ;;  %v6565_v11 = vadd.f32 %v11356_v30, %v6511_v44  ;;  %v9047_v45 = vpop.f32.mrb[26].mxu0 }
 0x796   : > { %5351 = vst.msk [vmem:[%s11362_s24 + $0x8] sm:$0xff] %vm5349_vm5, %v5342_v42  ;;  %v6574_v48 = vmax.f32 %v6566_v32, 0.0  ;;  %v5336_v49 = vadd.f32 %v9047_v45, %v11356_v30  ;;  %v5289_v15 = vpop.f32.mrb[27].mxu0 }
 0x797   : > { %5350 = vst.msk [vmem:[%s11362_s24] sm:$0xff] %vm5349_vm5, %v5341_v7  ;;  %v6573_v50 = vmax.f32 %v6565_v11, 0.0  ;;  %v5335_v51 = vadd.f32 %v11356_v30, %v5289_v15  ;;  %v9207_v52 = vpop.f32.mrb[22].mxu1 }
 0x798   : > { %7899 = vst.msk [vmem:[%s11362_s24 + $0x88] sm:$0xff] %vm5349_vm5, %v6574_v48  ;;  %v5344_v56 = vmax.f32 %v5336_v49, 0.0  ;;  %v6568_v53 = vadd.f32 %v9207_v52, %v11356_v30  ;;  %v6521_v40 = vpop.f32.mrb[23].mxu1 }
 0x799   : > { %7898 = vst.msk [vmem:[%s11362_s24 + $0x80] sm:$0xff] %vm5349_vm5, %v6573_v50  ;;  %v5343_v19 = vmax.f32 %v5335_v51, 0.0  ;;  %v6567_v21 = vadd.f32 %v11356_v30, %v6521_v40  ;;  %v9050_v39 = vpop.f32.mrb[28].mxu0 }
 0x79a   : > { %5353 = vst.msk [vmem:[%s11362_s24 + $0x18] sm:$0xff] %vm5349_vm5, %v5344_v56  ;;  %v6576_v43 = vmax.f32 %v6568_v53, 0.0  ;;  %v5338_v35 = vadd.f32 %v9050_v39, %v11356_v30  ;;  %v5299_v23 = vpop.f32.mrb[29].mxu0 }
 0x79b   : > { %5352 = vst.msk [vmem:[%s11362_s24 + $0x10] sm:$0xff] %vm5349_vm5, %v5343_v19  ;;  %v6575_v10 = vmax.f32 %v6567_v21, 0.0  ;;  %v5337_v28 = vadd.f32 %v11356_v30, %v5299_v23  ;;  %v9210_v29 = vpop.f32.mrb[24].mxu1 }
 0x79c   : > { %7901 = vst.msk [vmem:[%s11362_s24 + $0x98] sm:$0xff] %vm5349_vm5, %v6576_v43  ;;  %v5346_v31 = vmax.f32 %v5338_v35, 0.0  ;;  %v6570_v55 = vadd.f32 %v9210_v29, %v11356_v30  ;;  %v6531_v59 = vpop.f32.mrb[25].mxu1 }
 0x79d   : > { %7900 = vst.msk [vmem:[%s11362_s24 + $0x90] sm:$0xff] %vm5349_vm5, %v6575_v10  ;;  %v5345_v61 = vmax.f32 %v5337_v28, 0.0  ;;  %v6569_v63 = vadd.f32 %v11356_v30, %v6531_v59  ;;  %v9053_v17 = vpop.f32.mrb[30].mxu0 }
 0x79e   : > { %5355 = vst.msk [vmem:[%s11362_s24 + $0x28] sm:$0xff] %vm5349_vm5, %v5346_v31  ;;  %v6578_v2 = vmax.f32 %v6570_v55, 0.0  ;;  %v5340_v3 = vadd.f32 %v9053_v17, %v11356_v30  ;;  %v5309_v4 = vpop.f32.mrb[31].mxu0 }
 0x79f   : > { %5354 = vst.msk [vmem:[%s11362_s24 + $0x20] sm:$0xff] %vm5349_vm5, %v5345_v61  ;;  %v6577_v5 = vmax.f32 %v6569_v63, 0.0  ;;  %v5339_v47 = vadd.f32 %v11356_v30, %v5309_v4  ;;  %v9213_v6 = vpop.f32.mrb[26].mxu1  ;;  %v7307_v63 = vld [vmem:[%s11362_s24 + $0x8] sm:$0xff] (%p11571_p2) }
 0x7a0   : > { %7903 = vst.msk [vmem:[%s11362_s24 + $0xa8] sm:$0xff] %vm5349_vm5, %v6578_v2  ;;  %v5348_v8 = vmax.f32 %v5340_v3, 0.0  ;;  %v6572_v12 = vadd.f32 %v9213_v6, %v11356_v30  ;;  %v6541_v13 = vpop.f32.mrb[27].mxu1  ;;  %7308 = vst [vmem:[%s11465_s14 + $0x8] sm:$0xff] (%p11571_p2), %v7307_v63 }
 0x7a1   : > { %7902 = vst.msk [vmem:[%s11362_s24 + $0xa0] sm:$0xff] %vm5349_vm5, %v6577_v5  ;;  %v5347_v14 = vmax.f32 %v5339_v47, 0.0  ;;  %v6571_v16 = vadd.f32 %v11356_v30, %v6541_v13  ;;  %v7311_v2 = vld [vmem:[%s11362_s24 + $0x18] sm:$0xff] (%p11571_p2) }
 0x7a2   : > { %5357 = vst.msk [vmem:[%s11362_s24 + $0x38] sm:$0xff] %vm5349_vm5, %v5348_v8  ;;  %v6580_v58 = vmax.f32 %v6572_v12, 0.0  ;;  %v7309_v17 = vld [vmem:[%s11362_s24 + $0x10] sm:$0xff] (%p11571_p2)  ;;  %7312 = vst [vmem:[%s11465_s14 + $0x18] sm:$0xff] (%p11571_p2), %v7311_v2 }
 0x7a3   : > { %5356 = vst.msk [vmem:[%s11362_s24 + $0x30] sm:$0xff] %vm5349_vm5, %v5347_v14  ;;  %v6579_v18 = vmax.f32 %v6571_v16, 0.0  ;;  %7310 = vst [vmem:[%s11465_s14 + $0x10] sm:$0xff] (%p11571_p2), %v7309_v17 }
 0x7a4   : > { %7905 = vst.msk [vmem:[%s11362_s24 + $0xb8] sm:$0xff] %vm5349_vm5, %v6580_v58 }
 0x7a5   : > { %7904 = vst.msk [vmem:[%s11362_s24 + $0xb0] sm:$0xff] %vm5349_vm5, %v6579_v18  ;;  %v7315_v4 = vld [vmem:[%s11362_s24 + $0x28] sm:$0xff] (%p11571_p2) }
 0x7a6   : > { %v7313_v3 = vld [vmem:[%s11362_s24 + $0x20] sm:$0xff] (%p11571_p2)  ;;  %7316 = vst [vmem:[%s11465_s14 + $0x28] sm:$0xff] (%p11571_p2), %v7315_v4 }
 0x7a7   : > { %7314 = vst [vmem:[%s11465_s14 + $0x20] sm:$0xff] (%p11571_p2), %v7313_v3 }
 0x7a9   : > { %v7319_v47 = vld [vmem:[%s11362_s24 + $0x38] sm:$0xff] (%p11571_p2) }
 0x7aa   : > { %v7317_v5 = vld [vmem:[%s11362_s24 + $0x30] sm:$0xff] (%p11571_p2)  ;;  %7320 = vst [vmem:[%s11465_s14 + $0x38] sm:$0xff] (%p11571_p2), %v7319_v47 }
 0x7ab   : > { %7318 = vst [vmem:[%s11465_s14 + $0x30] sm:$0xff] (%p11571_p2), %v7317_v5 }
 0x7d1   : > { %v9124_v20 = vpop.f32.mrb[32].mxu0 }
 0x7d2   : > { %v5950_v24 = vadd.f32 %v9124_v20, %v11356_v30  ;;  %v5895_v62 = vpop.f32.mrb[33].mxu0  ;;  %v7337_v20 = vld [vmem:[%s11362_s24 + $0x80] sm:$0xff] (%p11571_p2) }
 0x7d3   : > { %v5949_v0 = vadd.f32 %v11356_v30, %v5895_v62  ;;  %7338 = vst [vmem:[%s11465_s14 + $0x100] sm:$0xff] (%p11571_p2), %v7337_v20  ;;  %v7341_v62 = vld [vmem:[%s11362_s24 + $0x90] sm:$0xff] (%p11571_p2) }
 0x7d4   : > { %v5958_v27 = vmax.f32 %v5950_v24, 0.0  ;;  %v7339_v24 = vld [vmem:[%s11362_s24 + $0x88] sm:$0xff] (%p11571_p2)  ;;  %7342 = vst [vmem:[%s11465_s14 + $0x110] sm:$0xff] (%p11571_p2), %v7341_v62 }
 0x7d5   : > { %v5957_v33 = vmax.f32 %v5949_v0, 0.0  ;;  %v9127_v34 = vpop.f32.mrb[34].mxu0  ;;  %7340 = vst [vmem:[%s11465_s14 + $0x108] sm:$0xff] (%p11571_p2), %v7339_v24  ;;  %v7343_v0 = vld [vmem:[%s11362_s24 + $0x98] sm:$0xff] (%p11571_p2) }
 0x7d6   : > { %7858 = vst.msk [vmem:[%s11362_s24 + $0x48] sm:$0xff] %vm5349_vm5, %v5958_v27  ;;  %v5952_v9 = vadd.f32 %v9127_v34, %v11356_v30  ;;  %v5905_v36 = vpop.f32.mrb[35].mxu0  ;;  %v7345_v27 = vld [vmem:[%s11362_s24 + $0xa0] sm:$0xff] (%p11571_p2)  ;;  %7344 = vst [vmem:[%s11465_s14 + $0x118] sm:$0xff] (%p11571_p2), %v7343_v0  ;;  %v7349_v34 = vld [vmem:[%s11362_s24 + $0xb0] sm:$0xff] (%p11571_p2) }
 0x7d7   : > { %7857 = vst.msk [vmem:[%s11362_s24 + $0x40] sm:$0xff] %vm5349_vm5, %v5957_v33  ;;  %v5951_v37 = vadd.f32 %v11356_v30, %v5905_v36  ;;  %7346 = vst [vmem:[%s11465_s14 + $0x120] sm:$0xff] (%p11571_p2), %v7345_v27  ;;  %v7347_v33 = vld [vmem:[%s11362_s24 + $0xa8] sm:$0xff] (%p11571_p2) }
 0x7d8   : > { %v5960_v38 = vmax.f32 %v5952_v9, 0.0  ;;  %v7351_v9 = vld [vmem:[%s11362_s24 + $0xb8] sm:$0xff] (%p11571_p2)  ;;  %7348 = vst [vmem:[%s11465_s14 + $0x128] sm:$0xff] (%p11571_p2), %v7347_v33  ;;  %7350 = vst [vmem:[%s11465_s14 + $0x130] sm:$0xff] (%p11571_p2), %v7349_v34 }
 0x7d9   : > { %v5959_v46 = vmax.f32 %v5951_v37, 0.0  ;;  %v9130_v41 = vpop.f32.mrb[36].mxu0  ;;  %7352 = vst [vmem:[%s11465_s14 + $0x138] sm:$0xff] (%p11571_p2), %v7351_v9 }
 0x7da   : > { %7860 = vst.msk [vmem:[%s11362_s24 + $0x58] sm:$0xff] %vm5349_vm5, %v5960_v38  ;;  %v5954_v22 = vadd.f32 %v9130_v41, %v11356_v30  ;;  %v5915_v25 = vpop.f32.mrb[37].mxu0 }
 0x7db   : > { %7859 = vst.msk [vmem:[%s11362_s24 + $0x50] sm:$0xff] %vm5349_vm5, %v5959_v46  ;;  %v5953_v54 = vadd.f32 %v11356_v30, %v5915_v25 }
 0x7dc   : > { %v5962_v57 = vmax.f32 %v5954_v22, 0.0 }
 0x7dd   : > { %v5961_v26 = vmax.f32 %v5953_v54, 0.0  ;;  %v9133_v60 = vpop.f32.mrb[38].mxu0  ;;  %v7323_v8 = vld [vmem:[%s11362_s24 + $0x48] sm:$0xff] (%p11571_p2) }
 0x7de   : > { %7862 = vst.msk [vmem:[%s11362_s24 + $0x68] sm:$0xff] %vm5349_vm5, %v5962_v57  ;;  %v5956_v1 = vadd.f32 %v9133_v60, %v11356_v30  ;;  %v5925_v42 = vpop.f32.mrb[39].mxu0  ;;  %v7321_v6 = vld [vmem:[%s11362_s24 + $0x40] sm:$0xff] (%p11571_p2)  ;;  %7324 = vst [vmem:[%s11465_s14 + $0x88] sm:$0xff] (%p11571_p2), %v7323_v8 }
 0x7df   : > { %7861 = vst.msk [vmem:[%s11362_s24 + $0x60] sm:$0xff] %vm5349_vm5, %v5961_v26  ;;  %v5955_v32 = vadd.f32 %v11356_v30, %v5925_v42  ;;  %7322 = vst [vmem:[%s11465_s14 + $0x80] sm:$0xff] (%p11571_p2), %v7321_v6 }
 0x7e0   : > { %v5964_v44 = vmax.f32 %v5956_v1, 0.0 }
 0x7e1   : > { %v5963_v7 = vmax.f32 %v5955_v32, 0.0  ;;  %v7327_v13 = vld [vmem:[%s11362_s24 + $0x58] sm:$0xff] (%p11571_p2) }
 0x7e2   : > { %7864 = vst.msk [vmem:[%s11362_s24 + $0x78] sm:$0xff] %vm5349_vm5, %v5964_v44  ;;  %v7325_v12 = vld [vmem:[%s11362_s24 + $0x50] sm:$0xff] (%p11571_p2)  ;;  %7328 = vst [vmem:[%s11465_s14 + $0x98] sm:$0xff] (%p11571_p2), %v7327_v13 }
 0x7e3   : > { %7863 = vst.msk [vmem:[%s11362_s24 + $0x70] sm:$0xff] %vm5349_vm5, %v5963_v7  ;;  %7326 = vst [vmem:[%s11465_s14 + $0x90] sm:$0xff] (%p11571_p2), %v7325_v12 }
 0x7e5   : > { %v7331_v16 = vld [vmem:[%s11362_s24 + $0x68] sm:$0xff] (%p11571_p2) }
 0x7e6   : > { %v7329_v14 = vld [vmem:[%s11362_s24 + $0x60] sm:$0xff] (%p11571_p2)  ;;  %7332 = vst [vmem:[%s11465_s14 + $0xa8] sm:$0xff] (%p11571_p2), %v7331_v16 }
 0x7e7   : > { %7330 = vst [vmem:[%s11465_s14 + $0xa0] sm:$0xff] (%p11571_p2), %v7329_v14 }
 0x7e9   : > { %v7335_v18 = vld [vmem:[%s11362_s24 + $0x78] sm:$0xff] (%p11571_p2) }
 0x7ea   : > { %v7333_v58 = vld [vmem:[%s11362_s24 + $0x70] sm:$0xff] (%p11571_p2)  ;;  %7336 = vst [vmem:[%s11465_s14 + $0xb8] sm:$0xff] (%p11571_p2), %v7335_v18 }
 0x7eb   : > { %7334 = vst [vmem:[%s11465_s14 + $0xb0] sm:$0xff] (%p11571_p2), %v7333_v58 }
 0x811   : > { %v9284_v11 = vpop.f32.mrb[40].mxu0 }
 0x812   : > { %v7182_v45 = vadd.f32 %v9284_v11, %v11356_v30  ;;  %v7127_v48 = vpop.f32.mrb[41].mxu0 }
 0x813   : > { %v7181_v49 = vadd.f32 %v11356_v30, %v7127_v48 }
 0x814   : > { %v7190_v15 = vmax.f32 %v7182_v45, 0.0 }
 0x815   : > { %v7189_v50 = vmax.f32 %v7181_v49, 0.0  ;;  %v9287_v51 = vpop.f32.mrb[42].mxu0 }
 0x816   : > { %7940 = vst.msk [vmem:[%s11362_s24 + $0xc8] sm:$0xff] %vm5349_vm5, %v7190_v15  ;;  %v7184_v52 = vadd.f32 %v9287_v51, %v11356_v30  ;;  %v7137_v56 = vpop.f32.mrb[43].mxu0 }
 0x817   : > { %7939 = vst.msk [vmem:[%s11362_s24 + $0xc0] sm:$0xff] %vm5349_vm5, %v7189_v50  ;;  %v7183_v53 = vadd.f32 %v11356_v30, %v7137_v56 }
 0x818   : > { %v7192_v40 = vmax.f32 %v7184_v52, 0.0 }
 0x819   : > { %v7191_v19 = vmax.f32 %v7183_v53, 0.0  ;;  %v9290_v21 = vpop.f32.mrb[44].mxu0 }
 0x81a   : > { %7942 = vst.msk [vmem:[%s11362_s24 + $0xd8] sm:$0xff] %vm5349_vm5, %v7192_v40  ;;  %v7186_v39 = vadd.f32 %v9290_v21, %v11356_v30  ;;  %v7147_v43 = vpop.f32.mrb[45].mxu0 }
 0x81b   : > { %7941 = vst.msk [vmem:[%s11362_s24 + $0xd0] sm:$0xff] %vm5349_vm5, %v7191_v19  ;;  %v7185_v35 = vadd.f32 %v11356_v30, %v7147_v43 }
 0x81c   : > { %v7194_v23 = vmax.f32 %v7186_v39, 0.0 }
 0x81d   : > { %v7193_v10 = vmax.f32 %v7185_v35, 0.0  ;;  %v9293_v28 = vpop.f32.mrb[46].mxu0  ;;  %7212 = sbr.rel (!%p11571_p2) target bundleno = 2092 (0x82c), region = 76  ;;  %v7355_v37 = vld [vmem:[%s11362_s24 + $0xc8] sm:$0xff] (%p11571_p2) }
 0x81e   : > { %7944 = vst.msk [vmem:[%s11362_s24 + $0xe8] sm:$0xff] %vm5349_vm5, %v7194_v23  ;;  %v7188_v29 = vadd.f32 %v9293_v28, %v11356_v30  ;;  %v7157_v31 = vpop.f32.mrb[47].mxu0  ;;  %v7353_v36 = vld [vmem:[%s11362_s24 + $0xc0] sm:$0xff] (%p11571_p2)  ;;  %7356 = vst [vmem:[%s11465_s14 + $0x188] sm:$0xff] (%p11571_p2), %v7355_v37 }
 0x81f   : > { %7943 = vst.msk [vmem:[%s11362_s24 + $0xe0] sm:$0xff] %vm5349_vm5, %v7193_v10  ;;  %v7187_v55 = vadd.f32 %v11356_v30, %v7157_v31  ;;  %v7305_v30 = vld [vmem:[%s11362_s24] sm:$0xff] (%p11571_p2)  ;;  %7354 = vst [vmem:[%s11465_s14 + $0x180] sm:$0xff] (%p11571_p2), %v7353_v36 }
 0x820   : > { %v7196_v59 = vmax.f32 %v7188_v29, 0.0  ;;  %7306 = vst [vmem:[%s11465_s14] sm:$0xff] (%p11571_p2), %v7305_v30 }
 0x821   : > { %v7195_v61 = vmax.f32 %v7187_v55, 0.0  ;;  %v7359_v46 = vld [vmem:[%s11362_s24 + $0xd8] sm:$0xff] (%p11571_p2) }
 0x822   : > { %7946 = vst.msk [vmem:[%s11362_s24 + $0xf8] sm:$0xff] %vm5349_vm5, %v7196_v59  ;;  %v7357_v38 = vld [vmem:[%s11362_s24 + $0xd0] sm:$0xff] (%p11571_p2)  ;;  %7360 = vst [vmem:[%s11465_s14 + $0x198] sm:$0xff] (%p11571_p2), %v7359_v46 }
 0x823   : > { %7945 = vst.msk [vmem:[%s11362_s24 + $0xf0] sm:$0xff] %vm5349_vm5, %v7195_v61  ;;  %7358 = vst [vmem:[%s11465_s14 + $0x190] sm:$0xff] (%p11571_p2), %v7357_v38 }
 0x825   : > { %v7363_v22 = vld [vmem:[%s11362_s24 + $0xe8] sm:$0xff] }
 0x826   : > { %v7361_v41 = vld [vmem:[%s11362_s24 + $0xe0] sm:$0xff]  ;;  %7364 = vst [vmem:[%s11465_s14 + $0x1a8] sm:$0xff] %v7363_v22 }
 0x827   : > { %7362 = vst [vmem:[%s11465_s14 + $0x1a0] sm:$0xff] %v7361_v41 }
 0x829   : > { %v7367_v54 = vld [vmem:[%s11362_s24 + $0xf8] sm:$0xff] }
 0x82a   : > { %v7365_v25 = vld [vmem:[%s11362_s24 + $0xf0] sm:$0xff]  ;;  %7368 = vst [vmem:[%s11465_s14 + $0x1b8] sm:$0xff] %v7367_v54 }
 0x82b   : > { %7366 = vst [vmem:[%s11465_s14 + $0x1b0] sm:$0xff] %v7365_v25 }
 0x82c PF: > { %p18_p3 = scmp.ge.s32.totalorder %s10221_s28, 4   ;;  %s11572_s24 = smov %s10149_s25 }
 0x82d   : > { %s11573_s25 = smov %s10229_s8  ;;  %s11574_s26 = smov %s10221_s28 }
 0x82e   :  { %20 = sbr.rel (!%p18_p3) target bundleno = 8 (0x8), region = 189 }
 0x835   :  { %7384 = vsyncpa [#allocation4], 1 }
 0x836   :  { %7386 = vsyncpa [#allocation4 + $0x1], 1 }
 0x837   :  { %7387 = vsyncpa [#allocation6], 1 }
 0x838   :  { %7388 = vsyncpa [#allocation9], 1 }
 0x839   :  { %7389 = vsyncpa [#allocation12], 1 }

</bundles_post_ra>
